<compile_context>
chip_gen: v5e
topology: v5e:2x2
jax: 0.10.0
libtpu: 0.0.40
codegen_flags: <defaults>
</compile_context>

<pallas_src>
import functools

import jax
import jax.numpy as jnp
from jax.experimental import pallas as pl
from jax.experimental.pallas import tpu as pltpu


FC1_WEIGHT_DTYPE = jnp.bfloat16   # halves the dominant 22 MB HBM stream
_CH_PAD = 8                       # pad tiny channel counts to one sublane group


# ----------------------------------------------------------------------------
# Fused conv2d (valid, stride 1) + ReLU + 2x2/2 max-pool.
# Layout: x (B, H, Cin, W), w (Cout, KH*KW*Cin), out (B, Hp, Cout, Wp).
# Per pooled row: two merged-K conv matmuls, row max, even/odd column
# selection via exact 0/1 matmuls, then bias + ReLU, one lane-dense store.
# ----------------------------------------------------------------------------
def _conv_relu_pool_kernel(x_ref, w_ref, b_ref, o_ref, *, KH, KW, Wout, Hp, Wp):
    cout = w_ref.shape[0]
    w_mat = w_ref[...]                                            # hoisted
    bias = jnp.broadcast_to(b_ref[...], (cout, Wp))               # hoisted bcast

    # 0/1 selection matrices picking even / odd output columns (width pooling).
    r_i = jax.lax.broadcasted_iota(jnp.int32, (Wout, Wp), 0)
    c_i = jax.lax.broadcasted_iota(jnp.int32, (Wout, Wp), 1)
    sel_e = (r_i == 2 * c_i).astype(jnp.float32)
    sel_o = (r_i == 2 * c_i + 1).astype(jnp.float32)

    def body(hp, carry):
        h0 = 2 * hp
        # The two conv rows of this pooled row share KH-1 input rows.
        rows = [x_ref[0, h0 + r] for r in range(KH + 1)]          # (Cin, W) each

        def conv_row(base):
            # im2col RHS (KH*KW*Cin, Wout); K order = (kh, kw, ci), all pieces
            # are 8/16 sublanes tall so the concat is sublane-aligned.
            pieces = [rows[base + kh][:, kw:kw + Wout]
                      for kh in range(KH) for kw in range(KW)]
            rhs = jnp.concatenate(pieces, axis=0)
            return jnp.dot(w_mat, rhs, preferred_element_type=jnp.float32)

        m = jnp.maximum(conv_row(0), conv_row(1))                 # (Cout, Wout)
        pooled = jnp.maximum(
            jnp.dot(m, sel_e, preferred_element_type=jnp.float32),
            jnp.dot(m, sel_o, preferred_element_type=jnp.float32))  # (Cout, Wp)
        o_ref[0, hp] = jnp.maximum(pooled + bias, 0.0)            # bias/relu after pool
        return carry

    jax.lax.fori_loop(0, Hp, body, 0)


def conv_relu_pool(x, w_mat, b_col, *, KH, KW):
    B, H, Cin, W = x.shape
    Cout, K = w_mat.shape
    assert K == KH * KW * Cin
    Hout, Wout = H - KH + 1, W - KW + 1
    assert Hout % 2 == 0 and Wout % 2 == 0
    Hp, Wp = Hout // 2, Wout // 2
    kernel = functools.partial(_conv_relu_pool_kernel, KH=KH, KW=KW,
                               Wout=Wout, Hp=Hp, Wp=Wp)
    return pl.pallas_call(
        kernel,
        out_shape=jax.ShapeDtypeStruct((B, Hp, Cout, Wp), jnp.float32),
        grid_spec=pltpu.PrefetchScalarGridSpec(
            num_scalar_prefetch=0,
            grid=(B,),
            in_specs=[
                pl.BlockSpec((1, H, Cin, W), lambda b: (b, 0, 0, 0)),
                pl.BlockSpec((Cout, K), lambda b: (0, 0)),
                pl.BlockSpec((Cout, 1), lambda b: (0, 0)),
            ],
            out_specs=pl.BlockSpec((1, Hp, Cout, Wp), lambda b: (b, 0, 0, 0)),
        ),
        compiler_params=pltpu.CompilerParams(
            dimension_semantics=("parallel",),      # megacore over batch (v7x)
        ),
    )(x, w_mat, b_col)


# ----------------------------------------------------------------------------
# Fused fc1 -> relu -> fc2 -> relu -> fc3.
# fc1 is K-tiled (weight streamed, optionally bf16) with an f32 VMEM
# accumulator; fc2/fc3 weights stay resident and run in the final K-step.
# ----------------------------------------------------------------------------
def _fc_fused_kernel(x_ref, w1_ref, b1_ref, w2_ref, b2_ref, w3_ref, b3_ref,
                     o_ref, acc_ref):
    k = pl.program_id(0)

    @pl.when(k == 0)
    def _():
        acc_ref[...] = jnp.zeros_like(acc_ref)

    acc_ref[...] += jnp.dot(x_ref[...].astype(w1_ref.dtype), w1_ref[...],
                            preferred_element_type=jnp.float32)

    @pl.when(k == pl.num_programs(0) - 1)
    def _():
        h1 = jnp.maximum(acc_ref[...] + b1_ref[...], 0.0)         # f32 epilogue
        h2 = jnp.maximum(
            jnp.dot(h1, w2_ref[...], preferred_element_type=jnp.float32)
            + b2_ref[...], 0.0)
        o_ref[...] = (jnp.dot(h2, w3_ref[...],
                              preferred_element_type=jnp.float32)
                      + b3_ref[...])


def fc_fused(x, w1, b1, w2, b2, w3, b3, *, tk=512):
    B, Kp = x.shape
    assert Kp == w1.shape[0] and Kp % tk == 0
    nk = Kp // tk
    N1, N2, N3 = w1.shape[1], w2.shape[1], w3.shape[1]
    return pl.pallas_call(
        _fc_fused_kernel,
        out_shape=jax.ShapeDtypeStruct((B, N3), jnp.float32),
        grid_spec=pltpu.PrefetchScalarGridSpec(
            num_scalar_prefetch=0,
            grid=(nk,),
            in_specs=[
                pl.BlockSpec((B, tk), lambda k: (0, k)),
                pl.BlockSpec((tk, N1), lambda k: (k, 0)),
                pl.BlockSpec((1, N1), lambda k: (0, 0)),
                pl.BlockSpec((N1, N2), lambda k: (0, 0)),
                pl.BlockSpec((1, N2), lambda k: (0, 0)),
                pl.BlockSpec((N2, N3), lambda k: (0, 0)),
                pl.BlockSpec((1, N3), lambda k: (0, 0)),
            ],
            out_specs=pl.BlockSpec((B, N3), lambda k: (0, 0)),
            scratch_shapes=[pltpu.VMEM((B, N1), jnp.float32)],
        ),
        compiler_params=pltpu.CompilerParams(
            dimension_semantics=("arbitrary",),     # K is a reduction axis
        ),
    )(x, w1, b1, w2, b2, w3, b3)


# ----------------------------------------------------------------------------
# Parameters (PyTorch-shaped) and one-time re-layout (outside the jit).
# ----------------------------------------------------------------------------
def init_params(key):
    ks = jax.random.split(key, 12)

    def w_init(k, shape, fan_in):
        return (jax.random.normal(k, shape, jnp.float32) /
                jnp.sqrt(jnp.float32(fan_in)))

    def b_init(k, shape):
        return 0.01 * jax.random.normal(k, shape, jnp.float32)

    return {
        "conv1": (w_init(ks[0], (6, 6, 5, 5), 6 * 5 * 5), b_init(ks[1], (6,))),
        "conv2": (w_init(ks[2], (16, 6, 3, 3), 6 * 3 * 3), b_init(ks[3], (16,))),
        "conv3": (w_init(ks[4], (8, 16, 3, 3), 16 * 3 * 3), b_init(ks[5], (8,))),
        "fc1": (w_init(ks[6], (1024, 5408), 5408), b_init(ks[7], (1024,))),
        "fc2": (w_init(ks[8], (500, 1024), 1024), b_init(ks[9], (500,))),
        "fc3": (w_init(ks[10], (2, 500), 500), b_init(ks[11], (2,))),
    }


def _prep_conv(w_oihw, b, cin_pad, cout_pad):
    O, I, KH, KW = w_oihw.shape
    w = jnp.pad(w_oihw, ((0, cout_pad - O), (0, cin_pad - I), (0, 0), (0, 0)))
    w = jnp.transpose(w, (0, 2, 3, 1)).reshape(cout_pad, KH * KW * cin_pad)
    b = jnp.pad(b, (0, cout_pad - O)).reshape(cout_pad, 1)
    return w, b


def prepare_params(params, *, fc1_ktile=512):
    """One-time weight re-layout (run outside the jitted forward).
    Conv OIHW -> (Cout_pad, KH*KW*Cin_pad) with zero channel padding (exact);
    fc (out,in) -> (in, out), fc1 K zero-padded to a tile multiple + cast."""
    p = {}
    p["conv1"] = _prep_conv(*params["conv1"], cin_pad=_CH_PAD, cout_pad=_CH_PAD)
    p["conv2"] = _prep_conv(*params["conv2"], cin_pad=_CH_PAD, cout_pad=16)
    p["conv3"] = _prep_conv(*params["conv3"], cin_pad=16, cout_pad=8)

    (w1, b1), (w2, b2), (w3, b3) = params["fc1"], params["fc2"], params["fc3"]
    k1 = w1.shape[1]
    k1_pad = ((k1 + fc1_ktile - 1) // fc1_ktile) * fc1_ktile
    w1t = jnp.pad(w1.T, ((0, k1_pad - k1), (0, 0))).astype(FC1_WEIGHT_DTYPE)
    p["fc"] = (w1t, b1.reshape(1, -1),
               w2.T, b2.reshape(1, -1),
               w3.T, b3.reshape(1, -1))
    return p


# ----------------------------------------------------------------------------
# Forward (matches TargetDetector.forward semantics).
# ----------------------------------------------------------------------------
def target_detector_forward(prepped, cur_obs, goal_description):
    # torch: x = cat((goal_description, cur_obs), dim=1)  -> (B, 6, H, W)
    x = jnp.concatenate([goal_description, cur_obs], axis=1)
    B = x.shape[0]
    # Pad channels to 8 (zeros, exact) and go to lane-dense (B, H, C, W).
    x = jnp.pad(x, ((0, 0), (0, _CH_PAD - x.shape[1]), (0, 0), (0, 0)))
    x = jnp.transpose(x, (0, 2, 1, 3))

    x = conv_relu_pool(x, *prepped["conv1"], KH=5, KW=5)   # (B, 110,  8, 110)
    x = conv_relu_pool(x, *prepped["conv2"], KH=3, KW=3)   # (B,  54, 16,  54)
    x = conv_relu_pool(x, *prepped["conv3"], KH=3, KW=3)   # (B,  26,  8,  26)

    # x.view(B, -1) in PyTorch NCHW order.
    x = jnp.transpose(x, (0, 2, 1, 3)).reshape(B, -1)      # (B, 5408)

    w1, b1, w2, b2, w3, b3 = prepped["fc"]
    x = jnp.pad(x, ((0, 0), (0, w1.shape[0] - x.shape[1])))  # zero K pad (exact)
    return fc_fused(x, w1, b1, w2, b2, w3, b3)


if __name__ == "__main__":
    key = jax.random.PRNGKey(0)
    k1, k2, kp = jax.random.split(key, 3)
    B = 2
    # 224x224 is forced by fc1's in_features = 5408 = 8*26*26.
    cur_obs = jax.random.normal(k1, (B, 3, 224, 224), jnp.float32)
    goal_description = jax.random.normal(k2, (B, 3, 224, 224), jnp.float32)

    params = init_params(kp)
    prepped = prepare_params(params)          # one-time re-layout, outside jit

    fwd = jax.jit(target_detector_forward)
    out = jax.block_until_ready(fwd(prepped, cur_obs, goal_description))

    assert out.shape == (B, 2), out.shape
    assert bool(jnp.all(jnp.isfinite(out)))
    print("KERNEL_OK")
</pallas_src>

<mosaic_0001>
module attributes {stable_mosaic.version = 11 : i64} {
  func.func @_conv_relu_pool_kernel(%arg0: i32, %arg1: memref<1x224x8x224xf32, #tpu.memory_space<vmem>>, %arg2: memref<8x200xf32, #tpu.memory_space<vmem>>, %arg3: memref<8x1xf32, #tpu.memory_space<vmem>>, %arg4: memref<1x110x8x110xf32, #tpu.memory_space<vmem>>) attributes {dimension_semantics = [#tpu.dimension_semantics<parallel>], iteration_bounds = array<i64: 2>, scalar_prefetch = 0 : i64, scratch_operands = 0 : i64, tpu.core_type = #tpu.core_type<tc>, window_params = [{transform_indices = @transform_0, window_bounds = array<i64: 1, 224, 8, 224>}, {pipeline_mode = #tpu.pipeline_mode<synchronous>, transform_indices = @transform_1, window_bounds = array<i64: 8, 200>}, {pipeline_mode = #tpu.pipeline_mode<synchronous>, transform_indices = @transform_2, window_bounds = array<i64: 8, 1>}, {transform_indices = @transform_3, window_bounds = array<i64: 1, 110, 8, 110>}]} {
    %c0 = arith.constant 0 : index
    %c0_0 = arith.constant 0 : index
    %0 = vector.load %arg2[%c0, %c0_0] : memref<8x200xf32, #tpu.memory_space<vmem>>, vector<8x200xf32>
    %c0_1 = arith.constant 0 : index
    %c0_2 = arith.constant 0 : index
    %1 = vector.load %arg3[%c0_1, %c0_2] : memref<8x1xf32, #tpu.memory_space<vmem>>, vector<8x1xf32>
    %2 = vector.shape_cast %1 : vector<8x1xf32> to vector<8x1xf32>
    %3 = vector.broadcast %2 : vector<8x1xf32> to vector<8x110xf32>
    %4 = tpu.iota {dimensions = array<i32: 0>} : vector<220x110xi32>
    %5 = tpu.iota {dimensions = array<i32: 1>} : vector<220x110xi32>
    %c2_i32 = arith.constant 2 : i32
    %6 = vector.broadcast %c2_i32 : i32 to vector<220x110xi32>
    %7 = arith.muli %6, %5 : vector<220x110xi32>
    %8 = arith.cmpi eq, %4, %7 : vector<220x110xi32>
    %9 = arith.extui %8 : vector<220x110xi1> to vector<220x110xi32>
    %10 = arith.sitofp %9 : vector<220x110xi32> to vector<220x110xf32>
    %c2_i32_3 = arith.constant 2 : i32
    %11 = vector.broadcast %c2_i32_3 : i32 to vector<220x110xi32>
    %12 = arith.muli %11, %5 : vector<220x110xi32>
    %c1_i32 = arith.constant 1 : i32
    %13 = vector.broadcast %c1_i32 : i32 to vector<220x110xi32>
    %14 = arith.addi %12, %13 : vector<220x110xi32>
    %15 = arith.cmpi eq, %4, %14 : vector<220x110xi32>
    %16 = arith.extui %15 : vector<220x110xi1> to vector<220x110xi32>
    %17 = arith.sitofp %16 : vector<220x110xi32> to vector<220x110xf32>
    %c0_i32 = arith.constant 0 : i32
    %c110_i32 = arith.constant 110 : i32
    %18 = arith.addi %c0_i32, %c110_i32 : i32
    %c1_i32_4 = arith.constant 1 : i32
    scf.for %arg5 = %c0_i32 to %18 step %c1_i32_4  : i32 {
      %c2_i32_6 = arith.constant 2 : i32
      %19 = arith.muli %c2_i32_6, %arg5 : i32
      %c0_i32_7 = arith.constant 0 : i32
      %20 = arith.addi %19, %c0_i32_7 : i32
      %c0_8 = arith.constant 0 : index
      %21 = arith.index_cast %20 : i32 to index
      %c0_9 = arith.constant 0 : index
      %c0_10 = arith.constant 0 : index
      %22 = vector.load %arg1[%c0_8, %21, %c0_9, %c0_10] : memref<1x224x8x224xf32, #tpu.memory_space<vmem>>, vector<1x1x8x224xf32>
      %23 = vector.shape_cast %22 : vector<1x1x8x224xf32> to vector<8x224xf32>
      %c1_i32_11 = arith.constant 1 : i32
      %24 = arith.addi %19, %c1_i32_11 : i32
      %c0_12 = arith.constant 0 : index
      %25 = arith.index_cast %24 : i32 to index
      %c0_13 = arith.constant 0 : index
      %c0_14 = arith.constant 0 : index
      %26 = vector.load %arg1[%c0_12, %25, %c0_13, %c0_14] : memref<1x224x8x224xf32, #tpu.memory_space<vmem>>, vector<1x1x8x224xf32>
      %27 = vector.shape_cast %26 : vector<1x1x8x224xf32> to vector<8x224xf32>
      %c2_i32_15 = arith.constant 2 : i32
      %28 = arith.addi %19, %c2_i32_15 : i32
      %c0_16 = arith.constant 0 : index
      %29 = arith.index_cast %28 : i32 to index
      %c0_17 = arith.constant 0 : index
      %c0_18 = arith.constant 0 : index
      %30 = vector.load %arg1[%c0_16, %29, %c0_17, %c0_18] : memref<1x224x8x224xf32, #tpu.memory_space<vmem>>, vector<1x1x8x224xf32>
      %31 = vector.shape_cast %30 : vector<1x1x8x224xf32> to vector<8x224xf32>
      %c3_i32 = arith.constant 3 : i32
      %32 = arith.addi %19, %c3_i32 : i32
      %c0_19 = arith.constant 0 : index
      %33 = arith.index_cast %32 : i32 to index
      %c0_20 = arith.constant 0 : index
      %c0_21 = arith.constant 0 : index
      %34 = vector.load %arg1[%c0_19, %33, %c0_20, %c0_21] : memref<1x224x8x224xf32, #tpu.memory_space<vmem>>, vector<1x1x8x224xf32>
      %35 = vector.shape_cast %34 : vector<1x1x8x224xf32> to vector<8x224xf32>
      %c4_i32 = arith.constant 4 : i32
      %36 = arith.addi %19, %c4_i32 : i32
      %c0_22 = arith.constant 0 : index
      %37 = arith.index_cast %36 : i32 to index
      %c0_23 = arith.constant 0 : index
      %c0_24 = arith.constant 0 : index
      %38 = vector.load %arg1[%c0_22, %37, %c0_23, %c0_24] : memref<1x224x8x224xf32, #tpu.memory_space<vmem>>, vector<1x1x8x224xf32>
      %39 = vector.shape_cast %38 : vector<1x1x8x224xf32> to vector<8x224xf32>
      %c5_i32 = arith.constant 5 : i32
      %40 = arith.addi %19, %c5_i32 : i32
      %c0_25 = arith.constant 0 : index
      %41 = arith.index_cast %40 : i32 to index
      %c0_26 = arith.constant 0 : index
      %c0_27 = arith.constant 0 : index
      %42 = vector.load %arg1[%c0_25, %41, %c0_26, %c0_27] : memref<1x224x8x224xf32, #tpu.memory_space<vmem>>, vector<1x1x8x224xf32>
      %43 = vector.shape_cast %42 : vector<1x1x8x224xf32> to vector<8x224xf32>
      %44 = vector.extract_strided_slice %23 {offsets = [0, 0], sizes = [8, 220], strides = [1, 1]} : vector<8x224xf32> to vector<8x220xf32>
      %45 = vector.extract_strided_slice %23 {offsets = [0, 1], sizes = [8, 220], strides = [1, 1]} : vector<8x224xf32> to vector<8x220xf32>
      %46 = vector.extract_strided_slice %23 {offsets = [0, 2], sizes = [8, 220], strides = [1, 1]} : vector<8x224xf32> to vector<8x220xf32>
      %47 = vector.extract_strided_slice %23 {offsets = [0, 3], sizes = [8, 220], strides = [1, 1]} : vector<8x224xf32> to vector<8x220xf32>
      %48 = vector.extract_strided_slice %23 {offsets = [0, 4], sizes = [8, 220], strides = [1, 1]} : vector<8x224xf32> to vector<8x220xf32>
      %49 = vector.extract_strided_slice %27 {offsets = [0, 0], sizes = [8, 220], strides = [1, 1]} : vector<8x224xf32> to vector<8x220xf32>
      %50 = vector.extract_strided_slice %27 {offsets = [0, 1], sizes = [8, 220], strides = [1, 1]} : vector<8x224xf32> to vector<8x220xf32>
      %51 = vector.extract_strided_slice %27 {offsets = [0, 2], sizes = [8, 220], strides = [1, 1]} : vector<8x224xf32> to vector<8x220xf32>
      %52 = vector.extract_strided_slice %27 {offsets = [0, 3], sizes = [8, 220], strides = [1, 1]} : vector<8x224xf32> to vector<8x220xf32>
      %53 = vector.extract_strided_slice %27 {offsets = [0, 4], sizes = [8, 220], strides = [1, 1]} : vector<8x224xf32> to vector<8x220xf32>
      %54 = vector.extract_strided_slice %31 {offsets = [0, 0], sizes = [8, 220], strides = [1, 1]} : vector<8x224xf32> to vector<8x220xf32>
      %55 = vector.extract_strided_slice %31 {offsets = [0, 1], sizes = [8, 220], strides = [1, 1]} : vector<8x224xf32> to vector<8x220xf32>
      %56 = vector.extract_strided_slice %31 {offsets = [0, 2], sizes = [8, 220], strides = [1, 1]} : vector<8x224xf32> to vector<8x220xf32>
      %57 = vector.extract_strided_slice %31 {offsets = [0, 3], sizes = [8, 220], strides = [1, 1]} : vector<8x224xf32> to vector<8x220xf32>
      %58 = vector.extract_strided_slice %31 {offsets = [0, 4], sizes = [8, 220], strides = [1, 1]} : vector<8x224xf32> to vector<8x220xf32>
      %59 = vector.extract_strided_slice %35 {offsets = [0, 0], sizes = [8, 220], strides = [1, 1]} : vector<8x224xf32> to vector<8x220xf32>
      %60 = vector.extract_strided_slice %35 {offsets = [0, 1], sizes = [8, 220], strides = [1, 1]} : vector<8x224xf32> to vector<8x220xf32>
      %61 = vector.extract_strided_slice %35 {offsets = [0, 2], sizes = [8, 220], strides = [1, 1]} : vector<8x224xf32> to vector<8x220xf32>
      %62 = vector.extract_strided_slice %35 {offsets = [0, 3], sizes = [8, 220], strides = [1, 1]} : vector<8x224xf32> to vector<8x220xf32>
      %63 = vector.extract_strided_slice %35 {offsets = [0, 4], sizes = [8, 220], strides = [1, 1]} : vector<8x224xf32> to vector<8x220xf32>
      %64 = vector.extract_strided_slice %39 {offsets = [0, 0], sizes = [8, 220], strides = [1, 1]} : vector<8x224xf32> to vector<8x220xf32>
      %65 = vector.extract_strided_slice %39 {offsets = [0, 1], sizes = [8, 220], strides = [1, 1]} : vector<8x224xf32> to vector<8x220xf32>
      %66 = vector.extract_strided_slice %39 {offsets = [0, 2], sizes = [8, 220], strides = [1, 1]} : vector<8x224xf32> to vector<8x220xf32>
      %67 = vector.extract_strided_slice %39 {offsets = [0, 3], sizes = [8, 220], strides = [1, 1]} : vector<8x224xf32> to vector<8x220xf32>
      %68 = vector.extract_strided_slice %39 {offsets = [0, 4], sizes = [8, 220], strides = [1, 1]} : vector<8x224xf32> to vector<8x220xf32>
      %69 = tpu.concatenate %44, %45, %46, %47, %48, %49, %50, %51, %52, %53, %54, %55, %56, %57, %58, %59 in 0 : vector<8x220xf32>, vector<8x220xf32>, vector<8x220xf32>, vector<8x220xf32>, vector<8x220xf32>, vector<8x220xf32>, vector<8x220xf32>, vector<8x220xf32>, vector<8x220xf32>, vector<8x220xf32>, vector<8x220xf32>, vector<8x220xf32>, vector<8x220xf32>, vector<8x220xf32>, vector<8x220xf32>, vector<8x220xf32> -> vector<128x220xf32>
      %70 = tpu.concatenate %60, %61, %62, %63, %64, %65, %66, %67, %68 in 0 : vector<8x220xf32>, vector<8x220xf32>, vector<8x220xf32>, vector<8x220xf32>, vector<8x220xf32>, vector<8x220xf32>, vector<8x220xf32>, vector<8x220xf32>, vector<8x220xf32> -> vector<72x220xf32>
      %71 = tpu.concatenate %69, %70 in 0 : vector<128x220xf32>, vector<72x220xf32> -> vector<200x220xf32>
      %cst = arith.constant dense<0.000000e+00> : vector<8x220xf32>
      %72 = tpu.matmul %0, %71, %cst {dimension_numbers = #tpu.dot_dimension_numbers<[1], [0], [0], [1], [0, 0, 1, 1], [], []>} : vector<8x200xf32>, vector<200x220xf32>, vector<8x220xf32> -> vector<8x220xf32>
      %73 = vector.extract_strided_slice %27 {offsets = [0, 0], sizes = [8, 220], strides = [1, 1]} : vector<8x224xf32> to vector<8x220xf32>
      %74 = vector.extract_strided_slice %27 {offsets = [0, 1], sizes = [8, 220], strides = [1, 1]} : vector<8x224xf32> to vector<8x220xf32>
      %75 = vector.extract_strided_slice %27 {offsets = [0, 2], sizes = [8, 220], strides = [1, 1]} : vector<8x224xf32> to vector<8x220xf32>
      %76 = vector.extract_strided_slice %27 {offsets = [0, 3], sizes = [8, 220], strides = [1, 1]} : vector<8x224xf32> to vector<8x220xf32>
      %77 = vector.extract_strided_slice %27 {offsets = [0, 4], sizes = [8, 220], strides = [1, 1]} : vector<8x224xf32> to vector<8x220xf32>
      %78 = vector.extract_strided_slice %31 {offsets = [0, 0], sizes = [8, 220], strides = [1, 1]} : vector<8x224xf32> to vector<8x220xf32>
      %79 = vector.extract_strided_slice %31 {offsets = [0, 1], sizes = [8, 220], strides = [1, 1]} : vector<8x224xf32> to vector<8x220xf32>
      %80 = vector.extract_strided_slice %31 {offsets = [0, 2], sizes = [8, 220], strides = [1, 1]} : vector<8x224xf32> to vector<8x220xf32>
      %81 = vector.extract_strided_slice %31 {offsets = [0, 3], sizes = [8, 220], strides = [1, 1]} : vector<8x224xf32> to vector<8x220xf32>
      %82 = vector.extract_strided_slice %31 {offsets = [0, 4], sizes = [8, 220], strides = [1, 1]} : vector<8x224xf32> to vector<8x220xf32>
      %83 = vector.extract_strided_slice %35 {offsets = [0, 0], sizes = [8, 220], strides = [1, 1]} : vector<8x224xf32> to vector<8x220xf32>
      %84 = vector.extract_strided_slice %35 {offsets = [0, 1], sizes = [8, 220], strides = [1, 1]} : vector<8x224xf32> to vector<8x220xf32>
      %85 = vector.extract_strided_slice %35 {offsets = [0, 2], sizes = [8, 220], strides = [1, 1]} : vector<8x224xf32> to vector<8x220xf32>
      %86 = vector.extract_strided_slice %35 {offsets = [0, 3], sizes = [8, 220], strides = [1, 1]} : vector<8x224xf32> to vector<8x220xf32>
      %87 = vector.extract_strided_slice %35 {offsets = [0, 4], sizes = [8, 220], strides = [1, 1]} : vector<8x224xf32> to vector<8x220xf32>
      %88 = vector.extract_strided_slice %39 {offsets = [0, 0], sizes = [8, 220], strides = [1, 1]} : vector<8x224xf32> to vector<8x220xf32>
      %89 = vector.extract_strided_slice %39 {offsets = [0, 1], sizes = [8, 220], strides = [1, 1]} : vector<8x224xf32> to vector<8x220xf32>
      %90 = vector.extract_strided_slice %39 {offsets = [0, 2], sizes = [8, 220], strides = [1, 1]} : vector<8x224xf32> to vector<8x220xf32>
      %91 = vector.extract_strided_slice %39 {offsets = [0, 3], sizes = [8, 220], strides = [1, 1]} : vector<8x224xf32> to vector<8x220xf32>
      %92 = vector.extract_strided_slice %39 {offsets = [0, 4], sizes = [8, 220], strides = [1, 1]} : vector<8x224xf32> to vector<8x220xf32>
      %93 = vector.extract_strided_slice %43 {offsets = [0, 0], sizes = [8, 220], strides = [1, 1]} : vector<8x224xf32> to vector<8x220xf32>
      %94 = vector.extract_strided_slice %43 {offsets = [0, 1], sizes = [8, 220], strides = [1, 1]} : vector<8x224xf32> to vector<8x220xf32>
      %95 = vector.extract_strided_slice %43 {offsets = [0, 2], sizes = [8, 220], strides = [1, 1]} : vector<8x224xf32> to vector<8x220xf32>
      %96 = vector.extract_strided_slice %43 {offsets = [0, 3], sizes = [8, 220], strides = [1, 1]} : vector<8x224xf32> to vector<8x220xf32>
      %97 = vector.extract_strided_slice %43 {offsets = [0, 4], sizes = [8, 220], strides = [1, 1]} : vector<8x224xf32> to vector<8x220xf32>
      %98 = tpu.concatenate %73, %74, %75, %76, %77, %78, %79, %80, %81, %82, %83, %84, %85, %86, %87, %88 in 0 : vector<8x220xf32>, vector<8x220xf32>, vector<8x220xf32>, vector<8x220xf32>, vector<8x220xf32>, vector<8x220xf32>, vector<8x220xf32>, vector<8x220xf32>, vector<8x220xf32>, vector<8x220xf32>, vector<8x220xf32>, vector<8x220xf32>, vector<8x220xf32>, vector<8x220xf32>, vector<8x220xf32>, vector<8x220xf32> -> vector<128x220xf32>
      %99 = tpu.concatenate %89, %90, %91, %92, %93, %94, %95, %96, %97 in 0 : vector<8x220xf32>, vector<8x220xf32>, vector<8x220xf32>, vector<8x220xf32>, vector<8x220xf32>, vector<8x220xf32>, vector<8x220xf32>, vector<8x220xf32>, vector<8x220xf32> -> vector<72x220xf32>
      %100 = tpu.concatenate %98, %99 in 0 : vector<128x220xf32>, vector<72x220xf32> -> vector<200x220xf32>
      %cst_28 = arith.constant dense<0.000000e+00> : vector<8x220xf32>
      %101 = tpu.matmul %0, %100, %cst_28 {dimension_numbers = #tpu.dot_dimension_numbers<[1], [0], [0], [1], [0, 0, 1, 1], [], []>} : vector<8x200xf32>, vector<200x220xf32>, vector<8x220xf32> -> vector<8x220xf32>
      %102 = arith.maximumf %72, %101 : vector<8x220xf32>
      %cst_29 = arith.constant dense<0.000000e+00> : vector<8x110xf32>
      %103 = tpu.matmul %102, %10, %cst_29 {dimension_numbers = #tpu.dot_dimension_numbers<[1], [0], [0], [1], [0, 0, 1, 1], [], []>} : vector<8x220xf32>, vector<220x110xf32>, vector<8x110xf32> -> vector<8x110xf32>
      %cst_30 = arith.constant dense<0.000000e+00> : vector<8x110xf32>
      %104 = tpu.matmul %102, %17, %cst_30 {dimension_numbers = #tpu.dot_dimension_numbers<[1], [0], [0], [1], [0, 0, 1, 1], [], []>} : vector<8x220xf32>, vector<220x110xf32>, vector<8x110xf32> -> vector<8x110xf32>
      %105 = arith.maximumf %103, %104 : vector<8x110xf32>
      %106 = arith.addf %105, %3 : vector<8x110xf32>
      %cst_31 = arith.constant 0.000000e+00 : f32
      %107 = vector.broadcast %cst_31 : f32 to vector<8x110xf32>
      %108 = arith.maximumf %106, %107 : vector<8x110xf32>
      %c0_32 = arith.constant 0 : index
      %109 = arith.index_cast %arg5 : i32 to index
      %c0_33 = arith.constant 0 : index
      %c0_34 = arith.constant 0 : index
      %110 = vector.load %arg4[%c0_32, %109, %c0_33, %c0_34] : memref<1x110x8x110xf32, #tpu.memory_space<vmem>>, vector<1x1x8x110xf32>
      %111 = vector.shape_cast %110 : vector<1x1x8x110xf32> to vector<8x110xf32>
      %112 = vector.shape_cast %108 : vector<8x110xf32> to vector<1x1x8x110xf32>
      tpu.vector_store %arg4[%c0_32, %109, %c0_33, %c0_34], %112 {strides = array<i32>} : memref<1x110x8x110xf32, #tpu.memory_space<vmem>>, vector<1x1x8x110xf32>,
    }
    %c110_i32_5 = arith.constant 110 : i32
    return
  }
  func.func @transform_0(%arg0: i32) -> (i32, i32, i32, i32) {
    %c0_i32 = arith.constant 0 : i32
    %c0_i32_0 = arith.constant 0 : i32
    %c0_i32_1 = arith.constant 0 : i32
    %c0_i32_2 = arith.constant 0 : i32
    return %arg0, %c0_i32, %c0_i32_0, %c0_i32_1 : i32, i32, i32, i32
  }
  func.func @transform_1(%arg0: i32) -> (i32, i32) {
    %c0_i32 = arith.constant 0 : i32
    %c0_i32_0 = arith.constant 0 : i32
    %c0_i32_1 = arith.constant 0 : i32
    return %c0_i32, %c0_i32_0 : i32, i32
  }
  func.func @transform_2(%arg0: i32) -> (i32, i32) {
    %c0_i32 = arith.constant 0 : i32
    %c0_i32_0 = arith.constant 0 : i32
    %c0_i32_1 = arith.constant 0 : i32
    return %c0_i32, %c0_i32_0 : i32, i32
  }
  func.func @transform_3(%arg0: i32) -> (i32, i32, i32, i32) {
    %c0_i32 = arith.constant 0 : i32
    %c0_i32_0 = arith.constant 0 : i32
    %c0_i32_1 = arith.constant 0 : i32
    %c0_i32_2 = arith.constant 0 : i32
    return %arg0, %c0_i32, %c0_i32_0, %c0_i32_1 : i32, i32, i32, i32
  }
}

module attributes {stable_mosaic.version = 11 : i64} {
  func.func @_conv_relu_pool_kernel(%arg0: i32, %arg1: memref<1x110x8x110xf32, #tpu.memory_space<vmem>>, %arg2: memref<16x72xf32, #tpu.memory_space<vmem>>, %arg3: memref<16x1xf32, #tpu.memory_space<vmem>>, %arg4: memref<1x54x16x54xf32, #tpu.memory_space<vmem>>) attributes {dimension_semantics = [#tpu.dimension_semantics<parallel>], iteration_bounds = array<i64: 2>, scalar_prefetch = 0 : i64, scratch_operands = 0 : i64, tpu.core_type = #tpu.core_type<tc>, window_params = [{transform_indices = @transform_0, window_bounds = array<i64: 1, 110, 8, 110>}, {pipeline_mode = #tpu.pipeline_mode<synchronous>, transform_indices = @transform_1, window_bounds = array<i64: 16, 72>}, {pipeline_mode = #tpu.pipeline_mode<synchronous>, transform_indices = @transform_2, window_bounds = array<i64: 16, 1>}, {transform_indices = @transform_3, window_bounds = array<i64: 1, 54, 16, 54>}]} {
    %c0 = arith.constant 0 : index
    %c0_0 = arith.constant 0 : index
    %0 = vector.load %arg2[%c0, %c0_0] : memref<16x72xf32, #tpu.memory_space<vmem>>, vector<16x72xf32>
    %c0_1 = arith.constant 0 : index
    %c0_2 = arith.constant 0 : index
    %1 = vector.load %arg3[%c0_1, %c0_2] : memref<16x1xf32, #tpu.memory_space<vmem>>, vector<16x1xf32>
    %2 = vector.shape_cast %1 : vector<16x1xf32> to vector<16x1xf32>
    %3 = vector.broadcast %2 : vector<16x1xf32> to vector<16x54xf32>
    %4 = tpu.iota {dimensions = array<i32: 0>} : vector<108x54xi32>
    %5 = tpu.iota {dimensions = array<i32: 1>} : vector<108x54xi32>
    %c2_i32 = arith.constant 2 : i32
    %6 = vector.broadcast %c2_i32 : i32 to vector<108x54xi32>
    %7 = arith.muli %6, %5 : vector<108x54xi32>
    %8 = arith.cmpi eq, %4, %7 : vector<108x54xi32>
    %9 = arith.extui %8 : vector<108x54xi1> to vector<108x54xi32>
    %10 = arith.sitofp %9 : vector<108x54xi32> to vector<108x54xf32>
    %c2_i32_3 = arith.constant 2 : i32
    %11 = vector.broadcast %c2_i32_3 : i32 to vector<108x54xi32>
    %12 = arith.muli %11, %5 : vector<108x54xi32>
    %c1_i32 = arith.constant 1 : i32
    %13 = vector.broadcast %c1_i32 : i32 to vector<108x54xi32>
    %14 = arith.addi %12, %13 : vector<108x54xi32>
    %15 = arith.cmpi eq, %4, %14 : vector<108x54xi32>
    %16 = arith.extui %15 : vector<108x54xi1> to vector<108x54xi32>
    %17 = arith.sitofp %16 : vector<108x54xi32> to vector<108x54xf32>
    %c0_i32 = arith.constant 0 : i32
    %c54_i32 = arith.constant 54 : i32
    %18 = arith.addi %c0_i32, %c54_i32 : i32
    %c1_i32_4 = arith.constant 1 : i32
    scf.for %arg5 = %c0_i32 to %18 step %c1_i32_4  : i32 {
      %c2_i32_6 = arith.constant 2 : i32
      %19 = arith.muli %c2_i32_6, %arg5 : i32
      %c0_i32_7 = arith.constant 0 : i32
      %20 = arith.addi %19, %c0_i32_7 : i32
      %c0_8 = arith.constant 0 : index
      %21 = arith.index_cast %20 : i32 to index
      %c0_9 = arith.constant 0 : index
      %c0_10 = arith.constant 0 : index
      %22 = vector.load %arg1[%c0_8, %21, %c0_9, %c0_10] : memref<1x110x8x110xf32, #tpu.memory_space<vmem>>, vector<1x1x8x110xf32>
      %23 = vector.shape_cast %22 : vector<1x1x8x110xf32> to vector<8x110xf32>
      %c1_i32_11 = arith.constant 1 : i32
      %24 = arith.addi %19, %c1_i32_11 : i32
      %c0_12 = arith.constant 0 : index
      %25 = arith.index_cast %24 : i32 to index
      %c0_13 = arith.constant 0 : index
      %c0_14 = arith.constant 0 : index
      %26 = vector.load %arg1[%c0_12, %25, %c0_13, %c0_14] : memref<1x110x8x110xf32, #tpu.memory_space<vmem>>, vector<1x1x8x110xf32>
      %27 = vector.shape_cast %26 : vector<1x1x8x110xf32> to vector<8x110xf32>
      %c2_i32_15 = arith.constant 2 : i32
      %28 = arith.addi %19, %c2_i32_15 : i32
      %c0_16 = arith.constant 0 : index
      %29 = arith.index_cast %28 : i32 to index
      %c0_17 = arith.constant 0 : index
      %c0_18 = arith.constant 0 : index
      %30 = vector.load %arg1[%c0_16, %29, %c0_17, %c0_18] : memref<1x110x8x110xf32, #tpu.memory_space<vmem>>, vector<1x1x8x110xf32>
      %31 = vector.shape_cast %30 : vector<1x1x8x110xf32> to vector<8x110xf32>
      %c3_i32 = arith.constant 3 : i32
      %32 = arith.addi %19, %c3_i32 : i32
      %c0_19 = arith.constant 0 : index
      %33 = arith.index_cast %32 : i32 to index
      %c0_20 = arith.constant 0 : index
      %c0_21 = arith.constant 0 : index
      %34 = vector.load %arg1[%c0_19, %33, %c0_20, %c0_21] : memref<1x110x8x110xf32, #tpu.memory_space<vmem>>, vector<1x1x8x110xf32>
      %35 = vector.shape_cast %34 : vector<1x1x8x110xf32> to vector<8x110xf32>
      %36 = vector.extract_strided_slice %23 {offsets = [0, 0], sizes = [8, 108], strides = [1, 1]} : vector<8x110xf32> to vector<8x108xf32>
      %37 = vector.extract_strided_slice %23 {offsets = [0, 1], sizes = [8, 108], strides = [1, 1]} : vector<8x110xf32> to vector<8x108xf32>
      %38 = vector.extract_strided_slice %23 {offsets = [0, 2], sizes = [8, 108], strides = [1, 1]} : vector<8x110xf32> to vector<8x108xf32>
      %39 = vector.extract_strided_slice %27 {offsets = [0, 0], sizes = [8, 108], strides = [1, 1]} : vector<8x110xf32> to vector<8x108xf32>
      %40 = vector.extract_strided_slice %27 {offsets = [0, 1], sizes = [8, 108], strides = [1, 1]} : vector<8x110xf32> to vector<8x108xf32>
      %41 = vector.extract_strided_slice %27 {offsets = [0, 2], sizes = [8, 108], strides = [1, 1]} : vector<8x110xf32> to vector<8x108xf32>
      %42 = vector.extract_strided_slice %31 {offsets = [0, 0], sizes = [8, 108], strides = [1, 1]} : vector<8x110xf32> to vector<8x108xf32>
      %43 = vector.extract_strided_slice %31 {offsets = [0, 1], sizes = [8, 108], strides = [1, 1]} : vector<8x110xf32> to vector<8x108xf32>
      %44 = vector.extract_strided_slice %31 {offsets = [0, 2], sizes = [8, 108], strides = [1, 1]} : vector<8x110xf32> to vector<8x108xf32>
      %45 = tpu.concatenate %36, %37, %38, %39, %40, %41, %42, %43, %44 in 0 : vector<8x108xf32>, vector<8x108xf32>, vector<8x108xf32>, vector<8x108xf32>, vector<8x108xf32>, vector<8x108xf32>, vector<8x108xf32>, vector<8x108xf32>, vector<8x108xf32> -> vector<72x108xf32>
      %cst = arith.constant dense<0.000000e+00> : vector<16x108xf32>
      %46 = tpu.matmul %0, %45, %cst {dimension_numbers = #tpu.dot_dimension_numbers<[1], [0], [0], [1], [0, 0, 1, 1], [], []>} : vector<16x72xf32>, vector<72x108xf32>, vector<16x108xf32> -> vector<16x108xf32>
      %47 = vector.extract_strided_slice %27 {offsets = [0, 0], sizes = [8, 108], strides = [1, 1]} : vector<8x110xf32> to vector<8x108xf32>
      %48 = vector.extract_strided_slice %27 {offsets = [0, 1], sizes = [8, 108], strides = [1, 1]} : vector<8x110xf32> to vector<8x108xf32>
      %49 = vector.extract_strided_slice %27 {offsets = [0, 2], sizes = [8, 108], strides = [1, 1]} : vector<8x110xf32> to vector<8x108xf32>
      %50 = vector.extract_strided_slice %31 {offsets = [0, 0], sizes = [8, 108], strides = [1, 1]} : vector<8x110xf32> to vector<8x108xf32>
      %51 = vector.extract_strided_slice %31 {offsets = [0, 1], sizes = [8, 108], strides = [1, 1]} : vector<8x110xf32> to vector<8x108xf32>
      %52 = vector.extract_strided_slice %31 {offsets = [0, 2], sizes = [8, 108], strides = [1, 1]} : vector<8x110xf32> to vector<8x108xf32>
      %53 = vector.extract_strided_slice %35 {offsets = [0, 0], sizes = [8, 108], strides = [1, 1]} : vector<8x110xf32> to vector<8x108xf32>
      %54 = vector.extract_strided_slice %35 {offsets = [0, 1], sizes = [8, 108], strides = [1, 1]} : vector<8x110xf32> to vector<8x108xf32>
      %55 = vector.extract_strided_slice %35 {offsets = [0, 2], sizes = [8, 108], strides = [1, 1]} : vector<8x110xf32> to vector<8x108xf32>
      %56 = tpu.concatenate %47, %48, %49, %50, %51, %52, %53, %54, %55 in 0 : vector<8x108xf32>, vector<8x108xf32>, vector<8x108xf32>, vector<8x108xf32>, vector<8x108xf32>, vector<8x108xf32>, vector<8x108xf32>, vector<8x108xf32>, vector<8x108xf32> -> vector<72x108xf32>
      %cst_22 = arith.constant dense<0.000000e+00> : vector<16x108xf32>
      %57 = tpu.matmul %0, %56, %cst_22 {dimension_numbers = #tpu.dot_dimension_numbers<[1], [0], [0], [1], [0, 0, 1, 1], [], []>} : vector<16x72xf32>, vector<72x108xf32>, vector<16x108xf32> -> vector<16x108xf32>
      %58 = arith.maximumf %46, %57 : vector<16x108xf32>
      %cst_23 = arith.constant dense<0.000000e+00> : vector<16x54xf32>
      %59 = tpu.matmul %58, %10, %cst_23 {dimension_numbers = #tpu.dot_dimension_numbers<[1], [0], [0], [1], [0, 0, 1, 1], [], []>} : vector<16x108xf32>, vector<108x54xf32>, vector<16x54xf32> -> vector<16x54xf32>
      %cst_24 = arith.constant dense<0.000000e+00> : vector<16x54xf32>
      %60 = tpu.matmul %58, %17, %cst_24 {dimension_numbers = #tpu.dot_dimension_numbers<[1], [0], [0], [1], [0, 0, 1, 1], [], []>} : vector<16x108xf32>, vector<108x54xf32>, vector<16x54xf32> -> vector<16x54xf32>
      %61 = arith.maximumf %59, %60 : vector<16x54xf32>
      %62 = arith.addf %61, %3 : vector<16x54xf32>
      %cst_25 = arith.constant 0.000000e+00 : f32
      %63 = vector.broadcast %cst_25 : f32 to vector<16x54xf32>
      %64 = arith.maximumf %62, %63 : vector<16x54xf32>
      %c0_26 = arith.constant 0 : index
      %65 = arith.index_cast %arg5 : i32 to index
      %c0_27 = arith.constant 0 : index
      %c0_28 = arith.constant 0 : index
      %66 = vector.load %arg4[%c0_26, %65, %c0_27, %c0_28] : memref<1x54x16x54xf32, #tpu.memory_space<vmem>>, vector<1x1x16x54xf32>
      %67 = vector.shape_cast %66 : vector<1x1x16x54xf32> to vector<16x54xf32>
      %68 = vector.shape_cast %64 : vector<16x54xf32> to vector<1x1x16x54xf32>
      tpu.vector_store %arg4[%c0_26, %65, %c0_27, %c0_28], %68 {strides = array<i32>} : memref<1x54x16x54xf32, #tpu.memory_space<vmem>>, vector<1x1x16x54xf32>,
    }
    %c54_i32_5 = arith.constant 54 : i32
    return
  }
  func.func @transform_0(%arg0: i32) -> (i32, i32, i32, i32) {
    %c0_i32 = arith.constant 0 : i32
    %c0_i32_0 = arith.constant 0 : i32
    %c0_i32_1 = arith.constant 0 : i32
    %c0_i32_2 = arith.constant 0 : i32
    return %arg0, %c0_i32, %c0_i32_0, %c0_i32_1 : i32, i32, i32, i32
  }
  func.func @transform_1(%arg0: i32) -> (i32, i32) {
    %c0_i32 = arith.constant 0 : i32
    %c0_i32_0 = arith.constant 0 : i32
    %c0_i32_1 = arith.constant 0 : i32
    return %c0_i32, %c0_i32_0 : i32, i32
  }
  func.func @transform_2(%arg0: i32) -> (i32, i32) {
    %c0_i32 = arith.constant 0 : i32
    %c0_i32_0 = arith.constant 0 : i32
    %c0_i32_1 = arith.constant 0 : i32
    return %c0_i32, %c0_i32_0 : i32, i32
  }
  func.func @transform_3(%arg0: i32) -> (i32, i32, i32, i32) {
    %c0_i32 = arith.constant 0 : i32
    %c0_i32_0 = arith.constant 0 : i32
    %c0_i32_1 = arith.constant 0 : i32
    %c0_i32_2 = arith.constant 0 : i32
    return %arg0, %c0_i32, %c0_i32_0, %c0_i32_1 : i32, i32, i32, i32
  }
}

module attributes {stable_mosaic.version = 11 : i64} {
  func.func @_conv_relu_pool_kernel(%arg0: i32, %arg1: memref<1x54x16x54xf32, #tpu.memory_space<vmem>>, %arg2: memref<8x144xf32, #tpu.memory_space<vmem>>, %arg3: memref<8x1xf32, #tpu.memory_space<vmem>>, %arg4: memref<1x26x8x26xf32, #tpu.memory_space<vmem>>) attributes {dimension_semantics = [#tpu.dimension_semantics<parallel>], iteration_bounds = array<i64: 2>, scalar_prefetch = 0 : i64, scratch_operands = 0 : i64, tpu.core_type = #tpu.core_type<tc>, window_params = [{transform_indices = @transform_0, window_bounds = array<i64: 1, 54, 16, 54>}, {pipeline_mode = #tpu.pipeline_mode<synchronous>, transform_indices = @transform_1, window_bounds = array<i64: 8, 144>}, {pipeline_mode = #tpu.pipeline_mode<synchronous>, transform_indices = @transform_2, window_bounds = array<i64: 8, 1>}, {transform_indices = @transform_3, window_bounds = array<i64: 1, 26, 8, 26>}]} {
    %c0 = arith.constant 0 : index
    %c0_0 = arith.constant 0 : index
    %0 = vector.load %arg2[%c0, %c0_0] : memref<8x144xf32, #tpu.memory_space<vmem>>, vector<8x144xf32>
    %c0_1 = arith.constant 0 : index
    %c0_2 = arith.constant 0 : index
    %1 = vector.load %arg3[%c0_1, %c0_2] : memref<8x1xf32, #tpu.memory_space<vmem>>, vector<8x1xf32>
    %2 = vector.shape_cast %1 : vector<8x1xf32> to vector<8x1xf32>
    %3 = vector.broadcast %2 : vector<8x1xf32> to vector<8x26xf32>
    %4 = tpu.iota {dimensions = array<i32: 0>} : vector<52x26xi32>
    %5 = tpu.iota {dimensions = array<i32: 1>} : vector<52x26xi32>
    %c2_i32 = arith.constant 2 : i32
    %6 = vector.broadcast %c2_i32 : i32 to vector<52x26xi32>
    %7 = arith.muli %6, %5 : vector<52x26xi32>
    %8 = arith.cmpi eq, %4, %7 : vector<52x26xi32>
    %9 = arith.extui %8 : vector<52x26xi1> to vector<52x26xi32>
    %10 = arith.sitofp %9 : vector<52x26xi32> to vector<52x26xf32>
    %c2_i32_3 = arith.constant 2 : i32
    %11 = vector.broadcast %c2_i32_3 : i32 to vector<52x26xi32>
    %12 = arith.muli %11, %5 : vector<52x26xi32>
    %c1_i32 = arith.constant 1 : i32
    %13 = vector.broadcast %c1_i32 : i32 to vector<52x26xi32>
    %14 = arith.addi %12, %13 : vector<52x26xi32>
    %15 = arith.cmpi eq, %4, %14 : vector<52x26xi32>
    %16 = arith.extui %15 : vector<52x26xi1> to vector<52x26xi32>
    %17 = arith.sitofp %16 : vector<52x26xi32> to vector<52x26xf32>
    %c0_i32 = arith.constant 0 : i32
    %c26_i32 = arith.constant 26 : i32
    %18 = arith.addi %c0_i32, %c26_i32 : i32
    %c1_i32_4 = arith.constant 1 : i32
    scf.for %arg5 = %c0_i32 to %18 step %c1_i32_4  : i32 {
      %c2_i32_6 = arith.constant 2 : i32
      %19 = arith.muli %c2_i32_6, %arg5 : i32
      %c0_i32_7 = arith.constant 0 : i32
      %20 = arith.addi %19, %c0_i32_7 : i32
      %c0_8 = arith.constant 0 : index
      %21 = arith.index_cast %20 : i32 to index
      %c0_9 = arith.constant 0 : index
      %c0_10 = arith.constant 0 : index
      %22 = vector.load %arg1[%c0_8, %21, %c0_9, %c0_10] : memref<1x54x16x54xf32, #tpu.memory_space<vmem>>, vector<1x1x16x54xf32>
      %23 = vector.shape_cast %22 : vector<1x1x16x54xf32> to vector<16x54xf32>
      %c1_i32_11 = arith.constant 1 : i32
      %24 = arith.addi %19, %c1_i32_11 : i32
      %c0_12 = arith.constant 0 : index
      %25 = arith.index_cast %24 : i32 to index
      %c0_13 = arith.constant 0 : index
      %c0_14 = arith.constant 0 : index
      %26 = vector.load %arg1[%c0_12, %25, %c0_13, %c0_14] : memref<1x54x16x54xf32, #tpu.memory_space<vmem>>, vector<1x1x16x54xf32>
      %27 = vector.shape_cast %26 : vector<1x1x16x54xf32> to vector<16x54xf32>
      %c2_i32_15 = arith.constant 2 : i32
      %28 = arith.addi %19, %c2_i32_15 : i32
      %c0_16 = arith.constant 0 : index
      %29 = arith.index_cast %28 : i32 to index
      %c0_17 = arith.constant 0 : index
      %c0_18 = arith.constant 0 : index
      %30 = vector.load %arg1[%c0_16, %29, %c0_17, %c0_18] : memref<1x54x16x54xf32, #tpu.memory_space<vmem>>, vector<1x1x16x54xf32>
      %31 = vector.shape_cast %30 : vector<1x1x16x54xf32> to vector<16x54xf32>
      %c3_i32 = arith.constant 3 : i32
      %32 = arith.addi %19, %c3_i32 : i32
      %c0_19 = arith.constant 0 : index
      %33 = arith.index_cast %32 : i32 to index
      %c0_20 = arith.constant 0 : index
      %c0_21 = arith.constant 0 : index
      %34 = vector.load %arg1[%c0_19, %33, %c0_20, %c0_21] : memref<1x54x16x54xf32, #tpu.memory_space<vmem>>, vector<1x1x16x54xf32>
      %35 = vector.shape_cast %34 : vector<1x1x16x54xf32> to vector<16x54xf32>
      %36 = vector.extract_strided_slice %23 {offsets = [0, 0], sizes = [16, 52], strides = [1, 1]} : vector<16x54xf32> to vector<16x52xf32>
      %37 = vector.extract_strided_slice %23 {offsets = [0, 1], sizes = [16, 52], strides = [1, 1]} : vector<16x54xf32> to vector<16x52xf32>
      %38 = vector.extract_strided_slice %23 {offsets = [0, 2], sizes = [16, 52], strides = [1, 1]} : vector<16x54xf32> to vector<16x52xf32>
      %39 = vector.extract_strided_slice %27 {offsets = [0, 0], sizes = [16, 52], strides = [1, 1]} : vector<16x54xf32> to vector<16x52xf32>
      %40 = vector.extract_strided_slice %27 {offsets = [0, 1], sizes = [16, 52], strides = [1, 1]} : vector<16x54xf32> to vector<16x52xf32>
      %41 = vector.extract_strided_slice %27 {offsets = [0, 2], sizes = [16, 52], strides = [1, 1]} : vector<16x54xf32> to vector<16x52xf32>
      %42 = vector.extract_strided_slice %31 {offsets = [0, 0], sizes = [16, 52], strides = [1, 1]} : vector<16x54xf32> to vector<16x52xf32>
      %43 = vector.extract_strided_slice %31 {offsets = [0, 1], sizes = [16, 52], strides = [1, 1]} : vector<16x54xf32> to vector<16x52xf32>
      %44 = vector.extract_strided_slice %31 {offsets = [0, 2], sizes = [16, 52], strides = [1, 1]} : vector<16x54xf32> to vector<16x52xf32>
      %45 = tpu.concatenate %36, %37, %38, %39, %40, %41, %42, %43, %44 in 0 : vector<16x52xf32>, vector<16x52xf32>, vector<16x52xf32>, vector<16x52xf32>, vector<16x52xf32>, vector<16x52xf32>, vector<16x52xf32>, vector<16x52xf32>, vector<16x52xf32> -> vector<144x52xf32>
      %cst = arith.constant dense<0.000000e+00> : vector<8x52xf32>
      %46 = tpu.matmul %0, %45, %cst {dimension_numbers = #tpu.dot_dimension_numbers<[1], [0], [0], [1], [0, 0, 1, 1], [], []>} : vector<8x144xf32>, vector<144x52xf32>, vector<8x52xf32> -> vector<8x52xf32>
      %47 = vector.extract_strided_slice %27 {offsets = [0, 0], sizes = [16, 52], strides = [1, 1]} : vector<16x54xf32> to vector<16x52xf32>
      %48 = vector.extract_strided_slice %27 {offsets = [0, 1], sizes = [16, 52], strides = [1, 1]} : vector<16x54xf32> to vector<16x52xf32>
      %49 = vector.extract_strided_slice %27 {offsets = [0, 2], sizes = [16, 52], strides = [1, 1]} : vector<16x54xf32> to vector<16x52xf32>
      %50 = vector.extract_strided_slice %31 {offsets = [0, 0], sizes = [16, 52], strides = [1, 1]} : vector<16x54xf32> to vector<16x52xf32>
      %51 = vector.extract_strided_slice %31 {offsets = [0, 1], sizes = [16, 52], strides = [1, 1]} : vector<16x54xf32> to vector<16x52xf32>
      %52 = vector.extract_strided_slice %31 {offsets = [0, 2], sizes = [16, 52], strides = [1, 1]} : vector<16x54xf32> to vector<16x52xf32>
      %53 = vector.extract_strided_slice %35 {offsets = [0, 0], sizes = [16, 52], strides = [1, 1]} : vector<16x54xf32> to vector<16x52xf32>
      %54 = vector.extract_strided_slice %35 {offsets = [0, 1], sizes = [16, 52], strides = [1, 1]} : vector<16x54xf32> to vector<16x52xf32>
      %55 = vector.extract_strided_slice %35 {offsets = [0, 2], sizes = [16, 52], strides = [1, 1]} : vector<16x54xf32> to vector<16x52xf32>
      %56 = tpu.concatenate %47, %48, %49, %50, %51, %52, %53, %54, %55 in 0 : vector<16x52xf32>, vector<16x52xf32>, vector<16x52xf32>, vector<16x52xf32>, vector<16x52xf32>, vector<16x52xf32>, vector<16x52xf32>, vector<16x52xf32>, vector<16x52xf32> -> vector<144x52xf32>
      %cst_22 = arith.constant dense<0.000000e+00> : vector<8x52xf32>
      %57 = tpu.matmul %0, %56, %cst_22 {dimension_numbers = #tpu.dot_dimension_numbers<[1], [0], [0], [1], [0, 0, 1, 1], [], []>} : vector<8x144xf32>, vector<144x52xf32>, vector<8x52xf32> -> vector<8x52xf32>
      %58 = arith.maximumf %46, %57 : vector<8x52xf32>
      %cst_23 = arith.constant dense<0.000000e+00> : vector<8x26xf32>
      %59 = tpu.matmul %58, %10, %cst_23 {dimension_numbers = #tpu.dot_dimension_numbers<[1], [0], [0], [1], [0, 0, 1, 1], [], []>} : vector<8x52xf32>, vector<52x26xf32>, vector<8x26xf32> -> vector<8x26xf32>
      %cst_24 = arith.constant dense<0.000000e+00> : vector<8x26xf32>
      %60 = tpu.matmul %58, %17, %cst_24 {dimension_numbers = #tpu.dot_dimension_numbers<[1], [0], [0], [1], [0, 0, 1, 1], [], []>} : vector<8x52xf32>, vector<52x26xf32>, vector<8x26xf32> -> vector<8x26xf32>
      %61 = arith.maximumf %59, %60 : vector<8x26xf32>
      %62 = arith.addf %61, %3 : vector<8x26xf32>
      %cst_25 = arith.constant 0.000000e+00 : f32
      %63 = vector.broadcast %cst_25 : f32 to vector<8x26xf32>
      %64 = arith.maximumf %62, %63 : vector<8x26xf32>
      %c0_26 = arith.constant 0 : index
      %65 = arith.index_cast %arg5 : i32 to index
      %c0_27 = arith.constant 0 : index
      %c0_28 = arith.constant 0 : index
      %66 = vector.load %arg4[%c0_26, %65, %c0_27, %c0_28] : memref<1x26x8x26xf32, #tpu.memory_space<vmem>>, vector<1x1x8x26xf32>
      %67 = vector.shape_cast %66 : vector<1x1x8x26xf32> to vector<8x26xf32>
      %68 = vector.shape_cast %64 : vector<8x26xf32> to vector<1x1x8x26xf32>
      tpu.vector_store %arg4[%c0_26, %65, %c0_27, %c0_28], %68 {strides = array<i32>} : memref<1x26x8x26xf32, #tpu.memory_space<vmem>>, vector<1x1x8x26xf32>,
    }
    %c26_i32_5 = arith.constant 26 : i32
    return
  }
  func.func @transform_0(%arg0: i32) -> (i32, i32, i32, i32) {
    %c0_i32 = arith.constant 0 : i32
    %c0_i32_0 = arith.constant 0 : i32
    %c0_i32_1 = arith.constant 0 : i32
    %c0_i32_2 = arith.constant 0 : i32
    return %arg0, %c0_i32, %c0_i32_0, %c0_i32_1 : i32, i32, i32, i32
  }
  func.func @transform_1(%arg0: i32) -> (i32, i32) {
    %c0_i32 = arith.constant 0 : i32
    %c0_i32_0 = arith.constant 0 : i32
    %c0_i32_1 = arith.constant 0 : i32
    return %c0_i32, %c0_i32_0 : i32, i32
  }
  func.func @transform_2(%arg0: i32) -> (i32, i32) {
    %c0_i32 = arith.constant 0 : i32
    %c0_i32_0 = arith.constant 0 : i32
    %c0_i32_1 = arith.constant 0 : i32
    return %c0_i32, %c0_i32_0 : i32, i32
  }
  func.func @transform_3(%arg0: i32) -> (i32, i32, i32, i32) {
    %c0_i32 = arith.constant 0 : i32
    %c0_i32_0 = arith.constant 0 : i32
    %c0_i32_1 = arith.constant 0 : i32
    %c0_i32_2 = arith.constant 0 : i32
    return %arg0, %c0_i32, %c0_i32_0, %c0_i32_1 : i32, i32, i32, i32
  }
}

module attributes {stable_mosaic.version = 11 : i64} {
  func.func @_fc_fused_kernel(%arg0: i32, %arg1: memref<2x512xf32, #tpu.memory_space<vmem>>, %arg2: memref<512x1024xbf16, #tpu.memory_space<vmem>>, %arg3: memref<1x1024xf32, #tpu.memory_space<vmem>>, %arg4: memref<1024x500xf32, #tpu.memory_space<vmem>>, %arg5: memref<1x500xf32, #tpu.memory_space<vmem>>, %arg6: memref<500x2xf32, #tpu.memory_space<vmem>>, %arg7: memref<1x2xf32, #tpu.memory_space<vmem>>, %arg8: memref<2x2xf32, #tpu.memory_space<vmem>>, %arg9: memref<2x1024xf32, #tpu.memory_space<vmem>>) attributes {dimension_semantics = [#tpu.dimension_semantics<arbitrary>], iteration_bounds = array<i64: 11>, scalar_prefetch = 0 : i64, scratch_operands = 1 : i64, tpu.core_type = #tpu.core_type<tc>, window_params = [{transform_indices = @transform_0, window_bounds = array<i64: 2, 512>}, {transform_indices = @transform_1, window_bounds = array<i64: 512, 1024>}, {pipeline_mode = #tpu.pipeline_mode<synchronous>, transform_indices = @transform_2, window_bounds = array<i64: 1, 1024>}, {pipeline_mode = #tpu.pipeline_mode<synchronous>, transform_indices = @transform_3, window_bounds = array<i64: 1024, 500>}, {pipeline_mode = #tpu.pipeline_mode<synchronous>, transform_indices = @transform_4, window_bounds = array<i64: 1, 500>}, {pipeline_mode = #tpu.pipeline_mode<synchronous>, transform_indices = @transform_5, window_bounds = array<i64: 500, 2>}, {pipeline_mode = #tpu.pipeline_mode<synchronous>, transform_indices = @transform_6, window_bounds = array<i64: 1, 2>}, {pipeline_mode = #tpu.pipeline_mode<synchronous>, transform_indices = @transform_7, window_bounds = array<i64: 2, 2>}]} {
    %c0_i32 = arith.constant 0 : i32
    %0 = arith.cmpi eq, %arg0, %c0_i32 : i32
    %1 = arith.extui %0 : i1 to i32
    %c0_i32_0 = arith.constant 0 : i32
    %2 = arith.cmpi ne, %1, %c0_i32_0 : i32
    scf.if %2 {
      %cst_9 = arith.constant 0.000000e+00 : f32
      %13 = vector.broadcast %cst_9 : f32 to vector<2x1024xf32>
      %c0_10 = arith.constant 0 : index
      %c0_11 = arith.constant 0 : index
      %14 = vector.load %arg9[%c0_10, %c0_11] : memref<2x1024xf32, #tpu.memory_space<vmem>>, vector<2x1024xf32>
      tpu.vector_store %arg9[%c0_10, %c0_11], %13 {strides = array<i32>} : memref<2x1024xf32, #tpu.memory_space<vmem>>, vector<2x1024xf32>,
    } else {
    }
    %c0 = arith.constant 0 : index
    %c0_1 = arith.constant 0 : index
    %3 = vector.load %arg9[%c0, %c0_1] : memref<2x1024xf32, #tpu.memory_space<vmem>>, vector<2x1024xf32>
    %c0_2 = arith.constant 0 : index
    %c0_3 = arith.constant 0 : index
    %4 = vector.load %arg1[%c0_2, %c0_3] : memref<2x512xf32, #tpu.memory_space<vmem>>, vector<2x512xf32>
    %5 = arith.truncf %4 : vector<2x512xf32> to vector<2x512xbf16>
    %c0_4 = arith.constant 0 : index
    %c0_5 = arith.constant 0 : index
    %6 = vector.load %arg2[%c0_4, %c0_5] : memref<512x1024xbf16, #tpu.memory_space<vmem>>, vector<512x1024xbf16>
    %cst = arith.constant dense<0.000000e+00> : vector<2x1024xf32>
    %7 = tpu.matmul %5, %6, %cst {dimension_numbers = #tpu.dot_dimension_numbers<[1], [0], [0], [1], [0, 0, 1, 1], [], []>} : vector<2x512xbf16>, vector<512x1024xbf16>, vector<2x1024xf32> -> vector<2x1024xf32>
    %8 = arith.addf %3, %7 : vector<2x1024xf32>
    %c0_6 = arith.constant 0 : index
    %c0_7 = arith.constant 0 : index
    %9 = vector.load %arg9[%c0_6, %c0_7] : memref<2x1024xf32, #tpu.memory_space<vmem>>, vector<2x1024xf32>
    tpu.vector_store %arg9[%c0_6, %c0_7], %8 {strides = array<i32>} : memref<2x1024xf32, #tpu.memory_space<vmem>>, vector<2x1024xf32>,
    %c10_i32 = arith.constant 10 : i32
    %10 = arith.cmpi eq, %arg0, %c10_i32 : i32
    %11 = arith.extui %10 : i1 to i32
    %c0_i32_8 = arith.constant 0 : i32
    %12 = arith.cmpi ne, %11, %c0_i32_8 : i32
    scf.if %12 {
      %c0_9 = arith.constant 0 : index
      %c0_10 = arith.constant 0 : index
      %13 = vector.load %arg9[%c0_9, %c0_10] : memref<2x1024xf32, #tpu.memory_space<vmem>>, vector<2x1024xf32>
      %c0_11 = arith.constant 0 : index
      %c0_12 = arith.constant 0 : index
      %14 = vector.load %arg3[%c0_11, %c0_12] : memref<1x1024xf32, #tpu.memory_space<vmem>>, vector<1x1024xf32>
      %15 = vector.broadcast %14 : vector<1x1024xf32> to vector<2x1024xf32>
      %16 = arith.addf %13, %15 : vector<2x1024xf32>
      %cst_13 = arith.constant 0.000000e+00 : f32
      %17 = vector.broadcast %cst_13 : f32 to vector<2x1024xf32>
      %18 = arith.maximumf %16, %17 : vector<2x1024xf32>
      %c0_14 = arith.constant 0 : index
      %c0_15 = arith.constant 0 : index
      %19 = vector.load %arg4[%c0_14, %c0_15] : memref<1024x500xf32, #tpu.memory_space<vmem>>, vector<1024x500xf32>
      %cst_16 = arith.constant dense<0.000000e+00> : vector<2x500xf32>
      %20 = tpu.matmul %18, %19, %cst_16 {dimension_numbers = #tpu.dot_dimension_numbers<[1], [0], [0], [1], [0, 0, 1, 1], [], []>} : vector<2x1024xf32>, vector<1024x500xf32>, vector<2x500xf32> -> vector<2x500xf32>
      %c0_17 = arith.constant 0 : index
      %c0_18 = arith.constant 0 : index
      %21 = vector.load %arg5[%c0_17, %c0_18] : memref<1x500xf32, #tpu.memory_space<vmem>>, vector<1x500xf32>
      %22 = vector.broadcast %21 : vector<1x500xf32> to vector<2x500xf32>
      %23 = arith.addf %20, %22 : vector<2x500xf32>
      %cst_19 = arith.constant 0.000000e+00 : f32
      %24 = vector.broadcast %cst_19 : f32 to vector<2x500xf32>
      %25 = arith.maximumf %23, %24 : vector<2x500xf32>
      %c0_20 = arith.constant 0 : index
      %c0_21 = arith.constant 0 : index
      %26 = vector.load %arg6[%c0_20, %c0_21] : memref<500x2xf32, #tpu.memory_space<vmem>>, vector<500x2xf32>
      %cst_22 = arith.constant dense<0.000000e+00> : vector<2x2xf32>
      %27 = tpu.matmul %25, %26, %cst_22 {dimension_numbers = #tpu.dot_dimension_numbers<[1], [0], [0], [1], [0, 0, 1, 1], [], []>} : vector<2x500xf32>, vector<500x2xf32>, vector<2x2xf32> -> vector<2x2xf32>
      %c0_23 = arith.constant 0 : index
      %c0_24 = arith.constant 0 : index
      %28 = vector.load %arg7[%c0_23, %c0_24] : memref<1x2xf32, #tpu.memory_space<vmem>>, vector<1x2xf32>
      %29 = vector.broadcast %28 : vector<1x2xf32> to vector<2x2xf32>
      %30 = arith.addf %27, %29 : vector<2x2xf32>
      %c0_25 = arith.constant 0 : index
      %c0_26 = arith.constant 0 : index
      %31 = vector.load %arg8[%c0_25, %c0_26] : memref<2x2xf32, #tpu.memory_space<vmem>>, vector<2x2xf32>
      tpu.vector_store %arg8[%c0_25, %c0_26], %30 {strides = array<i32>} : memref<2x2xf32, #tpu.memory_space<vmem>>, vector<2x2xf32>,
    } else {
    }
    return
  }
  func.func @transform_0(%arg0: i32) -> (i32, i32) {
    %c0_i32 = arith.constant 0 : i32
    %c0_i32_0 = arith.constant 0 : i32
    return %c0_i32, %arg0 : i32, i32
  }
  func.func @transform_1(%arg0: i32) -> (i32, i32) {
    %c0_i32 = arith.constant 0 : i32
    %c0_i32_0 = arith.constant 0 : i32
    return %arg0, %c0_i32 : i32, i32
  }
  func.func @transform_2(%arg0: i32) -> (i32, i32) {
    %c0_i32 = arith.constant 0 : i32
    %c0_i32_0 = arith.constant 0 : i32
    %c0_i32_1 = arith.constant 0 : i32
    return %c0_i32, %c0_i32_0 : i32, i32
  }
  func.func @transform_3(%arg0: i32) -> (i32, i32) {
    %c0_i32 = arith.constant 0 : i32
    %c0_i32_0 = arith.constant 0 : i32
    %c0_i32_1 = arith.constant 0 : i32
    return %c0_i32, %c0_i32_0 : i32, i32
  }
  func.func @transform_4(%arg0: i32) -> (i32, i32) {
    %c0_i32 = arith.constant 0 : i32
    %c0_i32_0 = arith.constant 0 : i32
    %c0_i32_1 = arith.constant 0 : i32
    return %c0_i32, %c0_i32_0 : i32, i32
  }
  func.func @transform_5(%arg0: i32) -> (i32, i32) {
    %c0_i32 = arith.constant 0 : i32
    %c0_i32_0 = arith.constant 0 : i32
    %c0_i32_1 = arith.constant 0 : i32
    return %c0_i32, %c0_i32_0 : i32, i32
  }
  func.func @transform_6(%arg0: i32) -> (i32, i32) {
    %c0_i32 = arith.constant 0 : i32
    %c0_i32_0 = arith.constant 0 : i32
    %c0_i32_1 = arith.constant 0 : i32
    return %c0_i32, %c0_i32_0 : i32, i32
  }
  func.func @transform_7(%arg0: i32) -> (i32, i32) {
    %c0_i32 = arith.constant 0 : i32
    %c0_i32_0 = arith.constant 0 : i32
    %c0_i32_1 = arith.constant 0 : i32
    return %c0_i32, %c0_i32_0 : i32, i32
  }
}

</mosaic_0001>

<bundles_post_ra>
// kernel: target_detector_forward.6
= control target key start
LH: loop header
LB: loop body
LE: loop exit
PB: predicated region body
PF: predicated region fallthrough
CT: control target
= control target key end

     0   :  { %s699_s12 = smov 0   ;;  %s872_s0 = inlined_call_operand.vmem [shape: f32[2,54,16,54], index: 0, kind: input, shape index: {}]   ;;  %s873_s1 = inlined_call_operand.vmem [shape: f32[8,144], index: 1, kind: input, shape index: {}]   ;;  %s874_s2 = inlined_call_operand.vmem [shape: f32[8,1], index: 2, kind: input, shape index: {}]   ;;  %s875_s3 = inlined_call_operand.vmem [shape: f32[2,26,8,26], index: 3, kind: output, shape index: {}]  }
   0x1 LB: > { %s534_s13 = sadd.s32 4294967295, %s668_s12   ;;  %p538_p0 = scmp.ge.s32.totalorder %s668_s12, 1  ;;  %s668_s12 = sphi %s699_s12, %s13_s12  }
   0x2   : > { %p137_p1 = scmp.lt.s32.totalorder %s668_s12, 3 }
   0x4   : > { %p138_p2 = pnand %p538_p0, %p137_p1 }
   0x5   : > { %p161_p3 = scmp.lt.s32.totalorder (!%p138_p2), %s534_s13, 1  ;;  %s787_s28 = smov (!%p138_p2), 0  }
   0x6   : > { %141 = sbr.rel (%p138_p2) target bundleno = 558 (0x22e), region = 32 }
   0xb   : > { %v173_v0 = vld [vmem:[%s874_s2] sm:$0xff]  ;;  %v674_v1 = vmov 0   ;;  %s877_s13 = smov (!%p161_p3, %s534_s13), 1  ;;  %v179_v2 = vlaneseq  ;;  %v753_v14 = vld [vmem:[%s873_s1 + $0x8] sm:$0xff]  ;;  %v675_v15 = vmov 0.0  }
   0xc   : > { %617 = vset.pattern.permute.xlu0 %v674_v1  ;;  %s594_s16 = smul.u32 864, %s877_s13  ;;  %v748_v13 = vld [vmem:[%s873_s1] sm:$0xff] }
   0xd   : > { %176 = vperm.xlu0 %617, %v173_v0   ;;  %s595_s17 = smul.u32 208, %s877_s13  ;;  %v188_v3 = vand.u32 127, %v179_v2  ;;  %v720_v4 = vshrl.u32 %v179_v2, 7 }
   0xe   : > { %s713_s20 = scalar_lea.vmem %s872_s0, %s594_s16 }
   0xf   : > { %s718_s23 = scalar_lea.vmem %s875_s3, %s595_s17  ;;  %v722_v5 = vmul.u32 2, %v188_v3  ;;  %v186_v6 = vadd.s32 48, %v720_v4  ;;  %v729_v8 = vadd.s32 8, %v720_v4  ;;  %v732_v9 = vadd.s32 16, %v720_v4 }
  0x10   : > { %v735_v10 = vadd.s32 24, %v720_v4  ;;  %v738_v11 = vadd.s32 32, %v720_v4  ;;  %v741_v12 = vadd.s32 40, %v720_v4 }
  0x11   : > { %v726_v7 = vadd.s32 1, %v722_v5  ;;  %vm196_vm0 = vcmp.eq.s32.totalorder %v186_v6, %v722_v5  ;;  %vm190_vm2 = vcmp.eq.s32.totalorder %v720_v4, %v722_v5  ;;  %vm191_vm3 = vcmp.eq.s32.totalorder %v729_v8, %v722_v5 }
  0x12   : > { %vm192_vm4 = vcmp.eq.s32.totalorder %v732_v9, %v722_v5  ;;  %vm193_vm5 = vcmp.eq.s32.totalorder %v735_v10, %v722_v5  ;;  %vm194_vm6 = vcmp.eq.s32.totalorder %v738_v11, %v722_v5  ;;  %vm195_vm7 = vcmp.eq.s32.totalorder %v741_v12, %v722_v5 }
  0x13   : > { %vm218_vm1 = vcmp.eq.s32.totalorder %v186_v6, %v726_v7  ;;  %v767_v16 = vsel %vm196_vm0, 1.0, %v675_v15  ;;  %vm212_vm8 = vcmp.eq.s32.totalorder %v720_v4, %v726_v7  ;;  %vm213_vm9 = vcmp.eq.s32.totalorder %v729_v8, %v726_v7 }
  0x14   : > { %vm214_vm10 = vcmp.eq.s32.totalorder %v732_v9, %v726_v7  ;;  %vm215_vm11 = vcmp.eq.s32.totalorder %v735_v10, %v726_v7  ;;  %vm216_vm12 = vcmp.eq.s32.totalorder %v738_v11, %v726_v7  ;;  %vm217_vm13 = vcmp.eq.s32.totalorder %v741_v12, %v726_v7 }
  0x15   : > { %v783_v17 = vsel %vm218_vm1, 1.0, %v675_v15 }
  0x7f   : > { %v785_v18 = vpop.permute.xlu0 %176 }
  0x80 LB: >> { %s590_s29 = sshll.u32 %s672_s28, 5  ;;  %s676_s4 = smov 127   ;;  %vm301_vm14 = vcmask 130048   ;;  %vm404_vm15 = vcmask 1043456   ;;  %v678_v42 = vmov 1.0   ;;  %vm400_vm0 = vcmask 424960   ;;  %s672_s28 = sphi %s787_s28, %s238_s28  }
  0x81   : >> { %s241_s30 = scalar_lea.vmem %s713_s20, %s590_s29  ;;  %s677_s5 = smov 126   ;;  %vm456_vm1 = vcmask 211968  }
  0x82   : >> { %v567_v19 = vld [vmem:[%s241_s30 + $0x30] sm:$0xff]  ;;  %v568_v20 = vld [vmem:[%s241_s30 + $0x38] sm:$0xff]  ;;  %v794_v21 = vld [vmem:[%s241_s30 + $0x20] sm:$0xff]  ;;  %s587_s6 = sshll.u32 %s672_s28, 3  ;;  %s238_s28 = sadd.s32 1, %s672_s28  }
  0x83   : >> { %v618_v22 = vpack.i.bf16 %v567_v19, %v568_v20  ;;  %v564_v23 = vld [vmem:[%s241_s30 + $0x28] sm:$0xff]  ;;  %v796_v24 = vld [vmem:[%s241_s30 + $0x10] sm:$0xff]  ;;  %v798_v25 = vld [vmem:[%s241_s30 + $0x18] sm:$0xff]  ;;  %s455_s7 = scalar_lea.vmem %s718_s23, %s587_s6  ;;  %p235_p4 = scmp.ge.s32.totalorder %s238_s28, 26  }
  0x84   : >> { %v628_v26 = vpack.i.bf16 %v794_v21, %v564_v23  ;;  %v638_v27 = vpack.i.bf16 %v796_v24, %v798_v25  ;;  %v803_v28 = vld [vmem:[%s241_s30] sm:$0xff]  ;;  %v805_v29 = vld [vmem:[%s241_s30 + $0x8] sm:$0xff] }
  0x85   : >> { %619 = vrot.lane.b32.xlu0 %v618_v22, %s676_s4  ;;  %v643_v30 = vpack.i.bf16 %v803_v28, %v805_v29 }
  0x86   : >> { %629 = vrot.lane.b32.xlu1 %v628_v26, %s677_s5  ;;  %639 = vrot.lane.b32.xlu2 %v638_v27, %s676_s4 }
  0x8d   : >> { %624 = vrot.lane.b32.xlu0 %v628_v26, %s676_s4 }
  0x8e   : >> { %634 = vrot.lane.b32.xlu1 %v638_v27, %s677_s5  ;;  %644 = vrot.lane.b32.xlu2 %v643_v30, %s677_s5 }
  0x95   : >> { %649 = vrot.lane.b32.xlu0 %v618_v22, %s677_s5 }
  0x96   : >> { %654 = vrot.lane.b32.xlu1 %v643_v30, %s676_s4 }
  0xe0   : >> { %v640_v41 = vpop.permute.xlu2 %639 }
  0xe1   : >> { %v641_v48 = vunpack.i.l.bf16 %v640_v41  ;;  %v642_v49 = vunpack.i.h.bf16 %v640_v41 }
  0xe8   : >> { %v645_v50 = vpop.permute.xlu2 %644 }
  0xe9   : >> { %v646_v51 = vunpack.i.l.bf16 %v645_v50  ;;  %v647_v53 = vunpack.i.h.bf16 %v645_v50 }
  0xf7   : >> { %v620_v31 = vpop.permute.xlu0 %619 }
  0xf8   : >> { %v621_v32 = vunpack.i.l.bf16 %v620_v31  ;;  %v630_v33 = vpop.permute.xlu1 %629  ;;  %v622_v36 = vunpack.i.h.bf16 %v620_v31 }
  0xf9   : >> { %v631_v34 = vunpack.i.l.bf16 %v630_v33  ;;  %v632_v35 = vunpack.i.h.bf16 %v630_v33 }
  0xfa   : >> { %359 = vmatpush.msra.mxu2 %v621_v32 }
  0xfb   : >> { %339 = vmatpush.msra.mxu1 %v631_v34 }
  0xfc   : >> { %360 = vmatpush.msra.mxu2 %v622_v36 }
  0xfd   : >> { %340 = vmatpush.msra.mxu1 %v632_v35 }
  0xfe   : >> { %361 = vmatpush.msra.mxu2 %v568_v20  ;;  %569 = vmatmul.msk.f32.vlgmr.msra.gmra.mxu1 %vm301_vm14, %v753_v14 }
  0xff   : >> { %v625_v37 = vpop.permute.xlu0 %624  ;;  %571 = vmatpush.msk.msrb.mxu1 %vm404_vm15, %v767_v16 }
 0x100   : >> { %362 = vmatpush.msra.mxu2 %v567_v19  ;;  %v626_v38 = vunpack.i.l.bf16 %v625_v37  ;;  %v627_v39 = vunpack.i.h.bf16 %v625_v37  ;;  %v635_v40 = vpop.permute.xlu1 %634 }
 0x101   : >> { %572 = vmatpush.msk.msrb.mxu1 %vm195_vm7, %v678_v42  ;;  %v636_v43 = vunpack.i.l.bf16 %v635_v40  ;;  %v637_v47 = vunpack.i.h.bf16 %v635_v40 }
 0x102   : >> { %305 = vmatpush.msra.mxu0 %v626_v38  ;;  %363 = vmatpush.msra.mxu2 %v631_v34 }
 0x103   : >> { %573 = vmatpush.msk.msrb.mxu1 %vm194_vm6, %v678_v42 }
 0x104   : >> { %306 = vmatpush.msra.mxu0 %v627_v39  ;;  %364 = vmatpush.msra.mxu2 %v632_v35 }
 0x105   : >> { %574 = vmatpush.msk.msrb.mxu1 %vm193_vm5, %v678_v42 }
 0x106   : >> { %307 = vmatpush.msra.mxu0 %v564_v23  ;;  %365 = vmatpush.msra.mxu2 %v626_v38 }
 0x107   : >> { %v650_v44 = vpop.permute.xlu0 %649  ;;  %575 = vmatpush.msk.msrb.mxu1 %vm192_vm4, %v678_v42 }
 0x108   : >> { %308 = vmatpush.msra.mxu0 %v794_v21  ;;  %366 = vmatpush.msra.mxu2 %v627_v39  ;;  %v651_v45 = vunpack.i.l.bf16 %v650_v44  ;;  %v652_v46 = vunpack.i.h.bf16 %v650_v44  ;;  %v655_v52 = vpop.permute.xlu1 %654 }
 0x109   : >> { %576 = vmatpush.msk.msrb.mxu1 %vm191_vm3, %v678_v42  ;;  %v656_v54 = vunpack.i.l.bf16 %v655_v52  ;;  %v657_v55 = vunpack.i.h.bf16 %v655_v52 }
 0x10a   : >> { %309 = vmatpush.msra.mxu0 %v636_v43  ;;  %367 = vmatpush.msra.mxu2 %v564_v23 }
 0x10b   : >> { %393 = vmatpush.msra.mxu3 %v651_v45  ;;  %577 = vmatpush.msk.msrb.mxu1 %vm190_vm2, %v678_v42 }
 0x10c   : >> { %310 = vmatpush.msra.mxu0 %v637_v47  ;;  %368 = vmatpush.msra.mxu2 %v794_v21 }
 0x10d   : >> { %394 = vmatpush.msra.mxu3 %v652_v46 }
 0x10e   : >> { %311 = vmatpush.msra.mxu0 %v641_v48  ;;  %369 = vmatpush.msra.mxu2 %v636_v43 }
 0x10f   : >> { %570 = vmatmul.msk.f32.vlgmr.msra.gmra.mxu3 %vm301_vm14, %v753_v14 }
 0x110   : >> { %312 = vmatpush.msra.mxu0 %v642_v49  ;;  %370 = vmatpush.msra.mxu2 %v637_v47 }
 0x111   : >> { %579 = vmatpush.msk.msrb.mxu3 %vm404_vm15, %v783_v17 }
 0x112   : >> { %313 = vmatpush.msra.mxu0 %v798_v25  ;;  %371 = vmatpush.msra.mxu2 %v641_v48 }
 0x113   : >> { %580 = vmatpush.msk.msrb.mxu3 %vm217_vm13, %v678_v42 }
 0x114   : >> { %314 = vmatpush.msra.mxu0 %v796_v24  ;;  %372 = vmatpush.msra.mxu2 %v642_v49 }
 0x115   : >> { %581 = vmatpush.msk.msrb.mxu3 %vm216_vm12, %v678_v42 }
 0x116   : >> { %315 = vmatpush.msra.mxu0 %v646_v51  ;;  %373 = vmatpush.msra.mxu2 %v798_v25 }
 0x117   : >> { %582 = vmatpush.msk.msrb.mxu3 %vm215_vm11, %v678_v42 }
 0x118   : >> { %316 = vmatpush.msra.mxu0 %v647_v53  ;;  %374 = vmatpush.msra.mxu2 %v796_v24 }
 0x119   : >> { %375 = vmatmul.f32.vlgmr.msra.gmra.mxu2 %v748_v13  ;;  %583 = vmatpush.msk.msrb.mxu3 %vm214_vm10, %v678_v42 }
 0x11a   : >> { %317 = vmatpush.msra.mxu0 %v656_v54 }
 0x11b   : >> { %584 = vmatpush.msk.msrb.mxu3 %vm213_vm9, %v678_v42 }
 0x11c   : >> { %318 = vmatpush.msra.mxu0 %v657_v55 }
 0x11d   : >> { %585 = vmatpush.msk.msrb.mxu3 %vm212_vm8, %v678_v42 }
 0x11e   : >> { %319 = vmatpush.msra.mxu0 %v805_v29 }
 0x120   : >> { %320 = vmatpush.msra.mxu0 %v803_v28 }
 0x121   : >> { %321 = vmatmul.f32.vlgmr.msra.gmra.mxu0 %v748_v13 }
 0x17b   : >> { %v342_v57 = vpop.f32.mrf.mxu1 }
 0x192   : >> { %v396_v56 = vpop.f32.mrf.mxu3 }
 0x19c   : >> { %v376_v58 = vpop.f32.mrf.mxu2 }
 0x19d   : >> { %v397_v59 = vadd.f32 %v396_v56, %v376_v58 }
 0x19e   : >> { %v322_v60 = vpop.f32.mrf.mxu0 }
 0x19f   : >> { %v343_v61 = vadd.f32 %v342_v57, %v322_v60 }
 0x1a1   : >> { %v399_v62 = vmax.f32 %v343_v61, %v397_v59 }
 0x1a3   : >> { %578 = vmatmul.msk.f32.vlgmr.msrb.gmra.mxu1 %vm400_vm0, %v399_v62  ;;  %586 = vmatmul.msk.f32.vlgmr.msrb.gmra.mxu3 %vm400_vm0, %v399_v62 }
 0x220   : >> { %v425_v63 = vpop.f32.mrf.mxu1 }
 0x226   : >> { %v448_v0 = vpop.f32.mrf.mxu3 }
 0x227   : >> { %v451_v1 = vmax.f32 %v425_v63, %v448_v0 }
 0x229   : >> { %v452_v2 = vadd.f32 %v451_v1, %v785_v18  ;;  %237 = sbr.rel (!%p235_p4) target bundleno = 128 (0x80), region = 74 }
 0x22b   : >> { %v453_v3 = vmax.f32 %v452_v2, 0.0 }
 0x22d   : >> { %457 = vst.msk [vmem:[%s455_s7] sm:$0xff] %vm456_vm1, %v453_v3 }
 0x22e PF: > { %s13_s12 = sadd.s32 1, %s668_s12  }
 0x22f   : > { %p10_p5 = scmp.ge.s32.totalorder %s13_s12, 4  }
 0x231   :  { %12 = sbr.rel (!%p10_p5) target bundleno = 1 (0x1), region = 85 }

// kernel: target_detector_forward.5
= control target key start
LH: loop header
LB: loop body
LE: loop exit
PB: predicated region body
PF: predicated region fallthrough
CT: control target
= control target key end

     0   :  { %s704_s12 = smov 0   ;;  %s948_s0 = inlined_call_operand.vmem [shape: f32[2,110,8,110], index: 0, kind: input, shape index: {}]   ;;  %s949_s1 = inlined_call_operand.vmem [shape: f32[16,72], index: 1, kind: input, shape index: {}]   ;;  %s950_s2 = inlined_call_operand.vmem [shape: f32[16,1], index: 2, kind: input, shape index: {}]   ;;  %s951_s3 = inlined_call_operand.vmem [shape: f32[2,54,16,54], index: 3, kind: output, shape index: {}]  }
   0x1 LB: > { %s540_s13 = sadd.s32 4294967295, %s673_s12   ;;  %p544_p0 = scmp.ge.s32.totalorder %s673_s12, 1  ;;  %s673_s12 = sphi %s704_s12, %s13_s12  }
   0x2   : > { %p137_p1 = scmp.lt.s32.totalorder %s673_s12, 3 }
   0x4   : > { %p138_p2 = pnand %p544_p0, %p137_p1 }
   0x5   : > { %p161_p3 = scmp.lt.s32.totalorder (!%p138_p2), %s540_s13, 1  ;;  %s844_s30 = smov (!%p138_p2), 0  }
   0x6   : > { %141 = sbr.rel (%p138_p2) target bundleno = 556 (0x22c), region = 32 }
   0xb   : > { %v173_v0 = vld [vmem:[%s950_s2] sm:$0xff]  ;;  %v679_v1 = vmov 0   ;;  %s970_s13 = smov (!%p161_p3, %s540_s13), 1  ;;  %v174_v2 = vld [vmem:[%s950_s2 + $0x8] sm:$0xff]  ;;  %v185_v3 = vlaneseq  ;;  %v680_v23 = vmov 0.0  }
   0xc   : > { %652 = vset.pattern.permute.xlu0 %v679_v1  ;;  %s629_s16 = smul.u32 880, %s970_s13  ;;  %v763_v17 = vld [vmem:[%s949_s1] sm:$0xff]  ;;  %v768_v18 = vld [vmem:[%s949_s1 + $0x8] sm:$0xff] }
   0xd   : > { %177 = vperm.xlu0 %652, %v173_v0   ;;  %s630_s17 = smul.u32 864, %s970_s13  ;;  %v201_v4 = vand.u32 127, %v185_v3  ;;  %v728_v5 = vshrl.u32 %v185_v3, 7 }
   0xe   : > { %s718_s20 = scalar_lea.vmem %s948_s0, %s629_s16 }
   0xf   : > { %s726_s25 = scalar_lea.vmem %s951_s3, %s630_s17  ;;  %v730_v6 = vmul.u32 2, %v201_v4  ;;  %v199_v7 = vadd.s32 104, %v728_v5  ;;  %v737_v9 = vadd.s32 8, %v728_v5  ;;  %v740_v10 = vadd.s32 16, %v728_v5 }
  0x10   : > { %v743_v11 = vadd.s32 24, %v728_v5  ;;  %v746_v12 = vadd.s32 32, %v728_v5  ;;  %v749_v13 = vadd.s32 40, %v728_v5  ;;  %v752_v14 = vadd.s32 48, %v728_v5 }
  0x11   : > { %v734_v8 = vadd.s32 1, %v730_v6  ;;  %v755_v15 = vadd.s32 56, %v728_v5  ;;  %v758_v16 = vadd.s32 64, %v728_v5  ;;  %v771_v19 = vadd.s32 72, %v728_v5 }
  0x12   : > { %v774_v20 = vadd.s32 80, %v728_v5  ;;  %v777_v21 = vadd.s32 88, %v728_v5  ;;  %v780_v22 = vadd.s32 96, %v728_v5  ;;  %vm216_vm13 = vcmp.eq.s32.totalorder %v199_v7, %v730_v6 }
  0x13   : > { %vm210_vm7 = vcmp.eq.s32.totalorder %v755_v15, %v730_v6  ;;  %vm211_vm8 = vcmp.eq.s32.totalorder %v758_v16, %v730_v6  ;;  %vm212_vm9 = vcmp.eq.s32.totalorder %v771_v19, %v730_v6  ;;  %v811_v24 = vsel %vm216_vm13, 1.0, %v680_v23 }
  0x14   : > { %vm213_vm10 = vcmp.eq.s32.totalorder %v774_v20, %v730_v6  ;;  %vm214_vm11 = vcmp.eq.s32.totalorder %v777_v21, %v730_v6  ;;  %vm215_vm12 = vcmp.eq.s32.totalorder %v780_v22, %v730_v6  ;;  %vm252_vm14 = vcmp.eq.s32.totalorder %v752_v14, %v734_v8 }
  0x15   : > { %182 = vperm.xlu0 %652, %v174_v2   ;;  %vm253_vm13 = vcmp.eq.s32.totalorder %v755_v15, %v734_v8  ;;  %vm254_vm15 = vcmp.eq.s32.totalorder %v758_v16, %v734_v8  ;;  %vm259_vm3 = vcmp.eq.s32.totalorder %v199_v7, %v734_v8 }
  0x16   : > { %v838_v25 = vsel %vm259_vm3, 1.0, %v680_v23 }
  0x7f   : > { %v840_v26 = vpop.permute.xlu0 %177 }
  0x87   : > { %v842_v27 = vpop.permute.xlu0 %182 }
  0x88 LB: >> { %s625_s4 = sshll.u32 %s677_s30, 4  ;;  %s681_s6 = smov 126   ;;  %vm400_vm3 = vcmask 1043456   ;;  %v683_v37 = vmov 1.0   ;;  %vm952_vm4 = vcmp.eq.s32.totalorder %v780_v22, %v734_v8  ;;  %vm953_vm2 = vcmp.eq.s32.totalorder %v777_v21, %v734_v8  ;;  %s677_s30 = sphi %s844_s30, %s293_s30  }
  0x89   : >> { %s296_s5 = scalar_lea.vmem %s718_s20, %s625_s4  ;;  %s682_s7 = smov 127   ;;  %590 = vmatpush.msk.msra.mxu2 %vm400_vm3, %v811_v24  ;;  %606 = vmatpush.msk.msra.mxu3 %vm400_vm3, %v838_v25  ;;  %vm954_vm1 = vcmp.eq.s32.totalorder %v774_v20, %v734_v8  ;;  %vm955_vm0 = vcmp.eq.s32.totalorder %v771_v19, %v734_v8  ;;  %vm956_vm6 = vcmp.eq.s32.totalorder %v752_v14, %v730_v6 }
  0x8a   : >> { %v582_v28 = vld [vmem:[%s296_s5 + $0x10] sm:$0xff]  ;;  %v585_v29 = vld [vmem:[%s296_s5 + $0x18] sm:$0xff]  ;;  %v579_v30 = vld [vmem:[%s296_s5 + $0x8] sm:$0xff]  ;;  %vm957_vm5 = vcmp.eq.s32.totalorder %v749_v13, %v730_v6  ;;  %vm958_vm3 = vcmp.eq.s32.totalorder %v749_v13, %v734_v8  ;;  %s460_s8 = scalar_lea.vmem %s726_s25, %s625_s4  ;;  %s293_s30 = sadd.s32 1, %s677_s30  }
  0x8b   : >> { %v653_v31 = vpack.i.bf16 %v585_v29, %v582_v28  ;;  %321 = vrot.lane.b32.xlu1 %v579_v30, %s681_s6  ;;  %v297_v32 = vld [vmem:[%s296_s5] sm:$0xff]  ;;  %591 = vmatpush.msk.msra.mxu2 %vm215_vm12, %v683_v37  ;;  %p290_p4 = scmp.ge.s32.totalorder %s293_s30, 54  }
  0x8c   : >> { %314 = vrot.lane.b32.xlu2 %v297_v32, %s681_s6  ;;  %607 = vmatpush.msk.msra.mxu3 %vm952_vm4, %v683_v37  ;;  %vm961_vm4 = vcmp.eq.s32.totalorder %v743_v11, %v730_v6 }
  0x8d   : >> { %654 = vrot.lane.b32.xlu0 %v653_v31, %s681_s6  ;;  %592 = vmatpush.msk.msra.mxu2 %vm214_vm11, %v683_v37 }
  0x8e   : >> { %608 = vmatpush.msk.msra.mxu3 %vm953_vm2, %v683_v37  ;;  %vm331_vm2 = vcmask 588800  }
  0x8f   : >> { %593 = vmatpush.msk.msra.mxu2 %vm213_vm10, %v683_v37 }
  0x90   : >> { %609 = vmatpush.msk.msra.mxu3 %vm954_vm1, %v683_v37  ;;  %vm960_vm1 = vcmp.eq.s32.totalorder %v746_v12, %v734_v8 }
  0x91   : >> { %594 = vmatpush.msk.msra.mxu2 %vm212_vm9, %v683_v37 }
  0x92   : >> { %610 = vmatpush.msk.msra.mxu3 %vm955_vm0, %v683_v37  ;;  %vm959_vm0 = vcmp.eq.s32.totalorder %v746_v12, %v730_v6 }
  0x93   : >> { %318 = vrot.lane.b32.xlu1 %v579_v30, %s682_s7  ;;  %595 = vmatpush.msk.msra.mxu2 %vm211_vm8, %v683_v37 }
  0x94   : >> { %311 = vrot.lane.b32.xlu2 %v297_v32, %s682_s7  ;;  %611 = vmatpush.msk.msra.mxu3 %vm254_vm15, %v683_v37 }
  0x95   : >> { %659 = vrot.lane.b32.xlu0 %v653_v31, %s682_s7  ;;  %596 = vmatpush.msk.msra.mxu2 %vm210_vm7, %v683_v37 }
  0x96   : >> { %612 = vmatpush.msk.msra.mxu3 %vm253_vm13, %v683_v37 }
  0x97   : >> { %597 = vmatpush.msk.msra.mxu2 %vm956_vm6, %v683_v37  ;;  %vm968_vm6 = vcmp.eq.s32.totalorder %v728_v5, %v734_v8 }
  0x98   : >> { %613 = vmatpush.msk.msra.mxu3 %vm252_vm14, %v683_v37 }
  0x99   : >> { %598 = vmatpush.msk.msra.mxu2 %vm957_vm5, %v683_v37  ;;  %vm967_vm5 = vcmp.eq.s32.totalorder %v728_v5, %v730_v6 }
  0x9a   : >> { %614 = vmatpush.msk.msra.mxu3 %vm958_vm3, %v683_v37  ;;  %vm962_vm3 = vcmp.eq.s32.totalorder %v743_v11, %v734_v8 }
  0x9b   : >> { %599 = vmatpush.msk.msra.mxu2 %vm959_vm0, %v683_v37  ;;  %vm963_vm0 = vcmp.eq.s32.totalorder %v740_v10, %v730_v6 }
  0x9c   : >> { %615 = vmatpush.msk.msra.mxu3 %vm960_vm1, %v683_v37  ;;  %vm964_vm1 = vcmp.eq.s32.totalorder %v740_v10, %v734_v8 }
  0x9d   : >> { %600 = vmatpush.msk.msra.mxu2 %vm961_vm4, %v683_v37  ;;  %vm965_vm4 = vcmp.eq.s32.totalorder %v737_v9, %v730_v6 }
  0x9e   : >> { %616 = vmatpush.msk.msra.mxu3 %vm962_vm3, %v683_v37  ;;  %vm966_vm3 = vcmp.eq.s32.totalorder %v737_v9, %v734_v8 }
  0x9f   : >> { %601 = vmatpush.msk.msra.mxu2 %vm963_vm0, %v683_v37  ;;  %vm393_vm0 = vcmask 883712  }
  0xa0   : >> { %617 = vmatpush.msk.msra.mxu3 %vm964_vm1, %v683_v37 }
  0xa1   : >> { %602 = vmatpush.msk.msra.mxu2 %vm965_vm4, %v683_v37 }
  0xa2   : >> { %618 = vmatpush.msk.msra.mxu3 %vm966_vm3, %v683_v37 }
  0xa3   : >> { %603 = vmatpush.msk.msra.mxu2 %vm967_vm5, %v683_v37 }
  0xa4   : >> { %619 = vmatpush.msk.msra.mxu3 %vm968_vm6, %v683_v37 }
  0xe6   : >> { %v315_v41 = vpop.permute.xlu2 %314 }
  0xee   : >> { %v312_v43 = vpop.permute.xlu2 %311 }
  0xfd   : >> { %v322_v36 = vpop.permute.xlu1 %321 }
  0xff   : >> { %v655_v33 = vpop.permute.xlu0 %654 }
 0x100   : >> { %v656_v34 = vunpack.i.l.bf16 %v655_v33  ;;  %v657_v35 = vunpack.i.h.bf16 %v655_v33 }
 0x102   : >> { %345 = vmatpush.msra.mxu0 %v656_v34  ;;  %375 = vmatpush.msra.mxu1 %v657_v35 }
 0x105   : >> { %v319_v42 = vpop.permute.xlu1 %318 }
 0x107   : >> { %v660_v38 = vpop.permute.xlu0 %659 }
 0x108   : >> { %v662_v39 = vunpack.i.h.bf16 %v660_v38  ;;  %v661_v40 = vunpack.i.l.bf16 %v660_v38 }
 0x10a   : >> { %346 = vmatpush.msra.mxu0 %v661_v40  ;;  %376 = vmatpush.msra.mxu1 %v662_v39 }
 0x10c   : >> { %347 = vmatpush.msra.mxu0 %v582_v28  ;;  %377 = vmatpush.msra.mxu1 %v585_v29 }
 0x10e   : >> { %348 = vmatpush.msra.mxu0 %v322_v36  ;;  %378 = vmatpush.msra.mxu1 %v656_v34 }
 0x110   : >> { %349 = vmatpush.msra.mxu0 %v319_v42  ;;  %379 = vmatpush.msra.mxu1 %v661_v40 }
 0x112   : >> { %350 = vmatpush.msra.mxu0 %v579_v30  ;;  %380 = vmatpush.msra.mxu1 %v582_v28 }
 0x114   : >> { %351 = vmatpush.msra.mxu0 %v315_v41  ;;  %381 = vmatpush.msra.mxu1 %v322_v36 }
 0x116   : >> { %352 = vmatpush.msra.mxu0 %v312_v43  ;;  %382 = vmatpush.msra.mxu1 %v319_v42 }
 0x118   : >> { %353 = vmatpush.msra.mxu0 %v297_v32  ;;  %383 = vmatpush.msra.mxu1 %v579_v30 }
 0x119   : >> { %586 = vmatmul.msk.f32.vlgmr.msra.gmra.mxu0 %vm331_vm2, %v763_v17  ;;  %588 = vmatmul.msk.f32.vlgmr.msra.gmra.mxu1 %vm331_vm2, %v763_v17 }
 0x121   : >> { %587 = vmatmul.msk.f32.gmra.mxu0 %vm331_vm2, %v768_v18  ;;  %589 = vmatmul.msk.f32.gmra.mxu1 %vm331_vm2, %v768_v18  ;;  %vm461_vm2 = vcmask 441344  }
 0x196   : >> { %v355_v44 = vpop.f32.mrf.mxu0  ;;  %v385_v45 = vpop.f32.mrf.mxu1 }
 0x197   : >> { %v391_v46 = vmax.f32 %v355_v44, %v385_v45 }
 0x199   : >> { %604 = vmatmul.msk.f32.vlgmr.msra.gmra.mxu2 %vm393_vm0, %v391_v46  ;;  %620 = vmatmul.msk.f32.vlgmr.msra.gmra.mxu3 %vm393_vm0, %v391_v46 }
 0x19e   : >> { %v358_v47 = vpop.f32.mrf.mxu0  ;;  %v388_v48 = vpop.f32.mrf.mxu1 }
 0x19f   : >> { %v392_v49 = vmax.f32 %v358_v47, %v388_v48 }
 0x1a1   : >> { %605 = vmatmul.msk.f32.gmra.mxu2 %vm393_vm0, %v392_v49  ;;  %621 = vmatmul.msk.f32.gmra.mxu3 %vm393_vm0, %v392_v49 }
 0x21c   : >> { %v421_v50 = vpop.f32.mrf.mxu2  ;;  %v447_v51 = vpop.f32.mrf.mxu3 }
 0x21d   : >> { %v453_v52 = vmax.f32 %v421_v50, %v447_v51 }
 0x21f   : >> { %v455_v53 = vadd.f32 %v453_v52, %v840_v26 }
 0x221   : >> { %v457_v54 = vmax.f32 %v455_v53, 0.0 }
 0x223   : >> { %462 = vst.msk [vmem:[%s460_s8] sm:$0xff] %vm461_vm2, %v457_v54 }
 0x224   : >> { %v424_v55 = vpop.f32.mrf.mxu2  ;;  %v450_v56 = vpop.f32.mrf.mxu3 }
 0x225   : >> { %v454_v57 = vmax.f32 %v424_v55, %v450_v56 }
 0x227   : >> { %v456_v58 = vadd.f32 %v454_v57, %v842_v27  ;;  %292 = sbr.rel (!%p290_p4) target bundleno = 136 (0x88), region = 74 }
 0x229   : >> { %v458_v59 = vmax.f32 %v456_v58, 0.0 }
 0x22b   : >> { %463 = vst.msk [vmem:[%s460_s8 + $0x8] sm:$0xff] %vm461_vm2, %v458_v59 }
 0x22c PF: > { %s13_s12 = sadd.s32 1, %s673_s12  }
 0x22d   : > { %p10_p5 = scmp.ge.s32.totalorder %s13_s12, 4  }
 0x22f   :  { %12 = sbr.rel (!%p10_p5) target bundleno = 1 (0x1), region = 85 }

// kernel: target_detector_forward.4
= control target key start
LH: loop header
LB: loop body
LE: loop exit
PB: predicated region body
PF: predicated region fallthrough
CT: control target
= control target key end

     0   :  { %s1409_s12 = smov 0   ;;  %s2250_s0 = inlined_call_operand.vmem [shape: f32[2,224,8,224], index: 0, kind: input, shape index: {}]   ;;  %s2251_s1 = inlined_call_operand.vmem [shape: f32[8,200], index: 1, kind: input, shape index: {}]   ;;  %s2252_s2 = inlined_call_operand.vmem [shape: f32[8,1], index: 2, kind: input, shape index: {}]   ;;  %s2253_s3 = inlined_call_operand.vmem [shape: f32[2,110,8,110], index: 3, kind: output, shape index: {}]  }
   0x1 LB: > { %s1020_s13 = sadd.s32 4294967295, %s1375_s12   ;;  %p1024_p0 = scmp.ge.s32.totalorder %s1375_s12, 1  ;;  %s1375_s12 = sphi %s1409_s12, %s13_s12  }
   0x2   : > { %p137_p1 = scmp.lt.s32.totalorder %s1375_s12, 3 }
   0x4   : > { %p138_p2 = pnand %p1024_p0, %p137_p1 }
   0x5   : > { %p161_p3 = scmp.lt.s32.totalorder (!%p138_p2), %s1020_s13, 1  ;;  %s1646_s28 = smov (!%p138_p2), 0  }
   0x6   : > { %141 = sbr.rel (%p138_p2) target bundleno = 728 (0x2d8), region = 32 }
   0xb   : > { %v173_v0 = vld [vmem:[%s2252_s2] sm:$0xff]  ;;  %v1381_v1 = vmov 0   ;;  %s2433_s13 = smov (!%p161_p3, %s1020_s13), 1  ;;  %v179_v2 = vlaneseq  ;;  %v1472_v17 = vld [vmem:[%s2251_s1 + $0x8] sm:$0xff]  ;;  %v1382_v36 = vmov 0.0  }
   0xc   : > { %1204 = vset.pattern.permute.xlu0 %v1381_v1  ;;  %s1178_s16 = smul.u32 3584, %s2433_s13  ;;  %v1467_v16 = vld [vmem:[%s2251_s1] sm:$0xff] }
   0xd   : > { %176 = vperm.xlu0 %1204, %v173_v0   ;;  %s1179_s17 = smul.u32 880, %s2433_s13  ;;  %v209_v3 = vand.u32 127, %v179_v2  ;;  %v1430_v4 = vshrl.u32 %v179_v2, 7 }
   0xe   : > { %s1423_s20 = scalar_lea.vmem %s2250_s0, %s1178_s16 }
   0xf   : > { %s1428_s23 = scalar_lea.vmem %s2253_s3, %s1179_s17  ;;  %2313 = vst [vmem:[#allocation2_spill] sm:$0xff] %v1430_v4  ;;  %v1432_v5 = vmul.u32 2, %v209_v3  ;;  %v1435_v6 = vadd.s32 216, %v1430_v4  ;;  %v1441_v8 = vadd.s32 8, %v1430_v4  ;;  %v1444_v9 = vadd.s32 16, %v1430_v4 }
  0x10   : > { %v1447_v10 = vadd.s32 24, %v1430_v4  ;;  %v1450_v11 = vadd.s32 32, %v1430_v4  ;;  %v1453_v12 = vadd.s32 40, %v1430_v4  ;;  %v1456_v13 = vadd.s32 48, %v1430_v4 }
  0x11   : > { %v1438_v7 = vadd.s32 1, %v1432_v5  ;;  %2314 = vst [vmem:[#allocation3_spill] sm:$0xff] %v1441_v8  ;;  %v1459_v14 = vadd.s32 56, %v1430_v4  ;;  %v1462_v15 = vadd.s32 64, %v1430_v4  ;;  %v1475_v18 = vadd.s32 72, %v1430_v4 }
  0x12   : > { %2315 = vst [vmem:[#allocation4_spill] sm:$0xff] %v1444_v9  ;;  %v1478_v19 = vadd.s32 80, %v1430_v4  ;;  %v1481_v20 = vadd.s32 88, %v1430_v4  ;;  %v1484_v21 = vadd.s32 96, %v1430_v4  ;;  %v1487_v22 = vadd.s32 104, %v1430_v4 }
  0x13   : > { %2316 = vst [vmem:[#allocation5_spill] sm:$0xff] %v1447_v10  ;;  %v1490_v23 = vadd.s32 112, %v1430_v4  ;;  %v1493_v24 = vadd.s32 120, %v1430_v4  ;;  %v1496_v25 = vadd.s32 128, %v1430_v4  ;;  %v1499_v26 = vadd.s32 136, %v1430_v4 }
  0x14   : > { %2317 = vst [vmem:[#allocation6_spill] sm:$0xff] %v1450_v11  ;;  %v1502_v27 = vadd.s32 144, %v1430_v4  ;;  %v1505_v28 = vadd.s32 152, %v1430_v4  ;;  %v1508_v29 = vadd.s32 160, %v1430_v4  ;;  %v1511_v30 = vadd.s32 168, %v1430_v4 }
  0x15   : > { %2318 = vst [vmem:[#allocation7_spill] sm:$0xff] %v1453_v12  ;;  %v1514_v31 = vadd.s32 176, %v1430_v4  ;;  %v1517_v32 = vadd.s32 184, %v1430_v4  ;;  %v1520_v33 = vadd.s32 192, %v1430_v4  ;;  %v1523_v34 = vadd.s32 200, %v1430_v4 }
  0x16   : > { %2319 = vst [vmem:[#allocation8_spill] sm:$0xff] %v1456_v13  ;;  %v1526_v35 = vadd.s32 208, %v1430_v4  ;;  %vm224_vm13 = vcmp.eq.s32.totalorder %v1487_v22, %v1432_v5  ;;  %vm225_vm14 = vcmp.eq.s32.totalorder %v1490_v23, %v1432_v5  ;;  %vm226_vm15 = vcmp.eq.s32.totalorder %v1493_v24, %v1432_v5 }
  0x17   : > { %2320 = vst [vmem:[#allocation9_spill] sm:$0xff] %v1459_v14  ;;  %vm238_vm4 = vcmp.eq.s32.totalorder %v1435_v6, %v1432_v5  ;;  %vm306_vm1 = vcmp.eq.s32.totalorder %v1478_v19, %v1438_v7  ;;  %vm307_vm2 = vcmp.eq.s32.totalorder %v1481_v20, %v1438_v7  ;;  %vm308_vm7 = vcmp.eq.s32.totalorder %v1484_v21, %v1438_v7 }
  0x18   : > { %2321 = vst [vmem:[#allocation10_spill] sm:$0xff] %v1462_v15  ;;  %v1586_v37 = vsel %vm238_vm4, 1.0, %v1382_v36  ;;  %vm309_vm3 = vcmp.eq.s32.totalorder %v1487_v22, %v1438_v7  ;;  %vm310_vm8 = vcmp.eq.s32.totalorder %v1490_v23, %v1438_v7  ;;  %vm311_vm5 = vcmp.eq.s32.totalorder %v1493_v24, %v1438_v7 }
  0x19   : > { %2322 = vst [vmem:[#allocation11_spill] sm:$0xff] %v1475_v18  ;;  %vm321_vm10 = vcmp.eq.s32.totalorder %v1523_v34, %v1438_v7  ;;  %vm322_vm6 = vcmp.eq.s32.totalorder %v1526_v35, %v1438_v7  ;;  %vm323_vm11 = vcmp.eq.s32.totalorder %v1435_v6, %v1438_v7 }
  0x1a   : > { %2323 = vst [vmem:[#allocation12_spill] sm:$0xff] %v1478_v19  ;;  %v1642_v38 = vsel %vm323_vm11, 1.0, %v1382_v36 }
  0x1b   : > { %2324 = vst [vmem:[#allocation13_spill] sm:$0xff] %v1481_v20 }
  0x1c   : > { %2325 = vst [vmem:[#allocation14_spill] sm:$0xff] %v1496_v25 }
  0x1d   : > { %2326 = vst [vmem:[#allocation15_spill] sm:$0xff] %v1499_v26 }
  0x1e   : > { %2327 = vst [vmem:[#allocation16_spill] sm:$0xff] %v1502_v27 }
  0x1f   : > { %2328 = vst [vmem:[#allocation17_spill] sm:$0xff] %v1505_v28 }
  0x20   : > { %2329 = vst [vmem:[#allocation18_spill] sm:$0xff] %v1508_v29 }
  0x21   : > { %2330 = vst [vmem:[#allocation19_spill] sm:$0xff] %v1511_v30 }
  0x22   : > { %2331 = vst [vmem:[#allocation20_spill] sm:$0xff] %v1514_v31 }
  0x23   : > { %2332 = vst [vmem:[#allocation21_spill] sm:$0xff] %v1517_v32 }
  0x24   : > { %2333 = vst [vmem:[#allocation22_spill] sm:$0xff] %v1520_v33 }
  0x25   : > { %2334 = vst [vmem:[#allocation23_spill] sm:$0xff] %v1523_v34 }
  0x26   : > { %2335 = vst [vmem:[#allocation24_spill] sm:$0xff] %v1526_v35 }
  0x27   : > { %2336 = vst [vmem:[#allocation25_spill] sm:$0xff] %v1586_v37 }
  0x28   : > { %2337 = vst [vmem:[#allocation26_spill] sm:$0xff] %v1642_v38 }
  0x7f   : > { %v1644_v39 = vpop.permute.xlu0 %176 }
  0x80   : > { %2338 = vst [vmem:[#allocation27_spill] sm:$0xff] %v1644_v39 }
  0x81 LB: >> { %s1172_s29 = sshll.u32 %s1379_s28, 5  ;;  %s1383_s4 = smov 127   ;;  %vm428_vm11 = vcmask 1039360   ;;  %vm436_vm0 = vcmask 1031168   ;;  %vm444_vm12 = vcmask 1022976   ;;  %vm539_vm9 = vcmask 7168   ;;  %s1379_s28 = sphi %s1646_s28, %s385_s28  }
  0x82   : >> { %s1653_s30 = scalar_lea.vmem %s1423_s20, %s1172_s29  ;;  %s1384_s5 = smov 125   ;;  %vm609_vm4 = vcmask 588800  }
  0x83   : >> { %v1656_v40 = vld [vmem:[%s1653_s30 + $0x40] sm:$0xff]  ;;  %v1659_v41 = vld [vmem:[%s1653_s30 + $0x48] sm:$0xff]  ;;  %v1666_v44 = vld [vmem:[%s1653_s30 + $0x38] sm:$0xff]  ;;  %s1385_s6 = smov 1   ;;  %s1386_s7 = smov 126  }
  0x84   : >> { %v1215_v42 = vpack.i.bf16 %v1656_v40, %v1659_v41  ;;  %v1225_v43 = vpack.i.bf16 %v1659_v41, %v1656_v40  ;;  %2339 = vst [vmem:[#allocation28_spill] sm:$0xff] %v1666_v44  ;;  %653 = vmatpush.msra.mxu2 %v1666_v44  ;;  %v1672_v45 = vld [vmem:[%s1653_s30 + $0x30] sm:$0xff]  ;;  %v1105_v47 = vld [vmem:[%s1653_s30 + $0x58] sm:$0xff]  ;;  %v1686_v50 = vld [vmem:[%s1653_s30 + $0x20] sm:$0xff]  ;;  %s1387_s8 = smov 124   ;;  %s1168_s9 = sshll.u32 %s1379_s28, 3 }
  0x85   : >> { %v1104_v46 = vld [vmem:[%s1653_s30 + $0x50] sm:$0xff]  ;;  %613 = vmatpush.msra.mxu0 %v1672_v45  ;;  %v1235_v49 = vpack.i.bf16 %v1672_v45, %v1666_v44  ;;  %v1689_v51 = vld [vmem:[%s1653_s30 + $0x28] sm:$0xff]  ;;  %v1700_v54 = vld [vmem:[%s1653_s30 + $0x18] sm:$0xff]  ;;  %v1275_v56 = vpack.i.bf16 %v1666_v44, %v1672_v45  ;;  %s933_s10 = scalar_lea.vmem %s1428_s23, %s1168_s9  ;;  %s385_s28 = sadd.s32 1, %s1379_s28  }
  0x86   : >> { %1216 = vrot.lane.b32.xlu1 %v1215_v42, %s1383_s4  ;;  %1206 = vrot.lane.b32.xlu0 %v1215_v42, %s1384_s5  ;;  %v1220_v48 = vpack.i.bf16 %v1105_v47, %v1104_v46  ;;  %2340 = vst [vmem:[#allocation29_spill] sm:$0xff] %v1689_v51  ;;  %v1260_v52 = vpack.i.bf16 %v1686_v50, %v1689_v51  ;;  %v1697_v53 = vld [vmem:[%s1653_s30 + $0x10] sm:$0xff]  ;;  %v1709_v57 = vld [vmem:[%s1653_s30 + $0x8] sm:$0xff]  ;;  %p382_p4 = scmp.ge.s32.totalorder %s385_s28, 110  }
  0x87   : >> { %1226 = vrot.lane.b32.xlu2 %v1225_v43, %s1385_s6  ;;  %2341 = vst [vmem:[#allocation30_spill] sm:$0xff] %v1700_v54  ;;  %v1285_v55 = vpack.i.bf16 %v1697_v53, %v1700_v54  ;;  %v1712_v58 = vld [vmem:[%s1653_s30] sm:$0xff] }
  0x88   : >> { %v1295_v59 = vpack.i.bf16 %v1712_v58, %v1709_v57 }
  0x8e   : >> { %1221 = vrot.lane.b32.xlu1 %v1220_v48, %s1384_s5  ;;  %1211 = vrot.lane.b32.xlu0 %v1215_v42, %s1386_s7 }
  0x8f   : >> { %1231 = vrot.lane.b32.xlu2 %v1220_v48, %s1386_s7 }
  0x96   : >> { %1241 = vrot.lane.b32.xlu1 %v1220_v48, %s1383_s4  ;;  %1236 = vrot.lane.b32.xlu0 %v1235_v49, %s1384_s5 }
  0x97   : >> { %1246 = vrot.lane.b32.xlu2 %v1235_v49, %s1386_s7 }
  0x9e   : >> { %1251 = vrot.lane.b32.xlu0 %v1235_v49, %s1383_s4  ;;  %1256 = vrot.lane.b32.xlu1 %v1220_v48, %s1385_s6 }
  0x9f   : >> { %1261 = vrot.lane.b32.xlu2 %v1260_v52, %s1387_s8 }
  0xa6   : >> { %1271 = vrot.lane.b32.xlu1 %v1260_v52, %s1386_s7  ;;  %1266 = vrot.lane.b32.xlu0 %v1260_v52, %s1384_s5 }
  0xa7   : >> { %1281 = vrot.lane.b32.xlu2 %v1285_v55, %s1387_s8 }
  0xae   : >> { %1286 = vrot.lane.b32.xlu1 %v1285_v55, %s1384_s5  ;;  %1276 = vrot.lane.b32.xlu0 %v1275_v56, %s1387_s8 }
  0xb6   : >> { %1291 = vrot.lane.b32.xlu1 %v1285_v55, %s1386_s7  ;;  %434 = vrot.lane.b32.xlu0 %v1709_v57, %s1386_s7 }
  0xbe   : >> { %1296 = vrot.lane.b32.xlu1 %v1295_v59, %s1387_s8 }
  0xc6   : >> { %442 = vrot.lane.b32.xlu1 %v1709_v57, %s1384_s5 }
  0xe1   : >> { %v1720_v60 = vpop.permute.xlu2 %1226 }
  0xe9   : >> { %v1232_v61 = vpop.permute.xlu2 %1231 }
  0xea   : >> { %v1234_v62 = vunpack.i.h.bf16 %v1232_v61  ;;  %v1233_v31 = vunpack.i.l.bf16 %v1232_v61 }
  0xec   : >> { %v1310_v63 = vpack.i.bf16 %v1700_v54, %v1234_v62 }
  0xee   : >> { %1311 = vrot.lane.b32.xlu0 %v1310_v63, %s1383_s4 }
  0xf1   : >> { %v1729_v47 = vpop.permute.xlu2 %1246 }
  0xf2   : >> { %v1733_v48 = vunpack.i.l.bf16 %v1729_v47 }
  0xf8   : >> { %v1217_v0 = vpop.permute.xlu1 %1216  ;;  %v1207_v1 = vpop.permute.xlu0 %1206 }
  0xf9   : >> { %v1208_v2 = vunpack.i.l.bf16 %v1207_v1  ;;  %v1726_v6 = vunpack.i.l.bf16 %v1217_v0  ;;  %v1219_v32 = vunpack.i.h.bf16 %v1217_v0 }
  0xfb   : >> { %v1300_v3 = vpack.i.bf16 %v1208_v2, %v1689_v51 }
  0xfd   : >> { %1301 = vrot.lane.b32.xlu2 %v1300_v3, %s1383_s4 }
 0x100   : >> { %v1222_v36 = vpop.permute.xlu1 %1221  ;;  %v1212_v42 = vpop.permute.xlu0 %1211 }
 0x101   : >> { %v1213_v43 = vunpack.i.l.bf16 %v1212_v42  ;;  %v1224_v39 = vunpack.i.h.bf16 %v1222_v36  ;;  %v1214_v25 = vunpack.i.h.bf16 %v1212_v42 }
 0x103   : >> { %v1305_v46 = vpack.i.bf16 %v1726_v6, %v1213_v43  ;;  %v550_v27 = vsel %vm436_vm0, %v1214_v25, %v1213_v43  ;;  %v1763_v43 = vsel %vm428_vm11, %v1219_v32, %v1726_v6  ;;  %v1229_v32 = vunpack.i.h.bf16 %v1720_v60 }
 0x105   : >> { %1306 = vrot.lane.b32.xlu1 %v1305_v46, %s1383_s4  ;;  %v1223_v46 = vunpack.i.l.bf16 %v1222_v36 }
 0x107   : >> { %v725_v28 = vsel %vm444_vm12, %v1223_v46, %v1224_v39 }
 0x108   : >> { %v1242_v49 = vpop.permute.xlu1 %1241  ;;  %v1237_v52 = vpop.permute.xlu0 %1236  ;;  %v1330_v42 = vpack.i.bf16 %v725_v28, %v550_v27  ;;  %v720_v27 = vsel %vm436_vm0, %v1233_v31, %v1234_v62 }
 0x109   : >> { %v1735_v55 = vunpack.i.h.bf16 %v1242_v49  ;;  %v1243_v56 = vunpack.i.l.bf16 %v1242_v49  ;;  %v1737_v59 = vunpack.i.l.bf16 %v1237_v52  ;;  %v1340_v46 = vpack.i.bf16 %v720_v27, %v1763_v43 }
 0x10a   : >> { %v1239_v33 = vunpack.i.h.bf16 %v1237_v52  ;;  %v1249_v52 = vunpack.i.h.bf16 %v1729_v47 }
 0x10b   : >> { %v1315_v63 = vpack.i.bf16 %v1733_v48, %v1735_v55  ;;  %v1743_v3 = vsel %vm428_vm11, %v1243_v56, %v1735_v55  ;;  %v1228_v56 = vunpack.i.l.bf16 %v1720_v60 }
 0x10c   : >> { %v1345_v26 = vpack.i.bf16 %v1743_v3, %v1737_v59  ;;  %v1783_v62 = vsel %vm444_vm12, %v1239_v33, %v1737_v59  ;;  %v1796_v33 = vsel %vm436_vm0, %v1249_v52, %v1733_v48 }
 0x10d   : >> { %1316 = vrot.lane.b32.xlu2 %v1315_v63, %s1383_s4  ;;  %v1209_v63 = vunpack.i.h.bf16 %v1207_v1  ;;  %v540_v31 = vsel %vm539_vm9, %v1228_v56, %v1229_v32  ;;  %v1350_v60 = vpack.i.bf16 %v1783_v62, %v1697_v53 }
 0x10e   : >> { %1346 = vrot.lane.b32.xlu1 %v1345_v26, %s1383_s4  ;;  %v1262_v26 = vpop.permute.xlu2 %1261  ;;  %v1335_v27 = vpack.i.bf16 %v540_v31, %v1224_v39 }
 0x10f   : >> { %v1759_v25 = vunpack.i.l.bf16 %v1262_v26  ;;  %v555_v28 = vsel %vm444_vm12, %v1209_v63, %v1208_v2  ;;  %v1264_v47 = vunpack.i.h.bf16 %v1262_v26 }
 0x110   : >> { %v1252_v49 = vpop.permute.xlu0 %1251  ;;  %v1257_v36 = vpop.permute.xlu1 %1256 }
 0x111   : >> { %v1752_v29 = vunpack.i.l.bf16 %v1252_v49  ;;  %2342 = vst [vmem:[#allocation31_spill] sm:$0xff] %v1759_v25  ;;  %654 = vmatpush.msra.mxu2 %v1759_v25  ;;  %v1259_v2 = vunpack.i.h.bf16 %v1257_v36  ;;  %v1258_v63 = vunpack.i.l.bf16 %v1257_v36 }
 0x113   : >> { %v1320_v30 = vpack.i.bf16 %v1752_v29, %v1228_v56 }
 0x115   : >> { %1331 = vrot.lane.b32.xlu2 %v1330_v42, %s1383_s4  ;;  %1321 = vrot.lane.b32.xlu0 %v1320_v30, %s1383_s4  ;;  %v1325_v42 = vpack.i.bf16 %v555_v28, %v1686_v50  ;;  %v1254_v28 = vunpack.i.h.bf16 %v1252_v49 }
 0x116   : >> { %426 = vrot.lane.b32.xlu1 %v1709_v57, %s1383_s4 }
 0x117   : >> { %v1792_v56 = vsel %vm428_vm11, %v1254_v28, %v1752_v29 }
 0x118   : >> { %v1267_v61 = vpop.permute.xlu0 %1266  ;;  %v1272_v0 = vpop.permute.xlu1 %1271  ;;  %v1360_v36 = vpack.i.bf16 %v1792_v56, %v1796_v33 }
 0x119   : >> { %v1768_v1 = vunpack.i.l.bf16 %v1267_v61  ;;  %v1770_v30 = vunpack.i.l.bf16 %v1272_v0  ;;  %v1269_v49 = vunpack.i.h.bf16 %v1267_v61 }
 0x11b   : >> { %2343 = vst [vmem:[#allocation32_spill] sm:$0xff] %v1768_v1  ;;  %655 = vmatpush.msra.mxu2 %v1768_v1  ;;  %v1812_v31 = vsel %vm444_vm12, %v1269_v49, %v1768_v1 }
 0x11c   : >> { %2344 = vst [vmem:[#allocation33_spill] sm:$0xff] %v1770_v30 }
 0x11d   : >> { %1341 = vrot.lane.b32.xlu2 %v1340_v46, %s1383_s4  ;;  %1326 = vrot.lane.b32.xlu0 %v1325_v42, %s1383_s4  ;;  %v710_v46 = vsel %vm539_vm9, %v1258_v63, %v1259_v2  ;;  %v1274_v42 = vunpack.i.h.bf16 %v1272_v0  ;;  %vm452_vm9 = vcmask 1014784  }
 0x11e   : >> { %424 = vrot.lane.b32.xlu1 %v1712_v58, %s1383_s4  ;;  %656 = vmatpush.msra.mxu2 %v1770_v30  ;;  %v1355_v39 = vpack.i.bf16 %v710_v46, %v1258_v63  ;;  %v1808_v32 = vsel %vm452_vm9, %v1264_v47, %v1759_v25  ;;  %v1282_v63 = vpop.permute.xlu2 %1281 }
 0x11f   : >> { %614 = vmatpush.msra.mxu0 %v1808_v32  ;;  %v1817_v2 = vsel %vm436_vm0, %v1274_v42, %v1770_v30  ;;  %v1284_v26 = vunpack.i.h.bf16 %v1282_v63  ;;  %v1825_v0 = vunpack.i.l.bf16 %v1282_v63 }
 0x120   : >> { %v1822_v61 = vpop.permute.xlu0 %1276 }
 0x121   : >> { %615 = vmatpush.msra.mxu0 %v1812_v31  ;;  %2345 = vst [vmem:[#allocation34_spill] sm:$0xff] %v1825_v0  ;;  %v1278_v52 = vunpack.i.l.bf16 %v1822_v61  ;;  %v1831_v28 = vsel %vm452_vm9, %v1284_v26, %v1825_v0 }
 0x122   : >> { %2346 = vst [vmem:[#allocation35_spill] sm:$0xff] %v1831_v28 }
 0x123   : >> { %616 = vmatpush.msra.mxu0 %v1817_v2 }
 0x125   : >> { %1351 = vrot.lane.b32.xlu2 %v1350_v60, %s1383_s4  ;;  %1336 = vrot.lane.b32.xlu0 %v1335_v27, %s1383_s4  ;;  %v1819_v27 = vpop.permute.xlu1 %1286  ;;  %v2272_v60 = vunpack.i.h.bf16 %v1822_v61 }
 0x126   : >> { %v1849_v63 = vunpack.i.l.bf16 %v1819_v27  ;;  %v1289_v18 = vunpack.i.h.bf16 %v1819_v27 }
 0x127   : >> { %v1836_v46 = vsel %vm452_vm9, %v1278_v52, %v2272_v60 }
 0x128   : >> { %2348 = vst [vmem:[#allocation37_spill] sm:$0xff] %v1849_v63 }
 0x12d   : >> { %1361 = vrot.lane.b32.xlu2 %v1360_v36, %s1383_s4  ;;  %1356 = vrot.lane.b32.xlu0 %v1355_v39, %s1383_s4  ;;  %v1838_v39 = vpop.permute.xlu1 %1291  ;;  %v1840_v36 = vpop.permute.xlu0 %434 }
 0x12e   : >> { %v1853_v26 = vunpack.i.l.bf16 %v1838_v39 }
 0x135   : >> { %432 = vrot.lane.b32.xlu0 %v1712_v58, %s1386_s7  ;;  %440 = vrot.lane.b32.xlu2 %v1712_v58, %s1384_s5  ;;  %v1856_v52 = vpop.permute.xlu1 %1296 }
 0x136   : >> { %v2283_v34 = vunpack.i.l.bf16 %v1856_v52 }
 0x13d   : >> { %v1870_v35 = vpop.permute.xlu1 %442 }
 0x157   : >> { %v1302_v47 = vpop.permute.xlu2 %1301 }
 0x158   : >> { %v1842_v49 = vunpack.i.h.bf16 %v1302_v47  ;;  %v1844_v42 = vunpack.i.l.bf16 %v1302_v47 }
 0x15a   : >> { %2347 = vst [vmem:[#allocation36_spill] sm:$0xff] %v1844_v42  ;;  %657 = vmatpush.msra.mxu2 %v1844_v42  ;;  %680 = vmatpush.msra.mxu3 %v1842_v49 }
 0x15c   : >> { %658 = vmatpush.msra.mxu2 %v1689_v51 }
 0x15e   : >> { %659 = vmatpush.msra.mxu2 %v1825_v0 }
 0x160   : >> { %660 = vmatpush.msra.mxu2 %v1849_v63  ;;  %v1859_v47 = vpop.permute.xlu0 %1311 }
 0x161   : >> { %v1862_v60 = vunpack.i.h.bf16 %v1859_v47 }
 0x162   : >> { %661 = vmatpush.msra.mxu2 %v1853_v26 }
 0x164   : >> { %662 = vmatpush.msra.mxu2 %v1862_v60 }
 0x166   : >> { %663 = vmatpush.msra.mxu2 %v1700_v54 }
 0x167   : >> { %v1874_v38 = vpop.permute.xlu2 %1316 }
 0x168   : >> { %664 = vmatpush.msra.mxu2 %v2283_v34 }
 0x16a   : >> { %665 = vmatpush.msra.mxu2 %v1870_v35 }
 0x16c   : >> { %666 = vmatpush.msra.mxu2 %v1840_v36 }
 0x16f   : >> { %v1876_v37 = vpop.permute.xlu2 %1331 }
 0x170   : >> { %v1333_v51 = vunpack.i.l.bf16 %v1876_v37 }
 0x177   : >> { %v1307_v4 = vpop.permute.xlu1 %1306  ;;  %v1887_v54 = vpop.permute.xlu2 %1341 }
 0x178   : >> { %v1878_v8 = vunpack.i.l.bf16 %v1307_v4  ;;  %v1880_v9 = vunpack.i.h.bf16 %v1307_v4  ;;  %v1343_v14 = vunpack.i.l.bf16 %v1887_v54 }
 0x17a   : >> { %681 = vmatpush.msra.mxu3 %v1878_v8 }
 0x17c   : >> { %682 = vmatpush.msra.mxu3 %v1880_v9 }
 0x17e   : >> { %683 = vmatpush.msra.mxu3 %v1726_v6 }
 0x17f   : >> { %v1352_v12 = vpop.permute.xlu2 %1351 }
 0x180   : >> { %v1885_v34 = vpop.permute.xlu1 %1346  ;;  %v1354_v27 = vunpack.i.h.bf16 %v1352_v12 }
 0x187   : >> { %v1889_v10 = vpop.permute.xlu0 %1321 }
 0x188   : >> { %v1891_v11 = vpop.permute.xlu1 %426  ;;  %v1323_v19 = vunpack.i.l.bf16 %v1889_v10 }
 0x189   : >> { %667 = vmatpush.msra.mxu2 %v1891_v11 }
 0x18b   : >> { %668 = vmatpush.msra.mxu2 %v1709_v57  ;;  %v1911_v57 = vsel %vm428_vm11, %v1333_v51, %v1878_v8  ;;  %v1924_v51 = vsel %vm444_vm12, %v1289_v18, %v1849_v63  ;;  %v1313_v63 = vunpack.i.l.bf16 %v1859_v47 }
 0x18c   : >> { %669 = vmatmul.f32.vlgmr.msra.gmra.mxu2 %v1467_v16  ;;  %2349 = vst [vmem:[#allocation38_spill] sm:$0xff] %v1924_v51 }
 0x18f   : >> { %v1327_v4 = vpop.permute.xlu0 %1326 }
 0x190   : >> { %v1329_v0 = vunpack.i.h.bf16 %v1327_v4  ;;  %v1328_v13 = vunpack.i.l.bf16 %v1327_v4  ;;  %v1362_v4 = vpop.permute.xlu2 %1361 }
 0x191   : >> { %v1364_v44 = vunpack.i.h.bf16 %v1362_v4 }
 0x192   : >> { %v1900_v15 = vsel %vm428_vm11, %v1328_v13, %v1844_v42  ;;  %v1904_v30 = vsel %vm428_vm11, %v1329_v0, %v1842_v49  ;;  %v1294_v13 = vunpack.i.h.bf16 %v1838_v39  ;;  %v1918_v0 = vsel %vm428_vm11, %v1343_v14, %v1880_v9 }
 0x193   : >> { %617 = vmatpush.msra.mxu0 %v1900_v15  ;;  %640 = vmatpush.msra.mxu1 %v1904_v30  ;;  %v1353_v42 = vunpack.i.l.bf16 %v1352_v12  ;;  %v1348_v39 = vunpack.i.l.bf16 %v1885_v34  ;;  %v1363_v12 = vunpack.i.l.bf16 %v1362_v4 }
 0x194   : >> { %v1932_v14 = vsel %vm436_vm0, %v1294_v13, %v1853_v26 }
 0x195   : >> { %618 = vmatpush.msra.mxu0 %v1686_v50  ;;  %641 = vmatpush.msra.mxu1 %v1911_v57  ;;  %v1942_v13 = vsel %vm428_vm11, %v1353_v42, %v1862_v60  ;;  %v2350_v42 = vunpack.i.l.bf16 %v1856_v52 }
 0x197   : >> { %v1337_v1 = vpop.permute.xlu0 %1336  ;;  %619 = vmatpush.msra.mxu0 %v1831_v28  ;;  %642 = vmatpush.msra.mxu1 %v1918_v0  ;;  %v1299_v28 = vunpack.i.h.bf16 %v1856_v52  ;;  %v2402_v52 = vld [vmem:[#allocation23_spill] sm:$0xff] }
 0x198   : >> { %v1339_v25 = vunpack.i.h.bf16 %v1337_v1  ;;  %v1338_v20 = vunpack.i.l.bf16 %v1337_v1  ;;  %v1319_v1 = vunpack.i.h.bf16 %v1874_v38 }
 0x199   : >> { %620 = vmatpush.msra.mxu0 %v1924_v51  ;;  %643 = vmatpush.msra.mxu1 %v1763_v43  ;;  %v1318_v51 = vunpack.i.l.bf16 %v1874_v38  ;;  %v453_v4 = vsel %vm452_vm9, %v1299_v28, %v2350_v42 }
 0x19a   : >> { %684 = vmatpush.msra.mxu3 %v1339_v25  ;;  %823 = vmatpush.msrb.mxu2 %v1338_v20  ;;  %v587_v18 = vsel %vm428_vm11, %v1323_v19, %v1339_v25  ;;  %v586_v19 = vsel %vm428_vm11, %v1354_v27, %v1348_v39  ;;  %v1324_v25 = vunpack.i.h.bf16 %v1889_v10  ;;  %v585_v47 = vsel %vm428_vm11, %v1363_v12, %v1319_v1 }
 0x19b   : >> { %621 = vmatpush.msra.mxu0 %v1932_v14  ;;  %644 = vmatpush.msra.mxu1 %v587_v18  ;;  %v441_v18 = vpop.permute.xlu2 %440 }
 0x19c   : >> { %685 = vmatpush.msra.mxu3 %v1348_v39  ;;  %824 = vmatpush.msrb.mxu2 %v1313_v63  ;;  %v584_v10 = vsel %vm428_vm11, %v1364_v44, %v1324_v25  ;;  %v1334_v39 = vunpack.i.h.bf16 %v1876_v37  ;;  %v445_v12 = vsel %vm444_vm12, %v441_v18, %v1870_v35  ;;  %v2428_v18 = vld [vmem:[#allocation14_spill] sm:$0xff] }
 0x19d   : >> { %622 = vmatpush.msra.mxu0 %v1942_v13  ;;  %645 = vmatpush.msra.mxu1 %v586_v19  ;;  %v1344_v19 = vunpack.i.h.bf16 %v1887_v54 }
 0x19e   : >> { %686 = vmatpush.msra.mxu3 %v1319_v1  ;;  %825 = vmatpush.msrb.mxu2 %v1318_v51  ;;  %v745_v44 = vsel %vm428_vm11, %v1334_v39, %v1338_v20  ;;  %v2416_v1 = vld [vmem:[#allocation18_spill] sm:$0xff] }
 0x19f   : >> { %v1357_v38 = vpop.permute.xlu0 %1356  ;;  %623 = vmatpush.msra.mxu0 %v1697_v53  ;;  %646 = vmatpush.msra.mxu1 %v585_v47  ;;  %v744_v37 = vsel %vm428_vm11, %v1344_v19, %v1313_v63  ;;  %v2399_v63 = vld [vmem:[#allocation26_spill] sm:$0xff]  ;;  %v2425_v47 = vld [vmem:[#allocation15_spill] sm:$0xff] }
 0x1a0   : >> { %687 = vmatpush.msra.mxu3 %v1324_v25  ;;  %826 = vmatpush.msrb.mxu2 %v1735_v55  ;;  %v1359_v27 = vunpack.i.h.bf16 %v1357_v38  ;;  %v1349_v55 = vunpack.i.h.bf16 %v1885_v34  ;;  %v1358_v35 = vunpack.i.l.bf16 %v1357_v38  ;;  %v425_v34 = vpop.permute.xlu1 %424  ;;  %v2422_v25 = vld [vmem:[#allocation16_spill] sm:$0xff] }
 0x1a1   : >> { %624 = vmatpush.msra.mxu0 %v453_v4  ;;  %647 = vmatpush.msra.mxu1 %v584_v10 }
 0x1a2   : >> { %688 = vmatpush.msra.mxu3 %v1752_v29  ;;  %827 = vmatpush.msrb.mxu2 %v1359_v27  ;;  %v743_v20 = vsel %vm428_vm11, %v1349_v55, %v1318_v51  ;;  %v742_v28 = vsel %vm428_vm11, %v1358_v35, %v1359_v27  ;;  %v2410_v51 = vld [vmem:[#allocation20_spill] sm:$0xff] }
 0x1a3   : >> { %625 = vmatpush.msra.mxu0 %v445_v12  ;;  %648 = vmatpush.msra.mxu1 %v1792_v56 }
 0x1a4   : >> { %783 = vmatpush.msrb.mxu3 %v745_v44  ;;  %828 = vmatpush.msrb.mxu2 %v1842_v49  ;;  %v2398_v49 = vld [vmem:[#allocation25_spill] sm:$0xff] }
 0x1a5   : >> { %756 = vmatpush.msrb.mxu1 %v1656_v40  ;;  %1107 = vmatmul.msk.f32.vlgmr.msra.gmra.mxu3 %vm609_vm4, %v1472_v17 }
 0x1a6   : >> { %784 = vmatpush.msrb.mxu3 %v744_v37  ;;  %829 = vmatpush.msrb.mxu2 %v1878_v8  ;;  %v429_v8 = vsel %vm428_vm11, %v425_v34, %v1891_v11  ;;  %v2351_v11 = vunpack.i.h.bf16 %v1822_v61  ;;  %v2386_v61 = vld [vmem:[#allocation4_spill] sm:$0xff] }
 0x1a7   : >> { %757 = vmatpush.msrb.mxu1 %v1836_v46  ;;  %v433_v54 = vpop.permute.xlu0 %432  ;;  %v2388_v46 = vld [vmem:[#allocation30_spill] sm:$0xff] }
 0x1a8   : >> { %1106 = vmatmul.msk.f32.vlgmr.msra.gmra.mxu1 %vm609_vm4, %v1472_v17  ;;  %785 = vmatpush.msrb.mxu3 %v743_v20  ;;  %v437_v40 = vsel %vm436_vm0, %v433_v54, %v1840_v36  ;;  %vm2359_vm0 = vcmp.eq.s32.totalorder %v1484_v21, %v1432_v5  ;;  %v2393_v36 = vld [vmem:[#allocation2_spill] sm:$0xff] }
 0x1a9   : >> { %758 = vmatpush.msrb.mxu1 %v1783_v62  ;;  %830 = vmatpush.msrb.mxu2 %v1880_v9  ;;  %v1388_v9 = vmov 1.0   ;;  %v2370_v62 = vld [vmem:[#allocation29_spill] sm:$0xff] }
 0x1aa   : >> { %626 = vmatpush.msra.mxu0 %v437_v40  ;;  %786 = vmatpush.msrb.mxu3 %v1743_v3  ;;  %v2364_v3 = vld [vmem:[#allocation10_spill] sm:$0xff] }
 0x1ab   : >> { %759 = vmatpush.msrb.mxu1 %v1796_v33  ;;  %831 = vmatpush.msrb.mxu2 %v1726_v6  ;;  %v2358_v6 = vld [vmem:[#allocation32_spill] sm:$0xff]  ;;  %vm2365_vm11 = vcmp.eq.s32.totalorder %v2364_v3, %v1438_v7  ;;  %v2376_v33 = vld [vmem:[#allocation7_spill] sm:$0xff] }
 0x1ac   : >> { %627 = vmatpush.msra.mxu0 %v429_v8  ;;  %787 = vmatpush.msrb.mxu3 %v742_v28 }
 0x1ad   : >> { %760 = vmatpush.msrb.mxu1 %v1792_v56  ;;  %1109 = vmatmul.msk.f32.vlgmr.msrb.gmra.mxu2 %vm609_vm4, %v1472_v17  ;;  %v2372_v56 = vld [vmem:[#allocation8_spill] sm:$0xff] }
 0x1ae   : >> { %628 = vmatpush.msra.mxu0 %v1712_v58  ;;  %788 = vmatpush.msrb.mxu3 %v1904_v30  ;;  %v2357_v58 = vld [vmem:[#allocation12_spill] sm:$0xff]  ;;  %v2368_v30 = vld [vmem:[#allocation9_spill] sm:$0xff] }
 0x1af   : >> { %761 = vmatpush.msrb.mxu1 %v1672_v45  ;;  %1139 = vmatpush.msk.msra.mxu2 %vm311_vm5, %v1388_v9  ;;  %v2355_v45 = vld [vmem:[#allocation31_spill] sm:$0xff]  ;;  %vm2367_vm9 = vcmp.eq.s32.totalorder %v2357_v58, %v1432_v5 }
 0x1b0   : >> { %796 = vmatpush.msrb.mxu0 %v1659_v41  ;;  %789 = vmatpush.msrb.mxu3 %v1911_v57  ;;  %v2352_v41 = vld [vmem:[#allocation28_spill] sm:$0xff]  ;;  %v2404_v57 = vld [vmem:[#allocation22_spill] sm:$0xff] }
 0x1b1   : >> { %762 = vmatpush.msrb.mxu1 %v1808_v32  ;;  %1140 = vmatpush.msk.msra.mxu2 %vm310_vm8, %v1388_v9  ;;  %v2378_v32 = vld [vmem:[#allocation37_spill] sm:$0xff] }
 0x1b2   : >> { %797 = vmatpush.msrb.mxu0 %v2351_v11  ;;  %790 = vmatpush.msrb.mxu3 %v1918_v0  ;;  %v2407_v0 = vld [vmem:[#allocation21_spill] sm:$0xff] }
 0x1b3   : >> { %763 = vmatpush.msrb.mxu1 %v1812_v31  ;;  %1141 = vmatpush.msk.msra.mxu2 %vm309_vm3, %v1388_v9  ;;  %v2380_v31 = vld [vmem:[#allocation6_spill] sm:$0xff] }
 0x1b4   : >> { %798 = vmatpush.msrb.mxu0 %v1737_v59  ;;  %791 = vmatpush.msrb.mxu3 %v1763_v43  ;;  %v2362_v59 = vld [vmem:[#allocation33_spill] sm:$0xff]  ;;  %v2366_v43 = vld [vmem:[#allocation36_spill] sm:$0xff] }
 0x1b5   : >> { %764 = vmatpush.msrb.mxu1 %v1817_v2  ;;  %1108 = vmatmul.msk.f32.vlgmr.msrb.gmra.mxu3 %vm609_vm4, %v1472_v17  ;;  %v2383_v2 = vld [vmem:[#allocation5_spill] sm:$0xff] }
 0x1b6   : >> { %799 = vmatpush.msrb.mxu0 %v1733_v48  ;;  %1110 = vmatpush.msk.msra.mxu3 %vm226_vm15, %v1388_v9  ;;  %v2360_v48 = vld [vmem:[#allocation11_spill] sm:$0xff] }
 0x1b7   : >> { %765 = vmatpush.msrb.mxu1 %v1900_v15  ;;  %629 = vmatmul.f32.vlgmr.msra.gmra.mxu0 %v1467_v16  ;;  %v2353_v15 = vld [vmem:[#allocation35_spill] sm:$0xff]  ;;  %vm2361_vm12 = vcmp.eq.s32.totalorder %v2360_v48, %v1438_v7 }
 0x1b8   : >> { %800 = vmatpush.msrb.mxu0 %v1752_v29  ;;  %1142 = vmatpush.msk.msra.mxu2 %vm308_vm7, %v1388_v9  ;;  %v2354_v29 = vld [vmem:[#allocation13_spill] sm:$0xff] }
 0x1b9   : >> { %766 = vmatpush.msrb.mxu1 %v1686_v50  ;;  %1111 = vmatpush.msk.msra.mxu3 %vm225_vm14, %v1388_v9  ;;  %v2356_v50 = vld [vmem:[#allocation38_spill] sm:$0xff]  ;;  %vm2363_vm4 = vcmp.eq.s32.totalorder %v2354_v29, %v1432_v5 }
 0x1ba   : >> { %801 = vmatpush.msrb.mxu0 %v2352_v41  ;;  %1143 = vmatpush.msk.msra.mxu2 %vm307_vm2, %v1388_v9 }
 0x1bb   : >> { %767 = vmatpush.msrb.mxu1 %v2353_v15  ;;  %1112 = vmatpush.msk.msra.mxu3 %vm224_vm13, %v1388_v9  ;;  %v2431_v15 = vld [vmem:[#allocation27_spill] sm:$0xff] }
 0x1bc   : >> { %802 = vmatpush.msrb.mxu0 %v2355_v45  ;;  %1144 = vmatpush.msk.msra.mxu2 %vm306_vm1, %v1388_v9 }
 0x1bd   : >> { %768 = vmatpush.msrb.mxu1 %v2356_v50  ;;  %1113 = vmatpush.msk.msra.mxu3 %vm2359_vm0, %v1388_v9  ;;  %vm2369_vm0 = vcmp.eq.s32.totalorder %v2368_v30, %v1438_v7 }
 0x1be   : >> { %803 = vmatpush.msrb.mxu0 %v2358_v6  ;;  %1145 = vmatpush.msk.msra.mxu2 %vm2361_vm12, %v1388_v9  ;;  %vm2371_vm12 = vcmp.eq.s32.totalorder %v2360_v48, %v1432_v5 }
 0x1bf   : >> { %769 = vmatpush.msrb.mxu1 %v1932_v14  ;;  %1114 = vmatpush.msk.msra.mxu3 %vm2363_vm4, %v1388_v9  ;;  %vm2373_vm4 = vcmp.eq.s32.totalorder %v2372_v56, %v1438_v7  ;;  %v2413_v14 = vld [vmem:[#allocation19_spill] sm:$0xff] }
 0x1c0   : >> { %804 = vmatpush.msrb.mxu0 %v2362_v59  ;;  %1146 = vmatpush.msk.msra.mxu2 %vm2365_vm11, %v1388_v9  ;;  %vm2375_vm11 = vcmp.eq.s32.totalorder %v2364_v3, %v1432_v5 }
 0x1c1   : >> { %770 = vmatpush.msrb.mxu1 %v1942_v13  ;;  %1115 = vmatpush.msk.msra.mxu3 %vm2367_vm9, %v1388_v9  ;;  %vm2377_vm9 = vcmp.eq.s32.totalorder %v2376_v33, %v1438_v7  ;;  %v2419_v13 = vld [vmem:[#allocation17_spill] sm:$0xff] }
 0x1c2   : >> { %805 = vmatpush.msrb.mxu0 %v2366_v43  ;;  %1147 = vmatpush.msk.msra.mxu2 %vm2369_vm0, %v1388_v9  ;;  %vm2379_vm0 = vcmp.eq.s32.totalorder %v2368_v30, %v1432_v5 }
 0x1c3   : >> { %771 = vmatpush.msrb.mxu1 %v1697_v53  ;;  %1116 = vmatpush.msk.msra.mxu3 %vm2371_vm12, %v1388_v9  ;;  %v2374_v53 = vld [vmem:[#allocation34_spill] sm:$0xff]  ;;  %vm2381_vm12 = vcmp.eq.s32.totalorder %v2380_v31, %v1438_v7 }
 0x1c4   : >> { %806 = vmatpush.msrb.mxu0 %v2370_v62  ;;  %772 = vmatmul.f32.vlgmr.msrb.gmra.mxu1 %v1467_v16 }
 0x1c5   : >> { %1148 = vmatpush.msk.msra.mxu2 %vm2373_vm4, %v1388_v9  ;;  %1117 = vmatpush.msk.msra.mxu3 %vm2375_vm11, %v1388_v9  ;;  %vm2382_vm4 = vcmp.eq.s32.totalorder %v2372_v56, %v1432_v5  ;;  %vm2384_vm11 = vcmp.eq.s32.totalorder %v2383_v2, %v1438_v7 }
 0x1c6   : >> { %807 = vmatpush.msrb.mxu0 %v2374_v53 }
 0x1c7   : >> { %1149 = vmatpush.msk.msra.mxu2 %vm2377_vm9, %v1388_v9  ;;  %1118 = vmatpush.msk.msra.mxu3 %vm2379_vm0, %v1388_v9  ;;  %vm2385_vm9 = vcmp.eq.s32.totalorder %v2376_v33, %v1432_v5  ;;  %vm2387_vm0 = vcmp.eq.s32.totalorder %v2386_v61, %v1438_v7 }
 0x1c8   : >> { %808 = vmatpush.msrb.mxu0 %v2378_v32 }
 0x1c9   : >> { %1150 = vmatpush.msk.msra.mxu2 %vm2381_vm12, %v1388_v9  ;;  %1119 = vmatpush.msk.msra.mxu3 %vm2382_vm4, %v1388_v9  ;;  %vm2389_vm12 = vcmp.eq.s32.totalorder %v2380_v31, %v1432_v5 }
 0x1ca   : >> { %809 = vmatpush.msrb.mxu0 %v1853_v26  ;;  %v2400_v26 = vld [vmem:[#allocation24_spill] sm:$0xff] }
 0x1cb   : >> { %1151 = vmatpush.msk.msra.mxu2 %vm2384_vm11, %v1388_v9  ;;  %1120 = vmatpush.msk.msra.mxu3 %vm2385_vm9, %v1388_v9  ;;  %vm2392_vm11 = vcmp.eq.s32.totalorder %v2383_v2, %v1432_v5  ;;  %vm2394_vm9 = vcmp.eq.s32.totalorder %v2393_v36, %v1438_v7 }
 0x1cc   : >> { %810 = vmatpush.msrb.mxu0 %v1862_v60  ;;  %v2390_v60 = vld [vmem:[#allocation3_spill] sm:$0xff] }
 0x1cd   : >> { %1152 = vmatpush.msk.msra.mxu2 %vm2387_vm0, %v1388_v9  ;;  %1121 = vmatpush.msk.msra.mxu3 %vm2389_vm12, %v1388_v9  ;;  %vm2391_vm4 = vcmp.eq.s32.totalorder %v2390_v60, %v1438_v7  ;;  %vm2395_vm0 = vcmp.eq.s32.totalorder %v2386_v61, %v1432_v5  ;;  %vm2396_vm12 = vcmp.eq.s32.totalorder %v2390_v60, %v1432_v5 }
 0x1ce   : >> { %811 = vmatpush.msrb.mxu0 %v2388_v46 }
 0x1cf   : >> { %812 = vmatmul.f32.vlgmr.msrb.gmra.mxu0 %v1467_v16  ;;  %1153 = vmatpush.msk.msra.mxu2 %vm2391_vm4, %v1388_v9  ;;  %vm2397_vm4 = vcmp.eq.s32.totalorder %v2393_v36, %v1432_v5 }
 0x1d0   : >> { %1122 = vmatpush.msk.msra.mxu3 %vm2392_vm11, %v1388_v9  ;;  %vm842_vm11 = vcmask 1043456  }
 0x1d1   : >> { %1154 = vmatpush.msk.msra.mxu2 %vm2394_vm9, %v1388_v9  ;;  %1126 = vmatpush.msk.msra.mxu1 %vm842_vm11, %v2398_v49  ;;  %vm2401_vm9 = vcmp.eq.s32.totalorder %v2400_v26, %v1432_v5 }
 0x1d2   : >> { %1123 = vmatpush.msk.msra.mxu3 %vm2395_vm0, %v1388_v9  ;;  %1155 = vmatpush.msk.msra.mxu0 %vm842_vm11, %v2399_v63  ;;  %vm2403_vm0 = vcmp.eq.s32.totalorder %v2402_v52, %v1432_v5  ;;  %vm2408_vm11 = vcmp.eq.s32.totalorder %v2407_v0, %v1432_v5 }
 0x1d3   : >> { %1127 = vmatpush.msk.msra.mxu1 %vm2401_vm9, %v1388_v9  ;;  %vm2409_vm9 = vcmp.eq.s32.totalorder %v2407_v0, %v1438_v7 }
 0x1d4   : >> { %1124 = vmatpush.msk.msra.mxu3 %vm2396_vm12, %v1388_v9  ;;  %1156 = vmatpush.msk.msra.mxu0 %vm322_vm6, %v1388_v9  ;;  %vm2405_vm12 = vcmp.eq.s32.totalorder %v2404_v57, %v1432_v5 }
 0x1d5   : >> { %1128 = vmatpush.msk.msra.mxu1 %vm2403_vm0, %v1388_v9  ;;  %vm2411_vm0 = vcmp.eq.s32.totalorder %v2410_v51, %v1432_v5 }
 0x1d6   : >> { %1125 = vmatpush.msk.msra.mxu3 %vm2397_vm4, %v1388_v9  ;;  %1157 = vmatpush.msk.msra.mxu0 %vm321_vm10, %v1388_v9  ;;  %vm2406_vm4 = vcmp.eq.s32.totalorder %v2404_v57, %v1438_v7 }
 0x1d7   : >> { %1129 = vmatpush.msk.msra.mxu1 %vm2405_vm12, %v1388_v9  ;;  %vm2412_vm12 = vcmp.eq.s32.totalorder %v2410_v51, %v1438_v7 }
 0x1d8   : >> { %1158 = vmatpush.msk.msra.mxu0 %vm2406_vm4, %v1388_v9  ;;  %vm2414_vm4 = vcmp.eq.s32.totalorder %v2413_v14, %v1432_v5 }
 0x1d9   : >> { %1130 = vmatpush.msk.msra.mxu1 %vm2408_vm11, %v1388_v9  ;;  %vm2415_vm11 = vcmp.eq.s32.totalorder %v2413_v14, %v1438_v7 }
 0x1da   : >> { %1159 = vmatpush.msk.msra.mxu0 %vm2409_vm9, %v1388_v9  ;;  %vm2417_vm9 = vcmp.eq.s32.totalorder %v2416_v1, %v1432_v5 }
 0x1db   : >> { %1131 = vmatpush.msk.msra.mxu1 %vm2411_vm0, %v1388_v9  ;;  %vm2418_vm0 = vcmp.eq.s32.totalorder %v2416_v1, %v1438_v7 }
 0x1dc   : >> { %1160 = vmatpush.msk.msra.mxu0 %vm2412_vm12, %v1388_v9  ;;  %vm2420_vm12 = vcmp.eq.s32.totalorder %v2419_v13, %v1432_v5 }
 0x1dd   : >> { %1132 = vmatpush.msk.msra.mxu1 %vm2414_vm4, %v1388_v9  ;;  %vm2421_vm4 = vcmp.eq.s32.totalorder %v2419_v13, %v1438_v7 }
 0x1de   : >> { %1161 = vmatpush.msk.msra.mxu0 %vm2415_vm11, %v1388_v9  ;;  %vm2423_vm11 = vcmp.eq.s32.totalorder %v2422_v25, %v1432_v5 }
 0x1df   : >> { %1133 = vmatpush.msk.msra.mxu1 %vm2417_vm9, %v1388_v9  ;;  %vm2424_vm9 = vcmp.eq.s32.totalorder %v2422_v25, %v1438_v7 }
 0x1e0   : >> { %1162 = vmatpush.msk.msra.mxu0 %vm2418_vm0, %v1388_v9  ;;  %vm2426_vm0 = vcmp.eq.s32.totalorder %v2425_v47, %v1432_v5 }
 0x1e1   : >> { %1134 = vmatpush.msk.msra.mxu1 %vm2420_vm12, %v1388_v9  ;;  %vm2427_vm12 = vcmp.eq.s32.totalorder %v2425_v47, %v1438_v7 }
 0x1e2   : >> { %1163 = vmatpush.msk.msra.mxu0 %vm2421_vm4, %v1388_v9  ;;  %vm2429_vm4 = vcmp.eq.s32.totalorder %v2428_v18, %v1432_v5 }
 0x1e3   : >> { %1135 = vmatpush.msk.msra.mxu1 %vm2423_vm11, %v1388_v9  ;;  %vm2430_vm11 = vcmp.eq.s32.totalorder %v2428_v18, %v1438_v7 }
 0x1e4   : >> { %1164 = vmatpush.msk.msra.mxu0 %vm2424_vm9, %v1388_v9  ;;  %vm838_vm9 = vcmask 752640  }
 0x1e5   : >> { %1136 = vmatpush.msk.msra.mxu1 %vm2426_vm0, %v1388_v9  ;;  %vm934_vm0 = vcmask 900096  }
 0x1e6   : >> { %1165 = vmatpush.msk.msra.mxu0 %vm2427_vm12, %v1388_v9 }
 0x1e7   : >> { %1137 = vmatpush.msk.msra.mxu1 %vm2429_vm4, %v1388_v9 }
 0x1e8   : >> { %1166 = vmatpush.msk.msra.mxu0 %vm2430_vm11, %v1388_v9 }
 0x20f   : >> { %v670_v19 = vpop.f32.mrf.mxu2 }
 0x225   : >> { %v650_v42 = vpop.f32.mrf.mxu1 }
 0x228   : >> { %v690_v38 = vpop.f32.mrf.mxu3 }
 0x229   : >> { %v691_v35 = vadd.f32 %v690_v38, %v670_v19 }
 0x230   : >> { %v833_v44 = vpop.f32.mrf.mxu2 }
 0x234   : >> { %v630_v4 = vpop.f32.mrf.mxu0 }
 0x235   : >> { %v651_v39 = vadd.f32 %v650_v42, %v630_v4 }
 0x238   : >> { %v793_v10 = vpop.f32.mrf.mxu3 }
 0x241   : >> { %v773_v27 = vpop.f32.mrf.mxu1 }
 0x242   : >> { %v794_v12 = vadd.f32 %v793_v10, %v773_v27 }
 0x244   : >> { %v836_v55 = vmax.f32 %v651_v39, %v794_v12 }
 0x246   : >> { %862 = vmatmul.f32.vlgmr.msra.gmra.mxu3 %v836_v55  ;;  %905 = vmatmul.f32.vlgmr.msra.gmra.mxu2 %v836_v55 }
 0x24c   : >> { %v813_v37 = vpop.f32.mrf.mxu0 }
 0x24d   : >> { %v834_v34 = vadd.f32 %v833_v44, %v813_v37 }
 0x24f   : >> { %v837_v54 = vmax.f32 %v691_v35, %v834_v34 }
 0x251   : >> { %1138 = vmatmul.msk.f32.vlgmr.msra.gmra.mxu1 %vm838_vm9, %v837_v54  ;;  %1167 = vmatmul.msk.f32.vlgmr.msra.gmra.mxu0 %vm838_vm9, %v837_v54 }
 0x2c9   : >> { %v863_v20 = vpop.f32.mrf.mxu3  ;;  %v906_v40 = vpop.f32.mrf.mxu2 }
 0x2ce   : >> { %v883_v8 = vpop.f32.mrf.mxu1  ;;  %v926_v28 = vpop.f32.mrf.mxu0 }
 0x2cf   : >> { %v884_v9 = vadd.f32 %v883_v8, %v863_v20  ;;  %v927_v11 = vadd.f32 %v926_v28, %v906_v40 }
 0x2d1   : >> { %v929_v41 = vmax.f32 %v884_v9, %v927_v11 }
 0x2d3   : >> { %v930_v45 = vadd.f32 %v929_v41, %v2431_v15  ;;  %384 = sbr.rel (!%p382_p4) target bundleno = 129 (0x81), region = 76 }
 0x2d5   : >> { %v931_v50 = vmax.f32 %v930_v45, 0.0 }
 0x2d7   : >> { %935 = vst.msk [vmem:[%s933_s10] sm:$0xff] %vm934_vm0, %v931_v50 }
 0x2d8 PF: > { %s13_s12 = sadd.s32 1, %s1375_s12  }
 0x2d9   : > { %p10_p5 = scmp.ge.s32.totalorder %s13_s12, 4  }
 0x2db   :  { %12 = sbr.rel (!%p10_p5) target bundleno = 1 (0x1), region = 87 }

// kernel: target_detector_forward.7
= control target key start
LH: loop header
LB: loop body
LE: loop exit
PB: predicated region body
PF: predicated region fallthrough
CT: control target
= control target key end

     0   :  { %12 = vsyncpa [#allocation4], 0  ;;  %s7768_s0 = inlined_call_operand.vmem [shape: f32[2,5632], index: 0, kind: input, shape index: {}]   ;;  %s7769_s1 = inlined_call_operand.hbm [shape: bf16[5632,1024], index: 1, kind: input, shape index: {}]   ;;  %s7770_s2 = inlined_call_operand.vmem [shape: f32[1,1024], index: 2, kind: input, shape index: {}]   ;;  %s7771_s3 = inlined_call_operand.vmem [shape: f32[1024,500], index: 3, kind: input, shape index: {}]   ;;  %s7772_s4 = inlined_call_operand.vmem [shape: f32[1,500], index: 4, kind: input, shape index: {}]   ;;  %s7773_s5 = inlined_call_operand.vmem [shape: f32[500,2], index: 5, kind: input, shape index: {}]   ;;  %s7774_s6 = inlined_call_operand.vmem [shape: f32[1,2], index: 6, kind: input, shape index: {}]   ;;  %s7775_s7 = inlined_call_operand.hbm [shape: f32[2,2], index: 7, kind: output, shape index: {}]  }
   0x1   :  { %14 = vsyncpa [#allocation4 + $0x1], 0 }
   0x2   :  { %15 = vsyncpa [#allocation5], 0  ;;  %s5264_s24 = smov 0   ;;  %s5266_s25 = smov 0  }
   0x3   :  { %s5268_s26 = smov 0   ;;  %s5270_s27 = smov 0  }
   0x4 LB: > { %s5283_s28 = sadd.s32 4294967295, %s5218_s27   ;;  %s5286_s29 = sadd.s32 1, %s5218_s27   ;;  %s5218_s27 = sphi %s5270_s27, %s7782_s27   ;;  %s5214_s26 = sphi %s5268_s26, %s7781_s26   ;;  %s5210_s25 = sphi %s5266_s25, %s7780_s25   ;;  %s5206_s24 = sphi %s5264_s24, %s7779_s24  }
   0x5   : > { %s51_s30 = ssub.s32 %s5218_s27, %s5286_s29  ;;  %s54_s8 = sadd.s32 1, %s5214_s26 }
   0x6   : > { %p52_p0 = scmp.eq.s32.totalorder %s51_s30, 0  ;;  %p61_p1 = scmp.ne.s32.totalorder %s5214_s26, %s5210_s25 }
   0x7   : > { %p62_p2 = scmp.eq.s32.totalorder %s5218_s27, 0  ;;  %p67_p3 = scmp.ne.s32.totalorder %s5210_s25, %s5206_s24 }
   0x8   : > { %s5296_s9 = scalar_select %p52_p0, %s5214_s26, %s54_s8  }
   0x9   : > { %p5298_p4 = por %p62_p2, %p61_p1  ;;  %p68_p5 = scmp.eq.s32.totalorder %s5283_s28, 0 }
   0xa   : > { %p5074_p6 = scmp.lt.s32.totalorder %s5218_s27, 11  ;;  %s241_s12 = sand.u32 1, %s5214_s26  }
   0xb   : > { %p5304_p7 = por %p68_p5, %p67_p3  ;;  %s3766_s13 = sshll.u32 %s241_s12, 11 }
   0xc   : > { %s4807_s14 = sshll.u32 %s5218_s27, 11  ;;  %s245_s18 = scalar_lea.vmem [#allocation3], %s3766_s13 }
   0xd   : > { %s251_s17 = scalar_lea.hbm %s7769_s1, %s4807_s14  ;;  %s254_s19 = sshll.u32 %s245_s18, 4  ;;  %s255_s19 = int_to_ptr.vmem [resolvable:$true] %s254_s19 }
   0xe   : > { %s252_s20 = sshll.u32 %s251_s17, 4  ;;  %p5315_p8 = pnand %p5074_p6, %p5298_p4  ;;  %s253_s20 = int_to_ptr.hbm [resolvable:$true] %s252_s20 }
   0xf   : > { %p3770_p9 = scmp.ge.s32.totalorder %s5218_s27, 1  ;;  %s242_s22 = scalar_lea.sflag [#allocation4], %s241_s12 }
  0x10   : > { %s5122_s23 = sshra.s32 %s253_s20, 4  ;;  %p5126_p11 = pneg %p5315_p8  ;;  %s5123_s23 = int_to_ptr.hbm [resolvable:$true] %s5122_s23 }
  0x11   : > { %s5124_s24 = scalar_lea.hbm %s5123_s23, 2048  ;;  %s5129_s13 = scalar_lea.hbm %s7769_s1, 22528 }
  0x12   : > { %p5125_p10 = scmp.ne.s32.totalorder %s5123_s23, %s5124_s24  ;;  %p5130_p0 = scmp.lt.s32.totalorder %s5123_s23, %s7769_s1 }
  0x13   : > { %p5131_p1 = scmp.lt.s32.totalorder %s5129_s13, %s5124_s24 }
  0x14   : > { %p5127_p12 = pnand %p5126_p11, %p5125_p10 }
  0x15   : > { %p5132_p2 = por %p5131_p1, %p5130_p0 }
  0x16   : > { %p5128_p13 = pneg %p5127_p12 }
  0x18   : > { %p5133_p3 = pnand %p5132_p2, %p5128_p13 }
  0x1a   : > { %5136 = shalt.err (!%p5133_p3)
}
  0x1b   : > { %s5220_s12 = smov 512   ;;  %s5221_s15 = smov 32  }
  0x1c   : > { %5073 = dma.hbm_to_vmem [thread:$0]  (!%p5315_p8), %s253_s20, 32768, %s255_s19, %s242_s22, %s5220_s12, %s5220_s12, %s5221_s15  }
  0x1d   : > { %p262_p4 = scmp.lt.s32.totalorder %s5218_s27, 12 }
  0x1f   : > { %p263_p5 = pnand %p3770_p9, %p262_p4 }
  0x20   : > { %s268_s16 = sand.u32 (!%p263_p5), 1, %s5210_s25  }
  0x21   : > { %266 = sbr.rel (%p263_p5) target bundleno = 1152 (0x480), region = 48  ;;  %s3771_s17 = sshll.u32 (!%p263_p5), %s268_s16, 11 }
  0x22   : > { %s269_s18 = scalar_lea.sflag (!%p263_p5), [#allocation4], %s268_s16  ;;  %s5334_s23 = scalar_lea.vmem (!%p263_p5), [#allocation3], %s3771_s17 }
  0x26   : > { %5197 = dma.done.wait (%p5304_p7), %s269_s18, 32768  }
  0x27   : > { %5199 = vsyncadd (%p5304_p7), %s269_s18, 4294934528  ;;  %s3772_s24 = sshll.u32 %s5283_s28, 2  ;;  %p3774_p8 = scmp.ne.s32.totalorder %s5283_s28, 0 }
  0x28   : > { %p305_p6 = scmp.lt.s32.totalorder %s3772_s24, 43 }
  0x29   : > { %314 = sbr.rel (%p3774_p8) target bundleno = 49 (0x31), region = 56 }
  0x2a   : > { %s7784_s24 = smov (!%p305_p6, %s3772_s24), 43 }
  0x2b   : > { %s3773_s19 = sshll.u32 %s7784_s24, 1 }
  0x2c   : > { %s5344_s21 = scalar_lea.vmem %s7768_s0, %s3773_s19 }
  0x2e   : > { %v5222_v0 = vmov 0.0  }
  0x2f   : > { %315 = vst [vmem:[#allocation2] sm:$0xff] %v5222_v0 }
  0x30   : > { %316 = vst [vmem:[#allocation2 + $0x8] sm:$0xff] %v5222_v0 }
  0x31 PF: > { %v4001_v1 = vld [vmem:[%s5334_s23 + $0x1c0] sm:$0xf]  ;;  %vm2300_vm0 = vcmask 1041408   ;;  %vm2302_vm1 = vcmask 1045508   ;;  %vm2304_vm2 = vcmask 1043456   ;;  %p4799_p7 = scmp.ne.s32.totalorder %s5283_s28, 10 }
  0x32   : > { %v4868_v2 = vld [vmem:[%s5334_s23 + $0x1dc] sm:$0xf0] }
  0x33   : > { %v4257_v3 = vld [vmem:[%s5334_s23 + $0x3c0] sm:$0xf]  ;;  %v4002_v4 = vor.u32 %v4868_v2, %v4001_v1 }
  0x34   : > { %v4932_v5 = vld [vmem:[%s5334_s23 + $0x3dc] sm:$0xf0] }
  0x35   : > { %v4513_v6 = vld [vmem:[%s5334_s23 + $0x5c0] sm:$0xf]  ;;  %v4258_v8 = vor.u32 %v4932_v5, %v4257_v3  ;;  %1870 = vmatpush.bf16.msra.mxu0 %v4002_v4 }
  0x36   : > { %v4996_v7 = vld [vmem:[%s5334_s23 + $0x5dc] sm:$0xf0] }
  0x37   : > { %v4514_v9 = vor.u32 %v4996_v7, %v4513_v6  ;;  %v4769_v10 = vld [vmem:[%s5334_s23 + $0x7c0] sm:$0xf]  ;;  %1883 = vmatpush.bf16.msra.mxu1 %v4258_v8 }
  0x38   : > { %v5060_v11 = vld [vmem:[%s5334_s23 + $0x7dc] sm:$0xf0] }
  0x39   : > { %v3969_v12 = vld [vmem:[%s5334_s23 + $0x180] sm:$0xf]  ;;  %v4770_v13 = vor.u32 %v5060_v11, %v4769_v10  ;;  %1896 = vmatpush.bf16.msra.mxu2 %v4514_v9 }
  0x3a   : > { %v4860_v14 = vld [vmem:[%s5334_s23 + $0x19c] sm:$0xf0] }
  0x3b   : > { %v4225_v15 = vld [vmem:[%s5334_s23 + $0x380] sm:$0xf]  ;;  %v3970_v17 = vor.u32 %v4860_v14, %v3969_v12  ;;  %1909 = vmatpush.bf16.msra.mxu3 %v4770_v13 }
  0x3c   : > { %v4924_v16 = vld [vmem:[%s5334_s23 + $0x39c] sm:$0xf0] }
  0x3d   : > { %v4226_v18 = vor.u32 %v4924_v16, %v4225_v15  ;;  %v4481_v19 = vld [vmem:[%s5334_s23 + $0x580] sm:$0xf]  ;;  %1871 = vmatpush.bf16.msra.mxu0 %v3970_v17 }
  0x3e   : > { %v4988_v20 = vld [vmem:[%s5334_s23 + $0x59c] sm:$0xf0] }
  0x3f   : > { %v4737_v21 = vld [vmem:[%s5334_s23 + $0x780] sm:$0xf]  ;;  %v4482_v22 = vor.u32 %v4988_v20, %v4481_v19  ;;  %1884 = vmatpush.bf16.msra.mxu1 %v4226_v18 }
  0x40   : > { %v5052_v23 = vld [vmem:[%s5334_s23 + $0x79c] sm:$0xf0] }
  0x41   : > { %v3937_v24 = vld [vmem:[%s5334_s23 + $0x140] sm:$0xf]  ;;  %v4738_v26 = vor.u32 %v5052_v23, %v4737_v21  ;;  %1897 = vmatpush.bf16.msra.mxu2 %v4482_v22 }
  0x42   : > { %v4852_v25 = vld [vmem:[%s5334_s23 + $0x15c] sm:$0xf0] }
  0x43   : > { %v4193_v27 = vld [vmem:[%s5334_s23 + $0x340] sm:$0xf]  ;;  %v3938_v30 = vor.u32 %v4852_v25, %v3937_v24  ;;  %1910 = vmatpush.bf16.msra.mxu3 %v4738_v26 }
  0x44   : > { %v4916_v28 = vld [vmem:[%s5334_s23 + $0x35c] sm:$0xf0] }
  0x45   : > { %v4449_v29 = vld [vmem:[%s5334_s23 + $0x540] sm:$0xf]  ;;  %v4194_v34 = vor.u32 %v4916_v28, %v4193_v27  ;;  %1872 = vmatpush.bf16.msra.mxu0 %v3938_v30  ;;  %v4003_v30 = vld [vmem:[%s5334_s23 + $0x1e0] sm:$0xf0] }
  0x46   : > { %v4980_v31 = vld [vmem:[%s5334_s23 + $0x55c] sm:$0xf0] }
  0x47   : > { %v4705_v32 = vld [vmem:[%s5334_s23 + $0x740] sm:$0xf]  ;;  %v4450_v35 = vor.u32 %v4980_v31, %v4449_v29  ;;  %1885 = vmatpush.bf16.msra.mxu1 %v4194_v34  ;;  %v4864_v29 = vld [vmem:[%s5334_s23 + $0x1c4] sm:$0xf] }
  0x48   : > { %v5044_v33 = vld [vmem:[%s5334_s23 + $0x75c] sm:$0xf0]  ;;  %v4928_v31 = vld [vmem:[%s5334_s23 + $0x3c4] sm:$0xf] }
  0x49   : > { %v3905_v36 = vld [vmem:[%s5334_s23 + $0x100] sm:$0xf]  ;;  %v4706_v39 = vor.u32 %v5044_v33, %v4705_v32  ;;  %1898 = vmatpush.bf16.msra.mxu2 %v4450_v35  ;;  %v4259_v33 = vld [vmem:[%s5334_s23 + $0x3e0] sm:$0xf0] }
  0x4a   : > { %v4844_v37 = vld [vmem:[%s5334_s23 + $0x11c] sm:$0xf0]  ;;  %v4992_v34 = vld [vmem:[%s5334_s23 + $0x5c4] sm:$0xf] }
  0x4b   : > { %v4161_v38 = vld [vmem:[%s5334_s23 + $0x300] sm:$0xf]  ;;  %v3906_v45 = vor.u32 %v4844_v37, %v3905_v36  ;;  %1911 = vmatpush.bf16.msra.mxu3 %v4706_v39  ;;  %v4515_v35 = vld [vmem:[%s5334_s23 + $0x5e0] sm:$0xf0] }
  0x4c   : > { %v4908_v40 = vld [vmem:[%s5334_s23 + $0x31c] sm:$0xf0]  ;;  %v4771_v39 = vld [vmem:[%s5334_s23 + $0x7e0] sm:$0xf0] }
  0x4d   : > { %v4417_v41 = vld [vmem:[%s5334_s23 + $0x500] sm:$0xf]  ;;  %v4162_v46 = vor.u32 %v4908_v40, %v4161_v38  ;;  %1873 = vmatpush.bf16.msra.mxu0 %v3906_v45  ;;  %v5056_v38 = vld [vmem:[%s5334_s23 + $0x7c4] sm:$0xf] }
  0x4e   : > { %v4972_v42 = vld [vmem:[%s5334_s23 + $0x51c] sm:$0xf0]  ;;  %v3971_v45 = vld [vmem:[%s5334_s23 + $0x1a0] sm:$0xf0] }
  0x4f   : > { %v4673_v43 = vld [vmem:[%s5334_s23 + $0x700] sm:$0xf]  ;;  %v4418_v47 = vor.u32 %v4972_v42, %v4417_v41  ;;  %1886 = vmatpush.bf16.msra.mxu1 %v4162_v46  ;;  %v4006_v41 = vor.u32 %v4864_v29, %v4003_v30  ;;  %v4262_v42 = vor.u32 %v4928_v31, %v4259_v33  ;;  %v4920_v46 = vld [vmem:[%s5334_s23 + $0x384] sm:$0xf] }
  0x50   : > { %v5036_v44 = vld [vmem:[%s5334_s23 + $0x71c] sm:$0xf0]  ;;  %v4131_v29 = vld [vmem:[%s5334_s23 + $0x2e0] sm:$0xf0] }
  0x51   : > { %v3873_v48 = vld [vmem:[%s5334_s23 + $0xc0] sm:$0xf]  ;;  %v4674_v51 = vor.u32 %v5036_v44, %v4673_v43  ;;  %1899 = vmatpush.bf16.msra.mxu2 %v4418_v47  ;;  %v4518_v43 = vor.u32 %v4992_v34, %v4515_v35  ;;  %v4856_v44 = vld [vmem:[%s5334_s23 + $0x184] sm:$0xf]  ;;  %v4774_v47 = vor.u32 %v5056_v38, %v4771_v39 }
  0x52   : > { %v4836_v49 = vld [vmem:[%s5334_s23 + $0xdc] sm:$0xf0]  ;;  %v4960_v30 = vld [vmem:[%s5334_s23 + $0x4c4] sm:$0xf] }
  0x53   : > { %v4129_v50 = vld [vmem:[%s5334_s23 + $0x2c0] sm:$0xf]  ;;  %v3874_v57 = vor.u32 %v4836_v49, %v3873_v48  ;;  %1912 = vmatpush.bf16.msra.mxu3 %v4674_v51  ;;  %v4227_v48 = vld [vmem:[%s5334_s23 + $0x3a0] sm:$0xf0] }
  0x54   : > { %v4900_v52 = vld [vmem:[%s5334_s23 + $0x2dc] sm:$0xf0]  ;;  %v4984_v49 = vld [vmem:[%s5334_s23 + $0x584] sm:$0xf] }
  0x55   : > { %v4385_v53 = vld [vmem:[%s5334_s23 + $0x4c0] sm:$0xf]  ;;  %v4130_v58 = vor.u32 %v4900_v52, %v4129_v50  ;;  %1874 = vmatpush.bf16.msra.mxu0 %v3874_v57  ;;  %v4483_v50 = vld [vmem:[%s5334_s23 + $0x5a0] sm:$0xf0] }
  0x56   : > { %v4964_v54 = vld [vmem:[%s5334_s23 + $0x4dc] sm:$0xf0]  ;;  %v5048_v51 = vld [vmem:[%s5334_s23 + $0x784] sm:$0xf] }
  0x57   : > { %v4641_v55 = vld [vmem:[%s5334_s23 + $0x6c0] sm:$0xf]  ;;  %v4386_v59 = vor.u32 %v4964_v54, %v4385_v53  ;;  %1887 = vmatpush.bf16.msra.mxu1 %v4130_v58  ;;  %v4739_v52 = vld [vmem:[%s5334_s23 + $0x7a0] sm:$0xf0]  ;;  %v319_v53 = vld [vmem:[%s5344_s21] sm:$0xff]  ;;  %v3974_v54 = vor.u32 %v4856_v44, %v3971_v45 }
  0x58   : > { %v5028_v56 = vld [vmem:[%s5334_s23 + $0x6dc] sm:$0xf0]  ;;  %321 = vst [vmem:[#allocation1] ss:$4 sm:$0xff] %v319_v53  ;;  %v4848_v57 = vld [vmem:[%s5334_s23 + $0x144] sm:$0xf] }
  0x59   : > { %v3841_v60 = vld [vmem:[%s5334_s23 + $0x80] sm:$0xf]  ;;  %v4642_v63 = vor.u32 %v5028_v56, %v4641_v55  ;;  %1900 = vmatpush.bf16.msra.mxu2 %v4386_v59  ;;  %v4230_v55 = vor.u32 %v4920_v46, %v4227_v48  ;;  %v4486_v56 = vor.u32 %v4984_v49, %v4483_v50  ;;  %v3939_v58 = vld [vmem:[%s5334_s23 + $0x160] sm:$0xf0] }
  0x5a   : > { %v4828_v61 = vld [vmem:[%s5334_s23 + $0x9c] sm:$0xf0]  ;;  %v4912_v59 = vld [vmem:[%s5334_s23 + $0x344] sm:$0xf] }
  0x5b   : > { %v4097_v62 = vld [vmem:[%s5334_s23 + $0x280] sm:$0xf]  ;;  %v3842_v5 = vor.u32 %v4828_v61, %v3841_v60  ;;  %1913 = vmatpush.bf16.msra.mxu3 %v4642_v63  ;;  %v4742_v60 = vor.u32 %v5048_v51, %v4739_v52  ;;  %v4195_v61 = vld [vmem:[%s5334_s23 + $0x360] sm:$0xf0] }
  0x5c   : > { %v4892_v0 = vld [vmem:[%s5334_s23 + $0x29c] sm:$0xf0]  ;;  %v4451_v63 = vld [vmem:[%s5334_s23 + $0x560] sm:$0xf0] }
  0x5d   : > { %v4353_v1 = vld [vmem:[%s5334_s23 + $0x480] sm:$0xf]  ;;  %v4098_v6 = vor.u32 %v4892_v0, %v4097_v62  ;;  %1875 = vmatpush.bf16.msra.mxu0 %v3842_v5  ;;  %v4976_v62 = vld [vmem:[%s5334_s23 + $0x544] sm:$0xf]  ;;  %v4198_v5 = vor.u32 %v4912_v59, %v4195_v61 }
  0x5e   : > { %v4956_v2 = vld [vmem:[%s5334_s23 + $0x49c] sm:$0xf0]  ;;  %v5040_v0 = vld [vmem:[%s5334_s23 + $0x744] sm:$0xf] }
  0x5f   : > { %v4609_v3 = vld [vmem:[%s5334_s23 + $0x680] sm:$0xf]  ;;  %v4354_v7 = vor.u32 %v4956_v2, %v4353_v1  ;;  %1888 = vmatpush.bf16.msra.mxu1 %v4098_v6  ;;  %v4707_v1 = vld [vmem:[%s5334_s23 + $0x760] sm:$0xf0]  ;;  %v3942_v2 = vor.u32 %v4848_v57, %v3939_v58  ;;  %v4454_v6 = vor.u32 %v4976_v62, %v4451_v63 }
  0x60   : > { %v5020_v4 = vld [vmem:[%s5334_s23 + $0x69c] sm:$0xf0]  ;;  %v4387_v31 = vld [vmem:[%s5334_s23 + $0x4e0] sm:$0xf0] }
  0x61   : > { %v3809_v8 = vld [vmem:[%s5334_s23 + $0x40] sm:$0xf]  ;;  %v4610_v11 = vor.u32 %v5020_v4, %v4609_v3  ;;  %1901 = vmatpush.bf16.msra.mxu2 %v4354_v7  ;;  %v4840_v3 = vld [vmem:[%s5334_s23 + $0x104] sm:$0xf] }
  0x62   : > { %v4820_v9 = vld [vmem:[%s5334_s23 + $0x5c] sm:$0xf0]  ;;  %v3907_v4 = vld [vmem:[%s5334_s23 + $0x120] sm:$0xf0] }
  0x63   : > { %v4065_v10 = vld [vmem:[%s5334_s23 + $0x240] sm:$0xf]  ;;  %v3810_v17 = vor.u32 %v4820_v9, %v3809_v8  ;;  %1914 = vmatpush.bf16.msra.mxu3 %v4610_v11  ;;  %v4904_v7 = vld [vmem:[%s5334_s23 + $0x304] sm:$0xf] }
  0x64   : > { %v4884_v12 = vld [vmem:[%s5334_s23 + $0x25c] sm:$0xf0]  ;;  %v4163_v8 = vld [vmem:[%s5334_s23 + $0x320] sm:$0xf0] }
  0x65   : > { %v4321_v13 = vld [vmem:[%s5334_s23 + $0x440] sm:$0xf]  ;;  %v4066_v20 = vor.u32 %v4884_v12, %v4065_v10  ;;  %1876 = vmatpush.bf16.msra.mxu0 %v3810_v17  ;;  %v4968_v9 = vld [vmem:[%s5334_s23 + $0x504] sm:$0xf]  ;;  %v4710_v10 = vor.u32 %v5040_v0, %v4707_v1  ;;  %v4166_v17 = vor.u32 %v4904_v7, %v4163_v8  ;;  %v4869_v7 = vld [vmem:[%s5334_s23 + $0x1e4] sm:$0xf0] }
  0x66   : > { %v4948_v14 = vld [vmem:[%s5334_s23 + $0x45c] sm:$0xf0]  ;;  %v4419_v11 = vld [vmem:[%s5334_s23 + $0x520] sm:$0xf0]  ;;  %v4265_v8 = vld [vmem:[%s5334_s23 + $0x3c8] sm:$0xf] }
  0x67   : > { %v4577_v15 = vld [vmem:[%s5334_s23 + $0x640] sm:$0xf]  ;;  %v4322_v21 = vor.u32 %v4948_v14, %v4321_v13  ;;  %1889 = vmatpush.bf16.msra.mxu1 %v4066_v20  ;;  %v5032_v12 = vld [vmem:[%s5334_s23 + $0x704] sm:$0xf] }
  0x68   : > { %v5012_v16 = vld [vmem:[%s5334_s23 + $0x65c] sm:$0xf0]  ;;  %v4675_v13 = vld [vmem:[%s5334_s23 + $0x720] sm:$0xf0] }
  0x69   : > { %v3777_v18 = vld [vmem:[%s5334_s23] sm:$0xf]  ;;  %v4578_v25 = vor.u32 %v5012_v16, %v4577_v15  ;;  %1902 = vmatpush.bf16.msra.mxu2 %v4322_v21  ;;  %v324_v14 = vld.sshfl [vmem:[#allocation1 + $0x10] sm:$0xff pattern:$0x73625140]  ;;  %v3910_v16 = vor.u32 %v4840_v3, %v3907_v4 }
  0x6a   : > { %v4812_v19 = vld [vmem:[%s5334_s23 + $0x1c] sm:$0xf0]  ;;  %v322_v20 = vld.sshfl [vmem:[#allocation1] sm:$0xff pattern:$0x73625140] }
  0x6b   : > { %v4033_v22 = vld [vmem:[%s5334_s23 + $0x200] sm:$0xf]  ;;  %v3778_v32 = vor.u32 %v4812_v19, %v3777_v18  ;;  %1915 = vmatpush.bf16.msra.mxu3 %v4578_v25  ;;  %v5444_v18 = vpack.c.bf16 %v324_v14, %v324_v14  ;;  %v323_v21 = vld.sshfl [vmem:[#allocation1 + $0x8] sm:$0xff pattern:$0x73625140] }
  0x6c   : > { %v4876_v23 = vld [vmem:[%s5334_s23 + $0x21c] sm:$0xf0]  ;;  %v4896_v25 = vld [vmem:[%s5334_s23 + $0x2c4] sm:$0xf] }
  0x6d   : > { %v4289_v24 = vld [vmem:[%s5334_s23 + $0x400] sm:$0xf]  ;;  %v4034_v36 = vor.u32 %v4876_v23, %v4033_v22  ;;  %1877 = vmatpush.bf16.msra.mxu0 %v3778_v32  ;;  %v4422_v22 = vor.u32 %v4968_v9, %v4419_v11  ;;  %v4832_v23 = vld [vmem:[%s5334_s23 + $0xc4] sm:$0xf]  ;;  %v4134_v35 = vor.u32 %v4896_v25, %v4131_v29  ;;  %v4521_v11 = vld [vmem:[%s5334_s23 + $0x5c8] sm:$0xf] }
  0x6e   : > { %v4940_v26 = vld [vmem:[%s5334_s23 + $0x41c] sm:$0xf0]  ;;  %v5024_v32 = vld [vmem:[%s5334_s23 + $0x6c4] sm:$0xf]  ;;  %v4233_v25 = vld [vmem:[%s5334_s23 + $0x388] sm:$0xf] }
  0x6f   : > { %v4545_v27 = vld [vmem:[%s5334_s23 + $0x600] sm:$0xf]  ;;  %v4290_v37 = vor.u32 %v4940_v26, %v4289_v24  ;;  %1890 = vmatpush.bf16.msra.mxu1 %v4034_v36  ;;  %v3875_v24 = vld [vmem:[%s5334_s23 + $0xe0] sm:$0xf0]  ;;  %v5451_v26 = vpack.c.bf16 %v322_v20, %v322_v20  ;;  %v4390_v36 = vor.u32 %v4960_v30, %v4387_v31  ;;  %v4925_v29 = vld [vmem:[%s5334_s23 + $0x3a4] sm:$0xf0] }
  0x70   : > { %v5004_v28 = vld [vmem:[%s5334_s23 + $0x61c] sm:$0xf0]  ;;  %v4643_v33 = vld [vmem:[%s5334_s23 + $0x6e0] sm:$0xf0]  ;;  %v3878_v34 = vor.u32 %v4832_v23, %v3875_v24  ;;  %v3977_v23 = vld [vmem:[%s5334_s23 + $0x188] sm:$0xf] }
  0x71   : > { %v4546_v40 = vor.u32 %v5004_v28, %v4545_v27  ;;  %1903 = vmatpush.bf16.msra.mxu2 %v4290_v37  ;;  %1922 = vmatpush.bf16.msrb.mxu0 %v4006_v41  ;;  %v325_v15 = vld.sshfl [vmem:[#allocation1 + $0x18] sm:$0xff pattern:$0x73625140]  ;;  %v5453_v27 = vpack.c.bf16 %v323_v21, %v323_v21  ;;  %v4678_v28 = vor.u32 %v5032_v12, %v4675_v13  ;;  %v4997_v12 = vld [vmem:[%s5334_s23 + $0x5e4] sm:$0xf0] }
  0x72   : > { %v5446_v19 = vpack.c.bf16 %v325_v15, %v325_v15  ;;  %1878 = vmatmul.bf16.vlgmr.msra.gmra.mxu0 %v5451_v26  ;;  %v4824_v37 = vld [vmem:[%s5334_s23 + $0x84] sm:$0xf]  ;;  %v4777_v15 = vld [vmem:[%s5334_s23 + $0x7c8] sm:$0xf] }
  0x73   : > { %1916 = vmatpush.bf16.msra.mxu3 %v4546_v40  ;;  %1935 = vmatpush.bf16.msrb.mxu1 %v4262_v42  ;;  %v3843_v38 = vld [vmem:[%s5334_s23 + $0xa0] sm:$0xf0]  ;;  %v4646_v40 = vor.u32 %v5024_v32, %v4643_v33  ;;  %v4861_v24 = vld [vmem:[%s5334_s23 + $0x1a4] sm:$0xf0] }
  0x74   : > { %1904 = vmatmul.bf16.vlgmr.msra.gmra.mxu2 %v5444_v18  ;;  %1891 = vmatmul.bf16.vlgmr.msra.gmra.mxu1 %v5453_v27  ;;  %v4888_v39 = vld [vmem:[%s5334_s23 + $0x284] sm:$0xf]  ;;  %v3846_v46 = vor.u32 %v4824_v37, %v3843_v38  ;;  %v4489_v30 = vld [vmem:[%s5334_s23 + $0x588] sm:$0xf] }
  0x75   : > { %1948 = vmatpush.bf16.msrb.mxu2 %v4518_v43  ;;  %1923 = vmatpush.bf16.msrb.mxu0 %v3974_v54  ;;  %v4099_v41 = vld [vmem:[%s5334_s23 + $0x2a0] sm:$0xf0]  ;;  %v4989_v31 = vld [vmem:[%s5334_s23 + $0x5a4] sm:$0xf0] }
  0x76   : > { %1917 = vmatmul.bf16.vlgmr.msra.gmra.mxu3 %v5446_v19  ;;  %v4952_v42 = vld [vmem:[%s5334_s23 + $0x484] sm:$0xf]  ;;  %v4745_v32 = vld [vmem:[%s5334_s23 + $0x788] sm:$0xf] }
  0x77   : > { %1961 = vmatpush.bf16.msrb.mxu3 %v4774_v47  ;;  %1936 = vmatpush.bf16.msrb.mxu1 %v4230_v55  ;;  %v4355_v43 = vld [vmem:[%s5334_s23 + $0x4a0] sm:$0xf0]  ;;  %v4102_v47 = vor.u32 %v4888_v39, %v4099_v41  ;;  %v5053_v33 = vld [vmem:[%s5334_s23 + $0x7a4] sm:$0xf0] }
  0x78   : > { %v5016_v44 = vld [vmem:[%s5334_s23 + $0x684] sm:$0xf]  ;;  %v4358_v48 = vor.u32 %v4952_v42, %v4355_v43  ;;  %v3945_v37 = vld [vmem:[%s5334_s23 + $0x148] sm:$0xf] }
  0x79   : > { %1949 = vmatpush.bf16.msrb.mxu2 %v4486_v56  ;;  %1924 = vmatpush.bf16.msrb.mxu0 %v3942_v2  ;;  %v4611_v45 = vld [vmem:[%s5334_s23 + $0x6a0] sm:$0xf0]  ;;  %v4853_v38 = vld [vmem:[%s5334_s23 + $0x164] sm:$0xf0] }
  0x7a   : > { %v4816_v49 = vld [vmem:[%s5334_s23 + $0x44] sm:$0xf]  ;;  %v4614_v52 = vor.u32 %v5016_v44, %v4611_v45  ;;  %v4201_v39 = vld [vmem:[%s5334_s23 + $0x348] sm:$0xf] }
  0x7b   : > { %1962 = vmatpush.bf16.msrb.mxu3 %v4742_v60  ;;  %1937 = vmatpush.bf16.msrb.mxu1 %v4198_v5  ;;  %v3811_v50 = vld [vmem:[%s5334_s23 + $0x60] sm:$0xf0]  ;;  %v4917_v41 = vld [vmem:[%s5334_s23 + $0x364] sm:$0xf0] }
  0x7c   : > { %v4880_v51 = vld [vmem:[%s5334_s23 + $0x244] sm:$0xf]  ;;  %v3814_v58 = vor.u32 %v4816_v49, %v3811_v50  ;;  %v4457_v42 = vld [vmem:[%s5334_s23 + $0x548] sm:$0xf] }
  0x7d   : > { %1950 = vmatpush.bf16.msrb.mxu2 %v4454_v6  ;;  %1925 = vmatpush.bf16.msrb.mxu0 %v3910_v16  ;;  %v4067_v53 = vld [vmem:[%s5334_s23 + $0x260] sm:$0xf0]  ;;  %v4009_v6 = vld [vmem:[%s5334_s23 + $0x1c8] sm:$0xf] }
  0x7e   : > { %v4944_v54 = vld [vmem:[%s5334_s23 + $0x444] sm:$0xf]  ;;  %v4070_v61 = vor.u32 %v4880_v51, %v4067_v53  ;;  %v5061_v16 = vld [vmem:[%s5334_s23 + $0x7e4] sm:$0xf0]  ;;  %v4010_v20 = vor.u32 %v4869_v7, %v4009_v6 }
  0x7f   : > { %1963 = vmatpush.bf16.msrb.mxu3 %v4710_v10  ;;  %1938 = vmatpush.bf16.msrb.mxu1 %v4166_v17  ;;  %v4323_v55 = vld [vmem:[%s5334_s23 + $0x460] sm:$0xf0]  ;;  %v4933_v10 = vld [vmem:[%s5334_s23 + $0x3e4] sm:$0xf0] }
  0x80   : > { %v5008_v56 = vld [vmem:[%s5334_s23 + $0x644] sm:$0xf]  ;;  %v4326_v62 = vor.u32 %v4944_v54, %v4323_v55  ;;  %v4266_v21 = vor.u32 %v4933_v10, %v4265_v8  ;;  %v4981_v43 = vld [vmem:[%s5334_s23 + $0x564] sm:$0xf0] }
  0x81   : > { %1951 = vmatpush.bf16.msrb.mxu2 %v4422_v22  ;;  %1926 = vmatpush.bf16.msrb.mxu0 %v3878_v34  ;;  %v4579_v57 = vld [vmem:[%s5334_s23 + $0x660] sm:$0xf0]  ;;  %v4522_v22 = vor.u32 %v4997_v12, %v4521_v11  ;;  %v3978_v34 = vor.u32 %v4861_v24, %v3977_v23  ;;  %v4713_v44 = vld [vmem:[%s5334_s23 + $0x748] sm:$0xf] }
  0x82   : > { %v4808_v59 = vld [vmem:[%s5334_s23 + $0x4] sm:$0xf]  ;;  %v4582_v2 = vor.u32 %v5008_v56, %v4579_v57  ;;  %v5045_v45 = vld [vmem:[%s5334_s23 + $0x764] sm:$0xf0] }
  0x83   : > { %1964 = vmatpush.bf16.msrb.mxu3 %v4678_v28  ;;  %1939 = vmatpush.bf16.msrb.mxu1 %v4134_v35  ;;  %v3779_v60 = vld [vmem:[%s5334_s23 + $0x20] sm:$0xf0]  ;;  %v4778_v28 = vor.u32 %v5061_v16, %v4777_v15  ;;  %v4234_v35 = vor.u32 %v4925_v29, %v4233_v25  ;;  %v3913_v49 = vld [vmem:[%s5334_s23 + $0x108] sm:$0xf] }
  0x84   : > { %v4872_v63 = vld [vmem:[%s5334_s23 + $0x204] sm:$0xf]  ;;  %v3782_v9 = vor.u32 %v4808_v59, %v3779_v60  ;;  %v4845_v50 = vld [vmem:[%s5334_s23 + $0x124] sm:$0xf0] }
  0x85   : > { %1952 = vmatpush.bf16.msrb.mxu2 %v4390_v36  ;;  %1927 = vmatpush.bf16.msrb.mxu0 %v3846_v46  ;;  %v4035_v0 = vld [vmem:[%s5334_s23 + $0x220] sm:$0xf0]  ;;  %v4490_v36 = vor.u32 %v4989_v31, %v4489_v30  ;;  %v3946_v46 = vor.u32 %v4853_v38, %v3945_v37  ;;  %v4169_v51 = vld [vmem:[%s5334_s23 + $0x308] sm:$0xf] }
  0x86   : > { %v4936_v1 = vld [vmem:[%s5334_s23 + $0x404] sm:$0xf]  ;;  %v4038_v13 = vor.u32 %v4872_v63, %v4035_v0  ;;  %v4909_v53 = vld [vmem:[%s5334_s23 + $0x324] sm:$0xf0] }
  0x87   : > { %1965 = vmatpush.bf16.msrb.mxu3 %v4646_v40  ;;  %1940 = vmatpush.bf16.msrb.mxu1 %v4102_v47  ;;  %v4291_v3 = vld [vmem:[%s5334_s23 + $0x420] sm:$0xf0]  ;;  %v4746_v40 = vor.u32 %v5053_v33, %v4745_v32  ;;  %v4202_v47 = vor.u32 %v4917_v41, %v4201_v39  ;;  %v4425_v54 = vld [vmem:[%s5334_s23 + $0x508] sm:$0xf]  ;;  %v4170_v59 = vor.u32 %v4909_v53, %v4169_v51  ;;  %v4993_v51 = vld [vmem:[%s5334_s23 + $0x5cc] sm:$0xf] }
  0x88   : > { %v5000_v4 = vld [vmem:[%s5334_s23 + $0x604] sm:$0xf]  ;;  %v4294_v14 = vor.u32 %v4936_v1, %v4291_v3  ;;  %v4973_v55 = vld [vmem:[%s5334_s23 + $0x524] sm:$0xf0] }
  0x89   : > { %1953 = vmatpush.bf16.msrb.mxu2 %v4358_v48  ;;  %v4547_v5 = vld [vmem:[%s5334_s23 + $0x620] sm:$0xf0]  ;;  %1928 = vmatpush.bf16.msrb.mxu0 %v3814_v58  ;;  %v4458_v48 = vor.u32 %v4981_v43, %v4457_v42  ;;  %v4681_v56 = vld [vmem:[%s5334_s23 + $0x708] sm:$0xf]  ;;  %v3914_v58 = vor.u32 %v4845_v50, %v3913_v49  ;;  %v4426_v60 = vor.u32 %v4973_v55, %v4425_v54  ;;  %v4267_v50 = vld [vmem:[%s5334_s23 + $0x3e8] sm:$0xf0] }
  0x8a   : > { %v4550_v17 = vor.u32 %v5000_v4, %v4547_v5  ;;  %v5037_v57 = vld [vmem:[%s5334_s23 + $0x724] sm:$0xf0]  ;;  %v5057_v55 = vld [vmem:[%s5334_s23 + $0x7cc] sm:$0xf] }
  0x8b   : > { %1966 = vmatpush.bf16.msrb.mxu3 %v4614_v52  ;;  %1941 = vmatpush.bf16.msrb.mxu1 %v4070_v61  ;;  %v4714_v52 = vor.u32 %v5045_v45, %v4713_v44  ;;  %v3881_v61 = vld [vmem:[%s5334_s23 + $0xc8] sm:$0xf]  ;;  %v4682_v0 = vor.u32 %v5037_v57, %v4681_v56  ;;  %v4779_v56 = vld [vmem:[%s5334_s23 + $0x7e8] sm:$0xf0] }
  0x8c   : > { %v4137_v63 = vld [vmem:[%s5334_s23 + $0x2c8] sm:$0xf] }
  0x8d   : > { %1954 = vmatpush.bf16.msrb.mxu2 %v4326_v62  ;;  %1929 = vmatpush.bf16.msrb.mxu0 %v3782_v9  ;;  %v4837_v62 = vld [vmem:[%s5334_s23 + $0xe4] sm:$0xf0] }
  0x8e   : > { %v4901_v1 = vld [vmem:[%s5334_s23 + $0x2e4] sm:$0xf0]  ;;  %v3882_v6 = vor.u32 %v4837_v62, %v3881_v61  ;;  %v4857_v61 = vld [vmem:[%s5334_s23 + $0x18c] sm:$0xf] }
  0x8f   : > { %1967 = vmatpush.bf16.msrb.mxu3 %v4582_v2  ;;  %1942 = vmatpush.bf16.msrb.mxu1 %v4038_v13  ;;  %v4393_v2 = vld [vmem:[%s5334_s23 + $0x4c8] sm:$0xf]  ;;  %v4138_v7 = vor.u32 %v4901_v1, %v4137_v63  ;;  %v3979_v62 = vld [vmem:[%s5334_s23 + $0x1a8] sm:$0xf0] }
  0x90   : > { %1930 = vmatmul.bf16.vlgmr.msrb.gmra.mxu0 %v5451_v26  ;;  %v4965_v3 = vld [vmem:[%s5334_s23 + $0x4e4] sm:$0xf0]  ;;  %v4921_v63 = vld [vmem:[%s5334_s23 + $0x38c] sm:$0xf] }
  0x91   : > { %1955 = vmatpush.bf16.msrb.mxu2 %v4294_v14  ;;  %1974 = vmatpush.bf16.msra.mxu0 %v4010_v20  ;;  %v4649_v4 = vld [vmem:[%s5334_s23 + $0x6c8] sm:$0xf]  ;;  %v4394_v8 = vor.u32 %v4965_v3, %v4393_v2  ;;  %v4235_v1 = vld [vmem:[%s5334_s23 + $0x3a8] sm:$0xf0] }
  0x92   : > { %1943 = vmatmul.bf16.vlgmr.msrb.gmra.mxu1 %v5453_v27  ;;  %v5029_v5 = vld [vmem:[%s5334_s23 + $0x6e4] sm:$0xf0]  ;;  %v4985_v2 = vld [vmem:[%s5334_s23 + $0x58c] sm:$0xf] }
  0x93   : > { %1968 = vmatpush.bf16.msrb.mxu3 %v4550_v17  ;;  %1987 = vmatpush.bf16.msra.mxu1 %v4266_v21  ;;  %v3849_v9 = vld [vmem:[%s5334_s23 + $0x88] sm:$0xf]  ;;  %v4650_v12 = vor.u32 %v5029_v5, %v4649_v4  ;;  %v4491_v3 = vld [vmem:[%s5334_s23 + $0x5a8] sm:$0xf0] }
  0x94   : > { %1956 = vmatmul.bf16.vlgmr.msrb.gmra.mxu2 %v5444_v18  ;;  %v4829_v10 = vld [vmem:[%s5334_s23 + $0xa4] sm:$0xf0]  ;;  %v5049_v4 = vld [vmem:[%s5334_s23 + $0x78c] sm:$0xf] }
  0x95   : > { %2000 = vmatpush.bf16.msra.mxu2 %v4522_v22  ;;  %1975 = vmatpush.bf16.msra.mxu0 %v3978_v34  ;;  %v4105_v11 = vld [vmem:[%s5334_s23 + $0x288] sm:$0xf]  ;;  %v3850_v20 = vor.u32 %v4829_v10, %v3849_v9  ;;  %v4747_v5 = vld [vmem:[%s5334_s23 + $0x7a8] sm:$0xf0] }
  0x96   : > { %1969 = vmatmul.bf16.vlgmr.msrb.gmra.mxu3 %v5446_v19  ;;  %v4893_v13 = vld [vmem:[%s5334_s23 + $0x2a4] sm:$0xf0]  ;;  %v4849_v9 = vld [vmem:[%s5334_s23 + $0x14c] sm:$0xf] }
  0x97   : > { %2013 = vmatpush.bf16.msra.mxu3 %v4778_v28  ;;  %1988 = vmatpush.bf16.msra.mxu1 %v4234_v35  ;;  %v4361_v14 = vld [vmem:[%s5334_s23 + $0x488] sm:$0xf]  ;;  %v4106_v21 = vor.u32 %v4893_v13, %v4105_v11  ;;  %v3947_v10 = vld [vmem:[%s5334_s23 + $0x168] sm:$0xf0] }
  0x98   : > { %v4957_v15 = vld [vmem:[%s5334_s23 + $0x4a4] sm:$0xf0]  ;;  %v4913_v11 = vld [vmem:[%s5334_s23 + $0x34c] sm:$0xf] }
  0x99   : > { %2001 = vmatpush.bf16.msra.mxu2 %v4490_v36  ;;  %1976 = vmatpush.bf16.msra.mxu0 %v3946_v46  ;;  %v4617_v16 = vld [vmem:[%s5334_s23 + $0x688] sm:$0xf]  ;;  %v4362_v22 = vor.u32 %v4957_v15, %v4361_v14  ;;  %v4865_v46 = vld [vmem:[%s5334_s23 + $0x1cc] sm:$0xf] }
  0x9a   : > { %v5021_v17 = vld [vmem:[%s5334_s23 + $0x6a4] sm:$0xf0]  ;;  %v4203_v13 = vld [vmem:[%s5334_s23 + $0x368] sm:$0xf0] }
  0x9b   : > { %2014 = vmatpush.bf16.msra.mxu3 %v4746_v40  ;;  %1989 = vmatpush.bf16.msra.mxu1 %v4202_v47  ;;  %v3817_v23 = vld [vmem:[%s5334_s23 + $0x48] sm:$0xf]  ;;  %v4618_v28 = vor.u32 %v5021_v17, %v4617_v16  ;;  %v4011_v47 = vld [vmem:[%s5334_s23 + $0x1e8] sm:$0xf0] }
  0x9c   : > { %v4821_v24 = vld [vmem:[%s5334_s23 + $0x64] sm:$0xf0]  ;;  %v4977_v14 = vld [vmem:[%s5334_s23 + $0x54c] sm:$0xf] }
  0x9d   : > { %2002 = vmatpush.bf16.msra.mxu2 %v4458_v48  ;;  %1977 = vmatpush.bf16.msra.mxu0 %v3914_v58  ;;  %v4073_v25 = vld [vmem:[%s5334_s23 + $0x248] sm:$0xf]  ;;  %v3818_v34 = vor.u32 %v4821_v24, %v3817_v23  ;;  %v4929_v48 = vld [vmem:[%s5334_s23 + $0x3cc] sm:$0xf]  ;;  %v4014_v58 = vor.u32 %v4865_v46, %v4011_v47 }
  0x9e   : > { %v4885_v29 = vld [vmem:[%s5334_s23 + $0x264] sm:$0xf0]  ;;  %v4459_v15 = vld [vmem:[%s5334_s23 + $0x568] sm:$0xf0] }
  0x9f   : > { %2015 = vmatpush.bf16.msra.mxu3 %v4714_v52  ;;  %1990 = vmatpush.bf16.msra.mxu1 %v4170_v59  ;;  %v4329_v30 = vld [vmem:[%s5334_s23 + $0x448] sm:$0xf]  ;;  %v4074_v37 = vor.u32 %v4885_v29, %v4073_v25  ;;  %v4523_v52 = vld [vmem:[%s5334_s23 + $0x5e8] sm:$0xf0]  ;;  %v4270_v59 = vor.u32 %v4929_v48, %v4267_v50 }
  0xa0   : > { %v4949_v31 = vld [vmem:[%s5334_s23 + $0x464] sm:$0xf0]  ;;  %v5041_v16 = vld [vmem:[%s5334_s23 + $0x74c] sm:$0xf] }
  0xa1   : > { %2003 = vmatpush.bf16.msra.mxu2 %v4426_v60  ;;  %1978 = vmatpush.bf16.msra.mxu0 %v3882_v6  ;;  %v4585_v32 = vld [vmem:[%s5334_s23 + $0x648] sm:$0xf]  ;;  %v4330_v38 = vor.u32 %v4949_v31, %v4329_v30  ;;  %v4526_v60 = vor.u32 %v4993_v51, %v4523_v52  ;;  %v3982_v6 = vor.u32 %v4857_v61, %v3979_v62  ;;  %v4715_v17 = vld [vmem:[%s5334_s23 + $0x768] sm:$0xf0] }
  0xa2   : > { %v5013_v33 = vld [vmem:[%s5334_s23 + $0x664] sm:$0xf0]  ;;  %v4841_v23 = vld [vmem:[%s5334_s23 + $0x10c] sm:$0xf] }
  0xa3   : > { %2016 = vmatpush.bf16.msra.mxu3 %v4682_v0  ;;  %1991 = vmatpush.bf16.msra.mxu1 %v4138_v7  ;;  %v3785_v35 = vld [vmem:[%s5334_s23 + $0x8] sm:$0xf]  ;;  %v4586_v42 = vor.u32 %v5013_v33, %v4585_v32  ;;  %v4782_v0 = vor.u32 %v5057_v55, %v4779_v56  ;;  %v4238_v7 = vor.u32 %v4921_v63, %v4235_v1  ;;  %v3915_v24 = vld [vmem:[%s5334_s23 + $0x128] sm:$0xf0] }
  0xa4   : > { %v4813_v36 = vld [vmem:[%s5334_s23 + $0x24] sm:$0xf0]  ;;  %v4905_v25 = vld [vmem:[%s5334_s23 + $0x30c] sm:$0xf] }
  0xa5   : > { %2004 = vmatpush.bf16.msra.mxu2 %v4394_v8  ;;  %1979 = vmatpush.bf16.msra.mxu0 %v3850_v20  ;;  %v4041_v39 = vld [vmem:[%s5334_s23 + $0x208] sm:$0xf]  ;;  %v3786_v49 = vor.u32 %v4813_v36, %v3785_v35  ;;  %v4494_v8 = vor.u32 %v4985_v2, %v4491_v3  ;;  %v3950_v20 = vor.u32 %v4849_v9, %v3947_v10  ;;  %v4171_v29 = vld [vmem:[%s5334_s23 + $0x328] sm:$0xf0] }
  0xa6   : > { %v4877_v40 = vld [vmem:[%s5334_s23 + $0x224] sm:$0xf0]  ;;  %v4969_v30 = vld [vmem:[%s5334_s23 + $0x50c] sm:$0xf]  ;;  %v4174_v35 = vor.u32 %v4905_v25, %v4171_v29  ;;  %v4529_v25 = vld [vmem:[%s5334_s23 + $0x5d0] sm:$0xf] }
  0xa7   : > { %2017 = vmatpush.bf16.msra.mxu3 %v4650_v12  ;;  %1992 = vmatpush.bf16.msra.mxu1 %v4106_v21  ;;  %v4297_v41 = vld [vmem:[%s5334_s23 + $0x408] sm:$0xf]  ;;  %v4042_v53 = vor.u32 %v4877_v40, %v4041_v39  ;;  %v4750_v12 = vor.u32 %v5049_v4, %v4747_v5  ;;  %v4206_v21 = vor.u32 %v4913_v11, %v4203_v13  ;;  %v4427_v31 = vld [vmem:[%s5334_s23 + $0x528] sm:$0xf0] }
  0xa8   : > { %v4941_v43 = vld [vmem:[%s5334_s23 + $0x424] sm:$0xf0]  ;;  %v5033_v32 = vld [vmem:[%s5334_s23 + $0x70c] sm:$0xf]  ;;  %v4430_v36 = vor.u32 %v4969_v30, %v4427_v31  ;;  %v4785_v31 = vld [vmem:[%s5334_s23 + $0x7d0] sm:$0xf] }
  0xa9   : > { %2005 = vmatpush.bf16.msra.mxu2 %v4362_v22  ;;  %v4553_v44 = vld [vmem:[%s5334_s23 + $0x608] sm:$0xf]  ;;  %1980 = vmatpush.bf16.msra.mxu0 %v3818_v34  ;;  %v4298_v54 = vor.u32 %v4941_v43, %v4297_v41  ;;  %v4462_v22 = vor.u32 %v4977_v14, %v4459_v15  ;;  %v4683_v33 = vld [vmem:[%s5334_s23 + $0x728] sm:$0xf0]  ;;  %v3918_v34 = vor.u32 %v4841_v23, %v3915_v24  ;;  %v4934_v24 = vld [vmem:[%s5334_s23 + $0x3ec] sm:$0xf0] }
  0xaa   : > { %v5005_v45 = vld [vmem:[%s5334_s23 + $0x624] sm:$0xf0]  ;;  %v4897_v39 = vld [vmem:[%s5334_s23 + $0x2cc] sm:$0xf]  ;;  %v4686_v40 = vor.u32 %v5033_v32, %v4683_v33  ;;  %v5062_v32 = vld [vmem:[%s5334_s23 + $0x7ec] sm:$0xf0] }
  0xab   : > { %2018 = vmatpush.bf16.msra.mxu3 %v4618_v28  ;;  %1993 = vmatpush.bf16.msra.mxu1 %v4074_v37  ;;  %v4554_v57 = vor.u32 %v5005_v45, %v4553_v44  ;;  %v4718_v28 = vor.u32 %v5041_v16, %v4715_v17  ;;  %v4833_v37 = vld [vmem:[%s5334_s23 + $0xcc] sm:$0xf] }
  0xac   : > { %v4139_v41 = vld [vmem:[%s5334_s23 + $0x2e8] sm:$0xf0] }
  0xad   : > { %2006 = vmatpush.bf16.msra.mxu2 %v4330_v38  ;;  %1981 = vmatpush.bf16.msra.mxu0 %v3786_v49  ;;  %v3883_v38 = vld [vmem:[%s5334_s23 + $0xe8] sm:$0xf0]  ;;  %v4142_v47 = vor.u32 %v4897_v39, %v4139_v41  ;;  %v4241_v39 = vld [vmem:[%s5334_s23 + $0x390] sm:$0xf] }
  0xae   : > { %v4395_v43 = vld [vmem:[%s5334_s23 + $0x4e8] sm:$0xf0]  ;;  %v3886_v46 = vor.u32 %v4833_v37, %v3883_v38  ;;  %v3985_v37 = vld [vmem:[%s5334_s23 + $0x190] sm:$0xf] }
  0xaf   : > { %2019 = vmatpush.bf16.msra.mxu3 %v4586_v42  ;;  %1994 = vmatpush.bf16.msra.mxu1 %v4042_v53  ;;  %v4961_v42 = vld [vmem:[%s5334_s23 + $0x4cc] sm:$0xf]  ;;  %v4862_v38 = vld [vmem:[%s5334_s23 + $0x1ac] sm:$0xf0] }
  0xb0   : > { %1982 = vmatmul.bf16.vlgmr.msra.gmra.mxu0 %v5451_v26  ;;  %v5025_v44 = vld [vmem:[%s5334_s23 + $0x6cc] sm:$0xf]  ;;  %v4398_v48 = vor.u32 %v4961_v42, %v4395_v43  ;;  %v4926_v41 = vld [vmem:[%s5334_s23 + $0x3ac] sm:$0xf0] }
  0xb1   : > { %2007 = vmatpush.bf16.msra.mxu2 %v4298_v54  ;;  %2026 = vmatpush.bf16.msrb.mxu0 %v4014_v58  ;;  %v4651_v45 = vld [vmem:[%s5334_s23 + $0x6e8] sm:$0xf0]  ;;  %v4497_v42 = vld [vmem:[%s5334_s23 + $0x590] sm:$0xf] }
  0xb2   : > { %1995 = vmatmul.bf16.vlgmr.msra.gmra.mxu1 %v5453_v27  ;;  %v4825_v49 = vld [vmem:[%s5334_s23 + $0x8c] sm:$0xf]  ;;  %v4654_v52 = vor.u32 %v5025_v44, %v4651_v45  ;;  %v4990_v43 = vld [vmem:[%s5334_s23 + $0x5ac] sm:$0xf0] }
  0xb3   : > { %2020 = vmatpush.bf16.msra.mxu3 %v4554_v57  ;;  %2039 = vmatpush.bf16.msrb.mxu1 %v4270_v59  ;;  %v3851_v50 = vld [vmem:[%s5334_s23 + $0xa8] sm:$0xf0]  ;;  %v4753_v44 = vld [vmem:[%s5334_s23 + $0x790] sm:$0xf] }
  0xb4   : > { %2008 = vmatmul.bf16.vlgmr.msra.gmra.mxu2 %v5444_v18  ;;  %v4889_v51 = vld [vmem:[%s5334_s23 + $0x28c] sm:$0xf]  ;;  %v3854_v58 = vor.u32 %v4825_v49, %v3851_v50  ;;  %v5054_v45 = vld [vmem:[%s5334_s23 + $0x7ac] sm:$0xf0] }
  0xb5   : > { %2052 = vmatpush.bf16.msrb.mxu2 %v4526_v60  ;;  %2027 = vmatpush.bf16.msrb.mxu0 %v3982_v6  ;;  %v4107_v53 = vld [vmem:[%s5334_s23 + $0x2a8] sm:$0xf0]  ;;  %v3953_v49 = vld [vmem:[%s5334_s23 + $0x150] sm:$0xf] }
  0xb6   : > { %2021 = vmatmul.bf16.vlgmr.msra.gmra.mxu3 %v5446_v19  ;;  %v4953_v54 = vld [vmem:[%s5334_s23 + $0x48c] sm:$0xf]  ;;  %v4110_v59 = vor.u32 %v4889_v51, %v4107_v53  ;;  %v4854_v50 = vld [vmem:[%s5334_s23 + $0x16c] sm:$0xf0] }
  0xb7   : > { %2065 = vmatpush.bf16.msrb.mxu3 %v4782_v0  ;;  %2040 = vmatpush.bf16.msrb.mxu1 %v4238_v7  ;;  %v4363_v55 = vld [vmem:[%s5334_s23 + $0x4a8] sm:$0xf0]  ;;  %v4209_v51 = vld [vmem:[%s5334_s23 + $0x350] sm:$0xf] }
  0xb8   : > { %v5017_v56 = vld [vmem:[%s5334_s23 + $0x68c] sm:$0xf]  ;;  %v4366_v60 = vor.u32 %v4953_v54, %v4363_v55  ;;  %v4918_v53 = vld [vmem:[%s5334_s23 + $0x36c] sm:$0xf0] }
  0xb9   : > { %2053 = vmatpush.bf16.msrb.mxu2 %v4494_v8  ;;  %2028 = vmatpush.bf16.msrb.mxu0 %v3950_v20  ;;  %v4619_v57 = vld [vmem:[%s5334_s23 + $0x6a8] sm:$0xf0]  ;;  %v4017_v20 = vld [vmem:[%s5334_s23 + $0x1d0] sm:$0xf] }
  0xba   : > { %v4817_v61 = vld [vmem:[%s5334_s23 + $0x4c] sm:$0xf]  ;;  %v4622_v0 = vor.u32 %v5017_v56, %v4619_v57  ;;  %v4465_v54 = vld [vmem:[%s5334_s23 + $0x550] sm:$0xf] }
  0xbb   : > { %2066 = vmatpush.bf16.msrb.mxu3 %v4750_v12  ;;  %2041 = vmatpush.bf16.msrb.mxu1 %v4206_v21  ;;  %v3819_v62 = vld [vmem:[%s5334_s23 + $0x68] sm:$0xf0]  ;;  %v4870_v21 = vld [vmem:[%s5334_s23 + $0x1ec] sm:$0xf0] }
  0xbc   : > { %v4881_v63 = vld [vmem:[%s5334_s23 + $0x24c] sm:$0xf]  ;;  %v3822_v6 = vor.u32 %v4817_v61, %v3819_v62  ;;  %v4982_v55 = vld [vmem:[%s5334_s23 + $0x56c] sm:$0xf0] }
  0xbd   : > { %2054 = vmatpush.bf16.msrb.mxu2 %v4462_v22  ;;  %2029 = vmatpush.bf16.msrb.mxu0 %v3918_v34  ;;  %v4075_v1 = vld [vmem:[%s5334_s23 + $0x268] sm:$0xf0]  ;;  %v4273_v22 = vld [vmem:[%s5334_s23 + $0x3d0] sm:$0xf]  ;;  %v4018_v34 = vor.u32 %v4870_v21, %v4017_v20 }
  0xbe   : > { %v4945_v2 = vld [vmem:[%s5334_s23 + $0x44c] sm:$0xf]  ;;  %v4078_v9 = vor.u32 %v4881_v63, %v4075_v1  ;;  %v4721_v56 = vld [vmem:[%s5334_s23 + $0x750] sm:$0xf] }
  0xbf   : > { %2067 = vmatpush.bf16.msrb.mxu3 %v4718_v28  ;;  %2042 = vmatpush.bf16.msrb.mxu1 %v4174_v35  ;;  %v4331_v3 = vld [vmem:[%s5334_s23 + $0x468] sm:$0xf0]  ;;  %v4998_v28 = vld [vmem:[%s5334_s23 + $0x5ec] sm:$0xf0]  ;;  %v4274_v35 = vor.u32 %v4934_v24, %v4273_v22 }
  0xc0   : > { %v5009_v4 = vld [vmem:[%s5334_s23 + $0x64c] sm:$0xf]  ;;  %v4334_v10 = vor.u32 %v4945_v2, %v4331_v3  ;;  %v5046_v57 = vld [vmem:[%s5334_s23 + $0x76c] sm:$0xf0] }
  0xc1   : > { %2055 = vmatpush.bf16.msrb.mxu2 %v4430_v36  ;;  %2030 = vmatpush.bf16.msrb.mxu0 %v3886_v46  ;;  %v4587_v5 = vld [vmem:[%s5334_s23 + $0x668] sm:$0xf0]  ;;  %v4530_v36 = vor.u32 %v4998_v28, %v4529_v25  ;;  %v3986_v46 = vor.u32 %v4862_v38, %v3985_v37  ;;  %v3921_v61 = vld [vmem:[%s5334_s23 + $0x110] sm:$0xf] }
  0xc2   : > { %v4809_v7 = vld [vmem:[%s5334_s23 + $0xc] sm:$0xf]  ;;  %v4590_v14 = vor.u32 %v5009_v4, %v4587_v5  ;;  %v4846_v62 = vld [vmem:[%s5334_s23 + $0x12c] sm:$0xf0] }
  0xc3   : > { %2068 = vmatpush.bf16.msrb.mxu3 %v4686_v40  ;;  %2043 = vmatpush.bf16.msrb.mxu1 %v4142_v47  ;;  %v3787_v8 = vld [vmem:[%s5334_s23 + $0x28] sm:$0xf0]  ;;  %v4786_v40 = vor.u32 %v5062_v32, %v4785_v31  ;;  %v4242_v47 = vor.u32 %v4926_v41, %v4241_v39  ;;  %v4177_v63 = vld [vmem:[%s5334_s23 + $0x310] sm:$0xf] }
  0xc4   : > { %v4873_v11 = vld [vmem:[%s5334_s23 + $0x20c] sm:$0xf]  ;;  %v3790_v23 = vor.u32 %v4809_v7, %v3787_v8  ;;  %v4910_v1 = vld [vmem:[%s5334_s23 + $0x32c] sm:$0xf0] }
  0xc5   : > { %2056 = vmatpush.bf16.msrb.mxu2 %v4398_v48  ;;  %2031 = vmatpush.bf16.msrb.mxu0 %v3854_v58  ;;  %v4043_v12 = vld [vmem:[%s5334_s23 + $0x228] sm:$0xf0]  ;;  %v4498_v48 = vor.u32 %v4990_v43, %v4497_v42  ;;  %v3954_v58 = vor.u32 %v4854_v50, %v3953_v49  ;;  %v4433_v2 = vld [vmem:[%s5334_s23 + $0x510] sm:$0xf]  ;;  %v4178_v7 = vor.u32 %v4910_v1, %v4177_v63  ;;  %v4994_v63 = vld [vmem:[%s5334_s23 + $0x5d4] sm:$0xf] }
  0xc6   : > { %v4937_v13 = vld [vmem:[%s5334_s23 + $0x40c] sm:$0xf]  ;;  %v4046_v29 = vor.u32 %v4873_v11, %v4043_v12  ;;  %v4974_v3 = vld [vmem:[%s5334_s23 + $0x52c] sm:$0xf0] }
  0xc7   : > { %2069 = vmatpush.bf16.msrb.mxu3 %v4654_v52  ;;  %2044 = vmatpush.bf16.msrb.mxu1 %v4110_v59  ;;  %v4299_v15 = vld [vmem:[%s5334_s23 + $0x428] sm:$0xf0]  ;;  %v4754_v52 = vor.u32 %v5054_v45, %v4753_v44  ;;  %v4210_v59 = vor.u32 %v4918_v53, %v4209_v51  ;;  %v4689_v4 = vld [vmem:[%s5334_s23 + $0x710] sm:$0xf]  ;;  %v4434_v8 = vor.u32 %v4974_v3, %v4433_v2  ;;  %v5058_v3 = vld [vmem:[%s5334_s23 + $0x7d4] sm:$0xf] }
  0xc8   : > { %v5001_v16 = vld [vmem:[%s5334_s23 + $0x60c] sm:$0xf]  ;;  %v4302_v30 = vor.u32 %v4937_v13, %v4299_v15  ;;  %v5038_v5 = vld [vmem:[%s5334_s23 + $0x72c] sm:$0xf0] }
  0xc9   : > { %2057 = vmatpush.bf16.msrb.mxu2 %v4366_v60  ;;  %v4555_v17 = vld [vmem:[%s5334_s23 + $0x628] sm:$0xf0]  ;;  %2032 = vmatpush.bf16.msrb.mxu0 %v3822_v6  ;;  %v4466_v60 = vor.u32 %v4982_v55, %v4465_v54  ;;  %v3922_v6 = vor.u32 %v4846_v62, %v3921_v61  ;;  %v4145_v11 = vld [vmem:[%s5334_s23 + $0x2d0] sm:$0xf]  ;;  %v4690_v12 = vor.u32 %v5038_v5, %v4689_v4  ;;  %v4275_v62 = vld [vmem:[%s5334_s23 + $0x3f0] sm:$0xf0] }
  0xca   : > { %v4558_v33 = vor.u32 %v5001_v16, %v4555_v17  ;;  %v4902_v13 = vld [vmem:[%s5334_s23 + $0x2ec] sm:$0xf0]  ;;  %v4787_v4 = vld [vmem:[%s5334_s23 + $0x7f0] sm:$0xf0] }
  0xcb   : > { %2070 = vmatpush.bf16.msrb.mxu3 %v4622_v0  ;;  %2045 = vmatpush.bf16.msrb.mxu1 %v4078_v9  ;;  %v4722_v0 = vor.u32 %v5046_v57, %v4721_v56  ;;  %v3889_v9 = vld [vmem:[%s5334_s23 + $0xd0] sm:$0xf]  ;;  %v4146_v21 = vor.u32 %v4902_v13, %v4145_v11  ;;  %v4922_v11 = vld [vmem:[%s5334_s23 + $0x394] sm:$0xf] }
  0xcc   : > { %v4966_v15 = vld [vmem:[%s5334_s23 + $0x4ec] sm:$0xf0]  ;;  %v4243_v13 = vld [vmem:[%s5334_s23 + $0x3b0] sm:$0xf0] }
  0xcd   : > { %2058 = vmatpush.bf16.msrb.mxu2 %v4334_v10  ;;  %2033 = vmatpush.bf16.msrb.mxu0 %v3790_v23  ;;  %v4838_v10 = vld [vmem:[%s5334_s23 + $0xec] sm:$0xf0] }
  0xce   : > { %v4657_v16 = vld [vmem:[%s5334_s23 + $0x6d0] sm:$0xf]  ;;  %v3890_v20 = vor.u32 %v4838_v10, %v3889_v9  ;;  %v4858_v9 = vld [vmem:[%s5334_s23 + $0x194] sm:$0xf] }
  0xcf   : > { %2071 = vmatpush.bf16.msrb.mxu3 %v4590_v14  ;;  %2046 = vmatpush.bf16.msrb.mxu1 %v4046_v29  ;;  %v4401_v14 = vld [vmem:[%s5334_s23 + $0x4d0] sm:$0xf]  ;;  %v3987_v10 = vld [vmem:[%s5334_s23 + $0x1b0] sm:$0xf0] }
  0xd0   : > { %2034 = vmatmul.bf16.vlgmr.msrb.gmra.mxu0 %v5451_v26  ;;  %v5030_v17 = vld [vmem:[%s5334_s23 + $0x6ec] sm:$0xf0]  ;;  %v4402_v22 = vor.u32 %v4966_v15, %v4401_v14  ;;  %v4986_v14 = vld [vmem:[%s5334_s23 + $0x594] sm:$0xf] }
  0xd1   : > { %2059 = vmatpush.bf16.msrb.mxu2 %v4302_v30  ;;  %2078 = vmatpush.bf16.msra.mxu0 %v4018_v34  ;;  %v3857_v23 = vld [vmem:[%s5334_s23 + $0x90] sm:$0xf]  ;;  %v4658_v28 = vor.u32 %v5030_v17, %v4657_v16  ;;  %v4499_v15 = vld [vmem:[%s5334_s23 + $0x5b0] sm:$0xf0] }
  0xd2   : > { %2047 = vmatmul.bf16.vlgmr.msrb.gmra.mxu1 %v5453_v27  ;;  %v4830_v24 = vld [vmem:[%s5334_s23 + $0xac] sm:$0xf0]  ;;  %v5050_v16 = vld [vmem:[%s5334_s23 + $0x794] sm:$0xf] }
  0xd3   : > { %2072 = vmatpush.bf16.msrb.mxu3 %v4558_v33  ;;  %2091 = vmatpush.bf16.msra.mxu1 %v4274_v35  ;;  %v4113_v25 = vld [vmem:[%s5334_s23 + $0x290] sm:$0xf]  ;;  %v3858_v34 = vor.u32 %v4830_v24, %v3857_v23  ;;  %v4755_v17 = vld [vmem:[%s5334_s23 + $0x7b0] sm:$0xf0] }
  0xd4   : > { %2060 = vmatmul.bf16.vlgmr.msrb.gmra.mxu2 %v5444_v18  ;;  %v4894_v29 = vld [vmem:[%s5334_s23 + $0x2ac] sm:$0xf0]  ;;  %v4850_v23 = vld [vmem:[%s5334_s23 + $0x154] sm:$0xf] }
  0xd5   : > { %2104 = vmatpush.bf16.msra.mxu2 %v4530_v36  ;;  %2079 = vmatpush.bf16.msra.mxu0 %v3986_v46  ;;  %v4369_v30 = vld [vmem:[%s5334_s23 + $0x490] sm:$0xf]  ;;  %v4114_v35 = vor.u32 %v4894_v29, %v4113_v25  ;;  %v3955_v24 = vld [vmem:[%s5334_s23 + $0x170] sm:$0xf0] }
  0xd6   : > { %2073 = vmatmul.bf16.vlgmr.msrb.gmra.mxu3 %v5446_v19  ;;  %v4958_v31 = vld [vmem:[%s5334_s23 + $0x4ac] sm:$0xf0]  ;;  %v4914_v25 = vld [vmem:[%s5334_s23 + $0x354] sm:$0xf] }
  0xd7   : > { %2117 = vmatpush.bf16.msra.mxu3 %v4786_v40  ;;  %2092 = vmatpush.bf16.msra.mxu1 %v4242_v47  ;;  %v4625_v32 = vld [vmem:[%s5334_s23 + $0x690] sm:$0xf]  ;;  %v4370_v36 = vor.u32 %v4958_v31, %v4369_v30  ;;  %v4211_v29 = vld [vmem:[%s5334_s23 + $0x370] sm:$0xf0] }
  0xd8   : > { %v5022_v33 = vld [vmem:[%s5334_s23 + $0x6ac] sm:$0xf0]  ;;  %v4978_v30 = vld [vmem:[%s5334_s23 + $0x554] sm:$0xf] }
  0xd9   : > { %2105 = vmatpush.bf16.msra.mxu2 %v4498_v48  ;;  %2080 = vmatpush.bf16.msra.mxu0 %v3954_v58  ;;  %v3825_v37 = vld [vmem:[%s5334_s23 + $0x50] sm:$0xf]  ;;  %v4626_v40 = vor.u32 %v5022_v33, %v4625_v32  ;;  %v4866_v58 = vld [vmem:[%s5334_s23 + $0x1d4] sm:$0xf] }
  0xda   : > { %v4822_v38 = vld [vmem:[%s5334_s23 + $0x6c] sm:$0xf0]  ;;  %v4467_v31 = vld [vmem:[%s5334_s23 + $0x570] sm:$0xf0] }
  0xdb   : > { %2118 = vmatpush.bf16.msra.mxu3 %v4754_v52  ;;  %2093 = vmatpush.bf16.msra.mxu1 %v4210_v59  ;;  %v4081_v39 = vld [vmem:[%s5334_s23 + $0x250] sm:$0xf]  ;;  %v3826_v46 = vor.u32 %v4822_v38, %v3825_v37  ;;  %v4019_v59 = vld [vmem:[%s5334_s23 + $0x1f0] sm:$0xf0] }
  0xdc   : > { %v4886_v41 = vld [vmem:[%s5334_s23 + $0x26c] sm:$0xf0]  ;;  %v5042_v32 = vld [vmem:[%s5334_s23 + $0x754] sm:$0xf] }
  0xdd   : > { %2106 = vmatpush.bf16.msra.mxu2 %v4466_v60  ;;  %2081 = vmatpush.bf16.msra.mxu0 %v3922_v6  ;;  %v4337_v42 = vld [vmem:[%s5334_s23 + $0x450] sm:$0xf]  ;;  %v4082_v49 = vor.u32 %v4886_v41, %v4081_v39  ;;  %v4930_v60 = vld [vmem:[%s5334_s23 + $0x3d4] sm:$0xf]  ;;  %v4022_v6 = vor.u32 %v4866_v58, %v4019_v59 }
  0xde   : > { %v4950_v43 = vld [vmem:[%s5334_s23 + $0x46c] sm:$0xf0]  ;;  %v4723_v33 = vld [vmem:[%s5334_s23 + $0x770] sm:$0xf0] }
  0xdf   : > { %2119 = vmatpush.bf16.msra.mxu3 %v4722_v0  ;;  %2094 = vmatpush.bf16.msra.mxu1 %v4178_v7  ;;  %v4593_v44 = vld [vmem:[%s5334_s23 + $0x650] sm:$0xf]  ;;  %v4338_v50 = vor.u32 %v4950_v43, %v4337_v42  ;;  %v4531_v0 = vld [vmem:[%s5334_s23 + $0x5f0] sm:$0xf0]  ;;  %v4278_v7 = vor.u32 %v4930_v60, %v4275_v62 }
  0xe0   : > { %v5014_v45 = vld [vmem:[%s5334_s23 + $0x66c] sm:$0xf0]  ;;  %v4842_v37 = vld [vmem:[%s5334_s23 + $0x114] sm:$0xf] }
  0xe1   : > { %2107 = vmatpush.bf16.msra.mxu2 %v4434_v8  ;;  %2082 = vmatpush.bf16.msra.mxu0 %v3890_v20  ;;  %v3793_v47 = vld [vmem:[%s5334_s23 + $0x10] sm:$0xf]  ;;  %v4594_v54 = vor.u32 %v5014_v45, %v4593_v44  ;;  %v4534_v8 = vor.u32 %v4994_v63, %v4531_v0  ;;  %v3990_v20 = vor.u32 %v4858_v9, %v3987_v10  ;;  %v3923_v38 = vld [vmem:[%s5334_s23 + $0x130] sm:$0xf0] }
  0xe2   : > { %v4814_v48 = vld [vmem:[%s5334_s23 + $0x2c] sm:$0xf0]  ;;  %v4906_v39 = vld [vmem:[%s5334_s23 + $0x314] sm:$0xf] }
  0xe3   : > { %2120 = vmatpush.bf16.msra.mxu3 %v4690_v12  ;;  %2095 = vmatpush.bf16.msra.mxu1 %v4146_v21  ;;  %v4049_v51 = vld [vmem:[%s5334_s23 + $0x210] sm:$0xf]  ;;  %v3794_v61 = vor.u32 %v4814_v48, %v3793_v47  ;;  %v4790_v12 = vor.u32 %v5058_v3, %v4787_v4  ;;  %v4246_v21 = vor.u32 %v4922_v11, %v4243_v13  ;;  %v4179_v41 = vld [vmem:[%s5334_s23 + $0x330] sm:$0xf0] }
  0xe4   : > { %v4878_v52 = vld [vmem:[%s5334_s23 + $0x22c] sm:$0xf0]  ;;  %v4970_v42 = vld [vmem:[%s5334_s23 + $0x514] sm:$0xf]  ;;  %v4182_v47 = vor.u32 %v4906_v39, %v4179_v41  ;;  %v4871_v41 = vld [vmem:[%s5334_s23 + $0x1f4] sm:$0xf0] }
  0xe5   : > { %2108 = vmatpush.bf16.msra.mxu2 %v4402_v22  ;;  %2083 = vmatpush.bf16.msra.mxu0 %v3858_v34  ;;  %v4305_v53 = vld [vmem:[%s5334_s23 + $0x410] sm:$0xf]  ;;  %v4050_v1 = vor.u32 %v4878_v52, %v4049_v51  ;;  %v4502_v22 = vor.u32 %v4986_v14, %v4499_v15  ;;  %v3958_v34 = vor.u32 %v4850_v23, %v3955_v24  ;;  %v4435_v43 = vld [vmem:[%s5334_s23 + $0x530] sm:$0xf0] }
  0xe6   : > { %v4942_v55 = vld [vmem:[%s5334_s23 + $0x42c] sm:$0xf0]  ;;  %v5034_v44 = vld [vmem:[%s5334_s23 + $0x714] sm:$0xf]  ;;  %v4438_v48 = vor.u32 %v4970_v42, %v4435_v43  ;;  %v4281_v42 = vld [vmem:[%s5334_s23 + $0x3d8] sm:$0xf] }
  0xe7   : > { %2121 = vmatpush.bf16.msra.mxu3 %v4658_v28  ;;  %2096 = vmatpush.bf16.msra.mxu1 %v4114_v35  ;;  %v4561_v56 = vld [vmem:[%s5334_s23 + $0x610] sm:$0xf]  ;;  %v4306_v2 = vor.u32 %v4942_v55, %v4305_v53  ;;  %v4758_v28 = vor.u32 %v5050_v16, %v4755_v17  ;;  %v4214_v35 = vor.u32 %v4914_v25, %v4211_v29  ;;  %v4691_v45 = vld [vmem:[%s5334_s23 + $0x730] sm:$0xf0] }
  0xe8   : > { %v5006_v57 = vld [vmem:[%s5334_s23 + $0x62c] sm:$0xf0]  ;;  %v4898_v51 = vld [vmem:[%s5334_s23 + $0x2d4] sm:$0xf]  ;;  %v4694_v52 = vor.u32 %v5034_v44, %v4691_v45  ;;  %v4935_v44 = vld [vmem:[%s5334_s23 + $0x3f4] sm:$0xf0] }
  0xe9   : > { %2109 = vmatpush.bf16.msra.mxu2 %v4370_v36  ;;  %2084 = vmatpush.bf16.msra.mxu0 %v3826_v46  ;;  %v4562_v5 = vor.u32 %v5006_v57, %v4561_v56  ;;  %v4470_v36 = vor.u32 %v4978_v30, %v4467_v31  ;;  %v3926_v46 = vor.u32 %v4842_v37, %v3923_v38  ;;  %v4147_v53 = vld [vmem:[%s5334_s23 + $0x2f0] sm:$0xf0]  ;;  %v4537_v45 = vld [vmem:[%s5334_s23 + $0x5d8] sm:$0xf] }
  0xea   : > { %v4403_v55 = vld [vmem:[%s5334_s23 + $0x4f0] sm:$0xf0]  ;;  %v4150_v59 = vor.u32 %v4898_v51, %v4147_v53  ;;  %v4793_v51 = vld [vmem:[%s5334_s23 + $0x7d8] sm:$0xf] }
  0xeb   : > { %2122 = vmatpush.bf16.msra.mxu3 %v4626_v40  ;;  %2097 = vmatpush.bf16.msra.mxu1 %v4082_v49  ;;  %v4726_v40 = vor.u32 %v5042_v32, %v4723_v33  ;;  %v4834_v49 = vld [vmem:[%s5334_s23 + $0xd4] sm:$0xf] }
  0xec   : > { %v5026_v56 = vld [vmem:[%s5334_s23 + $0x6d4] sm:$0xf] }
  0xed   : > { %2110 = vmatpush.bf16.msra.mxu2 %v4338_v50  ;;  %2085 = vmatpush.bf16.msra.mxu0 %v3794_v61  ;;  %v3891_v50 = vld [vmem:[%s5334_s23 + $0xf0] sm:$0xf0] }
  0xee   : > { %v4659_v57 = vld [vmem:[%s5334_s23 + $0x6f0] sm:$0xf0]  ;;  %v3894_v58 = vor.u32 %v4834_v49, %v3891_v50 }
  0xef   : > { %2123 = vmatpush.bf16.msra.mxu3 %v4594_v54  ;;  %2098 = vmatpush.bf16.msra.mxu1 %v4050_v1  ;;  %v4962_v54 = vld [vmem:[%s5334_s23 + $0x4d4] sm:$0xf]  ;;  %v4662_v0 = vor.u32 %v5026_v56, %v4659_v57  ;;  %v4282_v56 = vor.u32 %v4935_v44, %v4281_v42  ;;  %v4903_v42 = vld [vmem:[%s5334_s23 + $0x2f4] sm:$0xf0] }
  0xf0   : > { %2086 = vmatmul.bf16.vlgmr.msra.gmra.mxu0 %v5451_v26  ;;  %v4406_v60 = vor.u32 %v4962_v54, %v4403_v55  ;;  %v4826_v61 = vld [vmem:[%s5334_s23 + $0x94] sm:$0xf]  ;;  %v4967_v44 = vld [vmem:[%s5334_s23 + $0x4f4] sm:$0xf0] }
  0xf1   : > { %2111 = vmatpush.bf16.msra.mxu2 %v4306_v2  ;;  %2130 = vmatpush.bf16.msrb.mxu0 %v4022_v6  ;;  %v3859_v62 = vld [vmem:[%s5334_s23 + $0xb0] sm:$0xf0]  ;;  %v1892_v13 = vpop.f32.mrf.mxu1 }
  0xf2   : > { %2099 = vmatmul.bf16.vlgmr.msra.gmra.mxu1 %v5453_v27  ;;  %v4890_v63 = vld [vmem:[%s5334_s23 + $0x294] sm:$0xf]  ;;  %v3862_v6 = vor.u32 %v4826_v61, %v3859_v62  ;;  %v4927_v62 = vld [vmem:[%s5334_s23 + $0x3b4] sm:$0xf0] }
  0xf3   : > { %2124 = vmatpush.bf16.msra.mxu3 %v4562_v5  ;;  %2143 = vmatpush.bf16.msrb.mxu1 %v4278_v7  ;;  %v4115_v1 = vld [vmem:[%s5334_s23 + $0x2b0] sm:$0xf0]  ;;  %v1879_v7 = vpop.f32.mrf.mxu0 }
  0xf4   : > { %2112 = vmatmul.bf16.vlgmr.msra.gmra.mxu2 %v5444_v18  ;;  %v4954_v2 = vld [vmem:[%s5334_s23 + $0x494] sm:$0xf] }
  0xf5   : > { %2156 = vmatpush.bf16.msrb.mxu2 %v4534_v8  ;;  %2131 = vmatpush.bf16.msrb.mxu0 %v3990_v20  ;;  %v4371_v3 = vld [vmem:[%s5334_s23 + $0x4b0] sm:$0xf0]  ;;  %v4118_v8 = vor.u32 %v4890_v63, %v4115_v1  ;;  %v1893_v20 = vadd.f32 %v1892_v13, %v1879_v7  ;;  %v4505_v63 = vld [vmem:[%s5334_s23 + $0x598] sm:$0xf] }
  0xf6   : > { %2125 = vmatmul.bf16.vlgmr.msra.gmra.mxu3 %v5446_v19  ;;  %v5018_v4 = vld [vmem:[%s5334_s23 + $0x694] sm:$0xf]  ;;  %v4374_v9 = vor.u32 %v4954_v2, %v4371_v3  ;;  %v4761_v1 = vld [vmem:[%s5334_s23 + $0x798] sm:$0xf] }
  0xf7   : > { %2169 = vmatpush.bf16.msrb.mxu3 %v4790_v12  ;;  %2144 = vmatpush.bf16.msrb.mxu1 %v4246_v21  ;;  %v4627_v5 = vld [vmem:[%s5334_s23 + $0x6b0] sm:$0xf0]  ;;  %v1905_v33 = vpop.f32.mrf.mxu2  ;;  %v5055_v2 = vld [vmem:[%s5334_s23 + $0x7b4] sm:$0xf0] }
  0xf8   : > { %v4818_v10 = vld [vmem:[%s5334_s23 + $0x54] sm:$0xf]  ;;  %v4630_v14 = vor.u32 %v5018_v4, %v4627_v5  ;;  %v1906_v38 = vadd.f32 %v1905_v33, %v1893_v20  ;;  %v4473_v13 = vld [vmem:[%s5334_s23 + $0x558] sm:$0xf] }
  0xf9   : > { %2157 = vmatpush.bf16.msrb.mxu2 %v4502_v22  ;;  %2132 = vmatpush.bf16.msrb.mxu0 %v3958_v34  ;;  %v3827_v11 = vld [vmem:[%s5334_s23 + $0x70] sm:$0xf0]  ;;  %v1918_v39 = vpop.f32.mrf.mxu3  ;;  %v1894_v53 = vpop.f32.mrf.mxu1 }
  0xfa   : > { %v4882_v12 = vld [vmem:[%s5334_s23 + $0x254] sm:$0xf]  ;;  %v3830_v23 = vor.u32 %v4818_v10, %v3827_v11  ;;  %v4217_v10 = vld [vmem:[%s5334_s23 + $0x358] sm:$0xf]  ;;  %v4762_v11 = vor.u32 %v5055_v2, %v4761_v1 }
  0xfb   : > { %2170 = vmatpush.bf16.msrb.mxu3 %v4758_v28  ;;  %2145 = vmatpush.bf16.msrb.mxu1 %v4214_v35  ;;  %v4083_v15 = vld [vmem:[%s5334_s23 + $0x270] sm:$0xf0]  ;;  %v4831_v53 = vld [vmem:[%s5334_s23 + $0xb4] sm:$0xf0] }
  0xfc   : > { %v4946_v16 = vld [vmem:[%s5334_s23 + $0x454] sm:$0xf]  ;;  %v4086_v28 = vor.u32 %v4882_v12, %v4083_v15  ;;  %v4919_v12 = vld [vmem:[%s5334_s23 + $0x374] sm:$0xf0] }
  0xfd   : > { %2158 = vmatpush.bf16.msrb.mxu2 %v4470_v36  ;;  %2133 = vmatpush.bf16.msrb.mxu0 %v3926_v46  ;;  %v4339_v17 = vld [vmem:[%s5334_s23 + $0x470] sm:$0xf0]  ;;  %v4999_v46 = vld [vmem:[%s5334_s23 + $0x5f4] sm:$0xf0]  ;;  %v4218_v20 = vor.u32 %v4919_v12, %v4217_v10 }
  0xfe   : > { %v5010_v21 = vld [vmem:[%s5334_s23 + $0x654] sm:$0xf]  ;;  %v4342_v29 = vor.u32 %v4946_v16, %v4339_v17  ;;  %v4538_v57 = vor.u32 %v4999_v46, %v4537_v45  ;;  %v4729_v15 = vld [vmem:[%s5334_s23 + $0x758] sm:$0xf] }
  0xff   : > { %2171 = vmatpush.bf16.msrb.mxu3 %v4726_v40  ;;  %2146 = vmatpush.bf16.msrb.mxu1 %v4182_v47  ;;  %v4595_v22 = vld [vmem:[%s5334_s23 + $0x670] sm:$0xf0]  ;;  %v4025_v40 = vld [vmem:[%s5334_s23 + $0x1d8] sm:$0xf]  ;;  %v5766_v47 = vadd.f32 %v1918_v39, %v1906_v38  ;;  %v1907_v3 = vpop.f32.mrf.mxu2 }
 0x100   : > { %v4810_v24 = vld [vmem:[%s5334_s23 + $0x14] sm:$0xf]  ;;  %v4598_v34 = vor.u32 %v5010_v21, %v4595_v22  ;;  %v4026_v55 = vor.u32 %v4871_v41, %v4025_v40  ;;  %v5047_v16 = vld [vmem:[%s5334_s23 + $0x774] sm:$0xf0] }
 0x101   : > { %2159 = vmatpush.bf16.msrb.mxu2 %v4438_v48  ;;  %2134 = vmatpush.bf16.msrb.mxu0 %v3894_v58  ;;  %v3795_v25 = vld [vmem:[%s5334_s23 + $0x30] sm:$0xf0]  ;;  %v1881_v48 = vpop.f32.mrf.mxu0  ;;  %v3993_v58 = vld [vmem:[%s5334_s23 + $0x198] sm:$0xf]  ;;  %v1920_v5 = vpop.f32.mrf.mxu3 }
 0x102   : > { %v4874_v30 = vld [vmem:[%s5334_s23 + $0x214] sm:$0xf]  ;;  %v3798_v43 = vor.u32 %v4810_v24, %v3795_v25  ;;  %v3929_v22 = vld [vmem:[%s5334_s23 + $0x118] sm:$0xf]  ;;  %v4730_v25 = vor.u32 %v5047_v16, %v4729_v15 }
 0x103   : > { %2172 = vmatpush.bf16.msrb.mxu3 %v4694_v52  ;;  %2147 = vmatpush.bf16.msrb.mxu1 %v4150_v59  ;;  %v4051_v31 = vld [vmem:[%s5334_s23 + $0x230] sm:$0xf0]  ;;  %v5063_v52 = vld [vmem:[%s5334_s23 + $0x7f4] sm:$0xf0] }
 0x104   : > { %v4938_v32 = vld [vmem:[%s5334_s23 + $0x414] sm:$0xf]  ;;  %v4054_v49 = vor.u32 %v4874_v30, %v4051_v31  ;;  %v4863_v59 = vld [vmem:[%s5334_s23 + $0x1b4] sm:$0xf0]  ;;  %v4794_v61 = vor.u32 %v5063_v52, %v4793_v51 }
 0x105   : > { %2160 = vmatpush.bf16.msrb.mxu2 %v4406_v60  ;;  %2135 = vmatpush.bf16.msrb.mxu0 %v3862_v6  ;;  %v4307_v35 = vld [vmem:[%s5334_s23 + $0x430] sm:$0xf0]  ;;  %v4249_v60 = vld [vmem:[%s5334_s23 + $0x398] sm:$0xf]  ;;  %v3994_v4 = vor.u32 %v4863_v59, %v3993_v58 }
 0x106   : > { %v5002_v36 = vld [vmem:[%s5334_s23 + $0x614] sm:$0xf]  ;;  %v4310_v50 = vor.u32 %v4938_v32, %v4307_v35  ;;  %v4250_v6 = vor.u32 %v4927_v62, %v4249_v60  ;;  %v4185_v24 = vld [vmem:[%s5334_s23 + $0x318] sm:$0xf] }
 0x107   : > { %2173 = vmatpush.bf16.msrb.mxu3 %v4662_v0  ;;  %2148 = vmatpush.bf16.msrb.mxu1 %v4118_v8  ;;  %v4563_v37 = vld [vmem:[%s5334_s23 + $0x630] sm:$0xf0]  ;;  %v4991_v0 = vld [vmem:[%s5334_s23 + $0x5b4] sm:$0xf0] }
 0x108   : > { %v4566_v54 = vor.u32 %v5002_v36, %v4563_v37  ;;  %v4506_v7 = vor.u32 %v4991_v0, %v4505_v63  ;;  %v3961_v8 = vld [vmem:[%s5334_s23 + $0x158] sm:$0xf] }
 0x109   : > { %2161 = vmatpush.bf16.msrb.mxu2 %v4374_v9  ;;  %2136 = vmatpush.bf16.msrb.mxu0 %v3830_v23  ;;  %v4855_v9 = vld [vmem:[%s5334_s23 + $0x174] sm:$0xf0] }
 0x10a   : > { %v3962_v17 = vor.u32 %v4855_v9, %v3961_v8  ;;  %v4847_v23 = vld [vmem:[%s5334_s23 + $0x134] sm:$0xf0] }
 0x10b   : > { %2174 = vmatpush.bf16.msrb.mxu3 %v4630_v14  ;;  %2149 = vmatpush.bf16.msrb.mxu1 %v4086_v28  ;;  %v4983_v14 = vld [vmem:[%s5334_s23 + $0x574] sm:$0xf0]  ;;  %v3930_v33 = vor.u32 %v4847_v23, %v3929_v22 }
 0x10c   : > { %v4474_v21 = vor.u32 %v4983_v14, %v4473_v13  ;;  %v4911_v28 = vld [vmem:[%s5334_s23 + $0x334] sm:$0xf0] }
 0x10d   : > { %2162 = vmatpush.bf16.msrb.mxu2 %v4342_v29  ;;  %2137 = vmatpush.bf16.msrb.mxu0 %v3798_v43  ;;  %v4441_v29 = vld [vmem:[%s5334_s23 + $0x518] sm:$0xf]  ;;  %v4186_v35 = vor.u32 %v4911_v28, %v4185_v24 }
 0x10e   : > { %v4975_v30 = vld [vmem:[%s5334_s23 + $0x534] sm:$0xf0] }
 0x10f   : > { %2175 = vmatpush.bf16.msrb.mxu3 %v4598_v34  ;;  %2150 = vmatpush.bf16.msrb.mxu1 %v4054_v49  ;;  %v4697_v31 = vld [vmem:[%s5334_s23 + $0x718] sm:$0xf]  ;;  %v5798_v34 = vpop.f32.mrf.mxu0  ;;  %v4442_v36 = vor.u32 %v4975_v30, %v4441_v29  ;;  %v5800_v37 = vpop.f32.mrf.mxu1  ;;  %v4867_v30 = vld [vmem:[%s5334_s23 + $0x1dc] sm:$0xf] }
 0x110   : > { %2138 = vmatmul.bf16.vlgmr.msrb.gmra.mxu0 %v5451_v26  ;;  %v5039_v32 = vld [vmem:[%s5334_s23 + $0x734] sm:$0xf0] }
 0x111   : > { %2163 = vmatpush.bf16.msrb.mxu2 %v4310_v50  ;;  %2182 = vmatpush.bf16.msra.mxu0 %v4026_v55  ;;  %v3897_v38 = vld [vmem:[%s5334_s23 + $0xd8] sm:$0xf]  ;;  %v4698_v41 = vor.u32 %v5039_v32, %v4697_v31  ;;  %v4027_v31 = vld [vmem:[%s5334_s23 + $0x1f8] sm:$0xf0] }
 0x112   : > { %2151 = vmatmul.bf16.vlgmr.msrb.gmra.mxu1 %v5453_v27  ;;  %v4839_v39 = vld [vmem:[%s5334_s23 + $0xf4] sm:$0xf0]  ;;  %v4931_v32 = vld [vmem:[%s5334_s23 + $0x3dc] sm:$0xf] }
 0x113   : > { %2176 = vmatpush.bf16.msrb.mxu3 %v4566_v54  ;;  %2195 = vmatpush.bf16.msra.mxu1 %v4282_v56  ;;  %v4153_v40 = vld [vmem:[%s5334_s23 + $0x2d8] sm:$0xf]  ;;  %v3898_v48 = vor.u32 %v4839_v39, %v3897_v38  ;;  %v4539_v38 = vld [vmem:[%s5334_s23 + $0x5f8] sm:$0xf0] }
 0x114   : > { %2164 = vmatmul.bf16.vlgmr.msrb.gmra.mxu2 %v5444_v18  ;;  %v4409_v43 = vld [vmem:[%s5334_s23 + $0x4d8] sm:$0xf]  ;;  %v4154_v49 = vor.u32 %v4903_v42, %v4153_v40  ;;  %v4795_v42 = vld [vmem:[%s5334_s23 + $0x7f8] sm:$0xf0] }
 0x115   : > { %2208 = vmatpush.bf16.msra.mxu2 %v4538_v57  ;;  %2183 = vmatpush.bf16.msra.mxu0 %v3994_v4  ;;  %v4665_v45 = vld [vmem:[%s5334_s23 + $0x6d8] sm:$0xf]  ;;  %v4410_v50 = vor.u32 %v4967_v44, %v4409_v43  ;;  %v4030_v44 = vor.u32 %v4867_v30, %v4027_v31 }
 0x116   : > { %2177 = vmatmul.bf16.vlgmr.msrb.gmra.mxu3 %v5446_v19  ;;  %v5031_v46 = vld [vmem:[%s5334_s23 + $0x6f4] sm:$0xf0] }
 0x117   : > { %2221 = vmatpush.bf16.msra.mxu3 %v4794_v61  ;;  %2196 = vmatpush.bf16.msra.mxu1 %v4250_v6  ;;  %v5810_v51 = vpop.f32.mrf.mxu2  ;;  %v3865_v52 = vld [vmem:[%s5334_s23 + $0x98] sm:$0xf]  ;;  %v4666_v55 = vor.u32 %v5031_v46, %v4665_v45  ;;  %v1933_v63 = vpop.f32.mrf.mxu0 }
 0x118   : > { %v4121_v54 = vld [vmem:[%s5334_s23 + $0x298] sm:$0xf]  ;;  %v3866_v62 = vor.u32 %v4831_v53, %v3865_v52  ;;  %v1946_v5 = vpop.f32.mrf.mxu1  ;;  %v4251_v53 = vld [vmem:[%s5334_s23 + $0x3b8] sm:$0xf0] }
 0x119   : > { %2209 = vmatpush.bf16.msra.mxu2 %v4506_v7  ;;  %2184 = vmatpush.bf16.msra.mxu0 %v3962_v17  ;;  %v5815_v56 = vpop.f32.mrf.mxu3  ;;  %v4895_v57 = vld [vmem:[%s5334_s23 + $0x2b4] sm:$0xf0]  ;;  %v3963_v63 = vld [vmem:[%s5334_s23 + $0x178] sm:$0xf0] }
 0x11a   : > { %v4377_v58 = vld [vmem:[%s5334_s23 + $0x498] sm:$0xf]  ;;  %v4122_v0 = vor.u32 %v4895_v57, %v4121_v54  ;;  %v4987_v54 = vld [vmem:[%s5334_s23 + $0x59c] sm:$0xf] }
 0x11b   : > { %2222 = vmatpush.bf16.msra.mxu3 %v4762_v11  ;;  %2197 = vmatpush.bf16.msra.mxu1 %v4218_v20  ;;  %v4959_v59 = vld [vmem:[%s5334_s23 + $0x4b4] sm:$0xf0]  ;;  %v5051_v57 = vld [vmem:[%s5334_s23 + $0x79c] sm:$0xf] }
 0x11c   : > { %v4633_v60 = vld [vmem:[%s5334_s23 + $0x698] sm:$0xf]  ;;  %v4378_v1 = vor.u32 %v4959_v59, %v4377_v58  ;;  %v4763_v58 = vld [vmem:[%s5334_s23 + $0x7b8] sm:$0xf0] }
 0x11d   : > { %2210 = vmatpush.bf16.msra.mxu2 %v4474_v21  ;;  %2185 = vmatpush.bf16.msra.mxu0 %v3930_v33  ;;  %v5023_v61 = vld [vmem:[%s5334_s23 + $0x6b4] sm:$0xf0]  ;;  %v5043_v5 = vld [vmem:[%s5334_s23 + $0x75c] sm:$0xf] }
 0x11e   : > { %v3833_v2 = vld [vmem:[%s5334_s23 + $0x58] sm:$0xf]  ;;  %v4634_v6 = vor.u32 %v5023_v61, %v4633_v60 }
 0x11f   : > { %2223 = vmatpush.bf16.msra.mxu3 %v4730_v25  ;;  %2198 = vmatpush.bf16.msra.mxu1 %v4186_v35  ;;  %v4823_v3 = vld [vmem:[%s5334_s23 + $0x74] sm:$0xf0]  ;;  %v1959_v22 = vpop.f32.mrf.mxu2  ;;  %v4283_v35 = vld [vmem:[%s5334_s23 + $0x3f8] sm:$0xf0] }
 0x120   : > { %v4089_v4 = vld [vmem:[%s5334_s23 + $0x258] sm:$0xf]  ;;  %v3834_v12 = vor.u32 %v4823_v3, %v3833_v2  ;;  %v4286_v45 = vor.u32 %v4931_v32, %v4283_v35  ;;  %v4219_v2 = vld [vmem:[%s5334_s23 + $0x378] sm:$0xf0] }
 0x121   : > { %2211 = vmatpush.bf16.msra.mxu2 %v4442_v36  ;;  %2186 = vmatpush.bf16.msra.mxu0 %v3898_v48  ;;  %v4887_v7 = vld [vmem:[%s5334_s23 + $0x274] sm:$0xf0]  ;;  %v1972_v29 = vpop.f32.mrf.mxu3  ;;  %v4995_v36 = vld [vmem:[%s5334_s23 + $0x5dc] sm:$0xf] }
 0x122   : > { %v4345_v8 = vld [vmem:[%s5334_s23 + $0x458] sm:$0xf]  ;;  %v4090_v15 = vor.u32 %v4887_v7, %v4089_v4  ;;  %v4542_v46 = vor.u32 %v4995_v36, %v4539_v38  ;;  %v4859_v48 = vld [vmem:[%s5334_s23 + $0x19c] sm:$0xf] }
 0x123   : > { %2224 = vmatpush.bf16.msra.mxu3 %v4698_v41  ;;  %2199 = vmatpush.bf16.msra.mxu1 %v4154_v49  ;;  %v4951_v9 = vld [vmem:[%s5334_s23 + $0x474] sm:$0xf0]  ;;  %v5059_v41 = vld [vmem:[%s5334_s23 + $0x7dc] sm:$0xf] }
 0x124   : > { %v4601_v10 = vld [vmem:[%s5334_s23 + $0x658] sm:$0xf]  ;;  %v4346_v16 = vor.u32 %v4951_v9, %v4345_v8  ;;  %v3995_v49 = vld [vmem:[%s5334_s23 + $0x1b8] sm:$0xf0]  ;;  %v4798_v52 = vor.u32 %v5059_v41, %v4795_v42 }
 0x125   : > { %2212 = vmatpush.bf16.msra.mxu2 %v4410_v50  ;;  %v5015_v11 = vld [vmem:[%s5334_s23 + $0x674] sm:$0xf0]  ;;  %2187 = vmatpush.bf16.msra.mxu0 %v3866_v62  ;;  %v4923_v50 = vld [vmem:[%s5334_s23 + $0x39c] sm:$0xf]  ;;  %v3998_v59 = vor.u32 %v4859_v48, %v3995_v49 }
 0x126   : > { %v3801_v13 = vld [vmem:[%s5334_s23 + $0x18] sm:$0xf]  ;;  %v4602_v23 = vor.u32 %v5015_v11, %v4601_v10  ;;  %v4254_v60 = vor.u32 %v4923_v50, %v4251_v53  ;;  %v4851_v62 = vld [vmem:[%s5334_s23 + $0x15c] sm:$0xf] }
 0x127   : > { %2225 = vmatpush.bf16.msra.mxu3 %v4666_v55  ;;  %v4815_v14 = vld [vmem:[%s5334_s23 + $0x34] sm:$0xf0]  ;;  %2200 = vmatpush.bf16.msra.mxu1 %v4122_v0  ;;  %v4507_v55 = vld [vmem:[%s5334_s23 + $0x5b8] sm:$0xf0]  ;;  %v3966_v7 = vor.u32 %v4851_v62, %v3963_v63 }
 0x128   : > { %v4057_v17 = vld [vmem:[%s5334_s23 + $0x218] sm:$0xf]  ;;  %v3802_v33 = vor.u32 %v4815_v14, %v3801_v13  ;;  %v4510_v61 = vor.u32 %v4987_v54, %v4507_v55  ;;  %v4915_v0 = vld [vmem:[%s5334_s23 + $0x35c] sm:$0xf] }
 0x129   : > { %2213 = vmatpush.bf16.msra.mxu2 %v4378_v1  ;;  %v4879_v20 = vld [vmem:[%s5334_s23 + $0x234] sm:$0xf0]  ;;  %2188 = vmatpush.bf16.msra.mxu0 %v3834_v12  ;;  %v4766_v1 = vor.u32 %v5051_v57, %v4763_v58  ;;  %v4979_v3 = vld [vmem:[%s5334_s23 + $0x55c] sm:$0xf]  ;;  %v4222_v8 = vor.u32 %v4915_v0, %v4219_v2 }
 0x12a   : > { %v4313_v21 = vld [vmem:[%s5334_s23 + $0x418] sm:$0xf]  ;;  %v4058_v39 = vor.u32 %v4879_v20, %v4057_v17  ;;  %v4475_v4 = vld [vmem:[%s5334_s23 + $0x578] sm:$0xf0] }
 0x12b   : > { %2226 = vmatpush.bf16.msra.mxu3 %v4634_v6  ;;  %v4943_v24 = vld [vmem:[%s5334_s23 + $0x434] sm:$0xf0]  ;;  %2201 = vmatpush.bf16.msra.mxu1 %v4090_v15  ;;  %v4731_v6 = vld [vmem:[%s5334_s23 + $0x778] sm:$0xf0]  ;;  %v4478_v9 = vor.u32 %v4979_v3, %v4475_v4 }
 0x12c   : > { %v4569_v25 = vld [vmem:[%s5334_s23 + $0x618] sm:$0xf]  ;;  %v4314_v40 = vor.u32 %v4943_v24, %v4313_v21  ;;  %v4843_v10 = vld [vmem:[%s5334_s23 + $0x11c] sm:$0xf]  ;;  %v4734_v13 = vor.u32 %v5043_v5, %v4731_v6 }
 0x12d   : > { %v5007_v28 = vld [vmem:[%s5334_s23 + $0x634] sm:$0xf0]  ;;  %2214 = vmatpush.bf16.msra.mxu2 %v4346_v16  ;;  %2189 = vmatpush.bf16.msra.mxu0 %v3802_v33  ;;  %v3931_v11 = vld [vmem:[%s5334_s23 + $0x138] sm:$0xf0]  ;;  %v5874_v22 = vpop.f32.mrf.mxu0 }
 0x12e   : > { %v4570_v43 = vor.u32 %v5007_v28, %v4569_v25  ;;  %v4907_v12 = vld [vmem:[%s5334_s23 + $0x31c] sm:$0xf]  ;;  %v3934_v21 = vor.u32 %v4843_v10, %v3931_v11 }
 0x12f   : > { %2227 = vmatpush.bf16.msra.mxu3 %v4602_v23  ;;  %2202 = vmatpush.bf16.msra.mxu1 %v4058_v39  ;;  %v4187_v14 = vld [vmem:[%s5334_s23 + $0x338] sm:$0xf0]  ;;  %v5879_v30 = vpop.f32.mrf.mxu1 }
 0x130   : > { %2190 = vmatmul.bf16.vlgmr.msra.gmra.mxu0 %v5451_v26  ;;  %v4971_v15 = vld [vmem:[%s5334_s23 + $0x51c] sm:$0xf]  ;;  %v4190_v23 = vor.u32 %v4907_v12, %v4187_v14 }
 0x131   : > { %2215 = vmatpush.bf16.msra.mxu2 %v4314_v40  ;;  %2234 = vmatpush.bf16.msrb.mxu0 %v4030_v44  ;;  %v4443_v16 = vld [vmem:[%s5334_s23 + $0x538] sm:$0xf0] }
 0x132   : > { %2203 = vmatmul.bf16.vlgmr.msra.gmra.mxu1 %v5453_v27  ;;  %v5035_v17 = vld [vmem:[%s5334_s23 + $0x71c] sm:$0xf]  ;;  %v4446_v24 = vor.u32 %v4971_v15, %v4443_v16 }
 0x133   : > { %2228 = vmatpush.bf16.msra.mxu3 %v4570_v43  ;;  %2247 = vmatpush.bf16.msrb.mxu1 %v4286_v45  ;;  %v4699_v20 = vld [vmem:[%s5334_s23 + $0x738] sm:$0xf0] }
 0x134   : > { %2216 = vmatmul.bf16.vlgmr.msra.gmra.mxu2 %v5444_v18  ;;  %v4835_v25 = vld [vmem:[%s5334_s23 + $0xdc] sm:$0xf]  ;;  %v4702_v31 = vor.u32 %v5035_v17, %v4699_v20 }
 0x135   : > { %2260 = vmatpush.bf16.msrb.mxu2 %v4542_v46  ;;  %2235 = vmatpush.bf16.msrb.mxu0 %v3998_v59  ;;  %v3899_v28 = vld [vmem:[%s5334_s23 + $0xf8] sm:$0xf0]  ;;  %v1985_v57 = vpop.f32.mrf.mxu0 }
 0x136   : > { %2229 = vmatmul.bf16.vlgmr.msra.gmra.mxu3 %v5446_v19  ;;  %v4899_v29 = vld [vmem:[%s5334_s23 + $0x2dc] sm:$0xf]  ;;  %v3902_v39 = vor.u32 %v4835_v25, %v3899_v28 }
 0x137   : > { %2273 = vmatpush.bf16.msrb.mxu3 %v4798_v52  ;;  %2248 = vmatpush.bf16.msrb.mxu1 %v4254_v60  ;;  %v4155_v32 = vld [vmem:[%s5334_s23 + $0x2f8] sm:$0xf0]  ;;  %v5889_v45 = vpop.f32.mrf.mxu2  ;;  %v1998_v63 = vpop.f32.mrf.mxu1 }
 0x138   : > { %v4963_v33 = vld [vmem:[%s5334_s23 + $0x4dc] sm:$0xf]  ;;  %v4158_v40 = vor.u32 %v4899_v29, %v4155_v32  ;;  %v1945_v29 = vadd.f32 %v5800_v37, %v5798_v34 }
 0x139   : > { %2261 = vmatpush.bf16.msrb.mxu2 %v4510_v61  ;;  %2236 = vmatpush.bf16.msrb.mxu0 %v3966_v7  ;;  %v4411_v35 = vld [vmem:[%s5334_s23 + $0x4f8] sm:$0xf0]  ;;  %v5894_v52 = vpop.f32.mrf.mxu3 }
 0x13a   : > { %v5027_v36 = vld [vmem:[%s5334_s23 + $0x6dc] sm:$0xf]  ;;  %v4414_v41 = vor.u32 %v4963_v33, %v4411_v35  ;;  %v1958_v32 = vadd.f32 %v5810_v51, %v1945_v29 }
 0x13b   : > { %2274 = vmatpush.bf16.msrb.mxu3 %v4766_v1  ;;  %2249 = vmatpush.bf16.msrb.mxu1 %v4222_v8  ;;  %v4667_v38 = vld [vmem:[%s5334_s23 + $0x6f8] sm:$0xf0] }
 0x13c   : > { %v4827_v42 = vld [vmem:[%s5334_s23 + $0x9c] sm:$0xf]  ;;  %v4670_v46 = vor.u32 %v5027_v36, %v4667_v38 }
 0x13d   : > { %2262 = vmatpush.bf16.msrb.mxu2 %v4478_v9  ;;  %2237 = vmatpush.bf16.msrb.mxu0 %v3934_v21  ;;  %v3867_v43 = vld [vmem:[%s5334_s23 + $0xb8] sm:$0xf0] }
 0x13e   : > { %v4891_v44 = vld [vmem:[%s5334_s23 + $0x29c] sm:$0xf]  ;;  %v3870_v55 = vor.u32 %v4827_v42, %v3867_v43 }
 0x13f   : > { %2275 = vmatpush.bf16.msrb.mxu3 %v4734_v13  ;;  %2250 = vmatpush.bf16.msrb.mxu1 %v4190_v23  ;;  %v4123_v48 = vld [vmem:[%s5334_s23 + $0x2b8] sm:$0xf0]  ;;  %v2011_v12 = vpop.f32.mrf.mxu2 }
 0x140   : > { %v4955_v49 = vld [vmem:[%s5334_s23 + $0x49c] sm:$0xf]  ;;  %v4126_v58 = vor.u32 %v4891_v44, %v4123_v48 }
 0x141   : > { %2263 = vmatpush.bf16.msrb.mxu2 %v4446_v24  ;;  %v4379_v50 = vld [vmem:[%s5334_s23 + $0x4b8] sm:$0xf0]  ;;  %2238 = vmatpush.bf16.msrb.mxu0 %v3902_v39  ;;  %v2024_v17 = vpop.f32.mrf.mxu3 }
 0x142   : > { %v5019_v53 = vld [vmem:[%s5334_s23 + $0x69c] sm:$0xf]  ;;  %v4382_v59 = vor.u32 %v4955_v49, %v4379_v50 }
 0x143   : > { %2276 = vmatpush.bf16.msrb.mxu3 %v4702_v31  ;;  %v4635_v54 = vld [vmem:[%s5334_s23 + $0x6b8] sm:$0xf0]  ;;  %2251 = vmatpush.bf16.msrb.mxu1 %v4158_v40  ;;  %v1997_v31 = vadd.f32 %v5879_v30, %v5874_v22  ;;  %v317_v30 = vld [vmem:[#allocation2] sm:$0xff] }
 0x144   : > { %v4819_v60 = vld [vmem:[%s5334_s23 + $0x5c] sm:$0xf]  ;;  %v4638_v0 = vor.u32 %v5019_v53, %v4635_v54 }
 0x145   : > { %2264 = vmatpush.bf16.msrb.mxu2 %v4414_v41  ;;  %v3835_v61 = vld [vmem:[%s5334_s23 + $0x78] sm:$0xf0]  ;;  %2239 = vmatpush.bf16.msrb.mxu0 %v3870_v55  ;;  %v2010_v36 = vadd.f32 %v5889_v45, %v1997_v31 }
 0x146   : > { %v4883_v62 = vld [vmem:[%s5334_s23 + $0x25c] sm:$0xf]  ;;  %v3838_v6 = vor.u32 %v4819_v60, %v3835_v61 }
 0x147   : > { %2277 = vmatpush.bf16.msrb.mxu3 %v4670_v46  ;;  %v4091_v1 = vld [vmem:[%s5334_s23 + $0x278] sm:$0xf0]  ;;  %2252 = vmatpush.bf16.msrb.mxu1 %v4126_v58 }
 0x148   : > { %v4947_v2 = vld [vmem:[%s5334_s23 + $0x45c] sm:$0xf]  ;;  %v4094_v7 = vor.u32 %v4883_v62, %v4091_v1 }
 0x149   : > { %v4347_v3 = vld [vmem:[%s5334_s23 + $0x478] sm:$0xf0]  ;;  %2265 = vmatpush.bf16.msrb.mxu2 %v4382_v59  ;;  %2240 = vmatpush.bf16.msrb.mxu0 %v3838_v6 }
 0x14a   : > { %v5011_v4 = vld [vmem:[%s5334_s23 + $0x65c] sm:$0xf]  ;;  %v4350_v8 = vor.u32 %v4947_v2, %v4347_v3 }
 0x14b   : > { %v4603_v5 = vld [vmem:[%s5334_s23 + $0x678] sm:$0xf0]  ;;  %2278 = vmatpush.bf16.msrb.mxu3 %v4638_v0  ;;  %2253 = vmatpush.bf16.msrb.mxu1 %v4094_v7 }
 0x14c   : > { %v4811_v9 = vld [vmem:[%s5334_s23 + $0x1c] sm:$0xf]  ;;  %v4606_v13 = vor.u32 %v5011_v4, %v4603_v5 }
 0x14d   : > { %v3803_v10 = vld [vmem:[%s5334_s23 + $0x38] sm:$0xf0]  ;;  %2266 = vmatpush.bf16.msrb.mxu2 %v4350_v8  ;;  %v2035_v33 = vpop.f32.mrf.mxu0 }
 0x14e   : > { %v4875_v11 = vld [vmem:[%s5334_s23 + $0x21c] sm:$0xf]  ;;  %v3806_v23 = vor.u32 %v4811_v9, %v3803_v10 }
 0x14f   : > { %v4059_v14 = vld [vmem:[%s5334_s23 + $0x238] sm:$0xf0]  ;;  %2279 = vmatpush.bf16.msrb.mxu3 %v4606_v13  ;;  %v2048_v35 = vpop.f32.mrf.mxu1 }
 0x150   : > { %v4939_v15 = vld [vmem:[%s5334_s23 + $0x41c] sm:$0xf]  ;;  %v4062_v24 = vor.u32 %v4875_v11, %v4059_v14  ;;  %2241 = vmatpush.bf16.msrb.mxu0 %v3806_v23  ;;  %v2049_v38 = vadd.f32 %v2048_v35, %v2035_v33 }
 0x151   : > { %v4315_v16 = vld [vmem:[%s5334_s23 + $0x438] sm:$0xf0] }
 0x152   : > { %v5003_v20 = vld [vmem:[%s5334_s23 + $0x61c] sm:$0xf]  ;;  %v4318_v25 = vor.u32 %v4939_v15, %v4315_v16  ;;  %2254 = vmatpush.bf16.msrb.mxu1 %v4062_v24 }
 0x153   : > { %v4571_v21 = vld [vmem:[%s5334_s23 + $0x638] sm:$0xf0]  ;;  %2242 = vmatmul.bf16.vlgmr.msrb.gmra.mxu0 %v5451_v26  ;;  %v1971_v26 = vadd.f32 %v5815_v56, %v1958_v32 }
 0x154   : > { %v4574_v28 = vor.u32 %v5003_v20, %v4571_v21  ;;  %2267 = vmatpush.bf16.msrb.mxu2 %v4318_v25 }
 0x155   : > { %2255 = vmatmul.bf16.vlgmr.msrb.gmra.mxu1 %v5453_v27  ;;  %v2294_v40 = vrot.slane %v1971_v26, 6  ;;  %v2037_v34 = vpop.f32.mrf.mxu0 }
 0x156   : > { %2280 = vmatpush.bf16.msrb.mxu3 %v4574_v28 }
 0x157   : > { %2268 = vmatmul.bf16.vlgmr.msrb.gmra.mxu2 %v5444_v18  ;;  %v2061_v27 = vpop.f32.mrf.mxu2  ;;  %v2023_v18 = vadd.f32 %v5894_v52, %v2010_v36  ;;  %v2050_v37 = vpop.f32.mrf.mxu1  ;;  %v2301_v42 = vsel %vm2300_vm0, %v5766_v47, %v2294_v40 }
 0x158   : > { %v2062_v39 = vadd.f32 %v2061_v27, %v2049_v38  ;;  %v318_v38 = vld [vmem:[#allocation2 + $0x8] sm:$0xff] }
 0x159   : > { %2281 = vmatmul.bf16.vlgmr.msrb.gmra.mxu3 %v5446_v19  ;;  %v2074_v19 = vpop.f32.mrf.mxu3  ;;  %v2295_v22 = vrot.slane %v2023_v18, 4 }
 0x15a   : > { %v2075_v41 = vadd.f32 %v2074_v19, %v2062_v39 }
 0x15c   : > { %v2296_v51 = vrot.slane %v2075_v41, 2 }
 0x15e   : > { %v2303_v56 = vsel %vm2302_vm1, %v2295_v22, %v2296_v51 }
 0x15f   : > { %v2305_v43 = vsel %vm2304_vm2, %v2301_v42, %v2303_v56  ;;  %v2063_v44 = vpop.f32.mrf.mxu2 }
 0x160   : > { %v2311_v45 = vadd.f32 %v2305_v43, %v317_v30 }
 0x161   : > { %v2076_v46 = vpop.f32.mrf.mxu3 }
 0x162   : > { %2313 = vst [vmem:[#allocation2] sm:$0xff] %v2311_v45 }
 0x16d   : > { %v2087_v48 = vpop.f32.mrf.mxu0 }
 0x16f   : > { %v2100_v49 = vpop.f32.mrf.mxu1 }
 0x170   : > { %v2101_v50 = vadd.f32 %v2100_v49, %v2087_v48 }
 0x175   : > { %v2089_v57 = vpop.f32.mrf.mxu0 }
 0x177   : > { %v2113_v52 = vpop.f32.mrf.mxu2  ;;  %v2102_v58 = vpop.f32.mrf.mxu1 }
 0x178   : > { %v2114_v53 = vadd.f32 %v2113_v52, %v2101_v50 }
 0x179   : > { %v2126_v54 = vpop.f32.mrf.mxu3 }
 0x17a   : > { %v2127_v55 = vadd.f32 %v2126_v54, %v2114_v53 }
 0x17f   : > { %v2115_v59 = vpop.f32.mrf.mxu2 }
 0x181   : > { %v2128_v60 = vpop.f32.mrf.mxu3 }
 0x18d   : > { %v2139_v47 = vpop.f32.mrf.mxu0 }
 0x18f   : > { %v2152_v61 = vpop.f32.mrf.mxu1 }
 0x190   : > { %v2153_v12 = vadd.f32 %v2152_v61, %v2139_v47 }
 0x195   : > { %v2141_v0 = vpop.f32.mrf.mxu0 }
 0x197   : > { %v2165_v62 = vpop.f32.mrf.mxu2  ;;  %v2154_v1 = vpop.f32.mrf.mxu1 }
 0x198   : > { %v2166_v16 = vadd.f32 %v2165_v62, %v2153_v12 }
 0x199   : > { %v2178_v63 = vpop.f32.mrf.mxu3 }
 0x19a   : > { %v2179_v21 = vadd.f32 %v2178_v63, %v2166_v16 }
 0x19c   : > { %v2297_v32 = vrot.slane %v2179_v21, 6 }
 0x19e   : > { %v2306_v26 = vsel %vm2300_vm0, %v2127_v55, %v2297_v32 }
 0x19f   : > { %v2167_v2 = vpop.f32.mrf.mxu2 }
 0x1a1   : > { %v2180_v3 = vpop.f32.mrf.mxu3 }
 0x1ad   : > { %v2191_v4 = vpop.f32.mrf.mxu0 }
 0x1af   : > { %v2204_v5 = vpop.f32.mrf.mxu1 }
 0x1b0   : > { %v2205_v13 = vadd.f32 %v2204_v5, %v2191_v4 }
 0x1b5   : > { %v2193_v8 = vpop.f32.mrf.mxu0 }
 0x1b7   : > { %v2217_v6 = vpop.f32.mrf.mxu2  ;;  %v2206_v9 = vpop.f32.mrf.mxu1 }
 0x1b8   : > { %v2218_v17 = vadd.f32 %v2217_v6, %v2205_v13 }
 0x1b9   : > { %v2230_v7 = vpop.f32.mrf.mxu3 }
 0x1ba   : > { %v2231_v24 = vadd.f32 %v2230_v7, %v2218_v17 }
 0x1bc   : > { %v2298_v35 = vrot.slane %v2231_v24, 4 }
 0x1bf   : > { %v2219_v10 = vpop.f32.mrf.mxu2 }
 0x1c1   : > { %v2232_v11 = vpop.f32.mrf.mxu3 }
 0x1d0   : > { %v2243_v14 = vpop.f32.mrf.mxu0 }
 0x1d2   : > { %v2256_v15 = vpop.f32.mrf.mxu1 }
 0x1d3   : > { %v2257_v20 = vadd.f32 %v2256_v15, %v2243_v14 }
 0x1d8   : > { %v2245_v29 = vpop.f32.mrf.mxu0 }
 0x1da   : > { %v2269_v23 = vpop.f32.mrf.mxu2  ;;  %v2258_v31 = vpop.f32.mrf.mxu1 }
 0x1db   : > { %v2270_v25 = vadd.f32 %v2269_v23, %v2257_v20 }
 0x1dc   : > { %v2282_v28 = vpop.f32.mrf.mxu3 }
 0x1dd   : > { %v2283_v33 = vadd.f32 %v2282_v28, %v2270_v25 }
 0x1df   : > { %v2299_v36 = vrot.slane %v2283_v33, 2 }
 0x1e1   : > { %v2307_v27 = vsel %vm2302_vm1, %v2298_v35, %v2299_v36  ;;  %2318 = sbr.rel (%p4799_p7) target bundleno = 1147 (0x47b), region = 60 }
 0x1e2   : > { %v2308_v18 = vsel %vm2304_vm2, %v2306_v26, %v2307_v27  ;;  %v2271_v39 = vpop.f32.mrf.mxu2 }
 0x1e3   : > { %v2312_v19 = vadd.f32 %v2308_v18, %v318_v38 }
 0x1e4   : > { %v2284_v40 = vpop.f32.mrf.mxu3 }
 0x1e5   : > { %2314 = vst [vmem:[#allocation2 + $0x8] sm:$0xff] %v2312_v19 }
 0x1e6   : > { %v2409_v41 = vld [vmem:[%s7771_s3 + $0x1e0] sm:$0xff]  ;;  %vm3603_vm3 = vcmask 949248   ;;  %vm3690_vm4 = vcmask 9216  }
 0x1e7   : > { %v2473_v34 = vld [vmem:[%s7771_s3 + $0x3e0] sm:$0xff]  ;;  %2892 = vmatpush.msra.mxu0 %v2409_v41 }
 0x1e8   : > { %v2537_v37 = vld [vmem:[%s7771_s3 + $0x5e0] sm:$0xff]  ;;  %2912 = vmatpush.msra.mxu1 %v2473_v34 }
 0x1e9   : > { %v2405_v22 = vld [vmem:[%s7771_s3 + $0x1c0] sm:$0xff]  ;;  %2932 = vmatpush.msra.mxu2 %v2537_v37 }
 0x1ea   : > { %v2469_v51 = vld [vmem:[%s7771_s3 + $0x3c0] sm:$0xff]  ;;  %2893 = vmatpush.msra.mxu0 %v2405_v22 }
 0x1eb   : > { %v2533_v30 = vld [vmem:[%s7771_s3 + $0x5c0] sm:$0xff]  ;;  %2913 = vmatpush.msra.mxu1 %v2469_v51 }
 0x1ec   : > { %v2601_v42 = vld [vmem:[%s7771_s3 + $0x7e0] sm:$0xff]  ;;  %2933 = vmatpush.msra.mxu2 %v2533_v30 }
 0x1ed   : > { %v2401_v56 = vld [vmem:[%s7771_s3 + $0x1a0] sm:$0xff]  ;;  %2952 = vmatpush.msra.mxu3 %v2601_v42 }
 0x1ee   : > { %v2465_v43 = vld [vmem:[%s7771_s3 + $0x3a0] sm:$0xff]  ;;  %2894 = vmatpush.msra.mxu0 %v2401_v56 }
 0x1ef   : > { %v2529_v44 = vld [vmem:[%s7771_s3 + $0x5a0] sm:$0xff]  ;;  %2914 = vmatpush.msra.mxu1 %v2465_v43 }
 0x1f0   : > { %v2597_v45 = vld [vmem:[%s7771_s3 + $0x7c0] sm:$0xff]  ;;  %2934 = vmatpush.msra.mxu2 %v2529_v44 }
 0x1f1   : > { %v2397_v46 = vld [vmem:[%s7771_s3 + $0x180] sm:$0xff]  ;;  %2953 = vmatpush.msra.mxu3 %v2597_v45 }
 0x1f2   : > { %v2461_v48 = vld [vmem:[%s7771_s3 + $0x380] sm:$0xff]  ;;  %2895 = vmatpush.msra.mxu0 %v2397_v46 }
 0x1f3   : > { %v2525_v49 = vld [vmem:[%s7771_s3 + $0x580] sm:$0xff]  ;;  %2915 = vmatpush.msra.mxu1 %v2461_v48 }
 0x1f4   : > { %v2593_v50 = vld [vmem:[%s7771_s3 + $0x7a0] sm:$0xff]  ;;  %2935 = vmatpush.msra.mxu2 %v2525_v49 }
 0x1f5   : > { %v2393_v52 = vld [vmem:[%s7771_s3 + $0x160] sm:$0xff]  ;;  %2954 = vmatpush.msra.mxu3 %v2593_v50 }
 0x1f6   : > { %v2457_v53 = vld [vmem:[%s7771_s3 + $0x360] sm:$0xff]  ;;  %2896 = vmatpush.msra.mxu0 %v2393_v52 }
 0x1f7   : > { %v2521_v54 = vld [vmem:[%s7771_s3 + $0x560] sm:$0xff]  ;;  %2916 = vmatpush.msra.mxu1 %v2457_v53 }
 0x1f8   : > { %v2589_v55 = vld [vmem:[%s7771_s3 + $0x780] sm:$0xff]  ;;  %2936 = vmatpush.msra.mxu2 %v2521_v54 }
 0x1f9   : > { %v2389_v57 = vld [vmem:[%s7771_s3 + $0x140] sm:$0xff]  ;;  %2955 = vmatpush.msra.mxu3 %v2589_v55 }
 0x1fa   : > { %v2453_v58 = vld [vmem:[%s7771_s3 + $0x340] sm:$0xff]  ;;  %2897 = vmatpush.msra.mxu0 %v2389_v57 }
 0x1fb   : > { %v2517_v59 = vld [vmem:[%s7771_s3 + $0x540] sm:$0xff]  ;;  %2917 = vmatpush.msra.mxu1 %v2453_v58 }
 0x1fc   : > { %v2585_v60 = vld [vmem:[%s7771_s3 + $0x760] sm:$0xff]  ;;  %2937 = vmatpush.msra.mxu2 %v2517_v59 }
 0x1fd   : > { %v2385_v47 = vld [vmem:[%s7771_s3 + $0x120] sm:$0xff]  ;;  %2956 = vmatpush.msra.mxu3 %v2585_v60 }
 0x1fe   : > { %v2449_v61 = vld [vmem:[%s7771_s3 + $0x320] sm:$0xff]  ;;  %2898 = vmatpush.msra.mxu0 %v2385_v47 }
 0x1ff   : > { %v2513_v62 = vld [vmem:[%s7771_s3 + $0x520] sm:$0xff]  ;;  %2918 = vmatpush.msra.mxu1 %v2449_v61 }
 0x200   : > { %v2581_v63 = vld [vmem:[%s7771_s3 + $0x740] sm:$0xff]  ;;  %2938 = vmatpush.msra.mxu2 %v2513_v62 }
 0x201   : > { %v2381_v0 = vld [vmem:[%s7771_s3 + $0x100] sm:$0xff]  ;;  %2957 = vmatpush.msra.mxu3 %v2581_v63 }
 0x202   : > { %v2445_v1 = vld [vmem:[%s7771_s3 + $0x300] sm:$0xff]  ;;  %2899 = vmatpush.msra.mxu0 %v2381_v0 }
 0x203   : > { %v2509_v2 = vld [vmem:[%s7771_s3 + $0x500] sm:$0xff]  ;;  %2919 = vmatpush.msra.mxu1 %v2445_v1 }
 0x204   : > { %v2577_v3 = vld [vmem:[%s7771_s3 + $0x720] sm:$0xff]  ;;  %2939 = vmatpush.msra.mxu2 %v2509_v2 }
 0x205   : > { %v2377_v4 = vld [vmem:[%s7771_s3 + $0xe0] sm:$0xff]  ;;  %2958 = vmatpush.msra.mxu3 %v2577_v3 }
 0x206   : > { %v2441_v5 = vld [vmem:[%s7771_s3 + $0x2e0] sm:$0xff]  ;;  %2900 = vmatpush.msra.mxu0 %v2377_v4 }
 0x207   : > { %v2505_v6 = vld [vmem:[%s7771_s3 + $0x4e0] sm:$0xff]  ;;  %2920 = vmatpush.msra.mxu1 %v2441_v5 }
 0x208   : > { %v2573_v7 = vld [vmem:[%s7771_s3 + $0x700] sm:$0xff]  ;;  %2940 = vmatpush.msra.mxu2 %v2505_v6 }
 0x209   : > { %v2373_v8 = vld [vmem:[%s7771_s3 + $0xc0] sm:$0xff]  ;;  %2959 = vmatpush.msra.mxu3 %v2573_v7 }
 0x20a   : > { %v2437_v9 = vld [vmem:[%s7771_s3 + $0x2c0] sm:$0xff]  ;;  %2901 = vmatpush.msra.mxu0 %v2373_v8 }
 0x20b   : > { %v2501_v10 = vld [vmem:[%s7771_s3 + $0x4c0] sm:$0xff]  ;;  %2921 = vmatpush.msra.mxu1 %v2437_v9 }
 0x20c   : > { %v2569_v11 = vld [vmem:[%s7771_s3 + $0x6e0] sm:$0xff]  ;;  %2941 = vmatpush.msra.mxu2 %v2501_v10 }
 0x20d   : > { %v2369_v12 = vld [vmem:[%s7771_s3 + $0xa0] sm:$0xff]  ;;  %2960 = vmatpush.msra.mxu3 %v2569_v11 }
 0x20e   : > { %v2433_v13 = vld [vmem:[%s7771_s3 + $0x2a0] sm:$0xff]  ;;  %2902 = vmatpush.msra.mxu0 %v2369_v12 }
 0x20f   : > { %v2497_v14 = vld [vmem:[%s7771_s3 + $0x4a0] sm:$0xff]  ;;  %2922 = vmatpush.msra.mxu1 %v2433_v13 }
 0x210   : > { %v2565_v15 = vld [vmem:[%s7771_s3 + $0x6c0] sm:$0xff]  ;;  %2942 = vmatpush.msra.mxu2 %v2497_v14 }
 0x211   : > { %v2365_v16 = vld [vmem:[%s7771_s3 + $0x80] sm:$0xff]  ;;  %2961 = vmatpush.msra.mxu3 %v2565_v15 }
 0x212   : > { %v2429_v17 = vld [vmem:[%s7771_s3 + $0x280] sm:$0xff]  ;;  %2903 = vmatpush.msra.mxu0 %v2365_v16 }
 0x213   : > { %v2493_v20 = vld [vmem:[%s7771_s3 + $0x480] sm:$0xff]  ;;  %2923 = vmatpush.msra.mxu1 %v2429_v17  ;;  %v2319_v17 = vld [vmem:[#allocation2] sm:$0xff] }
 0x214   : > { %v2561_v21 = vld [vmem:[%s7771_s3 + $0x6a0] sm:$0xff]  ;;  %2943 = vmatpush.msra.mxu2 %v2493_v20 }
 0x215   : > { %v2361_v23 = vld [vmem:[%s7771_s3 + $0x60] sm:$0xff]  ;;  %2962 = vmatpush.msra.mxu3 %v2561_v21 }
 0x216   : > { %v2425_v24 = vld [vmem:[%s7771_s3 + $0x260] sm:$0xff]  ;;  %2904 = vmatpush.msra.mxu0 %v2361_v23 }
 0x217   : > { %v2489_v25 = vld [vmem:[%s7771_s3 + $0x460] sm:$0xff]  ;;  %2924 = vmatpush.msra.mxu1 %v2425_v24 }
 0x218   : > { %v2557_v28 = vld [vmem:[%s7771_s3 + $0x680] sm:$0xff]  ;;  %2944 = vmatpush.msra.mxu2 %v2489_v25 }
 0x219   : > { %v2357_v29 = vld [vmem:[%s7771_s3 + $0x40] sm:$0xff]  ;;  %2963 = vmatpush.msra.mxu3 %v2557_v28 }
 0x21a   : > { %v2421_v31 = vld [vmem:[%s7771_s3 + $0x240] sm:$0xff]  ;;  %2905 = vmatpush.msra.mxu0 %v2357_v29 }
 0x21b   : > { %v2485_v32 = vld [vmem:[%s7771_s3 + $0x440] sm:$0xff]  ;;  %2925 = vmatpush.msra.mxu1 %v2421_v31 }
 0x21c   : > { %v2553_v33 = vld [vmem:[%s7771_s3 + $0x660] sm:$0xff]  ;;  %2945 = vmatpush.msra.mxu2 %v2485_v32 }
 0x21d   : > { %v2353_v35 = vld [vmem:[%s7771_s3 + $0x20] sm:$0xff]  ;;  %2964 = vmatpush.msra.mxu3 %v2553_v33 }
 0x21e   : > { %v2417_v36 = vld [vmem:[%s7771_s3 + $0x220] sm:$0xff]  ;;  %2906 = vmatpush.msra.mxu0 %v2353_v35 }
 0x21f   : > { %v2481_v38 = vld [vmem:[%s7771_s3 + $0x420] sm:$0xff]  ;;  %2926 = vmatpush.msra.mxu1 %v2417_v36 }
 0x220   : > { %v2549_v26 = vld [vmem:[%s7771_s3 + $0x640] sm:$0xff]  ;;  %2946 = vmatpush.msra.mxu2 %v2481_v38 }
 0x221   : > { %v2349_v27 = vld [vmem:[%s7771_s3] sm:$0xff]  ;;  %2965 = vmatpush.msra.mxu3 %v2549_v26 }
 0x222   : > { %v2413_v18 = vld [vmem:[%s7771_s3 + $0x200] sm:$0xff]  ;;  %2907 = vmatpush.msra.mxu0 %v2349_v27 }
 0x223   : > { %v2477_v39 = vld [vmem:[%s7771_s3 + $0x400] sm:$0xff]  ;;  %2927 = vmatpush.msra.mxu1 %v2413_v18  ;;  %v2320_v18 = vld [vmem:[#allocation2 + $0x8] sm:$0xff] }
 0x224   : > { %v2545_v19 = vld [vmem:[%s7771_s3 + $0x620] sm:$0xff]  ;;  %2947 = vmatpush.msra.mxu2 %v2477_v39 }
 0x225   : > { %v2665_v40 = vld [vmem:[%s7771_s3 + $0x9e0] sm:$0xff]  ;;  %2966 = vmatpush.msra.mxu3 %v2545_v19 }
 0x226   : > { %v2729_v41 = vld [vmem:[%s7771_s3 + $0xbe0] sm:$0xff]  ;;  %2972 = vmatpush.msrb.mxu0 %v2665_v40 }
 0x227   : > { %v2793_v34 = vld [vmem:[%s7771_s3 + $0xde0] sm:$0xff]  ;;  %2992 = vmatpush.msrb.mxu1 %v2729_v41 }
 0x228   : > { %v2541_v37 = vld [vmem:[%s7771_s3 + $0x600] sm:$0xff]  ;;  %3012 = vmatpush.msrb.mxu2 %v2793_v34 }
 0x229   : > { %v2661_v22 = vld [vmem:[%s7771_s3 + $0x9c0] sm:$0xff]  ;;  %2967 = vmatpush.msra.mxu3 %v2541_v37 }
 0x22a   : > { %v2725_v51 = vld [vmem:[%s7771_s3 + $0xbc0] sm:$0xff]  ;;  %2973 = vmatpush.msrb.mxu0 %v2661_v22 }
 0x22b   : > { %v2789_v30 = vld [vmem:[%s7771_s3 + $0xdc0] sm:$0xff]  ;;  %2993 = vmatpush.msrb.mxu1 %v2725_v51 }
 0x22c   : > { %v2857_v42 = vld [vmem:[%s7771_s3 + $0xfe0] sm:$0xff]  ;;  %3013 = vmatpush.msrb.mxu2 %v2789_v30 }
 0x22d   : > { %v2657_v56 = vld [vmem:[%s7771_s3 + $0x9a0] sm:$0xff]  ;;  %3032 = vmatpush.msrb.mxu3 %v2857_v42 }
 0x22e   : > { %v2721_v43 = vld [vmem:[%s7771_s3 + $0xba0] sm:$0xff]  ;;  %2974 = vmatpush.msrb.mxu0 %v2657_v56 }
 0x22f   : > { %v2785_v44 = vld [vmem:[%s7771_s3 + $0xda0] sm:$0xff]  ;;  %2994 = vmatpush.msrb.mxu1 %v2721_v43 }
 0x230   : > { %v2853_v45 = vld [vmem:[%s7771_s3 + $0xfc0] sm:$0xff]  ;;  %3014 = vmatpush.msrb.mxu2 %v2785_v44 }
 0x231   : > { %v2653_v46 = vld [vmem:[%s7771_s3 + $0x980] sm:$0xff]  ;;  %3033 = vmatpush.msrb.mxu3 %v2853_v45 }
 0x232   : > { %v2717_v48 = vld [vmem:[%s7771_s3 + $0xb80] sm:$0xff]  ;;  %2975 = vmatpush.msrb.mxu0 %v2653_v46 }
 0x233   : > { %v2781_v49 = vld [vmem:[%s7771_s3 + $0xd80] sm:$0xff]  ;;  %2995 = vmatpush.msrb.mxu1 %v2717_v48 }
 0x234   : > { %v2849_v50 = vld [vmem:[%s7771_s3 + $0xfa0] sm:$0xff]  ;;  %3015 = vmatpush.msrb.mxu2 %v2781_v49 }
 0x235   : > { %v2649_v52 = vld [vmem:[%s7771_s3 + $0x960] sm:$0xff]  ;;  %3034 = vmatpush.msrb.mxu3 %v2849_v50 }
 0x236   : > { %v2713_v53 = vld [vmem:[%s7771_s3 + $0xb60] sm:$0xff]  ;;  %2976 = vmatpush.msrb.mxu0 %v2649_v52 }
 0x237   : > { %v2777_v54 = vld [vmem:[%s7771_s3 + $0xd60] sm:$0xff]  ;;  %2996 = vmatpush.msrb.mxu1 %v2713_v53 }
 0x238   : > { %v2845_v55 = vld [vmem:[%s7771_s3 + $0xf80] sm:$0xff]  ;;  %3016 = vmatpush.msrb.mxu2 %v2777_v54 }
 0x239   : > { %v2645_v57 = vld [vmem:[%s7771_s3 + $0x940] sm:$0xff]  ;;  %3035 = vmatpush.msrb.mxu3 %v2845_v55 }
 0x23a   : > { %v2709_v58 = vld [vmem:[%s7771_s3 + $0xb40] sm:$0xff]  ;;  %2977 = vmatpush.msrb.mxu0 %v2645_v57 }
 0x23b   : > { %v2773_v59 = vld [vmem:[%s7771_s3 + $0xd40] sm:$0xff]  ;;  %2997 = vmatpush.msrb.mxu1 %v2709_v58 }
 0x23c   : > { %v2841_v60 = vld [vmem:[%s7771_s3 + $0xf60] sm:$0xff]  ;;  %3017 = vmatpush.msrb.mxu2 %v2773_v59 }
 0x23d   : > { %v2641_v47 = vld [vmem:[%s7771_s3 + $0x920] sm:$0xff]  ;;  %3036 = vmatpush.msrb.mxu3 %v2841_v60 }
 0x23e   : > { %v2705_v61 = vld [vmem:[%s7771_s3 + $0xb20] sm:$0xff]  ;;  %2978 = vmatpush.msrb.mxu0 %v2641_v47 }
 0x23f   : > { %v2321_v62 = vld [vmem:[%s7770_s2] sm:$0xff]  ;;  %2998 = vmatpush.msrb.mxu1 %v2705_v61 }
 0x240   : > { %v2769_v63 = vld [vmem:[%s7771_s3 + $0xd20] sm:$0xff]  ;;  %v2323_v1 = vperm.slane %v2321_v62, 0  ;;  %v2324_v2 = vperm.slane %v2321_v62, 1  ;;  %v2325_v3 = vperm.slane %v2321_v62, 2  ;;  %v2326_v4 = vperm.slane %v2321_v62, 3 }
 0x241   : > { %v2837_v0 = vld [vmem:[%s7771_s3 + $0xf40] sm:$0xff]  ;;  %v2327_v7 = vperm.slane %v2321_v62, 4  ;;  %v2328_v8 = vperm.slane %v2321_v62, 5  ;;  %v2329_v9 = vperm.slane %v2321_v62, 6  ;;  %3018 = vmatpush.msrb.mxu2 %v2769_v63  ;;  %v2330_v20 = vperm.slane %v2321_v62, 7 }
 0x242   : > { %v2637_v5 = vld [vmem:[%s7771_s3 + $0x900] sm:$0xff]  ;;  %v2331_v12 = vrot.slane %v2324_v2, 6  ;;  %v2332_v13 = vrot.slane %v2325_v3, 4  ;;  %v2333_v14 = vrot.slane %v2326_v4, 2  ;;  %3037 = vmatpush.msrb.mxu3 %v2837_v0  ;;  %v2410_v2 = vld [vmem:[%s7771_s3 + $0x1e8] sm:$0xff] }
 0x243   : > { %v2701_v6 = vld [vmem:[%s7771_s3 + $0xb00] sm:$0xff]  ;;  %v2334_v21 = vrot.slane %v2328_v8, 6  ;;  %v2335_v23 = vrot.slane %v2329_v9, 4  ;;  %2979 = vmatpush.msrb.mxu0 %v2637_v5  ;;  %v2336_v35 = vrot.slane %v2330_v20, 2  ;;  %v2474_v3 = vld [vmem:[%s7771_s3 + $0x3e8] sm:$0xff] }
 0x244   : > { %v2765_v10 = vld [vmem:[%s7771_s3 + $0xd00] sm:$0xff]  ;;  %2999 = vmatpush.msrb.mxu1 %v2701_v6  ;;  %v2337_v28 = vsel %vm2300_vm0, %v2323_v1, %v2331_v12  ;;  %v2338_v29 = vsel %vm2302_vm1, %v2332_v13, %v2333_v14  ;;  %v2538_v4 = vld [vmem:[%s7771_s3 + $0x5e8] sm:$0xff] }
 0x245   : > { %v2833_v11 = vld [vmem:[%s7771_s3 + $0xf20] sm:$0xff]  ;;  %3019 = vmatpush.msrb.mxu2 %v2765_v10  ;;  %v2339_v33 = vsel %vm2304_vm2, %v2337_v28, %v2338_v29  ;;  %v2340_v36 = vsel %vm2300_vm0, %v2327_v7, %v2334_v21  ;;  %v2341_v40 = vsel %vm2302_vm1, %v2335_v23, %v2336_v35  ;;  %v2406_v6 = vld [vmem:[%s7771_s3 + $0x1c8] sm:$0xff] }
 0x246   : > { %v2633_v15 = vld [vmem:[%s7771_s3 + $0x8e0] sm:$0xff]  ;;  %3038 = vmatpush.msrb.mxu3 %v2833_v11  ;;  %v2345_v27 = vadd.f32 %v2339_v33, %v2319_v17  ;;  %v2342_v22 = vsel %vm2304_vm2, %v2340_v36, %v2341_v40  ;;  %v2470_v8 = vld [vmem:[%s7771_s3 + $0x3c8] sm:$0xff] }
 0x247   : > { %v2697_v16 = vld [vmem:[%s7771_s3 + $0xae0] sm:$0xff]  ;;  %2980 = vmatpush.msrb.mxu0 %v2633_v15  ;;  %v2346_v42 = vadd.f32 %v2342_v22, %v2320_v18  ;;  %v2534_v9 = vld [vmem:[%s7771_s3 + $0x5c8] sm:$0xff] }
 0x248   : > { %v2761_v24 = vld [vmem:[%s7771_s3 + $0xce0] sm:$0xff]  ;;  %3000 = vmatpush.msrb.mxu1 %v2697_v16  ;;  %v2347_v37 = vmax.f32 %v2345_v27, 0.0  ;;  %v2602_v10 = vld [vmem:[%s7771_s3 + $0x7e8] sm:$0xff] }
 0x249   : > { %v2829_v25 = vld [vmem:[%s7771_s3 + $0xf00] sm:$0xff]  ;;  %3020 = vmatpush.msrb.mxu2 %v2761_v24  ;;  %v2348_v46 = vmax.f32 %v2346_v42, 0.0  ;;  %v2402_v11 = vld [vmem:[%s7771_s3 + $0x1a8] sm:$0xff] }
 0x24a   : > { %v2629_v31 = vld [vmem:[%s7771_s3 + $0x8c0] sm:$0xff]  ;;  %3039 = vmatpush.msrb.mxu3 %v2829_v25  ;;  %2873 = vst [vmem:[#allocation1] ss:$4 sm:$0xff] %v2347_v37  ;;  %v2466_v12 = vld [vmem:[%s7771_s3 + $0x3a8] sm:$0xff] }
 0x24b   : > { %v2693_v32 = vld [vmem:[%s7771_s3 + $0xac0] sm:$0xff]  ;;  %2981 = vmatpush.msrb.mxu0 %v2629_v31  ;;  %2875 = vst [vmem:[#allocation1 + $0x20] ss:$4 sm:$0xff] %v2348_v46  ;;  %v2530_v13 = vld [vmem:[%s7771_s3 + $0x5a8] sm:$0xff] }
 0x24c   : > { %v2757_v38 = vld [vmem:[%s7771_s3 + $0xcc0] sm:$0xff]  ;;  %3001 = vmatpush.msrb.mxu1 %v2693_v32  ;;  %v2598_v14 = vld [vmem:[%s7771_s3 + $0x7c8] sm:$0xff] }
 0x24d   : > { %v2825_v26 = vld [vmem:[%s7771_s3 + $0xee0] sm:$0xff]  ;;  %3021 = vmatpush.msrb.mxu2 %v2757_v38  ;;  %v2398_v15 = vld [vmem:[%s7771_s3 + $0x188] sm:$0xff] }
 0x24e   : > { %v2625_v39 = vld [vmem:[%s7771_s3 + $0x8a0] sm:$0xff]  ;;  %3040 = vmatpush.msrb.mxu3 %v2825_v26  ;;  %v2462_v16 = vld [vmem:[%s7771_s3 + $0x388] sm:$0xff] }
 0x24f   : > { %v2689_v19 = vld [vmem:[%s7771_s3 + $0xaa0] sm:$0xff]  ;;  %2982 = vmatpush.msrb.mxu0 %v2625_v39  ;;  %v2526_v17 = vld [vmem:[%s7771_s3 + $0x588] sm:$0xff] }
 0x250   : > { %v2753_v41 = vld [vmem:[%s7771_s3 + $0xca0] sm:$0xff]  ;;  %3002 = vmatpush.msrb.mxu1 %v2689_v19  ;;  %v2594_v20 = vld [vmem:[%s7771_s3 + $0x7a8] sm:$0xff] }
 0x251   : > { %v2821_v34 = vld [vmem:[%s7771_s3 + $0xec0] sm:$0xff]  ;;  %3022 = vmatpush.msrb.mxu2 %v2753_v41  ;;  %v6326_v0 = vld.sshfl [vmem:[#allocation1 + $0x8] sm:$0xff pattern:$0x73625140] }
 0x252   : > { %v2621_v51 = vld [vmem:[%s7771_s3 + $0x880] sm:$0xff]  ;;  %3041 = vmatpush.msrb.mxu3 %v2821_v34  ;;  %v6328_v1 = vld.sshfl [vmem:[#allocation1 + $0x10] sm:$0xff pattern:$0x73625140]  ;;  %2928 = vmatmul.f32.vlgmr.msra.gmra.mxu1 %v6326_v0  ;;  %v2394_v23 = vld [vmem:[%s7771_s3 + $0x168] sm:$0xff] }
 0x253   : > { %v2685_v30 = vld [vmem:[%s7771_s3 + $0xa80] sm:$0xff]  ;;  %2983 = vmatpush.msrb.mxu0 %v2621_v51  ;;  %2948 = vmatmul.f32.vlgmr.msra.gmra.mxu2 %v6328_v1  ;;  %v6348_v7 = vld.sshfl [vmem:[#allocation1 + $0x18] sm:$0xff pattern:$0x73625140]  ;;  %v2458_v24 = vld [vmem:[%s7771_s3 + $0x368] sm:$0xff] }
 0x254   : > { %v2749_v56 = vld [vmem:[%s7771_s3 + $0xc80] sm:$0xff]  ;;  %3003 = vmatpush.msrb.mxu1 %v2685_v30  ;;  %2968 = vmatmul.f32.vlgmr.msra.gmra.mxu3 %v6348_v7  ;;  %v6384_v21 = vld.sshfl [vmem:[#allocation1 + $0x30] sm:$0xff pattern:$0x73625140]  ;;  %v2522_v25 = vld [vmem:[%s7771_s3 + $0x568] sm:$0xff] }
 0x255   : > { %v2817_v43 = vld [vmem:[%s7771_s3 + $0xea0] sm:$0xff]  ;;  %3023 = vmatpush.msrb.mxu2 %v2749_v56  ;;  %v2590_v28 = vld [vmem:[%s7771_s3 + $0x788] sm:$0xff]  ;;  %v6401_v31 = vld.sshfl [vmem:[#allocation1 + $0x38] sm:$0xff pattern:$0x73625140] }
 0x256   : > { %v2617_v44 = vld [vmem:[%s7771_s3 + $0x860] sm:$0xff]  ;;  %3042 = vmatpush.msrb.mxu3 %v2817_v43  ;;  %v2390_v32 = vld [vmem:[%s7771_s3 + $0x148] sm:$0xff] }
 0x257   : > { %v2681_v45 = vld [vmem:[%s7771_s3 + $0xa60] sm:$0xff]  ;;  %2984 = vmatpush.msrb.mxu0 %v2617_v44  ;;  %v2454_v33 = vld [vmem:[%s7771_s3 + $0x348] sm:$0xff] }
 0x258   : > { %v2745_v48 = vld [vmem:[%s7771_s3 + $0xc60] sm:$0xff]  ;;  %3004 = vmatpush.msrb.mxu1 %v2681_v45  ;;  %v2518_v35 = vld [vmem:[%s7771_s3 + $0x548] sm:$0xff] }
 0x259   : > { %v2813_v49 = vld [vmem:[%s7771_s3 + $0xe80] sm:$0xff]  ;;  %3024 = vmatpush.msrb.mxu2 %v2745_v48  ;;  %v2586_v36 = vld [vmem:[%s7771_s3 + $0x768] sm:$0xff] }
 0x25a   : > { %v2613_v50 = vld [vmem:[%s7771_s3 + $0x840] sm:$0xff]  ;;  %3043 = vmatpush.msrb.mxu3 %v2813_v49  ;;  %v6416_v38 = vld.sshfl [vmem:[#allocation1 + $0x28] sm:$0xff pattern:$0x73625140] }
 0x25b   : > { %v2677_v52 = vld [vmem:[%s7771_s3 + $0xa40] sm:$0xff]  ;;  %2985 = vmatpush.msrb.mxu0 %v2613_v50  ;;  %v2386_v26 = vld [vmem:[%s7771_s3 + $0x128] sm:$0xff] }
 0x25c   : > { %v2741_v53 = vld [vmem:[%s7771_s3 + $0xc40] sm:$0xff]  ;;  %3005 = vmatpush.msrb.mxu1 %v2677_v52  ;;  %v2450_v27 = vld [vmem:[%s7771_s3 + $0x328] sm:$0xff] }
 0x25d   : > { %v2809_v54 = vld [vmem:[%s7771_s3 + $0xe60] sm:$0xff]  ;;  %3025 = vmatpush.msrb.mxu2 %v2741_v53  ;;  %v2514_v18 = vld [vmem:[%s7771_s3 + $0x528] sm:$0xff] }
 0x25e   : > { %v2609_v55 = vld [vmem:[%s7771_s3 + $0x820] sm:$0xff]  ;;  %3044 = vmatpush.msrb.mxu3 %v2809_v54  ;;  %v2582_v39 = vld [vmem:[%s7771_s3 + $0x748] sm:$0xff] }
 0x25f   : > { %v2673_v57 = vld [vmem:[%s7771_s3 + $0xa20] sm:$0xff]  ;;  %2986 = vmatpush.msrb.mxu0 %v2609_v55  ;;  %v2382_v19 = vld [vmem:[%s7771_s3 + $0x108] sm:$0xff] }
 0x260   : > { %v2737_v58 = vld [vmem:[%s7771_s3 + $0xc20] sm:$0xff]  ;;  %3006 = vmatpush.msrb.mxu1 %v2673_v57  ;;  %v2446_v40 = vld [vmem:[%s7771_s3 + $0x308] sm:$0xff] }
 0x261   : > { %v2805_v59 = vld [vmem:[%s7771_s3 + $0xe40] sm:$0xff]  ;;  %3026 = vmatpush.msrb.mxu2 %v2737_v58  ;;  %v2510_v41 = vld [vmem:[%s7771_s3 + $0x508] sm:$0xff] }
 0x262   : > { %v2605_v60 = vld [vmem:[%s7771_s3 + $0x800] sm:$0xff]  ;;  %3045 = vmatpush.msrb.mxu3 %v2805_v59  ;;  %v2578_v34 = vld [vmem:[%s7771_s3 + $0x728] sm:$0xff] }
 0x263   : > { %v2669_v47 = vld [vmem:[%s7771_s3 + $0xa00] sm:$0xff]  ;;  %2987 = vmatpush.msrb.mxu0 %v2605_v60  ;;  %v2378_v37 = vld [vmem:[%s7771_s3 + $0xe8] sm:$0xff] }
 0x264   : > { %v2733_v61 = vld [vmem:[%s7771_s3 + $0xc00] sm:$0xff]  ;;  %3007 = vmatpush.msrb.mxu1 %v2669_v47  ;;  %v2442_v22 = vld [vmem:[%s7771_s3 + $0x2e8] sm:$0xff] }
 0x265   : > { %v2801_v62 = vld [vmem:[%s7771_s3 + $0xe20] sm:$0xff]  ;;  %3027 = vmatpush.msrb.mxu2 %v2733_v61  ;;  %3008 = vmatmul.f32.vlgmr.msrb.gmra.mxu1 %v6416_v38  ;;  %v2506_v51 = vld [vmem:[%s7771_s3 + $0x4e8] sm:$0xff] }
 0x266   : > { %v6324_v63 = vld.sshfl [vmem:[#allocation1] sm:$0xff pattern:$0x73625140]  ;;  %3046 = vmatpush.msrb.mxu3 %v2801_v62  ;;  %3072 = vmatpush.msra.mxu1 %v2474_v3  ;;  %v2574_v30 = vld [vmem:[%s7771_s3 + $0x708] sm:$0xff] }
 0x267   : > { %2908 = vmatmul.f32.vlgmr.msra.gmra.mxu0 %v6324_v63  ;;  %v2797_v5 = vld [vmem:[%s7771_s3 + $0xe00] sm:$0xff]  ;;  %3092 = vmatpush.msra.mxu2 %v2538_v4  ;;  %v2374_v42 = vld [vmem:[%s7771_s3 + $0xc8] sm:$0xff] }
 0x268   : > { %3052 = vmatpush.msra.mxu0 %v2410_v2  ;;  %3047 = vmatpush.msrb.mxu3 %v2797_v5  ;;  %v6398_v29 = vld.sshfl [vmem:[#allocation1 + $0x20] sm:$0xff pattern:$0x73625140]  ;;  %v2438_v56 = vld [vmem:[%s7771_s3 + $0x2c8] sm:$0xff] }
 0x269   : > { %3073 = vmatpush.msra.mxu1 %v2470_v8  ;;  %3093 = vmatpush.msra.mxu2 %v2534_v9  ;;  %v2502_v43 = vld [vmem:[%s7771_s3 + $0x4c8] sm:$0xff] }
 0x26a   : > { %3053 = vmatpush.msra.mxu0 %v2406_v6  ;;  %3112 = vmatpush.msra.mxu3 %v2602_v10  ;;  %v2570_v44 = vld [vmem:[%s7771_s3 + $0x6e8] sm:$0xff] }
 0x26b   : > { %3074 = vmatpush.msra.mxu1 %v2466_v12  ;;  %3094 = vmatpush.msra.mxu2 %v2530_v13  ;;  %v2370_v45 = vld [vmem:[%s7771_s3 + $0xa8] sm:$0xff] }
 0x26c   : > { %3054 = vmatpush.msra.mxu0 %v2402_v11  ;;  %3113 = vmatpush.msra.mxu3 %v2598_v14  ;;  %v2434_v46 = vld [vmem:[%s7771_s3 + $0x2a8] sm:$0xff] }
 0x26d   : > { %3075 = vmatpush.msra.mxu1 %v2462_v16  ;;  %3095 = vmatpush.msra.mxu2 %v2526_v17  ;;  %v2498_v48 = vld [vmem:[%s7771_s3 + $0x4a8] sm:$0xff] }
 0x26e   : > { %3055 = vmatpush.msra.mxu0 %v2398_v15  ;;  %3114 = vmatpush.msra.mxu3 %v2594_v20  ;;  %v2566_v49 = vld [vmem:[%s7771_s3 + $0x6c8] sm:$0xff] }
 0x26f   : > { %3028 = vmatmul.f32.vlgmr.msrb.gmra.mxu2 %v6384_v21  ;;  %3076 = vmatpush.msra.mxu1 %v2458_v24  ;;  %v2366_v50 = vld [vmem:[%s7771_s3 + $0x88] sm:$0xff] }
 0x270   : > { %3056 = vmatpush.msra.mxu0 %v2394_v23  ;;  %3096 = vmatpush.msra.mxu2 %v2522_v25  ;;  %v2430_v52 = vld [vmem:[%s7771_s3 + $0x288] sm:$0xff] }
 0x271   : > { %3115 = vmatpush.msra.mxu3 %v2590_v28  ;;  %2988 = vmatmul.f32.vlgmr.msrb.gmra.mxu0 %v6398_v29  ;;  %v2494_v53 = vld [vmem:[%s7771_s3 + $0x488] sm:$0xff] }
 0x272   : > { %3048 = vmatmul.f32.vlgmr.msrb.gmra.mxu3 %v6401_v31  ;;  %3057 = vmatpush.msra.mxu0 %v2390_v32  ;;  %v2562_v54 = vld [vmem:[%s7771_s3 + $0x6a8] sm:$0xff] }
 0x273   : > { %3077 = vmatpush.msra.mxu1 %v2454_v33  ;;  %3097 = vmatpush.msra.mxu2 %v2518_v35  ;;  %v2362_v55 = vld [vmem:[%s7771_s3 + $0x68] sm:$0xff] }
 0x274   : > { %3116 = vmatpush.msra.mxu3 %v2586_v36  ;;  %3058 = vmatpush.msra.mxu0 %v2386_v26  ;;  %v2426_v57 = vld [vmem:[%s7771_s3 + $0x268] sm:$0xff] }
 0x275   : > { %3078 = vmatpush.msra.mxu1 %v2450_v27  ;;  %3098 = vmatpush.msra.mxu2 %v2514_v18  ;;  %v2490_v58 = vld [vmem:[%s7771_s3 + $0x468] sm:$0xff] }
 0x276   : > { %3117 = vmatpush.msra.mxu3 %v2582_v39  ;;  %3059 = vmatpush.msra.mxu0 %v2382_v19  ;;  %v2558_v59 = vld [vmem:[%s7771_s3 + $0x688] sm:$0xff] }
 0x277   : > { %3079 = vmatpush.msra.mxu1 %v2446_v40  ;;  %3099 = vmatpush.msra.mxu2 %v2510_v41  ;;  %v2358_v60 = vld [vmem:[%s7771_s3 + $0x48] sm:$0xff] }
 0x278   : > { %3118 = vmatpush.msra.mxu3 %v2578_v34  ;;  %3060 = vmatpush.msra.mxu0 %v2378_v37  ;;  %v2422_v47 = vld [vmem:[%s7771_s3 + $0x248] sm:$0xff] }
 0x279   : > { %3080 = vmatpush.msra.mxu1 %v2442_v22  ;;  %3100 = vmatpush.msra.mxu2 %v2506_v51  ;;  %v2486_v61 = vld [vmem:[%s7771_s3 + $0x448] sm:$0xff] }
 0x27a   : > { %3119 = vmatpush.msra.mxu3 %v2574_v30  ;;  %3061 = vmatpush.msra.mxu0 %v2374_v42  ;;  %v2554_v62 = vld [vmem:[%s7771_s3 + $0x668] sm:$0xff] }
 0x27b   : > { %3081 = vmatpush.msra.mxu1 %v2438_v56  ;;  %3101 = vmatpush.msra.mxu2 %v2502_v43  ;;  %v2354_v2 = vld [vmem:[%s7771_s3 + $0x28] sm:$0xff] }
 0x27c   : > { %3120 = vmatpush.msra.mxu3 %v2570_v44  ;;  %3062 = vmatpush.msra.mxu0 %v2370_v45  ;;  %v2418_v3 = vld [vmem:[%s7771_s3 + $0x228] sm:$0xff] }
 0x27d   : > { %3082 = vmatpush.msra.mxu1 %v2434_v46  ;;  %3102 = vmatpush.msra.mxu2 %v2498_v48  ;;  %v2482_v4 = vld [vmem:[%s7771_s3 + $0x428] sm:$0xff] }
 0x27e   : > { %3121 = vmatpush.msra.mxu3 %v2566_v49  ;;  %3063 = vmatpush.msra.mxu0 %v2366_v50  ;;  %v2550_v5 = vld [vmem:[%s7771_s3 + $0x648] sm:$0xff] }
 0x27f   : > { %3083 = vmatpush.msra.mxu1 %v2430_v52  ;;  %3103 = vmatpush.msra.mxu2 %v2494_v53  ;;  %v2350_v6 = vld [vmem:[%s7771_s3 + $0x8] sm:$0xff] }
 0x280   : > { %3122 = vmatpush.msra.mxu3 %v2562_v54  ;;  %3064 = vmatpush.msra.mxu0 %v2362_v55  ;;  %v2414_v8 = vld [vmem:[%s7771_s3 + $0x208] sm:$0xff] }
 0x281   : > { %3084 = vmatpush.msra.mxu1 %v2426_v57  ;;  %3104 = vmatpush.msra.mxu2 %v2490_v58  ;;  %v2478_v9 = vld [vmem:[%s7771_s3 + $0x408] sm:$0xff] }
 0x282   : > { %3123 = vmatpush.msra.mxu3 %v2558_v59  ;;  %3065 = vmatpush.msra.mxu0 %v2358_v60  ;;  %v2546_v10 = vld [vmem:[%s7771_s3 + $0x628] sm:$0xff] }
 0x283   : > { %3085 = vmatpush.msra.mxu1 %v2422_v47  ;;  %3105 = vmatpush.msra.mxu2 %v2486_v61  ;;  %v2666_v11 = vld [vmem:[%s7771_s3 + $0x9e8] sm:$0xff] }
 0x284   : > { %3124 = vmatpush.msra.mxu3 %v2554_v62  ;;  %3066 = vmatpush.msra.mxu0 %v2354_v2  ;;  %v2730_v12 = vld [vmem:[%s7771_s3 + $0xbe8] sm:$0xff] }
 0x285   : > { %3086 = vmatpush.msra.mxu1 %v2418_v3  ;;  %3106 = vmatpush.msra.mxu2 %v2482_v4  ;;  %v2794_v13 = vld [vmem:[%s7771_s3 + $0xde8] sm:$0xff] }
 0x286   : > { %3125 = vmatpush.msra.mxu3 %v2550_v5  ;;  %3067 = vmatpush.msra.mxu0 %v2350_v6  ;;  %v2542_v14 = vld [vmem:[%s7771_s3 + $0x608] sm:$0xff] }
 0x287   : > { %3087 = vmatpush.msra.mxu1 %v2414_v8  ;;  %3107 = vmatpush.msra.mxu2 %v2478_v9  ;;  %v2662_v15 = vld [vmem:[%s7771_s3 + $0x9c8] sm:$0xff] }
 0x288   : > { %3126 = vmatpush.msra.mxu3 %v2546_v10  ;;  %v2726_v16 = vld [vmem:[%s7771_s3 + $0xbc8] sm:$0xff]  ;;  %3132 = vmatpush.msrb.mxu0 %v2666_v11 }
 0x289   : > { %3152 = vmatpush.msrb.mxu1 %v2730_v12  ;;  %v2790_v17 = vld [vmem:[%s7771_s3 + $0xdc8] sm:$0xff]  ;;  %3172 = vmatpush.msrb.mxu2 %v2794_v13 }
 0x28a   : > { %v2858_v20 = vld [vmem:[%s7771_s3 + $0xfe8] sm:$0xff]  ;;  %3127 = vmatpush.msra.mxu3 %v2542_v14  ;;  %3133 = vmatpush.msrb.mxu0 %v2662_v15 }
 0x28b   : > { %v2658_v23 = vld [vmem:[%s7771_s3 + $0x9a8] sm:$0xff]  ;;  %3153 = vmatpush.msrb.mxu1 %v2726_v16  ;;  %3173 = vmatpush.msrb.mxu2 %v2790_v17 }
 0x28c   : > { %v2722_v24 = vld [vmem:[%s7771_s3 + $0xba8] sm:$0xff]  ;;  %3192 = vmatpush.msrb.mxu3 %v2858_v20  ;;  %3134 = vmatpush.msrb.mxu0 %v2658_v23  ;;  %v2411_v23 = vld [vmem:[%s7771_s3 + $0x1f0] sm:$0xff] }
 0x28d   : > { %v2786_v25 = vld [vmem:[%s7771_s3 + $0xda8] sm:$0xff]  ;;  %3154 = vmatpush.msrb.mxu1 %v2722_v24  ;;  %v2475_v24 = vld [vmem:[%s7771_s3 + $0x3f0] sm:$0xff]  ;;  %3068 = vmatmul.f32.vlgmr.msra.gmra.mxu0 %v6324_v63 }
 0x28e   : > { %v2854_v28 = vld [vmem:[%s7771_s3 + $0xfc8] sm:$0xff]  ;;  %3174 = vmatpush.msrb.mxu2 %v2786_v25  ;;  %v2539_v25 = vld [vmem:[%s7771_s3 + $0x5f0] sm:$0xff]  ;;  %3088 = vmatmul.f32.vlgmr.msra.gmra.mxu1 %v6326_v0 }
 0x28f   : > { %v2654_v32 = vld [vmem:[%s7771_s3 + $0x988] sm:$0xff]  ;;  %3193 = vmatpush.msrb.mxu3 %v2854_v28  ;;  %3108 = vmatmul.f32.vlgmr.msra.gmra.mxu2 %v6328_v1  ;;  %v2535_v63 = vld [vmem:[%s7771_s3 + $0x5d0] sm:$0xff] }
 0x290   : > { %v2718_v33 = vld [vmem:[%s7771_s3 + $0xb88] sm:$0xff]  ;;  %3135 = vmatpush.msrb.mxu0 %v2654_v32  ;;  %v2407_v32 = vld [vmem:[%s7771_s3 + $0x1d0] sm:$0xff]  ;;  %3128 = vmatmul.f32.vlgmr.msra.gmra.mxu3 %v6348_v7 }
 0x291   : > { %v2782_v35 = vld [vmem:[%s7771_s3 + $0xd88] sm:$0xff]  ;;  %3155 = vmatpush.msrb.mxu1 %v2718_v33  ;;  %v2471_v33 = vld [vmem:[%s7771_s3 + $0x3d0] sm:$0xff] }
 0x292   : > { %v2850_v36 = vld [vmem:[%s7771_s3 + $0xfa8] sm:$0xff]  ;;  %3175 = vmatpush.msrb.mxu2 %v2782_v35  ;;  %v2603_v0 = vld [vmem:[%s7771_s3 + $0x7f0] sm:$0xff] }
 0x293   : > { %v2650_v26 = vld [vmem:[%s7771_s3 + $0x968] sm:$0xff]  ;;  %3194 = vmatpush.msrb.mxu3 %v2850_v36  ;;  %v2403_v35 = vld [vmem:[%s7771_s3 + $0x1b0] sm:$0xff] }
 0x294   : > { %v2714_v27 = vld [vmem:[%s7771_s3 + $0xb68] sm:$0xff]  ;;  %3136 = vmatpush.msrb.mxu0 %v2650_v26  ;;  %v2467_v36 = vld [vmem:[%s7771_s3 + $0x3b0] sm:$0xff] }
 0x295   : > { %v2778_v18 = vld [vmem:[%s7771_s3 + $0xd68] sm:$0xff]  ;;  %3156 = vmatpush.msrb.mxu1 %v2714_v27  ;;  %v2531_v26 = vld [vmem:[%s7771_s3 + $0x5b0] sm:$0xff] }
 0x296   : > { %v2846_v39 = vld [vmem:[%s7771_s3 + $0xf88] sm:$0xff]  ;;  %3176 = vmatpush.msrb.mxu2 %v2778_v18  ;;  %v2599_v27 = vld [vmem:[%s7771_s3 + $0x7d0] sm:$0xff] }
 0x297   : > { %v2646_v19 = vld [vmem:[%s7771_s3 + $0x948] sm:$0xff]  ;;  %3195 = vmatpush.msrb.mxu3 %v2846_v39  ;;  %v2399_v18 = vld [vmem:[%s7771_s3 + $0x190] sm:$0xff] }
 0x298   : > { %v2710_v40 = vld [vmem:[%s7771_s3 + $0xb48] sm:$0xff]  ;;  %3137 = vmatpush.msrb.mxu0 %v2646_v19  ;;  %v2463_v39 = vld [vmem:[%s7771_s3 + $0x390] sm:$0xff] }
 0x299   : > { %v2774_v41 = vld [vmem:[%s7771_s3 + $0xd48] sm:$0xff]  ;;  %3157 = vmatpush.msrb.mxu1 %v2710_v40  ;;  %v2527_v19 = vld [vmem:[%s7771_s3 + $0x590] sm:$0xff] }
 0x29a   : > { %v2842_v34 = vld [vmem:[%s7771_s3 + $0xf68] sm:$0xff]  ;;  %3177 = vmatpush.msrb.mxu2 %v2774_v41  ;;  %v2595_v40 = vld [vmem:[%s7771_s3 + $0x7b0] sm:$0xff] }
 0x29b   : > { %v2642_v37 = vld [vmem:[%s7771_s3 + $0x928] sm:$0xff]  ;;  %3196 = vmatpush.msrb.mxu3 %v2842_v34  ;;  %v2395_v41 = vld [vmem:[%s7771_s3 + $0x170] sm:$0xff] }
 0x29c   : > { %v2706_v22 = vld [vmem:[%s7771_s3 + $0xb28] sm:$0xff]  ;;  %3138 = vmatpush.msrb.mxu0 %v2642_v37  ;;  %v2459_v34 = vld [vmem:[%s7771_s3 + $0x370] sm:$0xff] }
 0x29d   : > { %v2770_v51 = vld [vmem:[%s7771_s3 + $0xd28] sm:$0xff]  ;;  %3158 = vmatpush.msrb.mxu1 %v2706_v22  ;;  %v2523_v37 = vld [vmem:[%s7771_s3 + $0x570] sm:$0xff] }
 0x29e   : > { %v2838_v30 = vld [vmem:[%s7771_s3 + $0xf48] sm:$0xff]  ;;  %3178 = vmatpush.msrb.mxu2 %v2770_v51  ;;  %v2591_v22 = vld [vmem:[%s7771_s3 + $0x790] sm:$0xff] }
 0x29f   : > { %v2638_v42 = vld [vmem:[%s7771_s3 + $0x908] sm:$0xff]  ;;  %3197 = vmatpush.msrb.mxu3 %v2838_v30  ;;  %v2391_v51 = vld [vmem:[%s7771_s3 + $0x150] sm:$0xff] }
 0x2a0   : > { %v2702_v56 = vld [vmem:[%s7771_s3 + $0xb08] sm:$0xff]  ;;  %3139 = vmatpush.msrb.mxu0 %v2638_v42  ;;  %v2455_v30 = vld [vmem:[%s7771_s3 + $0x350] sm:$0xff] }
 0x2a1   : > { %v2766_v43 = vld [vmem:[%s7771_s3 + $0xd08] sm:$0xff]  ;;  %3159 = vmatpush.msrb.mxu1 %v2702_v56  ;;  %v2519_v42 = vld [vmem:[%s7771_s3 + $0x550] sm:$0xff] }
 0x2a2   : > { %v2834_v44 = vld [vmem:[%s7771_s3 + $0xf28] sm:$0xff]  ;;  %3179 = vmatpush.msrb.mxu2 %v2766_v43  ;;  %v2587_v56 = vld [vmem:[%s7771_s3 + $0x770] sm:$0xff] }
 0x2a3   : > { %v2634_v45 = vld [vmem:[%s7771_s3 + $0x8e8] sm:$0xff]  ;;  %3198 = vmatpush.msrb.mxu3 %v2834_v44  ;;  %v2387_v43 = vld [vmem:[%s7771_s3 + $0x130] sm:$0xff] }
 0x2a4   : > { %v2698_v46 = vld [vmem:[%s7771_s3 + $0xae8] sm:$0xff]  ;;  %3140 = vmatpush.msrb.mxu0 %v2634_v45  ;;  %v2451_v44 = vld [vmem:[%s7771_s3 + $0x330] sm:$0xff] }
 0x2a5   : > { %v2762_v48 = vld [vmem:[%s7771_s3 + $0xce8] sm:$0xff]  ;;  %3160 = vmatpush.msrb.mxu1 %v2698_v46  ;;  %v2515_v45 = vld [vmem:[%s7771_s3 + $0x530] sm:$0xff] }
 0x2a6   : > { %v2830_v49 = vld [vmem:[%s7771_s3 + $0xf08] sm:$0xff]  ;;  %3180 = vmatpush.msrb.mxu2 %v2762_v48  ;;  %v2583_v46 = vld [vmem:[%s7771_s3 + $0x750] sm:$0xff] }
 0x2a7   : > { %v2630_v50 = vld [vmem:[%s7771_s3 + $0x8c8] sm:$0xff]  ;;  %3199 = vmatpush.msrb.mxu3 %v2830_v49  ;;  %v2383_v48 = vld [vmem:[%s7771_s3 + $0x110] sm:$0xff] }
 0x2a8   : > { %v2694_v52 = vld [vmem:[%s7771_s3 + $0xac8] sm:$0xff]  ;;  %3141 = vmatpush.msrb.mxu0 %v2630_v50  ;;  %v2447_v49 = vld [vmem:[%s7771_s3 + $0x310] sm:$0xff] }
 0x2a9   : > { %v2758_v53 = vld [vmem:[%s7771_s3 + $0xcc8] sm:$0xff]  ;;  %3161 = vmatpush.msrb.mxu1 %v2694_v52  ;;  %v2511_v50 = vld [vmem:[%s7771_s3 + $0x510] sm:$0xff] }
 0x2aa   : > { %v2826_v54 = vld [vmem:[%s7771_s3 + $0xee8] sm:$0xff]  ;;  %3181 = vmatpush.msrb.mxu2 %v2758_v53  ;;  %v2579_v52 = vld [vmem:[%s7771_s3 + $0x730] sm:$0xff] }
 0x2ab   : > { %v2626_v55 = vld [vmem:[%s7771_s3 + $0x8a8] sm:$0xff]  ;;  %3200 = vmatpush.msrb.mxu3 %v2826_v54  ;;  %v2379_v53 = vld [vmem:[%s7771_s3 + $0xf0] sm:$0xff] }
 0x2ac   : > { %v2690_v57 = vld [vmem:[%s7771_s3 + $0xaa8] sm:$0xff]  ;;  %3142 = vmatpush.msrb.mxu0 %v2626_v55  ;;  %v2443_v54 = vld [vmem:[%s7771_s3 + $0x2f0] sm:$0xff] }
 0x2ad   : > { %v2754_v58 = vld [vmem:[%s7771_s3 + $0xca8] sm:$0xff]  ;;  %3162 = vmatpush.msrb.mxu1 %v2690_v57  ;;  %v2507_v55 = vld [vmem:[%s7771_s3 + $0x4f0] sm:$0xff] }
 0x2ae   : > { %v2822_v59 = vld [vmem:[%s7771_s3 + $0xec8] sm:$0xff]  ;;  %3182 = vmatpush.msrb.mxu2 %v2754_v58  ;;  %v2575_v57 = vld [vmem:[%s7771_s3 + $0x710] sm:$0xff] }
 0x2af   : > { %v2622_v60 = vld [vmem:[%s7771_s3 + $0x888] sm:$0xff]  ;;  %3201 = vmatpush.msrb.mxu3 %v2822_v59  ;;  %v2375_v58 = vld [vmem:[%s7771_s3 + $0xd0] sm:$0xff] }
 0x2b0   : > { %v2686_v47 = vld [vmem:[%s7771_s3 + $0xa88] sm:$0xff]  ;;  %3143 = vmatpush.msrb.mxu0 %v2622_v60  ;;  %v2439_v59 = vld [vmem:[%s7771_s3 + $0x2d0] sm:$0xff] }
 0x2b1   : > { %v2750_v61 = vld [vmem:[%s7771_s3 + $0xc88] sm:$0xff]  ;;  %3163 = vmatpush.msrb.mxu1 %v2686_v47  ;;  %v2503_v60 = vld [vmem:[%s7771_s3 + $0x4d0] sm:$0xff] }
 0x2b2   : > { %v2818_v62 = vld [vmem:[%s7771_s3 + $0xea8] sm:$0xff]  ;;  %3183 = vmatpush.msrb.mxu2 %v2750_v61  ;;  %v2571_v47 = vld [vmem:[%s7771_s3 + $0x6f0] sm:$0xff] }
 0x2b3   : > { %v2618_v2 = vld [vmem:[%s7771_s3 + $0x868] sm:$0xff]  ;;  %3202 = vmatpush.msrb.mxu3 %v2818_v62  ;;  %v2371_v61 = vld [vmem:[%s7771_s3 + $0xb0] sm:$0xff] }
 0x2b4   : > { %v2682_v3 = vld [vmem:[%s7771_s3 + $0xa68] sm:$0xff]  ;;  %3144 = vmatpush.msrb.mxu0 %v2618_v2  ;;  %v2435_v62 = vld [vmem:[%s7771_s3 + $0x2b0] sm:$0xff] }
 0x2b5   : > { %v2746_v4 = vld [vmem:[%s7771_s3 + $0xc68] sm:$0xff]  ;;  %3164 = vmatpush.msrb.mxu1 %v2682_v3  ;;  %v2499_v2 = vld [vmem:[%s7771_s3 + $0x4b0] sm:$0xff] }
 0x2b6   : > { %v2814_v5 = vld [vmem:[%s7771_s3 + $0xe88] sm:$0xff]  ;;  %3184 = vmatpush.msrb.mxu2 %v2746_v4  ;;  %v2567_v3 = vld [vmem:[%s7771_s3 + $0x6d0] sm:$0xff] }
 0x2b7   : > { %v2614_v6 = vld [vmem:[%s7771_s3 + $0x848] sm:$0xff]  ;;  %3203 = vmatpush.msrb.mxu3 %v2814_v5  ;;  %v2367_v4 = vld [vmem:[%s7771_s3 + $0x90] sm:$0xff] }
 0x2b8   : > { %v2678_v8 = vld [vmem:[%s7771_s3 + $0xa48] sm:$0xff]  ;;  %3145 = vmatpush.msrb.mxu0 %v2614_v6  ;;  %v2431_v5 = vld [vmem:[%s7771_s3 + $0x290] sm:$0xff] }
 0x2b9   : > { %v2742_v9 = vld [vmem:[%s7771_s3 + $0xc48] sm:$0xff]  ;;  %3165 = vmatpush.msrb.mxu1 %v2678_v8  ;;  %v2495_v6 = vld [vmem:[%s7771_s3 + $0x490] sm:$0xff] }
 0x2ba   : > { %v2810_v10 = vld [vmem:[%s7771_s3 + $0xe68] sm:$0xff]  ;;  %3185 = vmatpush.msrb.mxu2 %v2742_v9  ;;  %v2563_v8 = vld [vmem:[%s7771_s3 + $0x6b0] sm:$0xff] }
 0x2bb   : > { %v2610_v11 = vld [vmem:[%s7771_s3 + $0x828] sm:$0xff]  ;;  %3204 = vmatpush.msrb.mxu3 %v2810_v10  ;;  %v2363_v9 = vld [vmem:[%s7771_s3 + $0x70] sm:$0xff] }
 0x2bc   : > { %v2674_v12 = vld [vmem:[%s7771_s3 + $0xa28] sm:$0xff]  ;;  %3146 = vmatpush.msrb.mxu0 %v2610_v11  ;;  %v2427_v10 = vld [vmem:[%s7771_s3 + $0x270] sm:$0xff] }
 0x2bd   : > { %v2738_v13 = vld [vmem:[%s7771_s3 + $0xc28] sm:$0xff]  ;;  %3166 = vmatpush.msrb.mxu1 %v2674_v12  ;;  %v2491_v11 = vld [vmem:[%s7771_s3 + $0x470] sm:$0xff] }
 0x2be   : > { %v2806_v14 = vld [vmem:[%s7771_s3 + $0xe48] sm:$0xff]  ;;  %3186 = vmatpush.msrb.mxu2 %v2738_v13  ;;  %v2559_v12 = vld [vmem:[%s7771_s3 + $0x690] sm:$0xff] }
 0x2bf   : > { %v2606_v15 = vld [vmem:[%s7771_s3 + $0x808] sm:$0xff]  ;;  %3205 = vmatpush.msrb.mxu3 %v2806_v14  ;;  %v2359_v13 = vld [vmem:[%s7771_s3 + $0x50] sm:$0xff] }
 0x2c0   : > { %v2670_v16 = vld [vmem:[%s7771_s3 + $0xa08] sm:$0xff]  ;;  %3147 = vmatpush.msrb.mxu0 %v2606_v15  ;;  %v2423_v14 = vld [vmem:[%s7771_s3 + $0x250] sm:$0xff] }
 0x2c1   : > { %v2734_v17 = vld [vmem:[%s7771_s3 + $0xc08] sm:$0xff]  ;;  %3167 = vmatpush.msrb.mxu1 %v2670_v16  ;;  %3148 = vmatmul.f32.vlgmr.msrb.gmra.mxu0 %v6398_v29  ;;  %v2487_v15 = vld [vmem:[%s7771_s3 + $0x450] sm:$0xff] }
 0x2c2   : > { %v2802_v20 = vld [vmem:[%s7771_s3 + $0xe28] sm:$0xff]  ;;  %3187 = vmatpush.msrb.mxu2 %v2734_v17  ;;  %3212 = vmatpush.msra.mxu0 %v2411_v23  ;;  %v2555_v16 = vld [vmem:[%s7771_s3 + $0x670] sm:$0xff] }
 0x2c3   : > { %3206 = vmatpush.msrb.mxu3 %v2802_v20  ;;  %v2798_v28 = vld [vmem:[%s7771_s3 + $0xe08] sm:$0xff]  ;;  %3232 = vmatpush.msra.mxu1 %v2475_v24  ;;  %v2355_v17 = vld [vmem:[%s7771_s3 + $0x30] sm:$0xff] }
 0x2c4   : > { %3252 = vmatpush.msra.mxu2 %v2539_v25  ;;  %3213 = vmatpush.msra.mxu0 %v2407_v32  ;;  %v2419_v20 = vld [vmem:[%s7771_s3 + $0x230] sm:$0xff] }
 0x2c5   : > { %3207 = vmatpush.msrb.mxu3 %v2798_v28  ;;  %3233 = vmatpush.msra.mxu1 %v2471_v33  ;;  %v2483_v23 = vld [vmem:[%s7771_s3 + $0x430] sm:$0xff] }
 0x2c6   : > { %3253 = vmatpush.msra.mxu2 %v2535_v63  ;;  %3214 = vmatpush.msra.mxu0 %v2403_v35  ;;  %v2551_v24 = vld [vmem:[%s7771_s3 + $0x650] sm:$0xff] }
 0x2c7   : > { %3272 = vmatpush.msra.mxu3 %v2603_v0  ;;  %3234 = vmatpush.msra.mxu1 %v2467_v36  ;;  %v2351_v25 = vld [vmem:[%s7771_s3 + $0x10] sm:$0xff] }
 0x2c8   : > { %3254 = vmatpush.msra.mxu2 %v2531_v26  ;;  %3215 = vmatpush.msra.mxu0 %v2399_v18  ;;  %v2415_v28 = vld [vmem:[%s7771_s3 + $0x210] sm:$0xff] }
 0x2c9   : > { %3273 = vmatpush.msra.mxu3 %v2599_v27  ;;  %3235 = vmatpush.msra.mxu1 %v2463_v39  ;;  %v2479_v32 = vld [vmem:[%s7771_s3 + $0x410] sm:$0xff] }
 0x2ca   : > { %3255 = vmatpush.msra.mxu2 %v2527_v19  ;;  %3216 = vmatpush.msra.mxu0 %v2395_v41  ;;  %v2547_v33 = vld [vmem:[%s7771_s3 + $0x630] sm:$0xff] }
 0x2cb   : > { %3274 = vmatpush.msra.mxu3 %v2595_v40  ;;  %3188 = vmatmul.f32.vlgmr.msrb.gmra.mxu2 %v6384_v21  ;;  %v2667_v63 = vld [vmem:[%s7771_s3 + $0x9f0] sm:$0xff] }
 0x2cc   : > { %3236 = vmatpush.msra.mxu1 %v2459_v34  ;;  %3256 = vmatpush.msra.mxu2 %v2523_v37  ;;  %v2731_v0 = vld [vmem:[%s7771_s3 + $0xbf0] sm:$0xff] }
 0x2cd   : > { %3275 = vmatpush.msra.mxu3 %v2591_v22  ;;  %3217 = vmatpush.msra.mxu0 %v2391_v51  ;;  %v2795_v35 = vld [vmem:[%s7771_s3 + $0xdf0] sm:$0xff] }
 0x2ce   : > { %3208 = vmatmul.f32.vlgmr.msrb.gmra.mxu3 %v6401_v31  ;;  %3237 = vmatpush.msra.mxu1 %v2455_v30  ;;  %v2543_v36 = vld [vmem:[%s7771_s3 + $0x610] sm:$0xff] }
 0x2cf   : > { %3257 = vmatpush.msra.mxu2 %v2519_v42  ;;  %3276 = vmatpush.msra.mxu3 %v2587_v56  ;;  %v2663_v26 = vld [vmem:[%s7771_s3 + $0x9d0] sm:$0xff] }
 0x2d0   : > { %3168 = vmatmul.f32.vlgmr.msrb.gmra.mxu1 %v6416_v38  ;;  %3218 = vmatpush.msra.mxu0 %v2387_v43  ;;  %v2727_v27 = vld [vmem:[%s7771_s3 + $0xbd0] sm:$0xff] }
 0x2d1   : > { %3238 = vmatpush.msra.mxu1 %v2451_v44  ;;  %3258 = vmatpush.msra.mxu2 %v2515_v45  ;;  %v2791_v18 = vld [vmem:[%s7771_s3 + $0xdd0] sm:$0xff] }
 0x2d2   : > { %3277 = vmatpush.msra.mxu3 %v2583_v46  ;;  %3219 = vmatpush.msra.mxu0 %v2383_v48  ;;  %v2859_v39 = vld [vmem:[%s7771_s3 + $0xff0] sm:$0xff] }
 0x2d3   : > { %3239 = vmatpush.msra.mxu1 %v2447_v49  ;;  %3259 = vmatpush.msra.mxu2 %v2511_v50  ;;  %v2659_v19 = vld [vmem:[%s7771_s3 + $0x9b0] sm:$0xff] }
 0x2d4   : > { %3278 = vmatpush.msra.mxu3 %v2579_v52  ;;  %3220 = vmatpush.msra.mxu0 %v2379_v53  ;;  %v2723_v40 = vld [vmem:[%s7771_s3 + $0xbb0] sm:$0xff] }
 0x2d5   : > { %3240 = vmatpush.msra.mxu1 %v2443_v54  ;;  %3260 = vmatpush.msra.mxu2 %v2507_v55  ;;  %v2787_v41 = vld [vmem:[%s7771_s3 + $0xdb0] sm:$0xff] }
 0x2d6   : > { %3279 = vmatpush.msra.mxu3 %v2575_v57  ;;  %3221 = vmatpush.msra.mxu0 %v2375_v58  ;;  %v2855_v34 = vld [vmem:[%s7771_s3 + $0xfd0] sm:$0xff] }
 0x2d7   : > { %3241 = vmatpush.msra.mxu1 %v2439_v59  ;;  %3261 = vmatpush.msra.mxu2 %v2503_v60  ;;  %v2655_v37 = vld [vmem:[%s7771_s3 + $0x990] sm:$0xff] }
 0x2d8   : > { %3280 = vmatpush.msra.mxu3 %v2571_v47  ;;  %3222 = vmatpush.msra.mxu0 %v2371_v61  ;;  %v2719_v22 = vld [vmem:[%s7771_s3 + $0xb90] sm:$0xff] }
 0x2d9   : > { %3242 = vmatpush.msra.mxu1 %v2435_v62  ;;  %3262 = vmatpush.msra.mxu2 %v2499_v2  ;;  %v2783_v51 = vld [vmem:[%s7771_s3 + $0xd90] sm:$0xff] }
 0x2da   : > { %3281 = vmatpush.msra.mxu3 %v2567_v3  ;;  %3223 = vmatpush.msra.mxu0 %v2367_v4  ;;  %v2851_v30 = vld [vmem:[%s7771_s3 + $0xfb0] sm:$0xff] }
 0x2db   : > { %3243 = vmatpush.msra.mxu1 %v2431_v5  ;;  %3263 = vmatpush.msra.mxu2 %v2495_v6  ;;  %v2651_v42 = vld [vmem:[%s7771_s3 + $0x970] sm:$0xff] }
 0x2dc   : > { %3282 = vmatpush.msra.mxu3 %v2563_v8  ;;  %3224 = vmatpush.msra.mxu0 %v2363_v9  ;;  %v2715_v56 = vld [vmem:[%s7771_s3 + $0xb70] sm:$0xff] }
 0x2dd   : > { %3244 = vmatpush.msra.mxu1 %v2427_v10  ;;  %3264 = vmatpush.msra.mxu2 %v2491_v11  ;;  %v2779_v43 = vld [vmem:[%s7771_s3 + $0xd70] sm:$0xff] }
 0x2de   : > { %3283 = vmatpush.msra.mxu3 %v2559_v12  ;;  %3225 = vmatpush.msra.mxu0 %v2359_v13  ;;  %v2847_v44 = vld [vmem:[%s7771_s3 + $0xf90] sm:$0xff] }
 0x2df   : > { %3245 = vmatpush.msra.mxu1 %v2423_v14  ;;  %3265 = vmatpush.msra.mxu2 %v2487_v15  ;;  %v2647_v45 = vld [vmem:[%s7771_s3 + $0x950] sm:$0xff] }
 0x2e0   : > { %3284 = vmatpush.msra.mxu3 %v2555_v16  ;;  %3226 = vmatpush.msra.mxu0 %v2355_v17  ;;  %v2711_v46 = vld [vmem:[%s7771_s3 + $0xb50] sm:$0xff] }
 0x2e1   : > { %3246 = vmatpush.msra.mxu1 %v2419_v20  ;;  %3266 = vmatpush.msra.mxu2 %v2483_v23  ;;  %v2775_v48 = vld [vmem:[%s7771_s3 + $0xd50] sm:$0xff] }
 0x2e2   : > { %3285 = vmatpush.msra.mxu3 %v2551_v24  ;;  %3227 = vmatpush.msra.mxu0 %v2351_v25  ;;  %v2843_v49 = vld [vmem:[%s7771_s3 + $0xf70] sm:$0xff] }
 0x2e3   : > { %3247 = vmatpush.msra.mxu1 %v2415_v28  ;;  %3267 = vmatpush.msra.mxu2 %v2479_v32  ;;  %v2643_v50 = vld [vmem:[%s7771_s3 + $0x930] sm:$0xff]  ;;  %v7098_v28 = vld.sshfl [vmem:[#allocation1] sm:$0xff pattern:$0x73625140] }
 0x2e4   : > { %3286 = vmatpush.msra.mxu3 %v2547_v33  ;;  %3292 = vmatpush.msrb.mxu0 %v2667_v63  ;;  %v2707_v52 = vld [vmem:[%s7771_s3 + $0xb30] sm:$0xff] }
 0x2e5   : > { %3312 = vmatpush.msrb.mxu1 %v2731_v0  ;;  %3332 = vmatpush.msrb.mxu2 %v2795_v35  ;;  %v2771_v53 = vld [vmem:[%s7771_s3 + $0xd30] sm:$0xff] }
 0x2e6   : > { %3287 = vmatpush.msra.mxu3 %v2543_v36  ;;  %3293 = vmatpush.msrb.mxu0 %v2663_v26  ;;  %v2839_v54 = vld [vmem:[%s7771_s3 + $0xf50] sm:$0xff] }
 0x2e7   : > { %3313 = vmatpush.msrb.mxu1 %v2727_v27  ;;  %3333 = vmatpush.msrb.mxu2 %v2791_v18  ;;  %v2639_v55 = vld [vmem:[%s7771_s3 + $0x910] sm:$0xff]  ;;  %v2412_v18 = vld [vmem:[%s7771_s3 + $0x1f8] sm:$0xff] }
 0x2e8   : > { %3352 = vmatpush.msrb.mxu3 %v2859_v39  ;;  %3294 = vmatpush.msrb.mxu0 %v2659_v19  ;;  %v2703_v57 = vld [vmem:[%s7771_s3 + $0xb10] sm:$0xff]  ;;  %v2476_v39 = vld [vmem:[%s7771_s3 + $0x3f8] sm:$0xff] }
 0x2e9   : > { %3314 = vmatpush.msrb.mxu1 %v2723_v40  ;;  %3334 = vmatpush.msrb.mxu2 %v2787_v41  ;;  %v2767_v58 = vld [vmem:[%s7771_s3 + $0xd10] sm:$0xff]  ;;  %v2540_v19 = vld [vmem:[%s7771_s3 + $0x5f8] sm:$0xff] }
 0x2ea   : > { %3353 = vmatpush.msrb.mxu3 %v2855_v34  ;;  %3295 = vmatpush.msrb.mxu0 %v2655_v37  ;;  %v2835_v59 = vld [vmem:[%s7771_s3 + $0xf30] sm:$0xff]  ;;  %v2408_v41 = vld [vmem:[%s7771_s3 + $0x1d8] sm:$0xff] }
 0x2eb   : > { %3315 = vmatpush.msrb.mxu1 %v2719_v22  ;;  %3335 = vmatpush.msrb.mxu2 %v2783_v51  ;;  %v2635_v60 = vld [vmem:[%s7771_s3 + $0x8f0] sm:$0xff]  ;;  %v2472_v34 = vld [vmem:[%s7771_s3 + $0x3d8] sm:$0xff] }
 0x2ec   : > { %3354 = vmatpush.msrb.mxu3 %v2851_v30  ;;  %3296 = vmatpush.msrb.mxu0 %v2651_v42  ;;  %v2699_v47 = vld [vmem:[%s7771_s3 + $0xaf0] sm:$0xff]  ;;  %v2536_v37 = vld [vmem:[%s7771_s3 + $0x5d8] sm:$0xff] }
 0x2ed   : > { %3316 = vmatpush.msrb.mxu1 %v2715_v56  ;;  %3336 = vmatpush.msrb.mxu2 %v2779_v43  ;;  %v2763_v61 = vld [vmem:[%s7771_s3 + $0xcf0] sm:$0xff]  ;;  %v2404_v22 = vld [vmem:[%s7771_s3 + $0x1b8] sm:$0xff] }
 0x2ee   : > { %3355 = vmatpush.msrb.mxu3 %v2847_v44  ;;  %3297 = vmatpush.msrb.mxu0 %v2647_v45  ;;  %v2831_v62 = vld [vmem:[%s7771_s3 + $0xf10] sm:$0xff]  ;;  %v2468_v51 = vld [vmem:[%s7771_s3 + $0x3b8] sm:$0xff] }
 0x2ef   : > { %3317 = vmatpush.msrb.mxu1 %v2711_v46  ;;  %3337 = vmatpush.msrb.mxu2 %v2775_v48  ;;  %v2631_v2 = vld [vmem:[%s7771_s3 + $0x8d0] sm:$0xff]  ;;  %v2600_v30 = vld [vmem:[%s7771_s3 + $0x7d8] sm:$0xff] }
 0x2f0   : > { %3356 = vmatpush.msrb.mxu3 %v2843_v49  ;;  %3298 = vmatpush.msrb.mxu0 %v2643_v50  ;;  %v2695_v3 = vld [vmem:[%s7771_s3 + $0xad0] sm:$0xff]  ;;  %v2464_v42 = vld [vmem:[%s7771_s3 + $0x398] sm:$0xff] }
 0x2f1   : > { %3318 = vmatpush.msrb.mxu1 %v2707_v52  ;;  %3338 = vmatpush.msrb.mxu2 %v2771_v53  ;;  %v2759_v4 = vld [vmem:[%s7771_s3 + $0xcd0] sm:$0xff]  ;;  %v2528_v56 = vld [vmem:[%s7771_s3 + $0x598] sm:$0xff] }
 0x2f2   : > { %3357 = vmatpush.msrb.mxu3 %v2839_v54  ;;  %3299 = vmatpush.msrb.mxu0 %v2639_v55  ;;  %v2827_v5 = vld [vmem:[%s7771_s3 + $0xef0] sm:$0xff]  ;;  %v2596_v43 = vld [vmem:[%s7771_s3 + $0x7b8] sm:$0xff] }
 0x2f3   : > { %3319 = vmatpush.msrb.mxu1 %v2703_v57  ;;  %3339 = vmatpush.msrb.mxu2 %v2767_v58  ;;  %v2627_v6 = vld [vmem:[%s7771_s3 + $0x8b0] sm:$0xff]  ;;  %v2460_v44 = vld [vmem:[%s7771_s3 + $0x378] sm:$0xff] }
 0x2f4   : > { %3358 = vmatpush.msrb.mxu3 %v2835_v59  ;;  %3300 = vmatpush.msrb.mxu0 %v2635_v60  ;;  %v2691_v8 = vld [vmem:[%s7771_s3 + $0xab0] sm:$0xff]  ;;  %v2524_v45 = vld [vmem:[%s7771_s3 + $0x578] sm:$0xff] }
 0x2f5   : > { %3320 = vmatpush.msrb.mxu1 %v2699_v47  ;;  %3340 = vmatpush.msrb.mxu2 %v2763_v61  ;;  %v2755_v9 = vld [vmem:[%s7771_s3 + $0xcb0] sm:$0xff]  ;;  %v2592_v46 = vld [vmem:[%s7771_s3 + $0x798] sm:$0xff] }
 0x2f6   : > { %3359 = vmatpush.msrb.mxu3 %v2831_v62  ;;  %3301 = vmatpush.msrb.mxu0 %v2631_v2  ;;  %v2823_v10 = vld [vmem:[%s7771_s3 + $0xed0] sm:$0xff]  ;;  %v2392_v48 = vld [vmem:[%s7771_s3 + $0x158] sm:$0xff] }
 0x2f7   : > { %3321 = vmatpush.msrb.mxu1 %v2695_v3  ;;  %3341 = vmatpush.msrb.mxu2 %v2759_v4  ;;  %v2623_v11 = vld [vmem:[%s7771_s3 + $0x890] sm:$0xff]  ;;  %v2456_v49 = vld [vmem:[%s7771_s3 + $0x358] sm:$0xff] }
 0x2f8   : > { %3360 = vmatpush.msrb.mxu3 %v2827_v5  ;;  %v2687_v12 = vld [vmem:[%s7771_s3 + $0xa90] sm:$0xff]  ;;  %3302 = vmatpush.msrb.mxu0 %v2627_v6  ;;  %v2520_v50 = vld [vmem:[%s7771_s3 + $0x558] sm:$0xff] }
 0x2f9   : > { %3322 = vmatpush.msrb.mxu1 %v2691_v8  ;;  %v2751_v13 = vld [vmem:[%s7771_s3 + $0xc90] sm:$0xff]  ;;  %3342 = vmatpush.msrb.mxu2 %v2755_v9  ;;  %v2588_v52 = vld [vmem:[%s7771_s3 + $0x778] sm:$0xff] }
 0x2fa   : > { %v2819_v14 = vld [vmem:[%s7771_s3 + $0xeb0] sm:$0xff]  ;;  %3361 = vmatpush.msrb.mxu3 %v2823_v10  ;;  %3303 = vmatpush.msrb.mxu0 %v2623_v11  ;;  %v2388_v53 = vld [vmem:[%s7771_s3 + $0x138] sm:$0xff] }
 0x2fb   : > { %v2619_v15 = vld [vmem:[%s7771_s3 + $0x870] sm:$0xff]  ;;  %3323 = vmatpush.msrb.mxu1 %v2687_v12  ;;  %3343 = vmatpush.msrb.mxu2 %v2751_v13  ;;  %v2452_v54 = vld [vmem:[%s7771_s3 + $0x338] sm:$0xff] }
 0x2fc   : > { %v2683_v16 = vld [vmem:[%s7771_s3 + $0xa70] sm:$0xff]  ;;  %3362 = vmatpush.msrb.mxu3 %v2819_v14  ;;  %3268 = vmatmul.f32.vlgmr.msra.gmra.mxu2 %v6328_v1  ;;  %v2516_v55 = vld [vmem:[%s7771_s3 + $0x538] sm:$0xff] }
 0x2fd   : > { %v2747_v17 = vld [vmem:[%s7771_s3 + $0xc70] sm:$0xff]  ;;  %3304 = vmatpush.msrb.mxu0 %v2619_v15  ;;  %3324 = vmatpush.msrb.mxu1 %v2683_v16  ;;  %v2584_v57 = vld [vmem:[%s7771_s3 + $0x758] sm:$0xff] }
 0x2fe   : > { %v2815_v20 = vld [vmem:[%s7771_s3 + $0xe90] sm:$0xff]  ;;  %3344 = vmatpush.msrb.mxu2 %v2747_v17  ;;  %3228 = vmatmul.f32.vlgmr.msra.gmra.mxu0 %v7098_v28  ;;  %v2384_v58 = vld [vmem:[%s7771_s3 + $0x118] sm:$0xff] }
 0x2ff   : > { %v2615_v23 = vld [vmem:[%s7771_s3 + $0x850] sm:$0xff]  ;;  %3363 = vmatpush.msrb.mxu3 %v2815_v20  ;;  %v2448_v59 = vld [vmem:[%s7771_s3 + $0x318] sm:$0xff] }
 0x300   : > { %v2679_v24 = vld [vmem:[%s7771_s3 + $0xa50] sm:$0xff]  ;;  %3288 = vmatmul.f32.vlgmr.msra.gmra.mxu3 %v6348_v7  ;;  %3305 = vmatpush.msrb.mxu0 %v2615_v23  ;;  %v7117_v7 = vld.sshfl [vmem:[#allocation1 + $0x8] sm:$0xff pattern:$0x73625140]  ;;  %v2512_v60 = vld [vmem:[%s7771_s3 + $0x518] sm:$0xff] }
 0x301   : > { %v2743_v25 = vld [vmem:[%s7771_s3 + $0xc50] sm:$0xff]  ;;  %3325 = vmatpush.msrb.mxu1 %v2679_v24  ;;  %v2580_v47 = vld [vmem:[%s7771_s3 + $0x738] sm:$0xff] }
 0x302   : > { %v2811_v1 = vld [vmem:[%s7771_s3 + $0xe70] sm:$0xff]  ;;  %3345 = vmatpush.msrb.mxu2 %v2743_v25  ;;  %3248 = vmatmul.f32.vlgmr.msra.gmra.mxu1 %v7117_v7  ;;  %v2380_v61 = vld [vmem:[%s7771_s3 + $0xf8] sm:$0xff] }
 0x303   : > { %v2611_v32 = vld [vmem:[%s7771_s3 + $0x830] sm:$0xff]  ;;  %3364 = vmatpush.msrb.mxu3 %v2811_v1  ;;  %v2444_v62 = vld [vmem:[%s7771_s3 + $0x2f8] sm:$0xff] }
 0x304   : > { %v2675_v33 = vld [vmem:[%s7771_s3 + $0xa30] sm:$0xff]  ;;  %3306 = vmatpush.msrb.mxu0 %v2611_v32  ;;  %v2508_v2 = vld [vmem:[%s7771_s3 + $0x4f8] sm:$0xff] }
 0x305   : > { %v2739_v63 = vld [vmem:[%s7771_s3 + $0xc30] sm:$0xff]  ;;  %3326 = vmatpush.msrb.mxu1 %v2675_v33  ;;  %v2576_v3 = vld [vmem:[%s7771_s3 + $0x718] sm:$0xff] }
 0x306   : > { %v2807_v0 = vld [vmem:[%s7771_s3 + $0xe50] sm:$0xff]  ;;  %3346 = vmatpush.msrb.mxu2 %v2739_v63  ;;  %v2376_v4 = vld [vmem:[%s7771_s3 + $0xd8] sm:$0xff] }
 0x307   : > { %v2607_v35 = vld [vmem:[%s7771_s3 + $0x810] sm:$0xff]  ;;  %3365 = vmatpush.msrb.mxu3 %v2807_v0  ;;  %v2440_v5 = vld [vmem:[%s7771_s3 + $0x2d8] sm:$0xff] }
 0x308   : > { %v2671_v36 = vld [vmem:[%s7771_s3 + $0xa10] sm:$0xff]  ;;  %3307 = vmatpush.msrb.mxu0 %v2607_v35  ;;  %v2504_v6 = vld [vmem:[%s7771_s3 + $0x4d8] sm:$0xff] }
 0x309   : > { %v2735_v26 = vld [vmem:[%s7771_s3 + $0xc10] sm:$0xff]  ;;  %3327 = vmatpush.msrb.mxu1 %v2671_v36  ;;  %3308 = vmatmul.f32.vlgmr.msrb.gmra.mxu0 %v6398_v29  ;;  %v2532_v29 = vld [vmem:[%s7771_s3 + $0x5b8] sm:$0xff] }
 0x30a   : > { %v2803_v27 = vld [vmem:[%s7771_s3 + $0xe30] sm:$0xff]  ;;  %3347 = vmatpush.msrb.mxu2 %v2735_v26  ;;  %3372 = vmatpush.msra.mxu0 %v2412_v18  ;;  %v2572_v8 = vld [vmem:[%s7771_s3 + $0x6f8] sm:$0xff] }
 0x30b   : > { %3366 = vmatpush.msrb.mxu3 %v2803_v27  ;;  %v2799_v40 = vld [vmem:[%s7771_s3 + $0xe10] sm:$0xff]  ;;  %3348 = vmatmul.f32.vlgmr.msrb.gmra.mxu2 %v6384_v21  ;;  %v2604_v21 = vld [vmem:[%s7771_s3 + $0x7f8] sm:$0xff] }
 0x30c   : > { %3392 = vmatpush.msra.mxu1 %v2476_v39  ;;  %3412 = vmatpush.msra.mxu2 %v2540_v19  ;;  %v2372_v9 = vld [vmem:[%s7771_s3 + $0xb8] sm:$0xff] }
 0x30d   : > { %3367 = vmatpush.msrb.mxu3 %v2799_v40  ;;  %3373 = vmatpush.msra.mxu0 %v2408_v41  ;;  %v2436_v10 = vld [vmem:[%s7771_s3 + $0x2b8] sm:$0xff] }
 0x30e   : > { %3368 = vmatmul.f32.vlgmr.msrb.gmra.mxu3 %v6401_v31  ;;  %3393 = vmatpush.msra.mxu1 %v2472_v34  ;;  %v2400_v31 = vld [vmem:[%s7771_s3 + $0x198] sm:$0xff] }
 0x30f   : > { %3413 = vmatpush.msra.mxu2 %v2536_v37  ;;  %3432 = vmatpush.msra.mxu3 %v2604_v21  ;;  %v2500_v11 = vld [vmem:[%s7771_s3 + $0x4b8] sm:$0xff] }
 0x310   : > { %3328 = vmatmul.f32.vlgmr.msrb.gmra.mxu1 %v6416_v38  ;;  %3374 = vmatpush.msra.mxu0 %v2404_v22  ;;  %v2396_v38 = vld [vmem:[%s7771_s3 + $0x178] sm:$0xff] }
 0x311   : > { %3394 = vmatpush.msra.mxu1 %v2468_v51  ;;  %3414 = vmatpush.msra.mxu2 %v2532_v29  ;;  %v2568_v12 = vld [vmem:[%s7771_s3 + $0x6d8] sm:$0xff] }
 0x312   : > { %3433 = vmatpush.msra.mxu3 %v2600_v30  ;;  %3375 = vmatpush.msra.mxu0 %v2400_v31  ;;  %v2368_v13 = vld [vmem:[%s7771_s3 + $0x98] sm:$0xff] }
 0x313   : > { %3395 = vmatpush.msra.mxu1 %v2464_v42  ;;  %3415 = vmatpush.msra.mxu2 %v2528_v56  ;;  %v2432_v14 = vld [vmem:[%s7771_s3 + $0x298] sm:$0xff] }
 0x314   : > { %3434 = vmatpush.msra.mxu3 %v2596_v43  ;;  %3376 = vmatpush.msra.mxu0 %v2396_v38  ;;  %v2496_v15 = vld [vmem:[%s7771_s3 + $0x498] sm:$0xff] }
 0x315   : > { %3396 = vmatpush.msra.mxu1 %v2460_v44  ;;  %3416 = vmatpush.msra.mxu2 %v2524_v45  ;;  %v2564_v16 = vld [vmem:[%s7771_s3 + $0x6b8] sm:$0xff] }
 0x316   : > { %3435 = vmatpush.msra.mxu3 %v2592_v46  ;;  %3377 = vmatpush.msra.mxu0 %v2392_v48  ;;  %v2364_v17 = vld [vmem:[%s7771_s3 + $0x78] sm:$0xff] }
 0x317   : > { %3397 = vmatpush.msra.mxu1 %v2456_v49  ;;  %3417 = vmatpush.msra.mxu2 %v2520_v50  ;;  %v2428_v20 = vld [vmem:[%s7771_s3 + $0x278] sm:$0xff] }
 0x318   : > { %3436 = vmatpush.msra.mxu3 %v2588_v52  ;;  %3378 = vmatpush.msra.mxu0 %v2388_v53  ;;  %v2492_v23 = vld [vmem:[%s7771_s3 + $0x478] sm:$0xff] }
 0x319   : > { %3398 = vmatpush.msra.mxu1 %v2452_v54  ;;  %3418 = vmatpush.msra.mxu2 %v2516_v55  ;;  %v2560_v24 = vld [vmem:[%s7771_s3 + $0x698] sm:$0xff] }
 0x31a   : > { %3437 = vmatpush.msra.mxu3 %v2584_v57  ;;  %3379 = vmatpush.msra.mxu0 %v2384_v58  ;;  %v2360_v25 = vld [vmem:[%s7771_s3 + $0x58] sm:$0xff] }
 0x31b   : > { %3399 = vmatpush.msra.mxu1 %v2448_v59  ;;  %3419 = vmatpush.msra.mxu2 %v2512_v60  ;;  %v2424_v1 = vld [vmem:[%s7771_s3 + $0x258] sm:$0xff]  ;;  %v7412_v60 = vpop.f32.mrf.mxu0 }
 0x31c   : > { %3438 = vmatpush.msra.mxu3 %v2580_v47  ;;  %3380 = vmatpush.msra.mxu0 %v2380_v61  ;;  %v2488_v32 = vld [vmem:[%s7771_s3 + $0x458] sm:$0xff] }
 0x31d   : > { %3400 = vmatpush.msra.mxu1 %v2444_v62  ;;  %3420 = vmatpush.msra.mxu2 %v2508_v2  ;;  %v2556_v33 = vld [vmem:[%s7771_s3 + $0x678] sm:$0xff] }
 0x31e   : > { %3439 = vmatpush.msra.mxu3 %v2576_v3  ;;  %3381 = vmatpush.msra.mxu0 %v2376_v4  ;;  %v2356_v63 = vld [vmem:[%s7771_s3 + $0x38] sm:$0xff] }
 0x31f   : > { %3401 = vmatpush.msra.mxu1 %v2440_v5  ;;  %3421 = vmatpush.msra.mxu2 %v2504_v6  ;;  %v2420_v0 = vld [vmem:[%s7771_s3 + $0x238] sm:$0xff] }
 0x320   : > { %3440 = vmatpush.msra.mxu3 %v2572_v8  ;;  %3382 = vmatpush.msra.mxu0 %v2372_v9  ;;  %v2484_v35 = vld [vmem:[%s7771_s3 + $0x438] sm:$0xff]  ;;  %v7438_v8 = vpop.f32.mrf.mxu1 }
 0x321   : > { %3402 = vmatpush.msra.mxu1 %v2436_v10  ;;  %3422 = vmatpush.msra.mxu2 %v2500_v11  ;;  %v2552_v36 = vld [vmem:[%s7771_s3 + $0x658] sm:$0xff] }
 0x322   : > { %3441 = vmatpush.msra.mxu3 %v2568_v12  ;;  %3383 = vmatpush.msra.mxu0 %v2368_v13  ;;  %v2352_v26 = vld [vmem:[%s7771_s3 + $0x18] sm:$0xff] }
 0x323   : > { %3403 = vmatpush.msra.mxu1 %v2432_v14  ;;  %3423 = vmatpush.msra.mxu2 %v2496_v15  ;;  %v2416_v27 = vld [vmem:[%s7771_s3 + $0x218] sm:$0xff] }
 0x324   : > { %3442 = vmatpush.msra.mxu3 %v2564_v16  ;;  %3384 = vmatpush.msra.mxu0 %v2364_v17  ;;  %v2480_v18 = vld [vmem:[%s7771_s3 + $0x418] sm:$0xff]  ;;  %v7464_v17 = vpop.f32.mrf.mxu2 }
 0x325   : > { %3404 = vmatpush.msra.mxu1 %v2428_v20  ;;  %3424 = vmatpush.msra.mxu2 %v2492_v23  ;;  %v2548_v39 = vld [vmem:[%s7771_s3 + $0x638] sm:$0xff] }
 0x326   : > { %3443 = vmatpush.msra.mxu3 %v2560_v24  ;;  %3385 = vmatpush.msra.mxu0 %v2360_v25  ;;  %v2668_v19 = vld [vmem:[%s7771_s3 + $0x9f8] sm:$0xff] }
 0x327   : > { %3405 = vmatpush.msra.mxu1 %v2424_v1  ;;  %3425 = vmatpush.msra.mxu2 %v2488_v32  ;;  %v2732_v40 = vld [vmem:[%s7771_s3 + $0xbf8] sm:$0xff]  ;;  %v7478_v1 = vpop.f32.mrf.mxu0 }
 0x328   : > { %3444 = vmatpush.msra.mxu3 %v2556_v33  ;;  %3386 = vmatpush.msra.mxu0 %v2356_v63  ;;  %v2796_v41 = vld [vmem:[%s7771_s3 + $0xdf8] sm:$0xff] }
 0x329   : > { %3406 = vmatpush.msra.mxu1 %v2420_v0  ;;  %3426 = vmatpush.msra.mxu2 %v2484_v35  ;;  %v2544_v34 = vld [vmem:[%s7771_s3 + $0x618] sm:$0xff]  ;;  %v7489_v0 = vpop.f32.mrf.mxu3 }
 0x32a   : > { %3445 = vmatpush.msra.mxu3 %v2552_v36  ;;  %3387 = vmatpush.msra.mxu0 %v2352_v26  ;;  %v2664_v37 = vld [vmem:[%s7771_s3 + $0x9d8] sm:$0xff]  ;;  %v5116_v36 = vld.sshfl [vmem:[#allocation1 + $0x10] sm:$0xff pattern:$0x73625140] }
 0x32b   : > { %3407 = vmatpush.msra.mxu1 %v2416_v27  ;;  %3427 = vmatpush.msra.mxu2 %v2480_v18  ;;  %v2728_v21 = vld [vmem:[%s7771_s3 + $0xbd8] sm:$0xff]  ;;  %v7500_v27 = vld [vmem:[%s7772_s4] sm:$0xf]  ;;  %v7502_v18 = vpop.f32.mrf.mxu1 }
 0x32c   : > { %3446 = vmatpush.msra.mxu3 %v2548_v39  ;;  %3452 = vmatpush.msrb.mxu0 %v2668_v19  ;;  %v2792_v22 = vld [vmem:[%s7771_s3 + $0xdd8] sm:$0xff] }
 0x32d   : > { %3472 = vmatpush.msrb.mxu1 %v2732_v40  ;;  %v2860_v51 = vld [vmem:[%s7771_s3 + $0xff8] sm:$0xff]  ;;  %3492 = vmatpush.msrb.mxu2 %v2796_v41 }
 0x32e   : > { %3447 = vmatpush.msra.mxu3 %v2544_v34  ;;  %v2660_v29 = vld [vmem:[%s7771_s3 + $0x9b8] sm:$0xff]  ;;  %3453 = vmatpush.msrb.mxu0 %v2664_v37 }
 0x32f   : > { %v2724_v30 = vld [vmem:[%s7771_s3 + $0xbb8] sm:$0xff]  ;;  %3473 = vmatpush.msrb.mxu1 %v2728_v21  ;;  %3493 = vmatpush.msrb.mxu2 %v2792_v22  ;;  %v2863_v21 = vperm.slane %v7500_v27, 0 }
 0x330   : > { %v2788_v31 = vld [vmem:[%s7771_s3 + $0xdb8] sm:$0xff]  ;;  %3512 = vmatpush.msrb.mxu3 %v2860_v51  ;;  %3454 = vmatpush.msrb.mxu0 %v2660_v29  ;;  %v2864_v51 = vperm.slane %v7500_v27, 1  ;;  %v7528_v29 = vpop.f32.mrf.mxu2 }
 0x331   : > { %v2856_v42 = vld [vmem:[%s7771_s3 + $0xfd8] sm:$0xff]  ;;  %3474 = vmatpush.msrb.mxu1 %v2724_v30  ;;  %3494 = vmatpush.msrb.mxu2 %v2788_v31 }
 0x332   : > { %v2656_v56 = vld [vmem:[%s7771_s3 + $0x998] sm:$0xff]  ;;  %3513 = vmatpush.msrb.mxu3 %v2856_v42  ;;  %3428 = vmatmul.f32.vlgmr.msra.gmra.mxu2 %v5116_v36  ;;  %v3069_v42 = vpop.f32.mrf.mxu0 }
 0x333   : > { %v2720_v43 = vld [vmem:[%s7771_s3 + $0xb98] sm:$0xff]  ;;  %3455 = vmatpush.msrb.mxu0 %v2656_v56  ;;  %3408 = vmatmul.f32.vlgmr.msra.gmra.mxu1 %v7117_v7 }
 0x334   : > { %v2784_v38 = vld [vmem:[%s7771_s3 + $0xd98] sm:$0xff]  ;;  %3475 = vmatpush.msrb.mxu1 %v2720_v43  ;;  %3388 = vmatmul.f32.vlgmr.msra.gmra.mxu0 %v7098_v28 }
 0x335   : > { %v2852_v44 = vld [vmem:[%s7771_s3 + $0xfb8] sm:$0xff]  ;;  %3495 = vmatpush.msrb.mxu2 %v2784_v38  ;;  %v2910_v38 = vadd.f32 %v7412_v60, %v2863_v21  ;;  %v3565_v60 = vld [vmem:[%s7773_s5 + $0xe8] sm:$0xff] }
 0x336   : > { %v2652_v45 = vld [vmem:[%s7771_s3 + $0x978] sm:$0xff]  ;;  %3514 = vmatpush.msrb.mxu3 %v2852_v44 }
 0x337   : > { %v2716_v46 = vld [vmem:[%s7771_s3 + $0xb78] sm:$0xff]  ;;  %3456 = vmatpush.msrb.mxu0 %v2652_v45 }
 0x338   : > { %v2780_v48 = vld [vmem:[%s7771_s3 + $0xd78] sm:$0xff]  ;;  %3476 = vmatpush.msrb.mxu1 %v2716_v46  ;;  %v3070_v46 = vadd.f32 %v3069_v42, %v2864_v51 }
 0x339   : > { %v2848_v49 = vld [vmem:[%s7771_s3 + $0xf98] sm:$0xff]  ;;  %3496 = vmatpush.msrb.mxu2 %v2780_v48  ;;  %v7553_v48 = vpop.f32.mrf.mxu3 }
 0x33a   : > { %v2648_v50 = vld [vmem:[%s7771_s3 + $0x958] sm:$0xff]  ;;  %3515 = vmatpush.msrb.mxu3 %v2848_v49  ;;  %v3089_v49 = vpop.f32.mrf.mxu1 }
 0x33b   : > { %v2712_v52 = vld [vmem:[%s7771_s3 + $0xb58] sm:$0xff]  ;;  %3457 = vmatpush.msrb.mxu0 %v2648_v50  ;;  %v5118_v50 = vld.sshfl [vmem:[#allocation1 + $0x30] sm:$0xff pattern:$0x73625140] }
 0x33c   : > { %v2776_v53 = vld [vmem:[%s7771_s3 + $0xd58] sm:$0xff]  ;;  %3477 = vmatpush.msrb.mxu1 %v2712_v52  ;;  %v3550_v52 = vld [vmem:[%s7773_s5 + $0x70] sm:$0xff] }
 0x33d   : > { %v2844_v54 = vld [vmem:[%s7771_s3 + $0xf78] sm:$0xff]  ;;  %3497 = vmatpush.msrb.mxu2 %v2776_v53  ;;  %v3566_v53 = vld [vmem:[%s7773_s5 + $0xf0] sm:$0xff] }
 0x33e   : > { %v2644_v55 = vld [vmem:[%s7771_s3 + $0x938] sm:$0xff]  ;;  %3516 = vmatpush.msrb.mxu3 %v2844_v54 }
 0x33f   : > { %v2708_v57 = vld [vmem:[%s7771_s3 + $0xb38] sm:$0xff]  ;;  %3458 = vmatpush.msrb.mxu0 %v2644_v55  ;;  %v2930_v55 = vadd.f32 %v7438_v8, %v2910_v38  ;;  %v3574_v38 = vld [vmem:[%s7773_s5 + $0x130] sm:$0xff] }
 0x340   : > { %v2772_v58 = vld [vmem:[%s7771_s3 + $0xd38] sm:$0xff]  ;;  %3478 = vmatpush.msrb.mxu1 %v2708_v57  ;;  %v5119_v57 = vld.sshfl [vmem:[#allocation1 + $0x20] sm:$0xff pattern:$0x73625140] }
 0x341   : > { %v2840_v59 = vld [vmem:[%s7771_s3 + $0xf58] sm:$0xff]  ;;  %3498 = vmatpush.msrb.mxu2 %v2772_v58 }
 0x342   : > { %v2640_v47 = vld [vmem:[%s7771_s3 + $0x918] sm:$0xff]  ;;  %3517 = vmatpush.msrb.mxu3 %v2840_v59  ;;  %v3549_v59 = vld [vmem:[%s7773_s5 + $0x68] sm:$0xff] }
 0x343   : > { %v2704_v61 = vld [vmem:[%s7771_s3 + $0xb18] sm:$0xff]  ;;  %3459 = vmatpush.msrb.mxu0 %v2640_v47  ;;  %v3090_v47 = vadd.f32 %v3089_v49, %v3070_v46  ;;  %v3537_v46 = vld [vmem:[%s7773_s5 + $0x8] sm:$0xff] }
 0x344   : > { %v2768_v62 = vld [vmem:[%s7771_s3 + $0xd18] sm:$0xff]  ;;  %3479 = vmatpush.msrb.mxu1 %v2704_v61  ;;  %v3109_v61 = vpop.f32.mrf.mxu2  ;;  %v3553_v49 = vld [vmem:[%s7773_s5 + $0x88] sm:$0xff] }
 0x345   : > { %v2836_v2 = vld [vmem:[%s7771_s3 + $0xf38] sm:$0xff]  ;;  %3499 = vmatpush.msrb.mxu2 %v2768_v62  ;;  %v3582_v62 = vld [vmem:[%s7773_s5 + $0x170] sm:$0xff]  ;;  %v3110_v8 = vadd.f32 %v3109_v61, %v3090_v47  ;;  %v3597_v61 = vld [vmem:[%s7773_s5 + $0x1e8] sm:$0xff] }
 0x346   : > { %v2636_v3 = vld [vmem:[%s7771_s3 + $0x8f8] sm:$0xff]  ;;  %3518 = vmatpush.msrb.mxu3 %v2836_v2  ;;  %v5121_v2 = vld.sshfl [vmem:[#allocation1 + $0x28] sm:$0xff pattern:$0x73625140]  ;;  %v3598_v47 = vld [vmem:[%s7773_s5 + $0x1f0] sm:$0xf] }
 0x347   : > { %v2700_v4 = vld [vmem:[%s7771_s3 + $0xaf8] sm:$0xff]  ;;  %3460 = vmatpush.msrb.mxu0 %v2636_v3  ;;  %v3548_v3 = vld [vmem:[%s7773_s5 + $0x60] sm:$0xff] }
 0x348   : > { %v2764_v5 = vld [vmem:[%s7771_s3 + $0xcf8] sm:$0xff]  ;;  %3480 = vmatpush.msrb.mxu1 %v2700_v4  ;;  %v3564_v4 = vld [vmem:[%s7773_s5 + $0xe0] sm:$0xff] }
 0x349   : > { %v2832_v6 = vld [vmem:[%s7771_s3 + $0xf18] sm:$0xff]  ;;  %3500 = vmatpush.msrb.mxu2 %v2764_v5  ;;  %v3581_v5 = vld [vmem:[%s7773_s5 + $0x168] sm:$0xff] }
 0x34a   : > { %v2632_v9 = vld [vmem:[%s7771_s3 + $0x8d8] sm:$0xff]  ;;  %3519 = vmatpush.msrb.mxu3 %v2832_v6  ;;  %v2950_v6 = vadd.f32 %v7464_v17, %v2930_v55  ;;  %v3572_v55 = vld [vmem:[%s7773_s5 + $0x120] sm:$0xff] }
 0x34b   : > { %v2696_v10 = vld [vmem:[%s7771_s3 + $0xad8] sm:$0xff]  ;;  %3461 = vmatpush.msrb.mxu0 %v2632_v9 }
 0x34c   : > { %v2760_v11 = vld [vmem:[%s7771_s3 + $0xcd8] sm:$0xff]  ;;  %3481 = vmatpush.msrb.mxu1 %v2696_v10 }
 0x34d   : > { %v2828_v12 = vld [vmem:[%s7771_s3 + $0xef8] sm:$0xff]  ;;  %3501 = vmatpush.msrb.mxu2 %v2760_v11  ;;  %v3129_v11 = vpop.f32.mrf.mxu3 }
 0x34e   : > { %v2628_v13 = vld [vmem:[%s7771_s3 + $0x8b8] sm:$0xff]  ;;  %3520 = vmatpush.msrb.mxu3 %v2828_v12  ;;  %v3580_v12 = vld [vmem:[%s7773_s5 + $0x160] sm:$0xff]  ;;  %v3130_v17 = vadd.f32 %v3129_v11, %v3110_v8  ;;  %v3189_v21 = vpop.f32.mrf.mxu2 }
 0x34f   : > { %v2692_v14 = vld [vmem:[%s7771_s3 + $0xab8] sm:$0xff]  ;;  %3462 = vmatpush.msrb.mxu0 %v2628_v13  ;;  %v3546_v13 = vld [vmem:[%s7773_s5 + $0x50] sm:$0xff] }
 0x350   : > { %v2756_v15 = vld [vmem:[%s7771_s3 + $0xcb8] sm:$0xff]  ;;  %3482 = vmatpush.msrb.mxu1 %v2692_v14  ;;  %v3562_v14 = vld [vmem:[%s7773_s5 + $0xd0] sm:$0xff] }
 0x351   : > { %v2824_v16 = vld [vmem:[%s7771_s3 + $0xed8] sm:$0xff]  ;;  %3502 = vmatpush.msrb.mxu2 %v2756_v15 }
 0x352   : > { %v2624_v20 = vld [vmem:[%s7771_s3 + $0x898] sm:$0xff]  ;;  %3521 = vmatpush.msrb.mxu3 %v2824_v16  ;;  %v2970_v16 = vadd.f32 %v7489_v0, %v2950_v6 }
 0x353   : > { %v2688_v23 = vld [vmem:[%s7771_s3 + $0xa98] sm:$0xff]  ;;  %3463 = vmatpush.msrb.mxu0 %v2624_v20  ;;  %v3545_v20 = vld [vmem:[%s7773_s5 + $0x48] sm:$0xff] }
 0x354   : > { %v2752_v24 = vld [vmem:[%s7771_s3 + $0xc98] sm:$0xff]  ;;  %3483 = vmatpush.msrb.mxu1 %v2688_v23  ;;  %v3561_v23 = vld [vmem:[%s7773_s5 + $0xc8] sm:$0xff] }
 0x355   : > { %v2820_v25 = vld [vmem:[%s7771_s3 + $0xeb8] sm:$0xff]  ;;  %3503 = vmatpush.msrb.mxu2 %v2752_v24  ;;  %v3149_v24 = vpop.f32.mrf.mxu0 }
 0x356   : > { %v2620_v32 = vld [vmem:[%s7771_s3 + $0x878] sm:$0xff]  ;;  %3522 = vmatpush.msrb.mxu3 %v2820_v25  ;;  %v3578_v25 = vld [vmem:[%s7773_s5 + $0x150] sm:$0xff]  ;;  %v3150_v0 = vadd.f32 %v3149_v24, %v3130_v17 }
 0x357   : > { %v2684_v33 = vld [vmem:[%s7771_s3 + $0xa78] sm:$0xff]  ;;  %3464 = vmatpush.msrb.mxu0 %v2620_v32  ;;  %v3544_v32 = vld [vmem:[%s7773_s5 + $0x40] sm:$0xff] }
 0x358   : > { %v2748_v63 = vld [vmem:[%s7771_s3 + $0xc78] sm:$0xff]  ;;  %3484 = vmatpush.msrb.mxu1 %v2684_v33  ;;  %v3560_v33 = vld [vmem:[%s7773_s5 + $0xc0] sm:$0xff] }
 0x359   : > { %v2816_v35 = vld [vmem:[%s7771_s3 + $0xe98] sm:$0xff]  ;;  %3504 = vmatpush.msrb.mxu2 %v2748_v63  ;;  %v2990_v63 = vadd.f32 %v7478_v1, %v2970_v16  ;;  %v3558_v1 = vld [vmem:[%s7773_s5 + $0xb0] sm:$0xff] }
 0x35a   : > { %v2616_v26 = vld [vmem:[%s7771_s3 + $0x858] sm:$0xff]  ;;  %3523 = vmatpush.msrb.mxu3 %v2816_v35 }
 0x35b   : > { %v2680_v39 = vld [vmem:[%s7771_s3 + $0xa58] sm:$0xff]  ;;  %3465 = vmatpush.msrb.mxu0 %v2616_v26  ;;  %v3169_v26 = vpop.f32.mrf.mxu1 }
 0x35c   : > { %v2744_v19 = vld [vmem:[%s7771_s3 + $0xc58] sm:$0xff]  ;;  %3485 = vmatpush.msrb.mxu1 %v2680_v39  ;;  %v3542_v39 = vld [vmem:[%s7773_s5 + $0x30] sm:$0xff] }
 0x35d   : > { %v2812_v40 = vld [vmem:[%s7771_s3 + $0xe78] sm:$0xff]  ;;  %3505 = vmatpush.msrb.mxu2 %v2744_v19  ;;  %v3010_v19 = vadd.f32 %v7502_v18, %v2990_v63  ;;  %v3540_v18 = vld [vmem:[%s7773_s5 + $0x20] sm:$0xff] }
 0x35e   : > { %v5117_v41 = vld.sshfl [vmem:[#allocation1 + $0x18] sm:$0xff pattern:$0x73625140]  ;;  %3524 = vmatpush.msrb.mxu3 %v2812_v40  ;;  %v3170_v40 = vadd.f32 %v3169_v26, %v3150_v0  ;;  %v3592_v63 = vld [vmem:[%s7773_s5 + $0x1c0] sm:$0xff] }
 0x35f   : > { %3448 = vmatmul.f32.vlgmr.msra.gmra.mxu3 %v5117_v41  ;;  %v2612_v34 = vld [vmem:[%s7771_s3 + $0x838] sm:$0xff]  ;;  %v3541_v41 = vld [vmem:[%s7773_s5 + $0x28] sm:$0xff]  ;;  %v3030_v51 = vadd.f32 %v7528_v29, %v3010_v19  ;;  %v3538_v29 = vld [vmem:[%s7773_s5 + $0x10] sm:$0xff] }
 0x360   : > { %v2676_v37 = vld [vmem:[%s7771_s3 + $0xa38] sm:$0xff]  ;;  %3466 = vmatpush.msrb.mxu0 %v2612_v34  ;;  %v3557_v34 = vld [vmem:[%s7773_s5 + $0xa8] sm:$0xff]  ;;  %v3588_v26 = vld [vmem:[%s7773_s5 + $0x1a0] sm:$0xff] }
 0x361   : > { %v2740_v28 = vld [vmem:[%s7771_s3 + $0xc38] sm:$0xff]  ;;  %3486 = vmatpush.msrb.mxu1 %v2676_v37  ;;  %v3577_v37 = vld [vmem:[%s7773_s5 + $0x148] sm:$0xff] }
 0x362   : > { %v2808_v22 = vld [vmem:[%s7771_s3 + $0xe58] sm:$0xff]  ;;  %3506 = vmatpush.msrb.mxu2 %v2740_v28  ;;  %v3556_v28 = vld [vmem:[%s7773_s5 + $0xa0] sm:$0xff]  ;;  %v3585_v19 = vld [vmem:[%s7773_s5 + $0x188] sm:$0xff] }
 0x363   : > { %v2608_v30 = vld [vmem:[%s7771_s3 + $0x818] sm:$0xff]  ;;  %3525 = vmatpush.msrb.mxu3 %v2808_v22  ;;  %v3576_v22 = vld [vmem:[%s7773_s5 + $0x140] sm:$0xff] }
 0x364   : > { %v2672_v31 = vld [vmem:[%s7771_s3 + $0xa18] sm:$0xff]  ;;  %3467 = vmatpush.msrb.mxu0 %v2608_v30  ;;  %v3190_v30 = vadd.f32 %v3189_v21, %v3170_v40  ;;  %v3584_v40 = vld [vmem:[%s7773_s5 + $0x180] sm:$0xff] }
 0x365   : > { %v2736_v56 = vld [vmem:[%s7771_s3 + $0xc18] sm:$0xff]  ;;  %3487 = vmatpush.msrb.mxu1 %v2672_v31  ;;  %3468 = vmatmul.f32.vlgmr.msrb.gmra.mxu0 %v5119_v57 }
 0x366   : > { %v2804_v43 = vld [vmem:[%s7771_s3 + $0xe38] sm:$0xff]  ;;  %3507 = vmatpush.msrb.mxu2 %v2736_v56  ;;  %3488 = vmatmul.f32.vlgmr.msrb.gmra.mxu1 %v5121_v2  ;;  %v3209_v56 = vpop.f32.mrf.mxu3 }
 0x367   : > { %v3551_v7 = vld [vmem:[%s7773_s5 + $0x78] sm:$0xff]  ;;  %3526 = vmatpush.msrb.mxu3 %v2804_v43  ;;  %3508 = vmatmul.f32.vlgmr.msrb.gmra.mxu2 %v5118_v50  ;;  %v3536_v50 = vld [vmem:[%s7773_s5] sm:$0xff] }
 0x368   : > { %v3567_v44 = vld [vmem:[%s7773_s5 + $0xf8] sm:$0xff]  ;;  %3610 = vmatpush.msra.mxu0 %v3551_v7  ;;  %v3554_v7 = vld [vmem:[%s7773_s5 + $0x90] sm:$0xff] }
 0x369   : > { %v2800_v45 = vld [vmem:[%s7771_s3 + $0xe18] sm:$0xff]  ;;  %3630 = vmatpush.msra.mxu1 %v3567_v44  ;;  %v3050_v44 = vadd.f32 %v7553_v48, %v3030_v51  ;;  %v3552_v48 = vld [vmem:[%s7773_s5 + $0x80] sm:$0xff] }
 0x36a   : > { %3527 = vmatpush.msrb.mxu3 %v2800_v45  ;;  %v3583_v54 = vld [vmem:[%s7773_s5 + $0x178] sm:$0xff]  ;;  %3611 = vmatpush.msra.mxu0 %v3550_v52  ;;  %v3210_v45 = vadd.f32 %v3209_v56, %v3190_v30  ;;  %v3573_v52 = vld [vmem:[%s7773_s5 + $0x128] sm:$0xff] }
 0x36b   : > { %v5120_v58 = vld.sshfl [vmem:[#allocation1 + $0x38] sm:$0xff pattern:$0x73625140]  ;;  %3631 = vmatpush.msra.mxu1 %v3566_v53  ;;  %3650 = vmatpush.msra.mxu2 %v3583_v54  ;;  %v3532_v53 = vmax.f32 %v3050_v44, 0.0 }
 0x36c   : > { %3528 = vmatmul.f32.vlgmr.msrb.gmra.mxu3 %v5120_v58  ;;  %3612 = vmatpush.msra.mxu0 %v3549_v59  ;;  %v3547_v9 = vld [vmem:[%s7773_s5 + $0x58] sm:$0xff]  ;;  %v3533_v54 = vmax.f32 %v3210_v45, 0.0  ;;  %v3570_v58 = vld [vmem:[%s7773_s5 + $0x110] sm:$0xff]  ;;  %v3569_v59 = vld [vmem:[%s7773_s5 + $0x108] sm:$0xff] }
 0x36d   : > { %3632 = vmatpush.msra.mxu1 %v3565_v60  ;;  %v3563_v10 = vld [vmem:[%s7773_s5 + $0xd8] sm:$0xff]  ;;  %3651 = vmatpush.msra.mxu2 %v3582_v62  ;;  %v3568_v60 = vld [vmem:[%s7773_s5 + $0x100] sm:$0xff] }
 0x36e   : > { %3613 = vmatpush.msra.mxu0 %v3548_v3  ;;  %v3579_v15 = vld [vmem:[%s7773_s5 + $0x158] sm:$0xff]  ;;  %4800 = vmatpush.msk.msra.mxu3 %vm2304_vm2, %v3598_v47  ;;  %v3596_v62 = vld [vmem:[%s7773_s5 + $0x1e0] sm:$0xff]  ;;  %v3594_v3 = vld [vmem:[%s7773_s5 + $0x1d0] sm:$0xff] }
 0x36f   : > { %3633 = vmatpush.msra.mxu1 %v3564_v4  ;;  %3652 = vmatpush.msra.mxu2 %v3581_v5  ;;  %v3543_v35 = vld [vmem:[%s7773_s5 + $0x38] sm:$0xff]  ;;  %v2865_v4 = vperm.slane %v7500_v27, 2 }
 0x370   : > { %3614 = vmatpush.msra.mxu0 %v3547_v9  ;;  %v3559_v36 = vld [vmem:[%s7773_s5 + $0xb8] sm:$0xff]  ;;  %3672 = vmatpush.msra.mxu3 %v3597_v61 }
 0x371   : > { %3634 = vmatpush.msra.mxu1 %v3563_v10  ;;  %3653 = vmatpush.msra.mxu2 %v3580_v12  ;;  %v3539_v31 = vld [vmem:[%s7773_s5 + $0x18] sm:$0xff] }
 0x372   : > { %3615 = vmatpush.msra.mxu0 %v3546_v13  ;;  %v3555_v42 = vld [vmem:[%s7773_s5 + $0x98] sm:$0xff]  ;;  %3673 = vmatpush.msra.mxu3 %v3596_v62 }
 0x373   : > { %3635 = vmatpush.msra.mxu1 %v3562_v14  ;;  %3654 = vmatpush.msra.mxu2 %v3579_v15  ;;  %v3575_v43 = vld [vmem:[%s7773_s5 + $0x138] sm:$0xff] }
 0x374   : > { %3616 = vmatpush.msra.mxu0 %v3545_v20  ;;  %v3571_v57 = vld [vmem:[%s7773_s5 + $0x118] sm:$0xff] }
 0x375   : > { %3636 = vmatpush.msra.mxu1 %v3561_v23  ;;  %3655 = vmatpush.msra.mxu2 %v3578_v25  ;;  %v3595_v2 = vld [vmem:[%s7773_s5 + $0x1d8] sm:$0xff] }
 0x376   : > { %3617 = vmatpush.msra.mxu0 %v3544_v32  ;;  %3674 = vmatpush.msra.mxu3 %v3595_v2  ;;  %v3591_v0 = vld [vmem:[%s7773_s5 + $0x1b8] sm:$0xff] }
 0x377   : > { %3637 = vmatpush.msra.mxu1 %v3560_v33  ;;  %3656 = vmatpush.msra.mxu2 %v3577_v37  ;;  %v3593_v33 = vld [vmem:[%s7773_s5 + $0x1c8] sm:$0xff] }
 0x378   : > { %3618 = vmatpush.msra.mxu0 %v3543_v35  ;;  %3675 = vmatpush.msra.mxu3 %v3594_v3  ;;  %v3590_v35 = vld [vmem:[%s7773_s5 + $0x1b0] sm:$0xff] }
 0x379   : > { %3638 = vmatpush.msra.mxu1 %v3559_v36  ;;  %3657 = vmatpush.msra.mxu2 %v3576_v22  ;;  %v3589_v36 = vld [vmem:[%s7773_s5 + $0x1a8] sm:$0xff] }
 0x37a   : > { %3619 = vmatpush.msra.mxu0 %v3542_v39  ;;  %3676 = vmatpush.msra.mxu3 %v3593_v33  ;;  %v3587_v39 = vld [vmem:[%s7773_s5 + $0x198] sm:$0xff] }
 0x37b   : > { %3639 = vmatpush.msra.mxu1 %v3558_v1  ;;  %3658 = vmatpush.msra.mxu2 %v3575_v43  ;;  %v3229_v5 = vpop.f32.mrf.mxu0  ;;  %v3586_v1 = vld [vmem:[%s7773_s5 + $0x190] sm:$0xff] }
 0x37c   : > { %3620 = vmatpush.msra.mxu0 %v3541_v41  ;;  %v3230_v6 = vadd.f32 %v3229_v5, %v2865_v4  ;;  %3677 = vmatpush.msra.mxu3 %v3592_v63  ;;  %v2866_v41 = vperm.slane %v7500_v27, 3  ;;  %v5113_v27 = vld [vmem:[%s7774_s6] ss:$0 sm:$0xff] }
 0x37d   : > { %3640 = vmatpush.msra.mxu1 %v3557_v34  ;;  %3659 = vmatpush.msra.mxu2 %v3574_v38 }
 0x37e   : > { %3621 = vmatpush.msra.mxu0 %v3540_v18  ;;  %3678 = vmatpush.msra.mxu3 %v3591_v0 }
 0x37f   : > { %3641 = vmatpush.msra.mxu1 %v3556_v28  ;;  %3660 = vmatpush.msra.mxu2 %v3573_v52  ;;  %v3249_v8 = vpop.f32.mrf.mxu1  ;;  %v3269_v10 = vpop.f32.mrf.mxu2 }
 0x380   : > { %3622 = vmatpush.msra.mxu0 %v3539_v31  ;;  %v3250_v9 = vadd.f32 %v3249_v8, %v3230_v6  ;;  %3679 = vmatpush.msra.mxu3 %v3590_v35 }
 0x381   : > { %3642 = vmatpush.msra.mxu1 %v3555_v42  ;;  %3661 = vmatpush.msra.mxu2 %v3572_v55 }
 0x382   : > { %3623 = vmatpush.msra.mxu0 %v3538_v29  ;;  %v3270_v11 = vadd.f32 %v3269_v10, %v3250_v9  ;;  %3680 = vmatpush.msra.mxu3 %v3589_v36 }
 0x383   : > { %3643 = vmatpush.msra.mxu1 %v3554_v7  ;;  %3662 = vmatpush.msra.mxu2 %v3571_v57  ;;  %v3289_v12 = vpop.f32.mrf.mxu3 }
 0x384   : > { %3624 = vmatpush.msra.mxu0 %v3537_v46  ;;  %v3290_v13 = vadd.f32 %v3289_v12, %v3270_v11  ;;  %3681 = vmatpush.msra.mxu3 %v3588_v26 }
 0x385   : > { %3644 = vmatpush.msra.mxu1 %v3553_v49  ;;  %3663 = vmatpush.msra.mxu2 %v3570_v58 }
 0x386   : > { %3625 = vmatpush.msra.mxu0 %v3536_v50  ;;  %v3309_v14 = vpop.f32.mrf.mxu0  ;;  %3682 = vmatpush.msra.mxu3 %v3587_v39 }
 0x387   : > { %3645 = vmatpush.msra.mxu1 %v3552_v48  ;;  %3626 = vmatmul.f32.vlgmr.msra.gmra.mxu0 %v3532_v53  ;;  %v3310_v15 = vadd.f32 %v3309_v14, %v3290_v13 }
 0x388   : > { %3646 = vmatmul.f32.vlgmr.msra.gmra.mxu1 %v3533_v54  ;;  %3664 = vmatpush.msra.mxu2 %v3569_v59 }
 0x389   : > { %3683 = vmatpush.msra.mxu3 %v3586_v1 }
 0x38a   : > { %3665 = vmatpush.msra.mxu2 %v3568_v60 }
 0x38b   : > { %3684 = vmatpush.msra.mxu3 %v3585_v19 }
 0x38d   : > { %v3329_v16 = vpop.f32.mrf.mxu1  ;;  %3685 = vmatpush.msra.mxu3 %v3584_v40 }
 0x38e   : > { %v3330_v17 = vadd.f32 %v3329_v16, %v3310_v15  ;;  %v3349_v20 = vpop.f32.mrf.mxu2 }
 0x390   : > { %v3350_v23 = vadd.f32 %v3349_v20, %v3330_v17 }
 0x391   : > { %v3369_v24 = vpop.f32.mrf.mxu3 }
 0x392   : > { %v3370_v25 = vadd.f32 %v3369_v24, %v3350_v23 }
 0x394   : > { %v3534_v32 = vmax.f32 %v3370_v25, 0.0 }
 0x396   : > { %3666 = vmatmul.f32.vlgmr.msra.gmra.mxu2 %v3534_v32 }
 0x3b0   : > { %v3409_v21 = vpop.f32.mrf.mxu1 }
 0x3b1   : > { %v3389_v34 = vpop.f32.mrf.mxu0 }
 0x3b2   : > { %v3390_v37 = vadd.f32 %v3389_v34, %v2866_v41 }
 0x3b4   : > { %v3410_v18 = vadd.f32 %v3409_v21, %v3390_v37 }
 0x3b5   : > { %v3429_v28 = vpop.f32.mrf.mxu2 }
 0x3b6   : > { %v3430_v22 = vadd.f32 %v3429_v28, %v3410_v18 }
 0x3e2   : > { %v3449_v51 = vpop.f32.mrf.mxu3  ;;  %v3469_v31 = vpop.f32.mrf.mxu0 }
 0x3e3   : > { %v3450_v30 = vadd.f32 %v3449_v51, %v3430_v22  ;;  %v3489_v56 = vpop.f32.mrf.mxu1 }
 0x3e5   : > { %v3470_v42 = vadd.f32 %v3469_v31, %v3450_v30 }
 0x3e7   : > { %v3490_v43 = vadd.f32 %v3489_v56, %v3470_v42 }
 0x3ea   : > { %v3509_v29 = vpop.f32.mrf.mxu2 }
 0x3eb   : > { %v3510_v7 = vadd.f32 %v3509_v29, %v3490_v43 }
 0x3ef   : > { %v3529_v38 = vpop.f32.mrf.mxu3 }
 0x3f0   : > { %v3530_v44 = vadd.f32 %v3529_v38, %v3510_v7 }
 0x3f2   : > { %v3535_v45 = vmax.f32 %v3530_v44, 0.0 }
 0x3f4   : > { %4801 = vmatmul.msk.f32.vlgmr.msra.gmra.mxu3 %vm3603_vm3, %v3535_v45 }
 0x404   : > { %v3627_v46 = vpop.f32.mrf.mxu0 }
 0x405   : > { %v3628_v49 = vadd.f32 %v5113_v27, %v3627_v46  ;;  %v3647_v50 = vpop.f32.mrf.mxu1 }
 0x407   : > { %v3648_v52 = vadd.f32 %v3647_v50, %v3628_v49 }
 0x419   : > { %v3667_v48 = vpop.f32.mrf.mxu2 }
 0x41a   : > { %v3668_v53 = vadd.f32 %v3667_v48, %v3648_v52 }
 0x477   : > { %v3687_v54 = vpop.f32.mrf.mxu3 }
 0x478   : > { %v3688_v55 = vadd.f32 %v3687_v54, %v3668_v53 }
 0x47a   : > { %3691 = vst.msk [vmem:[#allocation6] sm:$0x3] %vm3690_vm4, %v3688_v55 }
 0x47b PF: > { %p5075_p9 = scmp.eq.s32.totalorder %s5283_s28, 10  ;;  %s5223_s13 = smov [#allocation6]  }
 0x47c   : > { %s3698_s10 = sshll.u32 %s5223_s13, 4  ;;  %s3700_s15 = sshll.u32 %s7775_s7, 4  ;;  %s3699_s10 = int_to_ptr.vmem [resolvable:$true] %s3698_s10  ;;  %s3701_s15 = int_to_ptr.hbm [resolvable:$true] %s3700_s15 }
 0x47d   : > { %5067 = dma.vmem_to_hbm [thread:$0]  (%p5075_p9), %s3699_s10, 32, %s3701_s15, [#allocation5]  }
 0x47e   : > { %5201 = dma.done.wait (%p5075_p9), [#allocation5], 32  }
 0x47f   : > { %5203 = vsyncadd (%p5075_p9), [#allocation5], 4294967264 }
 0x480 PF: > { %p18_p10 = scmp.ge.s32.totalorder %s5286_s29, 13   ;;  %s7779_s24 = smov %s5210_s25 }
 0x481   : > { %s7780_s25 = smov %s5214_s26  ;;  %s7781_s26 = smov %s5296_s9 }
 0x482   : > { %s7782_s27 = smov %s5286_s29  ;;  %20 = sbr.rel (!%p18_p10) target bundleno = 4 (0x4), region = 97 }
 0x487   :  { %3714 = vsyncpa [#allocation4], 1 }
 0x488   :  { %3716 = vsyncpa [#allocation4 + $0x1], 1 }
 0x489   :  { %3717 = vsyncpa [#allocation5], 1 }
 0x48a   :  { %3719 = vsyncpa [#allocation5 + $0x1], 1 }

</bundles_post_ra>
